<compile_context>
chip_gen: v7x
topology: tpu7x:2x2x1
jax: 0.10.0
libtpu: 0.0.40
codegen_flags: <defaults>
</compile_context>

<pallas_src>
import functools

import jax
import jax.numpy as jnp
from jax.experimental import pallas as pl
from jax.experimental.pallas import tpu as pltpu

# (in_features, out_features) of each Linear layer in the PyTorch module.
_LAYER_DIMS = [(13, 1024), (1024, 2048), (2048, 1024), (1024, 128), (128, 4)]
_K0_PAD = 16      # first-layer K padded 13 -> 16 (sublane friendly)
_N5_PAD = 128     # last-layer N padded 4 -> 128 for a lane-full final matmul
_NOUT = 4         # real output width (stored directly, no padded writeback)


def _relu6(x):
    return jnp.clip(x, 0.0, 6.0)


def _round_up(v, m):
    return ((v + m - 1) // m) * m


@functools.lru_cache(maxsize=None)
def _default_tuning():
    """(block_b, vmem_limit_bytes) picked per TPU generation."""
    try:
        vmem_cap = int(pltpu.get_tpu_info().vmem_capacity_bytes)
    except Exception:
        vmem_cap = 64 << 20  # conservative: assume v7x-like 64 MiB per core
    if vmem_cap >= (100 << 20):     # v5e / v6e: 128 MiB VMEM
        return 512, 96 << 20
    return 256, 48 << 20            # v7x: 64 MiB physical VMEM per TC


# --------------------------------------------------------------------------
# Kernel: the whole 5-layer MLP fused.  Weights bf16 (in,out), biases f32
# (1,out), x tile f32 (tb, 16), output tile f32 (tb, 4).
# --------------------------------------------------------------------------
def _mlp_kernel(x_ref,
                w1_ref, b1_ref,
                w2_ref, b2_ref,
                w3_ref, b3_ref,
                w4_ref, b4_ref,
                w5_ref, b5_ref,
                o_ref):
    f32 = jnp.float32
    bf16 = jnp.bfloat16

    x = x_ref[...].astype(bf16)
    h = jnp.dot(x, w1_ref[...], preferred_element_type=f32)
    h = _relu6(h + b1_ref[...]).astype(bf16)

    h = jnp.dot(h, w2_ref[...], preferred_element_type=f32)
    h = _relu6(h + b2_ref[...]).astype(bf16)

    h = jnp.dot(h, w3_ref[...], preferred_element_type=f32)
    h = _relu6(h + b3_ref[...]).astype(bf16)

    h = jnp.dot(h, w4_ref[...], preferred_element_type=f32)
    h = _relu6(h + b4_ref[...]).astype(bf16)

    h = jnp.dot(h, w5_ref[...], preferred_element_type=f32)  # (tb, 128) padded
    h = h + b5_ref[...]
    # Store only the real 4 output columns (masked store; negligible vs matmul).
    o_ref[...] = h[:, :_NOUT].astype(o_ref.dtype)


# --------------------------------------------------------------------------
# One-time parameter preparation (outside the per-call path).
# Input convention here: W has shape (in, out), b has shape (out,) or (1, out).
# When importing real PyTorch weights (W: (out, in), b: (out,)), pass W.T.
# --------------------------------------------------------------------------
def prepare_params(params, *, compute_dtype=jnp.bfloat16):
    (w1, b1), (w2, b2), (w3, b3), (w4, b4), (w5, b5) = params

    w1 = jnp.asarray(w1, jnp.float32)
    w5 = jnp.asarray(w5, jnp.float32)
    b5 = jnp.asarray(b5, jnp.float32).reshape(1, -1)

    w1p = jnp.pad(w1, ((0, _K0_PAD - w1.shape[0]), (0, 0)))          # 13 -> 16 rows
    w5p = jnp.pad(w5, ((0, 0), (0, _N5_PAD - w5.shape[1])))          # 4 -> 128 cols
    b5p = jnp.pad(b5, ((0, 0), (0, _N5_PAD - b5.shape[1])))

    ws = [jnp.asarray(w, jnp.float32).astype(compute_dtype)
          for w in (w1p, w2, w3, w4, w5p)]
    bs = [jnp.asarray(b, jnp.float32).reshape(1, -1)
          for b in (b1, b2, b3, b4, b5p)]

    flat = []
    for w, b in zip(ws, bs):
        flat += [w, b]
    return tuple(flat)


# --------------------------------------------------------------------------
# Forward pass.
# --------------------------------------------------------------------------
@functools.partial(jax.jit, static_argnames=("block_b", "vmem_limit"))
def _forward(x, flat_params, block_b, vmem_limit):
    B = x.shape[0]

    # Clamp the batch tile so tiny inference batches don't compute hundreds of
    # padded rows, while big batches get a full MXU-height tile.
    tb = max(8, min(block_b, _round_up(B, 8)))
    tb = _round_up(tb, 8)
    n_steps = pl.cdiv(B, tb)

    x_p = jnp.pad(x, ((0, 0), (0, _K0_PAD - x.shape[1])))  # tiny per-call pad

    x_spec = pl.BlockSpec((tb, _K0_PAD), lambda i: (i, 0))
    o_spec = pl.BlockSpec((tb, _NOUT), lambda i: (i, 0))

    def resident_spec(arr):
        # Constant index_map -> array stays VMEM-resident across the grid.
        # Single-buffer: double-buffering constants would waste ~8.7 MiB.
        return pl.BlockSpec(arr.shape, lambda i: (0,) * arr.ndim,
                            pipeline_mode=pl.Buffered(1))

    in_specs = [x_spec] + [resident_spec(a) for a in flat_params]

    # Scheduling hint: at small batch this kernel is a one-time ~8.7 MiB
    # bf16-weight HBM read; at large batch it is MXU flops.
    param_bytes = sum(int(a.size) * a.dtype.itemsize for a in flat_params)
    flops = 2 * B * sum(fi * fo for (fi, fo) in _LAYER_DIMS)
    cost = pl.CostEstimate(
        flops=flops,
        transcendentals=0,
        bytes_accessed=param_bytes + B * _K0_PAD * 4 + B * _NOUT * 4,
    )

    # Shard the batch grid across TensorCores whenever there is more than one
    # step: the duplicated weight fetch is cheap relative to per-step MXU work.
    dim_sem = ("parallel",) if n_steps >= 2 else ("arbitrary",)

    return pl.pallas_call(
        _mlp_kernel,
        out_shape=jax.ShapeDtypeStruct((B, _NOUT), jnp.float32),
        grid_spec=pltpu.PrefetchScalarGridSpec(
            num_scalar_prefetch=0,
            grid=(n_steps,),
            in_specs=in_specs,
            out_specs=o_spec,
        ),
        compiler_params=pltpu.CompilerParams(
            dimension_semantics=dim_sem,
            vmem_limit_bytes=vmem_limit,
        ),
        cost_estimate=cost,
    )(x_p, *flat_params)


def relu6_bigger_net(x, prepared_params, *, block_b=None):
    """x: (B, 13) float32.  prepared_params: output of prepare_params()."""
    def_b, def_vmem = _default_tuning()
    if block_b is None:
        block_b = def_b
    return _forward(x, prepared_params, block_b, def_vmem)


# --------------------------------------------------------------------------
# Synthetic params + references for self-test.
# --------------------------------------------------------------------------
def init_params(key):
    """Deterministic synthetic params matching Relu6BiggerNet shapes."""
    params = []
    for (fan_in, fan_out) in _LAYER_DIMS:
        key, kw, kb = jax.random.split(key, 3)
        bound = 1.0 / (fan_in ** 0.5)  # same scale as torch's default init
        w = jax.random.uniform(kw, (fan_in, fan_out), jnp.float32, -bound, bound)
        b = jax.random.uniform(kb, (1, fan_out), jnp.float32, -bound, bound)
        params.append((w, b))
    return params


def reference_forward_f32(x, params):
    h = x
    for i, (w, b) in enumerate(params):
        h = h @ w + b
        if i < len(params) - 1:
            h = jnp.clip(h, 0.0, 6.0)
    return h


def reference_forward_bf16(x, params):
    """Numerics-matched reference (bf16 operands, f32 accumulation)."""
    h = x.astype(jnp.bfloat16)
    for i, (w, b) in enumerate(params):
        h = jnp.dot(h, w.astype(jnp.bfloat16),
                    preferred_element_type=jnp.float32) + b
        if i < len(params) - 1:
            h = jnp.clip(h, 0.0, 6.0).astype(jnp.bfloat16)
    return h


if __name__ == "__main__":
    key = jax.random.PRNGKey(0)
    k_x1, k_x2, k_p = jax.random.split(key, 3)
    params = init_params(k_p)
    prepared = prepare_params(params)  # one-time pad / transpose / bf16 cast

    # Small inference-style batch (single grid step, clamped tile) and a batch
    # that is not a multiple of the tile (exercises the masked final tile).
    for B, kx in ((8, k_x1), (300, k_x2)):
        x = jax.random.normal(kx, (B, 13), jnp.float32)
        out = jax.block_until_ready(relu6_bigger_net(x, prepared))
        assert out.shape == (B, _NOUT), out.shape

        ref_bf16 = reference_forward_bf16(x, params)
        ref_f32 = reference_forward_f32(x, params)
        err_bf16 = float(jnp.max(jnp.abs(out - ref_bf16)))
        err_f32 = float(jnp.max(jnp.abs(out - ref_f32)))
        assert jnp.allclose(out, ref_bf16, atol=5e-3, rtol=5e-3), \
            f"B={B}: max abs err vs bf16 ref = {err_bf16}"
        assert jnp.allclose(out, ref_f32, atol=1.5e-1, rtol=5e-2), \
            f"B={B}: max abs err vs f32 ref = {err_f32}"

    print("KERNEL_OK")
</pallas_src>

<mosaic_0001>
module attributes {stable_mosaic.version = 11 : i64} {
  func.func @_mlp_kernel(%arg0: i32, %arg1: memref<8x16xf32, #tpu.memory_space<vmem>>, %arg2: memref<16x1024xbf16, #tpu.memory_space<vmem>>, %arg3: memref<1x1024xf32, #tpu.memory_space<vmem>>, %arg4: memref<1024x2048xbf16, #tpu.memory_space<vmem>>, %arg5: memref<1x2048xf32, #tpu.memory_space<vmem>>, %arg6: memref<2048x1024xbf16, #tpu.memory_space<vmem>>, %arg7: memref<1x1024xf32, #tpu.memory_space<vmem>>, %arg8: memref<1024x128xbf16, #tpu.memory_space<vmem>>, %arg9: memref<1x128xf32, #tpu.memory_space<vmem>>, %arg10: memref<128x128xbf16, #tpu.memory_space<vmem>>, %arg11: memref<1x128xf32, #tpu.memory_space<vmem>>, %arg12: memref<8x4xf32, #tpu.memory_space<vmem>>) attributes {dimension_semantics = [#tpu.dimension_semantics<arbitrary>], iteration_bounds = array<i64: 1>, scalar_prefetch = 0 : i64, scratch_operands = 0 : i64, tpu.core_type = #tpu.core_type<tc>, window_params = [{transform_indices = @transform_0, window_bounds = array<i64: 8, 16>}, {pipeline_mode = #tpu.pipeline_mode<synchronous>, transform_indices = @transform_1, window_bounds = array<i64: 16, 1024>}, {pipeline_mode = #tpu.pipeline_mode<synchronous>, transform_indices = @transform_2, window_bounds = array<i64: 1, 1024>}, {pipeline_mode = #tpu.pipeline_mode<synchronous>, transform_indices = @transform_3, window_bounds = array<i64: 1024, 2048>}, {pipeline_mode = #tpu.pipeline_mode<synchronous>, transform_indices = @transform_4, window_bounds = array<i64: 1, 2048>}, {pipeline_mode = #tpu.pipeline_mode<synchronous>, transform_indices = @transform_5, window_bounds = array<i64: 2048, 1024>}, {pipeline_mode = #tpu.pipeline_mode<synchronous>, transform_indices = @transform_6, window_bounds = array<i64: 1, 1024>}, {pipeline_mode = #tpu.pipeline_mode<synchronous>, transform_indices = @transform_7, window_bounds = array<i64: 1024, 128>}, {pipeline_mode = #tpu.pipeline_mode<synchronous>, transform_indices = @transform_8, window_bounds = array<i64: 1, 128>}, {pipeline_mode = #tpu.pipeline_mode<synchronous>, transform_indices = @transform_9, window_bounds = array<i64: 128, 128>}, {pipeline_mode = #tpu.pipeline_mode<synchronous>, transform_indices = @transform_10, window_bounds = array<i64: 1, 128>}, {transform_indices = @transform_11, window_bounds = array<i64: 8, 4>}]} {
    %c0 = arith.constant 0 : index
    %c0_0 = arith.constant 0 : index
    %0 = vector.load %arg1[%c0, %c0_0] : memref<8x16xf32, #tpu.memory_space<vmem>>, vector<8x16xf32>
    %1 = arith.truncf %0 : vector<8x16xf32> to vector<8x16xbf16>
    %c0_1 = arith.constant 0 : index
    %c0_2 = arith.constant 0 : index
    %2 = vector.load %arg2[%c0_1, %c0_2] : memref<16x1024xbf16, #tpu.memory_space<vmem>>, vector<16x1024xbf16>
    %cst = arith.constant dense<0.000000e+00> : vector<8x1024xf32>
    %3 = tpu.matmul %1, %2, %cst {dimension_numbers = #tpu.dot_dimension_numbers<[1], [0], [0], [1], [0, 0, 1, 1], [], []>} : vector<8x16xbf16>, vector<16x1024xbf16>, vector<8x1024xf32> -> vector<8x1024xf32>
    %c0_3 = arith.constant 0 : index
    %c0_4 = arith.constant 0 : index
    %4 = vector.load %arg3[%c0_3, %c0_4] : memref<1x1024xf32, #tpu.memory_space<vmem>>, vector<1x1024xf32>
    %5 = vector.broadcast %4 : vector<1x1024xf32> to vector<8x1024xf32>
    %6 = arith.addf %3, %5 : vector<8x1024xf32>
    %cst_5 = arith.constant 0.000000e+00 : f32
    %cst_6 = arith.constant 6.000000e+00 : f32
    %7 = vector.broadcast %cst_5 : f32 to vector<8x1024xf32>
    %8 = arith.maximumf %7, %6 : vector<8x1024xf32>
    %9 = vector.broadcast %cst_6 : f32 to vector<8x1024xf32>
    %10 = arith.minimumf %9, %8 : vector<8x1024xf32>
    %11 = arith.truncf %10 : vector<8x1024xf32> to vector<8x1024xbf16>
    %c0_7 = arith.constant 0 : index
    %c0_8 = arith.constant 0 : index
    %12 = vector.load %arg4[%c0_7, %c0_8] : memref<1024x2048xbf16, #tpu.memory_space<vmem>>, vector<1024x2048xbf16>
    %cst_9 = arith.constant dense<0.000000e+00> : vector<8x2048xf32>
    %13 = tpu.matmul %11, %12, %cst_9 {dimension_numbers = #tpu.dot_dimension_numbers<[1], [0], [0], [1], [0, 0, 1, 1], [], []>} : vector<8x1024xbf16>, vector<1024x2048xbf16>, vector<8x2048xf32> -> vector<8x2048xf32>
    %c0_10 = arith.constant 0 : index
    %c0_11 = arith.constant 0 : index
    %14 = vector.load %arg5[%c0_10, %c0_11] : memref<1x2048xf32, #tpu.memory_space<vmem>>, vector<1x2048xf32>
    %15 = vector.broadcast %14 : vector<1x2048xf32> to vector<8x2048xf32>
    %16 = arith.addf %13, %15 : vector<8x2048xf32>
    %cst_12 = arith.constant 0.000000e+00 : f32
    %cst_13 = arith.constant 6.000000e+00 : f32
    %17 = vector.broadcast %cst_12 : f32 to vector<8x2048xf32>
    %18 = arith.maximumf %17, %16 : vector<8x2048xf32>
    %19 = vector.broadcast %cst_13 : f32 to vector<8x2048xf32>
    %20 = arith.minimumf %19, %18 : vector<8x2048xf32>
    %21 = arith.truncf %20 : vector<8x2048xf32> to vector<8x2048xbf16>
    %c0_14 = arith.constant 0 : index
    %c0_15 = arith.constant 0 : index
    %22 = vector.load %arg6[%c0_14, %c0_15] : memref<2048x1024xbf16, #tpu.memory_space<vmem>>, vector<2048x1024xbf16>
    %cst_16 = arith.constant dense<0.000000e+00> : vector<8x1024xf32>
    %23 = tpu.matmul %21, %22, %cst_16 {dimension_numbers = #tpu.dot_dimension_numbers<[1], [0], [0], [1], [0, 0, 1, 1], [], []>} : vector<8x2048xbf16>, vector<2048x1024xbf16>, vector<8x1024xf32> -> vector<8x1024xf32>
    %c0_17 = arith.constant 0 : index
    %c0_18 = arith.constant 0 : index
    %24 = vector.load %arg7[%c0_17, %c0_18] : memref<1x1024xf32, #tpu.memory_space<vmem>>, vector<1x1024xf32>
    %25 = vector.broadcast %24 : vector<1x1024xf32> to vector<8x1024xf32>
    %26 = arith.addf %23, %25 : vector<8x1024xf32>
    %cst_19 = arith.constant 0.000000e+00 : f32
    %cst_20 = arith.constant 6.000000e+00 : f32
    %27 = vector.broadcast %cst_19 : f32 to vector<8x1024xf32>
    %28 = arith.maximumf %27, %26 : vector<8x1024xf32>
    %29 = vector.broadcast %cst_20 : f32 to vector<8x1024xf32>
    %30 = arith.minimumf %29, %28 : vector<8x1024xf32>
    %31 = arith.truncf %30 : vector<8x1024xf32> to vector<8x1024xbf16>
    %c0_21 = arith.constant 0 : index
    %c0_22 = arith.constant 0 : index
    %32 = vector.load %arg8[%c0_21, %c0_22] : memref<1024x128xbf16, #tpu.memory_space<vmem>>, vector<1024x128xbf16>
    %cst_23 = arith.constant dense<0.000000e+00> : vector<8x128xf32>
    %33 = tpu.matmul %31, %32, %cst_23 {dimension_numbers = #tpu.dot_dimension_numbers<[1], [0], [0], [1], [0, 0, 1, 1], [], []>} : vector<8x1024xbf16>, vector<1024x128xbf16>, vector<8x128xf32> -> vector<8x128xf32>
    %c0_24 = arith.constant 0 : index
    %c0_25 = arith.constant 0 : index
    %34 = vector.load %arg9[%c0_24, %c0_25] : memref<1x128xf32, #tpu.memory_space<vmem>>, vector<1x128xf32>
    %35 = vector.broadcast %34 : vector<1x128xf32> to vector<8x128xf32>
    %36 = arith.addf %33, %35 : vector<8x128xf32>
    %cst_26 = arith.constant 0.000000e+00 : f32
    %cst_27 = arith.constant 6.000000e+00 : f32
    %37 = vector.broadcast %cst_26 : f32 to vector<8x128xf32>
    %38 = arith.maximumf %37, %36 : vector<8x128xf32>
    %39 = vector.broadcast %cst_27 : f32 to vector<8x128xf32>
    %40 = arith.minimumf %39, %38 : vector<8x128xf32>
    %41 = arith.truncf %40 : vector<8x128xf32> to vector<8x128xbf16>
    %c0_28 = arith.constant 0 : index
    %c0_29 = arith.constant 0 : index
    %42 = vector.load %arg10[%c0_28, %c0_29] : memref<128x128xbf16, #tpu.memory_space<vmem>>, vector<128x128xbf16>
    %cst_30 = arith.constant dense<0.000000e+00> : vector<8x128xf32>
    %43 = tpu.matmul %41, %42, %cst_30 {dimension_numbers = #tpu.dot_dimension_numbers<[1], [0], [0], [1], [0, 0, 1, 1], [], []>} : vector<8x128xbf16>, vector<128x128xbf16>, vector<8x128xf32> -> vector<8x128xf32>
    %c0_31 = arith.constant 0 : index
    %c0_32 = arith.constant 0 : index
    %44 = vector.load %arg11[%c0_31, %c0_32] : memref<1x128xf32, #tpu.memory_space<vmem>>, vector<1x128xf32>
    %45 = vector.broadcast %44 : vector<1x128xf32> to vector<8x128xf32>
    %46 = arith.addf %43, %45 : vector<8x128xf32>
    %47 = vector.extract_strided_slice %46 {offsets = [0, 0], sizes = [8, 4], strides = [1, 1]} : vector<8x128xf32> to vector<8x4xf32>
    %c0_33 = arith.constant 0 : index
    %c0_34 = arith.constant 0 : index
    %48 = vector.load %arg12[%c0_33, %c0_34] : memref<8x4xf32, #tpu.memory_space<vmem>>, vector<8x4xf32>
    tpu.vector_store %arg12[%c0_33, %c0_34], %47 {strides = array<i32>} : memref<8x4xf32, #tpu.memory_space<vmem>>, vector<8x4xf32>,
    return
  }
  func.func @transform_0(%arg0: i32) -> (i32, i32) {
    %c0_i32 = arith.constant 0 : i32
    %c0_i32_0 = arith.constant 0 : i32
    return %arg0, %c0_i32 : i32, i32
  }
  func.func @transform_1(%arg0: i32) -> (i32, i32) {
    %c0_i32 = arith.constant 0 : i32
    %c0_i32_0 = arith.constant 0 : i32
    %c0_i32_1 = arith.constant 0 : i32
    return %c0_i32, %c0_i32_0 : i32, i32
  }
  func.func @transform_2(%arg0: i32) -> (i32, i32) {
    %c0_i32 = arith.constant 0 : i32
    %c0_i32_0 = arith.constant 0 : i32
    %c0_i32_1 = arith.constant 0 : i32
    return %c0_i32, %c0_i32_0 : i32, i32
  }
  func.func @transform_3(%arg0: i32) -> (i32, i32) {
    %c0_i32 = arith.constant 0 : i32
    %c0_i32_0 = arith.constant 0 : i32
    %c0_i32_1 = arith.constant 0 : i32
    return %c0_i32, %c0_i32_0 : i32, i32
  }
  func.func @transform_4(%arg0: i32) -> (i32, i32) {
    %c0_i32 = arith.constant 0 : i32
    %c0_i32_0 = arith.constant 0 : i32
    %c0_i32_1 = arith.constant 0 : i32
    return %c0_i32, %c0_i32_0 : i32, i32
  }
  func.func @transform_5(%arg0: i32) -> (i32, i32) {
    %c0_i32 = arith.constant 0 : i32
    %c0_i32_0 = arith.constant 0 : i32
    %c0_i32_1 = arith.constant 0 : i32
    return %c0_i32, %c0_i32_0 : i32, i32
  }
  func.func @transform_6(%arg0: i32) -> (i32, i32) {
    %c0_i32 = arith.constant 0 : i32
    %c0_i32_0 = arith.constant 0 : i32
    %c0_i32_1 = arith.constant 0 : i32
    return %c0_i32, %c0_i32_0 : i32, i32
  }
  func.func @transform_7(%arg0: i32) -> (i32, i32) {
    %c0_i32 = arith.constant 0 : i32
    %c0_i32_0 = arith.constant 0 : i32
    %c0_i32_1 = arith.constant 0 : i32
    return %c0_i32, %c0_i32_0 : i32, i32
  }
  func.func @transform_8(%arg0: i32) -> (i32, i32) {
    %c0_i32 = arith.constant 0 : i32
    %c0_i32_0 = arith.constant 0 : i32
    %c0_i32_1 = arith.constant 0 : i32
    return %c0_i32, %c0_i32_0 : i32, i32
  }
  func.func @transform_9(%arg0: i32) -> (i32, i32) {
    %c0_i32 = arith.constant 0 : i32
    %c0_i32_0 = arith.constant 0 : i32
    %c0_i32_1 = arith.constant 0 : i32
    return %c0_i32, %c0_i32_0 : i32, i32
  }
  func.func @transform_10(%arg0: i32) -> (i32, i32) {
    %c0_i32 = arith.constant 0 : i32
    %c0_i32_0 = arith.constant 0 : i32
    %c0_i32_1 = arith.constant 0 : i32
    return %c0_i32, %c0_i32_0 : i32, i32
  }
  func.func @transform_11(%arg0: i32) -> (i32, i32) {
    %c0_i32 = arith.constant 0 : i32
    %c0_i32_0 = arith.constant 0 : i32
    return %arg0, %c0_i32 : i32, i32
  }
}

</mosaic_0001>

<bundles_post_ra>
// kernel: _forward.1
= control target key start
LH: loop header
LB: loop body
LE: loop exit
PB: predicated region body
PF: predicated region fallthrough
CT: control target
= control target key end

     0   :  { %16 = vsyncpa [#allocation3], 0  ;;  %s19769_s0 = inlined_call_operand.vmem [shape: f32[8,16], index: 0, kind: input, shape index: {}]   ;;  %s19770_s1 = inlined_call_operand.hbm [shape: bf16[16,1024], index: 1, kind: input, shape index: {}]   ;;  %s19771_s2 = inlined_call_operand.hbm [shape: f32[1,1024], index: 2, kind: input, shape index: {}]   ;;  %s19772_s3 = inlined_call_operand.hbm [shape: bf16[1024,2048], index: 3, kind: input, shape index: {}]   ;;  %s19773_s4 = inlined_call_operand.hbm [shape: f32[1,2048], index: 4, kind: input, shape index: {}]   ;;  %s19774_s5 = inlined_call_operand.hbm [shape: bf16[2048,1024], index: 5, kind: input, shape index: {}]   ;;  %s19775_s6 = inlined_call_operand.hbm [shape: f32[1,1024], index: 6, kind: input, shape index: {}]   ;;  %s19776_s7 = inlined_call_operand.hbm [shape: bf16[1024,128], index: 7, kind: input, shape index: {}]   ;;  %s19777_s8 = inlined_call_operand.hbm [shape: f32[1,128], index: 8, kind: input, shape index: {}]   ;;  %s19778_s9 = inlined_call_operand.hbm [shape: bf16[128,128], index: 9, kind: input, shape index: {}]   ;;  %s19779_s10 = inlined_call_operand.hbm [shape: f32[1,128], index: 10, kind: input, shape index: {}]   ;;  %s19780_s11 = inlined_call_operand.vmem [shape: f32[8,4], index: 11, kind: output, shape index: {}]  }
   0x1   :  { %17 = vsyncpa [#allocation5], 0 }
   0x2   :  { %18 = vsyncpa [#allocation8], 0 }
   0x3   :  { %19 = vsyncpa [#allocation11], 0 }
   0x4   :  { %20 = vsyncpa [#allocation14], 0 }
   0x5   :  { %21 = vsyncpa [#allocation17], 0  ;;  %s19172_s17 = smov [#allocation4]   ;;  %s19173_s19 = smov [#allocation7]  }
   0x6   :  { %s42_s18 = sshll.u32 %s19172_s17, 4  ;;  %s64_s20 = sshll.u32 %s19173_s19, 4  ;;  %s43_s18 = int_to_ptr.vmem [resolvable:$true] %s42_s18  ;;  %s65_s20 = int_to_ptr.vmem [resolvable:$true] %s64_s20 }
   0x7   :  { %s18940_s23 = scalar_lea.hbm %s19771_s2, 128 }
   0x8   :  { %p18941_p0 = scmp.ne.s32.totalorder %s19771_s2, %s18940_s23  ;;  %p18944_p1 = scmp.lt.u32.totalorder %s18940_s23, %s19771_s2 }
   0xa   :  { %p18946_p2 = pnand %p18944_p1, %p18941_p0 }
   0xc   :  { %18949 = shalt.err (!%p18946_p2)
}
   0xd   :  { %s18950_s28 = scalar_lea.vmem %s43_s18, 128  ;;  %p18955_p4 = scmp.lt.s32.totalorder %s43_s18, %s43_s18 }
   0xe   :  { %p18951_p3 = scmp.ne.s32.totalorder %s43_s18, %s18950_s28  ;;  %p18956_p5 = scmp.lt.s32.totalorder %s18950_s28, %s18950_s28 }
  0x10   :  { %p18957_p6 = por %p18956_p5, %p18955_p4 }
  0x12   :  { %p18958_p7 = pnand %p18957_p6, %p18951_p3 }
  0x14   :  { %18961 = shalt.err (!%p18958_p7)
}
  0x15   :  { %45 = dma.hbm_to_vmem [thread:$0]  %s19771_s2, 128, %s43_s18, [#allocation5]  }
  0x16   :  { %s18962_s14 = scalar_lea.hbm %s19773_s4, 256 }
  0x17   :  { %p18963_p8 = scmp.ne.s32.totalorder %s19773_s4, %s18962_s14  ;;  %p18966_p9 = scmp.lt.u32.totalorder %s18962_s14, %s19773_s4 }
  0x19   :  { %p18968_p10 = pnand %p18966_p9, %p18963_p8 }
  0x1b   :  { %18971 = shalt.err (!%p18968_p10)
}
  0x1c   :  { %s18972_s21 = scalar_lea.vmem %s65_s20, 256  ;;  %p18977_p12 = scmp.lt.s32.totalorder %s65_s20, %s65_s20 }
  0x1d   :  { %p18973_p11 = scmp.ne.s32.totalorder %s65_s20, %s18972_s21  ;;  %p18978_p13 = scmp.lt.s32.totalorder %s18972_s21, %s18972_s21 }
  0x1f   :  { %p18979_p0 = por %p18978_p13, %p18977_p12 }
  0x21   :  { %p18980_p1 = pnand %p18979_p0, %p18973_p11 }
  0x23   :  { %18983 = shalt.err (!%p18980_p1)
}
  0x24   :  { %67 = dma.hbm_to_vmem [thread:$0]  %s19773_s4, 256, %s65_s20, [#allocation8]  }
  0x25   :  { %s19174_s22 = smov [#allocation10]   ;;  %s19175_s24 = smov [#allocation13]  }
  0x26   :  { %s86_s23 = sshll.u32 %s19174_s22, 4  ;;  %s108_s25 = sshll.u32 %s19175_s24, 4  ;;  %s87_s23 = int_to_ptr.vmem [resolvable:$true] %s86_s23  ;;  %s109_s25 = int_to_ptr.vmem [resolvable:$true] %s108_s25 }
  0x27   :  { %s18984_s28 = scalar_lea.hbm %s19775_s6, 128 }
  0x28   :  { %p18985_p2 = scmp.ne.s32.totalorder %s19775_s6, %s18984_s28  ;;  %p18988_p3 = scmp.lt.u32.totalorder %s18984_s28, %s19775_s6 }
  0x2a   :  { %p18990_p4 = pnand %p18988_p3, %p18985_p2 }
  0x2c   :  { %18993 = shalt.err (!%p18990_p4)
}
  0x2d   :  { %s18994_s4 = scalar_lea.vmem %s87_s23, 128  ;;  %p18999_p6 = scmp.lt.s32.totalorder %s87_s23, %s87_s23 }
  0x2e   :  { %p18995_p5 = scmp.ne.s32.totalorder %s87_s23, %s18994_s4  ;;  %p19000_p7 = scmp.lt.s32.totalorder %s18994_s4, %s18994_s4 }
  0x30   :  { %p19001_p8 = por %p19000_p7, %p18999_p6 }
  0x32   :  { %p19002_p9 = pnand %p19001_p8, %p18995_p5 }
  0x34   :  { %19005 = shalt.err (!%p19002_p9)
}
  0x35   :  { %89 = dma.hbm_to_vmem [thread:$0]  %s19775_s6, 128, %s87_s23, [#allocation11]  }
  0x36   :  { %s19006_s17 = scalar_lea.hbm %s19777_s8, 16 }
  0x37   :  { %p19007_p10 = scmp.ne.s32.totalorder %s19777_s8, %s19006_s17  ;;  %p19010_p11 = scmp.lt.u32.totalorder %s19006_s17, %s19777_s8 }
  0x39   :  { %p19012_p12 = pnand %p19010_p11, %p19007_p10 }
  0x3b   :  { %19015 = shalt.err (!%p19012_p12)
}
  0x3c   :  { %s19016_s22 = scalar_lea.vmem %s109_s25, 16  ;;  %s19020_s24 = scalar_lea.vmem %s109_s25, 32 }
  0x3d   :  { %p19017_p13 = scmp.ne.s32.totalorder %s109_s25, %s19016_s22  ;;  %p19021_p0 = scmp.lt.s32.totalorder %s109_s25, %s109_s25 }
  0x3e   :  { %p19022_p1 = scmp.lt.s32.totalorder %s19020_s24, %s19016_s22 }
  0x40   :  { %p19023_p2 = por %p19022_p1, %p19021_p0 }
  0x42   :  { %p19024_p3 = pnand %p19023_p2, %p19017_p13 }
  0x44   :  { %19027 = shalt.err (!%p19024_p3)
}
  0x45   :  { %111 = dma.hbm_to_vmem [thread:$0]  %s19777_s8, 16, %s109_s25, [#allocation14]  }
  0x46   :  { %s19176_s26 = smov [#allocation2]   ;;  %s19028_s30 = scalar_lea.hbm %s19770_s1, 1024 }
  0x47   :  { %s29_s27 = sshll.u32 %s19176_s26, 4  ;;  %p19029_p4 = scmp.ne.s32.totalorder %s19770_s1, %s19028_s30  ;;  %s30_s27 = int_to_ptr.vmem [resolvable:$true] %s29_s27 }
  0x48   :  { %p19032_p5 = scmp.lt.u32.totalorder %s19028_s30, %s19770_s1 }
  0x4a   :  { %p19034_p6 = pnand %p19032_p5, %p19029_p4 }
  0x4c   :  { %19037 = shalt.err (!%p19034_p6)
}
  0x4d   :  { %s19038_s14 = scalar_lea.vmem %s30_s27, 1024  ;;  %p19043_p8 = scmp.lt.s32.totalorder %s30_s27, %s30_s27 }
  0x4e   :  { %p19039_p7 = scmp.ne.s32.totalorder %s30_s27, %s19038_s14  ;;  %p19044_p9 = scmp.lt.s32.totalorder %s19038_s14, %s19038_s14 }
  0x50   :  { %p19045_p10 = por %p19044_p9, %p19043_p8 }
  0x52   :  { %p19046_p11 = pnand %p19045_p10, %p19039_p7 }
  0x54   :  { %19049 = shalt.err (!%p19046_p11)
}
  0x55   :  { %s19177_s8 = smov 512   ;;  %s19178_s25 = smov 32  }
  0x56   :  { %35 = dma.hbm_to_vmem [thread:$0]  %s19770_s1, 1024, %s30_s27, [#allocation3], %s19177_s8, %s19177_s8, %s19178_s25  }
  0x57   :  { %s19179_s17 = smov [#allocation6]   ;;  %s19050_s18 = scalar_lea.hbm %s19772_s3, 131072 }
  0x58   :  { %s51_s19 = sshll.u32 %s19179_s17, 4  ;;  %p19051_p12 = scmp.ne.s32.totalorder %s19772_s3, %s19050_s18  ;;  %s52_s19 = int_to_ptr.vmem [resolvable:$true] %s51_s19 }
  0x59   :  { %p19054_p13 = scmp.lt.u32.totalorder %s19050_s18, %s19772_s3 }
  0x5b   :  { %p19056_p0 = pnand %p19054_p13, %p19051_p12 }
  0x5d   :  { %19059 = shalt.err (!%p19056_p0)
}
  0x5e   :  { %s19060_s26 = scalar_lea.vmem %s52_s19, 131072  ;;  %p19065_p2 = scmp.lt.s32.totalorder %s52_s19, %s52_s19 }
  0x5f   :  { %p19061_p1 = scmp.ne.s32.totalorder %s52_s19, %s19060_s26  ;;  %p19066_p3 = scmp.lt.s32.totalorder %s19060_s26, %s19060_s26 }
  0x61   :  { %p19067_p4 = por %p19066_p3, %p19065_p2 }
  0x63   :  { %p19068_p5 = pnand %p19067_p4, %p19061_p1 }
  0x65   :  { %19071 = shalt.err (!%p19068_p5)
}
  0x66   :  { %s19180_s1 = smov 1024   ;;  %s19181_s27 = smov 64  }
  0x67   :  { %57 = dma.hbm_to_vmem [thread:$0]  %s19772_s3, 131072, %s52_s19, [#allocation5], %s19180_s1, %s19180_s1, %s19181_s27  }
  0x68   :  { %s19182_s30 = smov [#allocation9]   ;;  %s19183_s13 = smov [#allocation12]  }
  0x69   :  { %s73_s12 = sshll.u32 %s19182_s30, 4  ;;  %s95_s4 = sshll.u32 %s19183_s13, 4  ;;  %s74_s12 = int_to_ptr.vmem [resolvable:$true] %s73_s12  ;;  %s19326_s4 = int_to_ptr.vmem [resolvable:$true] %s95_s4 }
  0x6a   :  { %s19072_s15 = scalar_lea.hbm %s19774_s5, 131072 }
  0x6b   :  { %p19073_p6 = scmp.ne.s32.totalorder %s19774_s5, %s19072_s15  ;;  %p19076_p7 = scmp.lt.u32.totalorder %s19072_s15, %s19774_s5 }
  0x6d   :  { %p19078_p8 = pnand %p19076_p7, %p19073_p6 }
  0x6f   :  { %19081 = shalt.err (!%p19078_p8)
}
  0x70   :  { %s19082_s3 = scalar_lea.vmem %s74_s12, 131072  ;;  %p19087_p10 = scmp.lt.s32.totalorder %s74_s12, %s74_s12 }
  0x71   :  { %p19083_p9 = scmp.ne.s32.totalorder %s74_s12, %s19082_s3  ;;  %p19088_p11 = scmp.lt.s32.totalorder %s19082_s3, %s19082_s3 }
  0x73   :  { %p19089_p12 = por %p19088_p11, %p19087_p10 }
  0x75   :  { %p19090_p13 = pnand %p19089_p12, %p19083_p9 }
  0x77   :  { %19093 = shalt.err (!%p19090_p13)
}
  0x78   :  { %79 = dma.hbm_to_vmem [thread:$0]  %s19774_s5, 131072, %s74_s12, [#allocation8], %s19177_s8, %s19177_s8, %s19178_s25  }
  0x79   :  { %s19094_s6 = scalar_lea.hbm %s19776_s7, 8192 }
  0x7a   :  { %p19095_p0 = scmp.ne.s32.totalorder %s19776_s7, %s19094_s6  ;;  %p19098_p1 = scmp.lt.u32.totalorder %s19094_s6, %s19776_s7 }
  0x7c   :  { %p19100_p2 = pnand %p19098_p1, %p19095_p0 }
  0x7e   :  { %19103 = shalt.err (!%p19100_p2)
}
  0x7f   :  { %s19104_s29 = scalar_lea.vmem %s19326_s4, 8192  ;;  %p19109_p4 = scmp.lt.s32.totalorder %s19326_s4, %s19326_s4 }
  0x80   :  { %p19105_p3 = scmp.ne.s32.totalorder %s19326_s4, %s19104_s29  ;;  %p19110_p5 = scmp.lt.s32.totalorder %s19104_s29, %s19104_s29 }
  0x82   :  { %p19111_p6 = por %p19110_p5, %p19109_p4 }
  0x84   :  { %p19112_p7 = pnand %p19111_p6, %p19105_p3 }
  0x86   :  { %19115 = shalt.err (!%p19112_p7)
}
  0x87   :  { %s19184_s5 = smov 4   ;;  %s19185_s30 = smov [#allocation15]  }
  0x88   :  { %101 = dma.hbm_to_vmem [thread:$0]  %s19776_s7, 8192, %s19326_s4, [#allocation11], %s19181_s27, %s19181_s27, %s19184_s5  }
  0x89   :  { %s117_s12 = sshll.u32 %s19185_s30, 4  ;;  %s19186_s13 = smov [#allocation16]   ;;  %s118_s12 = int_to_ptr.vmem [resolvable:$true] %s117_s12 }
  0x8a   :  { %s130_s20 = sshll.u32 %s19186_s13, 4  ;;  %s19116_s16 = scalar_lea.hbm %s19778_s9, 1024  ;;  %s131_s20 = int_to_ptr.vmem [resolvable:$true] %s130_s20 }
  0x8b   :  { %p19117_p8 = scmp.ne.s32.totalorder %s19778_s9, %s19116_s16  ;;  %p19120_p9 = scmp.lt.u32.totalorder %s19116_s16, %s19778_s9 }
  0x8d   :  { %p19122_p10 = pnand %p19120_p9, %p19117_p8 }
  0x8f   :  { %19125 = shalt.err (!%p19122_p10)
}
  0x90   :  { %s19126_s7 = scalar_lea.vmem %s118_s12, 1024  ;;  %p19131_p12 = scmp.lt.s32.totalorder %s118_s12, %s118_s12 }
  0x91   :  { %p19127_p11 = scmp.ne.s32.totalorder %s118_s12, %s19126_s7  ;;  %p19132_p13 = scmp.lt.s32.totalorder %s19126_s7, %s19126_s7 }
  0x93   :  { %p19133_p0 = por %p19132_p13, %p19131_p12 }
  0x95   :  { %p19134_p1 = pnand %p19133_p0, %p19127_p11 }
  0x97   :  { %19137 = shalt.err (!%p19134_p1)
}
  0x98   :  { %123 = dma.hbm_to_vmem [thread:$0]  %s19778_s9, 1024, %s118_s12, [#allocation14], %s19181_s27, %s19181_s27, %s19184_s5  }
  0x99   :  { %s19138_s24 = scalar_lea.hbm %s19779_s10, 16 }
  0x9a   :  { %p19139_p2 = scmp.ne.s32.totalorder %s19779_s10, %s19138_s24  ;;  %p19142_p3 = scmp.lt.u32.totalorder %s19138_s24, %s19779_s10 }
  0x9c   :  { %p19144_p4 = pnand %p19142_p3, %p19139_p2 }
  0x9e   :  { %19147 = shalt.err (!%p19144_p4)
}
  0x9f   :  { %s19148_s28 = scalar_lea.vmem %s131_s20, 16  ;;  %s19152_s29 = scalar_lea.vmem %s131_s20, 32 }
  0xa0   :  { %p19149_p5 = scmp.ne.s32.totalorder %s131_s20, %s19148_s28  ;;  %p19153_p6 = scmp.lt.s32.totalorder %s131_s20, %s131_s20 }
  0xa1   :  { %p19154_p7 = scmp.lt.s32.totalorder %s19152_s29, %s19148_s28 }
  0xa3   :  { %p19155_p8 = por %p19154_p7, %p19153_p6 }
  0xa5   :  { %p19156_p9 = pnand %p19155_p8, %p19149_p5 }
  0xa7   :  { %19159 = shalt.err (!%p19156_p9)
}
  0xa8   :  { %133 = dma.hbm_to_vmem [thread:$0]  %s19779_s10, 16, %s131_s20, [#allocation17]  }
  0xa9   :  { %19160 = dma.done.wait [#allocation3], 1024  }
  0xaa   :  { %19161 = vsyncadd [#allocation3], 4294966272 }
  0xab   :  { %19162 = dma.done.wait [#allocation5], 131200  }
  0xac   :  { %19163 = vsyncadd [#allocation5], 4294836096 }
  0xad   :  { %19164 = dma.done.wait [#allocation8], 131328  }
  0xae   :  { %19165 = vsyncadd [#allocation8], 4294835968 }
  0xaf   :  { %19166 = dma.done.wait [#allocation11], 8320  }
  0xb0   :  { %19167 = vsyncadd [#allocation11], 4294958976 }
  0xb1   :  { %19168 = dma.done.wait [#allocation14], 1040  }
  0xb2   :  { %19169 = vsyncadd [#allocation14], 4294966256 }
  0xb3   :  { %19170 = dma.done.wait [#allocation17], 16  }
  0xb4   :  { %19171 = vsyncadd [#allocation17], 4294967280  ;;  %v19187_v0 = vmov 0   ;;  %v167_v1 = vld [vmem:[#allocation2] sm:$0xff]  ;;  %v168_v6 = vld [vmem:[#allocation2 + $0x8] sm:$0xff]  ;;  %vm257_vm0 = vcmask 130048  }
  0xb5   :  { %293 = vmatprep.mubr.bf16.mxu1 %v19187_v0  ;;  %v171_v2 = vld [vmem:[#allocation2 + $0x20] sm:$0xff]  ;;  %v172_v7 = vld [vmem:[#allocation2 + $0x28] sm:$0xff]  ;;  %v169_v9 = vld [vmem:[#allocation2 + $0x10] sm:$0xff]  ;;  %vm19189_vm1 = vmmov 0   ;;  %vm16352_vm2 = vcmask 31744  }
  0xb6   :  { %v165_v3 = vld [vmem:[%s19769_s0] sm:$0xff]  ;;  %v16365_v4 = vcombine.high %v167_v1, %v171_v2  ;;  %v16364_v5 = vcombine.low %v167_v1, %v171_v2  ;;  %v16367_v8 = vcombine.high %v168_v6, %v172_v7  ;;  %v173_v10 = vld [vmem:[#allocation2 + $0x30] sm:$0xff]  ;;  %v449_v12 = vld [vmem:[#allocation6] sm:$0xff]  ;;  %v16366_v14 = vcombine.low %v168_v6, %v172_v7 }
  0xb7   :  { %v19392_v11 = vpack.c.bf16 %v165_v3, %v165_v3  ;;  %v457_v13 = vld [vmem:[#allocation6 + $0x40] sm:$0xff]  ;;  %v16369_v19 = vcombine.high %v169_v9, %v173_v10  ;;  %v170_v25 = vld [vmem:[#allocation2 + $0x18] sm:$0xff]  ;;  %v16368_v30 = vcombine.low %v169_v9, %v173_v10  ;;  %v450_v37 = vld [vmem:[#allocation6 + $0x8] sm:$0xff] }
  0xb8   :  { %261 = vmatprep.subr.bf16.mxu1 %v16365_v4  ;;  %v16377_v15 = vcombine.high %v449_v12, %v457_v13  ;;  %v16376_v16 = vcombine.low %v449_v12, %v457_v13  ;;  %v465_v17 = vld [vmem:[#allocation6 + $0x80] sm:$0xff]  ;;  %v174_v26 = vld [vmem:[#allocation2 + $0x38] sm:$0xff]  ;;  %v458_v38 = vld [vmem:[#allocation6 + $0x48] sm:$0xff] }
  0xb9   :  { %262 = vmatpush1.bf16.msra.mxu1 %v16364_v5  ;;  %v473_v18 = vld [vmem:[#allocation6 + $0xc0] sm:$0xff]  ;;  %v16371_v31 = vcombine.high %v170_v25, %v174_v26  ;;  %v16370_v42 = vcombine.low %v170_v25, %v174_v26  ;;  %v16379_v43 = vcombine.high %v450_v37, %v458_v38  ;;  %v466_v50 = vld [vmem:[#allocation6 + $0x88] sm:$0xff]  ;;  %v16378_v56 = vcombine.low %v450_v37, %v458_v38 }
  0xba   :  { %302 = vmatprep.subr.bf16.mxu1 %v16367_v8  ;;  %v16393_v20 = vcombine.high %v465_v17, %v473_v18  ;;  %v481_v21 = vld [vmem:[#allocation6 + $0x100] sm:$0xff]  ;;  %6677 = vmatprep.subr.bf16.mxu0 %v16377_v15  ;;  %v16392_v23 = vcombine.low %v465_v17, %v473_v18  ;;  %v474_v51 = vld [vmem:[#allocation6 + $0xc8] sm:$0xff] }
  0xbb   :  { %v489_v22 = vld [vmem:[#allocation6 + $0x140] sm:$0xff]  ;;  %6678 = vmatpush1.bf16.msra.mxu0 %v16376_v16  ;;  %v482_v57 = vld [vmem:[#allocation6 + $0x108] sm:$0xff]  ;;  %v16395_v60 = vcombine.high %v466_v50, %v474_v51 }
  0xbc   :  { %16372 = vmatmul.mubr.msk.bf16.vlgmr.msra.gmra.mrb[0].mxu1 %vm257_vm0, %v19392_v11  ;;  %v16409_v24 = vcombine.high %v481_v21, %v489_v22  ;;  %6679 = vmatprep.subr.bf16.mxu0 %v16393_v20  ;;  %v497_v27 = vld [vmem:[#allocation6 + $0x180] sm:$0xff]  ;;  %v16408_v29 = vcombine.low %v481_v21, %v489_v22  ;;  %v490_v58 = vld [vmem:[#allocation6 + $0x148] sm:$0xff] }
  0xbd   :  { %303 = vmatpush1.bf16.msra.mxu1 %v16366_v14  ;;  %334 = vmatprep.mubr.bf16.mxu1 %v19187_v0  ;;  %v505_v28 = vld [vmem:[#allocation6 + $0x1c0] sm:$0xff]  ;;  %v498_v1 = vld [vmem:[#allocation6 + $0x188] sm:$0xff]  ;;  %v16411_v4 = vcombine.high %v482_v57, %v490_v58  ;;  %v16410_v8 = vcombine.low %v482_v57, %v490_v58 }
  0xbe   :  { %343 = vmatprep.subr.bf16.mxu1 %v16369_v19  ;;  %v16425_v32 = vcombine.high %v497_v27, %v505_v28  ;;  %v513_v33 = vld [vmem:[#allocation6 + $0x200] sm:$0xff]  ;;  %v16424_v35 = vcombine.low %v497_v27, %v505_v28  ;;  %v506_v2 = vld [vmem:[#allocation6 + $0x1c8] sm:$0xff] }
  0xbf   :  { %6680 = vmatpush1.bf16.msra.mxu0 %v16392_v23  ;;  %v521_v34 = vld [vmem:[#allocation6 + $0x240] sm:$0xff]  ;;  %v514_v9 = vld [vmem:[#allocation6 + $0x208] sm:$0xff]  ;;  %v16427_v12 = vcombine.high %v498_v1, %v506_v2  ;;  %v16426_v16 = vcombine.low %v498_v1, %v506_v2 }
  0xc0   :  { %6681 = vmatprep.subr.bf16.mxu0 %v16409_v24  ;;  %v16441_v36 = vcombine.high %v513_v33, %v521_v34  ;;  %v529_v39 = vld [vmem:[#allocation6 + $0x280] sm:$0xff]  ;;  %v16440_v41 = vcombine.low %v513_v33, %v521_v34  ;;  %v522_v10 = vld [vmem:[#allocation6 + $0x248] sm:$0xff] }
  0xc1   :  { %v537_v40 = vld [vmem:[#allocation6 + $0x2c0] sm:$0xff]  ;;  %v530_v17 = vld [vmem:[#allocation6 + $0x288] sm:$0xff]  ;;  %v16443_v20 = vcombine.high %v514_v9, %v522_v10  ;;  %v16442_v24 = vcombine.low %v514_v9, %v522_v10 }
  0xc2   :  { %v16457_v44 = vcombine.high %v529_v39, %v537_v40  ;;  %v545_v45 = vld [vmem:[#allocation6 + $0x300] sm:$0xff]  ;;  %v16456_v47 = vcombine.low %v529_v39, %v537_v40  ;;  %v538_v18 = vld [vmem:[#allocation6 + $0x2c8] sm:$0xff] }
  0xc3   :  { %6682 = vmatpush1.bf16.msra.mxu0 %v16408_v29  ;;  %v553_v46 = vld [vmem:[#allocation6 + $0x340] sm:$0xff]  ;;  %v546_v25 = vld [vmem:[#allocation6 + $0x308] sm:$0xff]  ;;  %v16459_v28 = vcombine.high %v530_v17, %v538_v18 }
  0xc4   :  { %16373 = vmatmul.mubr.msk.bf16.vlgmr.msra.gmra.mrb[4].mxu1 %vm257_vm0, %v19392_v11  ;;  %6683 = vmatprep.subr.bf16.mxu0 %v16425_v32  ;;  %v561_v48 = vld [vmem:[#allocation6 + $0x380] sm:$0xff]  ;;  %v16473_v52 = vcombine.high %v545_v45, %v553_v46  ;;  %v16472_v53 = vcombine.low %v545_v45, %v553_v46  ;;  %v554_v26 = vld [vmem:[#allocation6 + $0x348] sm:$0xff]  ;;  %v16458_v32 = vcombine.low %v530_v17, %v538_v18 }
  0xc5   :  { %344 = vmatpush1.bf16.msra.mxu1 %v16368_v30  ;;  %375 = vmatprep.mubr.bf16.mxu1 %v19187_v0  ;;  %v569_v49 = vld [vmem:[#allocation6 + $0x3c0] sm:$0xff]  ;;  %v562_v33 = vld [vmem:[#allocation6 + $0x388] sm:$0xff]  ;;  %v16474_v38 = vcombine.low %v546_v25, %v554_v26 }
  0xc6   :  { %384 = vmatprep.subr.bf16.mxu1 %v16371_v31  ;;  %v577_v54 = vld [vmem:[#allocation6 + $0x400] sm:$0xff]  ;;  %v16489_v59 = vcombine.high %v561_v48, %v569_v49  ;;  %v16488_v61 = vcombine.low %v561_v48, %v569_v49  ;;  %v570_v34 = vld [vmem:[#allocation6 + $0x3c8] sm:$0xff] }
  0xc7   :  { %6684 = vmatpush1.bf16.msra.mxu0 %v16424_v35  ;;  %v585_v55 = vld [vmem:[#allocation6 + $0x440] sm:$0xff]  ;;  %v578_v39 = vld [vmem:[#allocation6 + $0x408] sm:$0xff] }
  0xc8   :  { %6685 = vmatprep.subr.bf16.mxu0 %v16441_v36  ;;  %v593_v62 = vld [vmem:[#allocation6 + $0x480] sm:$0xff]  ;;  %v16505_v3 = vcombine.high %v577_v54, %v585_v55  ;;  %v16504_v5 = vcombine.low %v577_v54, %v585_v55  ;;  %v16475_v36 = vcombine.high %v546_v25, %v554_v26  ;;  %v586_v40 = vld [vmem:[#allocation6 + $0x448] sm:$0xff] }
  0xc9   :  { %v601_v63 = vld [vmem:[#allocation6 + $0x4c0] sm:$0xff]  ;;  %v594_v45 = vld [vmem:[#allocation6 + $0x488] sm:$0xff]  ;;  %v16506_v48 = vcombine.low %v578_v39, %v586_v40 }
  0xca   :  { %v609_v6 = vld [vmem:[#allocation6 + $0x500] sm:$0xff]  ;;  %v16520_v13 = vcombine.low %v593_v62, %v601_v63  ;;  %v602_v46 = vld [vmem:[#allocation6 + $0x4c8] sm:$0xff] }
  0xcb   :  { %6686 = vmatpush1.bf16.msra.mxu0 %v16440_v41  ;;  %v617_v7 = vld [vmem:[#allocation6 + $0x540] sm:$0xff]  ;;  %v610_v49 = vld [vmem:[#allocation6 + $0x508] sm:$0xff] }
  0xcc   :  { %16374 = vmatmul.mubr.msk.bf16.vlgmr.msra.gmra.mrb[8].mxu1 %vm257_vm0, %v19392_v11  ;;  %6687 = vmatprep.subr.bf16.mxu0 %v16457_v44  ;;  %v625_v14 = vld [vmem:[#allocation6 + $0x580] sm:$0xff]  ;;  %v16537_v19 = vcombine.high %v609_v6, %v617_v7  ;;  %v16536_v21 = vcombine.low %v609_v6, %v617_v7  ;;  %v16490_v44 = vcombine.low %v562_v33, %v570_v34  ;;  %v634_v54 = vld [vmem:[#allocation6 + $0x5c8] sm:$0xff] }
  0xcd   :  { %385 = vmatpush1.bf16.msra.mxu1 %v16370_v42  ;;  %416 = vmatprep.mubr.bf16.mxu1 %v19187_v0  ;;  %v16394_v0 = vcombine.low %v466_v50, %v474_v51  ;;  %v633_v15 = vld [vmem:[#allocation6 + $0x5c0] sm:$0xff]  ;;  %v16491_v42 = vcombine.high %v562_v33, %v570_v34  ;;  %v618_v50 = vld [vmem:[#allocation6 + $0x548] sm:$0xff]  ;;  %v16523_v51 = vcombine.high %v594_v45, %v602_v46 }
  0xce   :  { %6841 = vmatprep.subr.bf16.mxu1 %v16379_v43  ;;  %v641_v22 = vld [vmem:[#allocation6 + $0x600] sm:$0xff]  ;;  %v16553_v27 = vcombine.high %v625_v14, %v633_v15  ;;  %v16552_v29 = vcombine.low %v625_v14, %v633_v15  ;;  %v16539_v55 = vcombine.high %v610_v49, %v618_v50  ;;  %v642_v58 = vld [vmem:[#allocation6 + $0x608] sm:$0xff] }
  0xcf   :  { %6688 = vmatpush1.bf16.msra.mxu0 %v16456_v47  ;;  %v649_v23 = vld [vmem:[#allocation6 + $0x640] sm:$0xff]  ;;  %v16507_v47 = vcombine.high %v578_v39, %v586_v40  ;;  %v682_v7 = vld [vmem:[#allocation6 + $0x748] sm:$0xff] }
  0xd0   :  { %6689 = vmatprep.subr.bf16.mxu0 %v16473_v52  ;;  %v657_v30 = vld [vmem:[#allocation6 + $0x680] sm:$0xff]  ;;  %v16569_v35 = vcombine.high %v641_v22, %v649_v23  ;;  %v16568_v37 = vcombine.low %v641_v22, %v649_v23  ;;  %v16522_v52 = vcombine.low %v594_v45, %v602_v46  ;;  %v698_v15 = vld [vmem:[#allocation6 + $0x7c8] sm:$0xff] }
  0xd1   :  { %v665_v31 = vld [vmem:[#allocation6 + $0x6c0] sm:$0xff]  ;;  %v714_v23 = vld [vmem:[#allocation6 + $0x848] sm:$0xff] }
  0xd2   :  { %v16585_v41 = vcombine.high %v657_v30, %v665_v31  ;;  %v16584_v43 = vcombine.low %v657_v30, %v665_v31  ;;  %v19410_v30 = vld [vmem:[#allocation4] sm:$0xff]  ;;  %v729_v46 = vld [vmem:[#allocation6 + $0x8c0] sm:$0xff] }
  0xd3   :  { %6690 = vmatpush1.bf16.msra.mxu0 %v16472_v53  ;;  %v626_v53 = vld [vmem:[#allocation6 + $0x588] sm:$0xff] }
  0xd4   :  { %16375 = vmatmul.mubr.msk.bf16.vlgmr.msra.gmra.mrb[12].mxu1 %vm257_vm0, %v19392_v11  ;;  %6691 = vmatprep.subr.bf16.mxu0 %v16489_v59  ;;  %v16521_v11 = vcombine.high %v593_v62, %v601_v63  ;;  %v16555_v57 = vcombine.high %v626_v53, %v634_v54  ;;  %v650_v59 = vld [vmem:[#allocation6 + $0x648] sm:$0xff] }
  0xd5   :  { %6842 = vmatpush1.bf16.msra.mxu1 %v16378_v56  ;;  %v16538_v56 = vcombine.low %v610_v49, %v618_v50  ;;  %v658_v62 = vld [vmem:[#allocation6 + $0x688] sm:$0xff] }
  0xd6   :  { %6843 = vmatprep.subr.bf16.mxu1 %v16395_v60  ;;  %v16554_v60 = vcombine.low %v626_v53, %v634_v54  ;;  %v666_v63 = vld [vmem:[#allocation6 + $0x6c8] sm:$0xff] }
  0xd7   :  { %6692 = vmatpush1.bf16.msra.mxu0 %v16488_v61  ;;  %v16571_v61 = vcombine.high %v642_v58, %v650_v59  ;;  %v16587_v1 = vcombine.high %v658_v62, %v666_v63  ;;  %v16586_v2 = vcombine.low %v658_v62, %v666_v63 }
  0xd8   :  { %6693 = vmatprep.subr.bf16.mxu0 %v16505_v3  ;;  %v673_v3 = vld [vmem:[#allocation6 + $0x700] sm:$0xff] }
  0xd9   :  { %6844 = vmatpush1.bf16.msra.mxu1 %v16394_v0  ;;  %v16570_v0 = vcombine.low %v642_v58, %v650_v59  ;;  %v738_v58 = vld [vmem:[#allocation6 + $0x908] sm:$0xff] }
  0xda   :  { %6845 = vmatprep.subr.bf16.mxu1 %v16411_v4  ;;  %v681_v4 = vld [vmem:[#allocation6 + $0x740] sm:$0xff]  ;;  %v746_v59 = vld [vmem:[#allocation6 + $0x948] sm:$0xff] }
  0xdb   :  { %6694 = vmatpush1.bf16.msra.mxu0 %v16504_v5  ;;  %v674_v5 = vld [vmem:[#allocation6 + $0x708] sm:$0xff]  ;;  %v16601_v6 = vcombine.high %v673_v3, %v681_v4  ;;  %v16600_v10 = vcombine.low %v673_v3, %v681_v4  ;;  %v16667_v3 = vcombine.high %v738_v58, %v746_v59  ;;  %v753_v4 = vld [vmem:[#allocation6 + $0x980] sm:$0xff] }
  0xdc   :  { %6695 = vmatprep.subr.bf16.mxu0 %v16521_v11  ;;  %v16603_v9 = vcombine.high %v674_v5, %v682_v7  ;;  %v689_v11 = vld [vmem:[#allocation6 + $0x780] sm:$0xff] }
  0xdd   :  { %6846 = vmatpush1.bf16.msra.mxu1 %v16410_v8  ;;  %v16602_v8 = vcombine.low %v674_v5, %v682_v7  ;;  %v761_v5 = vld [vmem:[#allocation6 + $0x9c0] sm:$0xff]  ;;  %v762_v7 = vld [vmem:[#allocation6 + $0x9c8] sm:$0xff] }
  0xde   :  { %6847 = vmatprep.subr.bf16.mxu1 %v16427_v12  ;;  %v697_v12 = vld [vmem:[#allocation6 + $0x7c0] sm:$0xff] }
  0xdf   :  { %6696 = vmatpush1.bf16.msra.mxu0 %v16520_v13  ;;  %v690_v13 = vld [vmem:[#allocation6 + $0x788] sm:$0xff]  ;;  %v16617_v14 = vcombine.high %v689_v11, %v697_v12  ;;  %v16616_v18 = vcombine.low %v689_v11, %v697_v12 }
  0xe0   :  { %6697 = vmatprep.subr.bf16.mxu0 %v16537_v19  ;;  %v16619_v17 = vcombine.high %v690_v13, %v698_v15  ;;  %v705_v19 = vld [vmem:[#allocation6 + $0x800] sm:$0xff] }
  0xe1   :  { %6848 = vmatpush1.bf16.msra.mxu1 %v16426_v16  ;;  %v16618_v16 = vcombine.low %v690_v13, %v698_v15  ;;  %v16681_v13 = vcombine.high %v753_v4, %v761_v5  ;;  %v769_v15 = vld [vmem:[#allocation6 + $0xa00] sm:$0xff] }
  0xe2   :  { %6849 = vmatprep.subr.bf16.mxu1 %v16443_v20  ;;  %v713_v20 = vld [vmem:[#allocation6 + $0x840] sm:$0xff] }
  0xe3   :  { %6698 = vmatpush1.bf16.msra.mxu0 %v16536_v21  ;;  %v706_v21 = vld [vmem:[#allocation6 + $0x808] sm:$0xff]  ;;  %v16633_v22 = vcombine.high %v705_v19, %v713_v20 }
  0xe4   :  { %6699 = vmatprep.subr.bf16.mxu0 %v16553_v27  ;;  %v16634_v25 = vcombine.low %v706_v21, %v714_v23  ;;  %v16635_v26 = vcombine.high %v706_v21, %v714_v23  ;;  %v177_v27 = vlaneseq }
  0xe5   :  { %6850 = vmatpush1.bf16.msra.mxu1 %v16442_v24  ;;  %v16632_v24 = vcombine.low %v705_v19, %v713_v20  ;;  %v778_v19 = vld [vmem:[#allocation6 + $0xa48] sm:$0xff] }
  0xe6   :  { %6851 = vmatprep.subr.bf16.mxu1 %v16459_v28  ;;  %v19405_v28 = vshrl.u32 %v177_v27, 7  ;;  %v793_v27 = vld [vmem:[#allocation6 + $0xac0] sm:$0xff] }
  0xe7   :  { %6700 = vmatpush1.bf16.msra.mxu0 %v16552_v29 }
  0xe8   :  { %6701 = vmatprep.subr.bf16.mxu0 %v16569_v35  ;;  %v19408_v29 = vsub.s32 0, %v19405_v28  ;;  %v19413_v31 = vsub.s32 1, %v19405_v28  ;;  %v19420_v39 = vsub.s32 3, %v19405_v28 }
  0xe9   :  { %6852 = vmatpush1.bf16.msra.mxu1 %v16458_v32 }
  0xea   :  { %6853 = vmatprep.subr.bf16.mxu1 %v16475_v36  ;;  %v180_v32 = vrot.slane %v19410_v30, %v19408_v29  ;;  %v184_v33 = vrot.slane %v19410_v30, %v19413_v31  ;;  %v192_v49 = vrot.slane %v19410_v30, %v19420_v39 }
  0xeb   :  { %6702 = vmatpush1.bf16.msra.mxu0 %v16568_v37 }
  0xec   :  { %6703 = vmatprep.subr.bf16.mxu0 %v16585_v41 }
  0xed   :  { %6854 = vmatpush1.bf16.msra.mxu1 %v16474_v38 }
  0xee   :  { %6855 = vmatprep.subr.bf16.mxu1 %v16491_v42 }
  0xef   :  { %6704 = vmatpush1.bf16.msra.mxu0 %v16584_v43 }
  0xf0   :  { %6705 = vmatprep.subr.bf16.mxu0 %v16601_v6  ;;  %v754_v6 = vld [vmem:[#allocation6 + $0x988] sm:$0xff] }
  0xf1   :  { %6856 = vmatpush1.bf16.msra.mxu1 %v16490_v44  ;;  %v721_v44 = vld [vmem:[#allocation6 + $0x880] sm:$0xff]  ;;  %v16682_v23 = vcombine.low %v754_v6, %v762_v7 }
  0xf2   :  { %6857 = vmatprep.subr.bf16.mxu1 %v16507_v47  ;;  %v722_v47 = vld [vmem:[#allocation6 + $0x888] sm:$0xff]  ;;  %v16649_v53 = vcombine.high %v721_v44, %v729_v46  ;;  %v16648_v63 = vcombine.low %v721_v44, %v729_v46 }
  0xf3   :  { %6706 = vmatpush1.bf16.msra.mxu0 %v16600_v10  ;;  %v16666_v10 = vcombine.low %v738_v58, %v746_v59 }
  0xf4   :  { %6707 = vmatprep.subr.bf16.mxu0 %v16617_v14  ;;  %v16683_v14 = vcombine.high %v754_v6, %v762_v7  ;;  %v849_v6 = vld [vmem:[#allocation6 + $0xc80] sm:$0xff] }
  0xf5   :  { %6858 = vmatpush1.bf16.msra.mxu1 %v16506_v48  ;;  %v730_v48 = vld [vmem:[#allocation6 + $0x8c8] sm:$0xff]  ;;  %v857_v7 = vld [vmem:[#allocation6 + $0xcc0] sm:$0xff] }
  0xf6   :  { %6859 = vmatprep.subr.bf16.mxu1 %v16523_v51  ;;  %v16651_v54 = vcombine.high %v722_v47, %v730_v48 }
  0xf7   :  { %6708 = vmatpush1.bf16.msra.mxu0 %v16616_v18  ;;  %v770_v18 = vld [vmem:[#allocation6 + $0xa08] sm:$0xff] }
  0xf8   :  { %6718 = vmatprep.subr.bf16.mxu0 %v16633_v22  ;;  %v16680_v22 = vcombine.low %v753_v4, %v761_v5 }
  0xf9   :  { %6860 = vmatpush1.bf16.msra.mxu1 %v16522_v52 }
  0xfa   :  { %6861 = vmatprep.subr.bf16.mxu1 %v16539_v55  ;;  %v737_v55 = vld [vmem:[#allocation6 + $0x900] sm:$0xff] }
  0xfd   :  { %6862 = vmatpush1.bf16.msra.mxu1 %v16538_v56 }
  0xfe   :  { %6863 = vmatprep.subr.bf16.mxu1 %v16555_v57  ;;  %v745_v57 = vld [vmem:[#allocation6 + $0x940] sm:$0xff] }
 0x101   :  { %6864 = vmatpush1.bf16.msra.mxu1 %v16554_v60 }
 0x102   :  { %6865 = vmatprep.subr.bf16.mxu1 %v16571_v61 }
 0x105   :  { %6866 = vmatpush1.bf16.msra.mxu1 %v16570_v0  ;;  %v16650_v0 = vcombine.low %v722_v47, %v730_v48  ;;  %v817_v48 = vld [vmem:[#allocation6 + $0xb80] sm:$0xff] }
 0x106   :  { %6867 = vmatprep.subr.bf16.mxu1 %v16587_v1 }
 0x109   :  { %6868 = vmatpush1.bf16.msra.mxu1 %v16586_v2  ;;  %v16665_v2 = vcombine.high %v737_v55, %v745_v57 }
 0x10a   :  { %6869 = vmatprep.subr.bf16.mxu1 %v16603_v9  ;;  %v16664_v9 = vcombine.low %v737_v55, %v745_v57  ;;  %v826_v55 = vld [vmem:[#allocation6 + $0xbc8] sm:$0xff] }
 0x10d   :  { %6870 = vmatpush1.bf16.msra.mxu1 %v16602_v8 }
 0x10e   :  { %6871 = vmatprep.subr.bf16.mxu1 %v16619_v17  ;;  %v777_v17 = vld [vmem:[#allocation6 + $0xa40] sm:$0xff] }
 0x111   :  { %6872 = vmatpush1.bf16.msra.mxu1 %v16618_v16 }
 0x112   :  { %6882 = vmatprep.subr.bf16.mxu1 %v16635_v26  ;;  %v785_v26 = vld [vmem:[#allocation6 + $0xa80] sm:$0xff] }
 0x18f   :  { %v295_v34 = vpop.f32.mrb[0].mxu1 }
 0x190   :  { %v296_v35 = vadd.f32 %v295_v34, %v180_v32  ;;  %v297_v36 = vpop.f32.mrb[1].mxu1  ;;  %v786_v32 = vld [vmem:[#allocation6 + $0xa88] sm:$0xff]  ;;  %v16696_v34 = vcombine.low %v769_v15, %v777_v17 }
 0x191   :  { %v298_v37 = vadd.f32 %v297_v36, %v184_v33  ;;  %v299_v38 = vpop.f32.mrb[2].mxu1  ;;  %v794_v33 = vld [vmem:[#allocation6 + $0xac8] sm:$0xff]  ;;  %v16713_v36 = vcombine.high %v785_v26, %v793_v27 }
 0x192   :  { %v425_v40 = vmax.f32 %v296_v35, 0.0  ;;  %v300_v41 = vpop.f32.mrb[3].mxu1  ;;  %v16698_v35 = vcombine.low %v770_v18, %v778_v19  ;;  %v801_v38 = vld [vmem:[#allocation6 + $0xb00] sm:$0xff]  ;;  %v16714_v44 = vcombine.low %v786_v32, %v794_v33 }
 0x193   :  { %v426_v42 = vmax.f32 %v298_v37, 0.0  ;;  %v16715_v37 = vcombine.high %v786_v32, %v794_v33  ;;  %v802_v41 = vld [vmem:[#allocation6 + $0xb08] sm:$0xff] }
 0x194   :  { %v433_v43 = vmin.f32 %v425_v40, 6.0  ;;  %v809_v40 = vld [vmem:[#allocation6 + $0xb40] sm:$0xff]  ;;  %v890_v32 = vld [vmem:[#allocation6 + $0xdc8] sm:$0xff] }
 0x195   :  { %v434_v45 = vmin.f32 %v426_v42, 6.0  ;;  %v810_v42 = vld [vmem:[#allocation6 + $0xb48] sm:$0xff]  ;;  %v16729_v46 = vcombine.high %v801_v38, %v809_v40  ;;  %v16728_v58 = vcombine.low %v801_v38, %v809_v40  ;;  %v905_v38 = vld [vmem:[#allocation6 + $0xe40] sm:$0xff] }
 0x196   :  { %v19428_v52 = vpack.c.bf16 %v433_v43, %v433_v43  ;;  %v16712_v43 = vcombine.low %v785_v26, %v793_v27  ;;  %v16731_v47 = vcombine.high %v802_v41, %v810_v42  ;;  %v16730_v59 = vcombine.low %v802_v41, %v810_v42  ;;  %v889_v26 = vld [vmem:[#allocation6 + $0xdc0] sm:$0xff]  ;;  %v882_v27 = vld [vmem:[#allocation6 + $0xd88] sm:$0xff] }
 0x197   :  { %v19424_v50 = vpack.c.bf16 %v434_v45, %v434_v45  ;;  %v19426_v51 = vpop.f32.mrb[4].mxu1  ;;  %v898_v40 = vld [vmem:[#allocation6 + $0xe08] sm:$0xff]  ;;  %v19447_v42 = vsub.s32 2, %v19405_v28 }
 0x198   :  { %v338_v56 = vpop.f32.mrb[5].mxu1  ;;  %v906_v41 = vld [vmem:[#allocation6 + $0xe48] sm:$0xff] }
 0x199   :  { %6709 = vmatprep.mubr.bf16.mxu0 %v19424_v50  ;;  %6873 = vmatprep.mubr.bf16.mxu1 %v19424_v50  ;;  %v339_v60 = vadd.f32 %v338_v56, %v192_v49  ;;  %v340_v61 = vpop.f32.mrb[6].mxu1 }
 0x19a   :  { %6710 = vmatmul.mubr.bf16.vlgmr.msra.gmra.mrb[0].mxu0 %v19428_v52  ;;  %6874 = vmatmul.mubr.bf16.vlgmr.msra.gmra.mrb[16].mxu1 %v19428_v52  ;;  %v341_v62 = vpop.f32.mrb[7].mxu1 }
 0x19b   :  { %6719 = vmatpush1.bf16.msra.mxu0 %v16632_v24  ;;  %6883 = vmatpush1.bf16.msra.mxu1 %v16634_v25  ;;  %v428_v1 = vmax.f32 %v339_v60, 0.0  ;;  %v16697_v24 = vcombine.high %v769_v15, %v777_v17  ;;  %v16699_v25 = vcombine.high %v770_v18, %v778_v19  ;;  %v833_v62 = vld [vmem:[#allocation6 + $0xc00] sm:$0xff]  ;;  %v866_v19 = vld [vmem:[#allocation6 + $0xd08] sm:$0xff] }
 0x19c   :  { %6720 = vmatprep.subr.bf16.mxu0 %v16649_v53  ;;  %6884 = vmatprep.subr.bf16.mxu1 %v16651_v54  ;;  %v825_v53 = vld [vmem:[#allocation6 + $0xbc0] sm:$0xff]  ;;  %v818_v54 = vld [vmem:[#allocation6 + $0xb88] sm:$0xff] }
 0x19d   :  { %v436_v8 = vmin.f32 %v428_v1, 6.0  ;;  %v16745_v60 = vcombine.high %v817_v48, %v825_v53  ;;  %v16747_v61 = vcombine.high %v818_v54, %v826_v55  ;;  %v842_v1 = vld [vmem:[#allocation6 + $0xc48] sm:$0xff]  ;;  %v865_v17 = vld [vmem:[#allocation6 + $0xd00] sm:$0xff] }
 0x19e   :  { %v873_v18 = vld [vmem:[#allocation6 + $0xd40] sm:$0xff] }
 0x19f   :  { %6721 = vmatpush1.bf16.msra.mxu0 %v16648_v63  ;;  %6885 = vmatpush1.bf16.msra.mxu1 %v16650_v0  ;;  %v19434_v11 = vpack.c.bf16 %v436_v8, %v436_v8  ;;  %v19436_v12 = vpop.f32.mrb[8].mxu1  ;;  %v841_v63 = vld [vmem:[#allocation6 + $0xc40] sm:$0xff]  ;;  %v834_v0 = vld [vmem:[#allocation6 + $0xc08] sm:$0xff]  ;;  %v16792_v33 = vcombine.low %v865_v17, %v873_v18 }
 0x1a0   :  { %6722 = vmatprep.subr.bf16.mxu0 %v16665_v2  ;;  %6886 = vmatprep.subr.bf16.mxu1 %v16667_v3  ;;  %v19438_v16 = vpop.f32.mrb[9].mxu1  ;;  %v16744_v2 = vcombine.low %v817_v48, %v825_v53  ;;  %v16746_v3 = vcombine.low %v818_v54, %v826_v55  ;;  %v16761_v4 = vcombine.high %v833_v62, %v841_v63  ;;  %v850_v8 = vld [vmem:[#allocation6 + $0xc88] sm:$0xff]  ;;  %v913_v48 = vld [vmem:[#allocation6 + $0xe80] sm:$0xff] }
 0x1a1   :  { %6750 = vmatprep.mubr.bf16.mxu0 %v19434_v11  ;;  %6914 = vmatprep.mubr.bf16.mxu1 %v19434_v11  ;;  %v381_v20 = vpop.f32.mrb[10].mxu1  ;;  %v16763_v5 = vcombine.high %v834_v0, %v842_v1  ;;  %v921_v53 = vld [vmem:[#allocation6 + $0xec0] sm:$0xff]  ;;  %v914_v54 = vld [vmem:[#allocation6 + $0xe88] sm:$0xff] }
 0x1a2   :  { %v382_v21 = vpop.f32.mrb[11].mxu1  ;;  %v874_v20 = vld [vmem:[#allocation6 + $0xd48] sm:$0xff] }
 0x1a3   :  { %6723 = vmatpush1.bf16.msra.mxu0 %v16664_v9  ;;  %6887 = vmatpush1.bf16.msra.mxu1 %v16666_v10  ;;  %v858_v9 = vld [vmem:[#allocation6 + $0xcc8] sm:$0xff]  ;;  %v16760_v10 = vcombine.low %v833_v62, %v841_v63  ;;  %v16776_v21 = vcombine.low %v849_v6, %v857_v7  ;;  %v929_v62 = vld [vmem:[#allocation6 + $0xf00] sm:$0xff] }
 0x1a4   :  { %6724 = vmatprep.subr.bf16.mxu0 %v16681_v13  ;;  %6888 = vmatprep.subr.bf16.mxu1 %v16683_v14  ;;  %v16762_v13 = vcombine.low %v834_v0, %v842_v1  ;;  %v16777_v14 = vcombine.high %v849_v6, %v857_v7  ;;  %v16779_v15 = vcombine.high %v850_v8, %v858_v9  ;;  %v922_v55 = vld [vmem:[#allocation6 + $0xec8] sm:$0xff]  ;;  %v937_v63 = vld [vmem:[#allocation6 + $0xf40] sm:$0xff] }
 0x1a5   :  { %v930_v0 = vld [vmem:[#allocation6 + $0xf08] sm:$0xff]  ;;  %v16857_v6 = vcombine.high %v929_v62, %v937_v63 }
 0x1a6   :  { %v938_v1 = vld [vmem:[#allocation6 + $0xf48] sm:$0xff] }
 0x1a7   :  { %6725 = vmatpush1.bf16.msra.mxu0 %v16680_v22  ;;  %6889 = vmatpush1.bf16.msra.mxu1 %v16682_v23  ;;  %v19442_v45 = vpop.f32.mrb[12].mxu1  ;;  %v16778_v22 = vcombine.low %v850_v8, %v858_v9  ;;  %v16793_v23 = vcombine.high %v865_v17, %v873_v18  ;;  %v16859_v7 = vcombine.high %v930_v0, %v938_v1  ;;  %v945_v8 = vld [vmem:[#allocation6 + $0xf80] sm:$0xff] }
 0x1a8   :  { %6726 = vmatprep.subr.bf16.mxu0 %v16697_v24  ;;  %6890 = vmatprep.subr.bf16.mxu1 %v16699_v25  ;;  %v19444_v49 = vpop.f32.mrb[13].mxu1  ;;  %v16795_v24 = vcombine.high %v866_v19, %v874_v20  ;;  %v881_v25 = vld [vmem:[#allocation6 + $0xd80] sm:$0xff]  ;;  %v16856_v17 = vcombine.low %v929_v62, %v937_v63  ;;  %v16858_v18 = vcombine.low %v930_v0, %v938_v1  ;;  %v1010_v62 = vld [vmem:[#allocation6 + $0x1188] sm:$0xff] }
 0x1a9   :  { %v422_v56 = vpop.f32.mrb[14].mxu1  ;;  %v953_v9 = vld [vmem:[#allocation6 + $0xfc0] sm:$0xff]  ;;  %v1018_v63 = vld [vmem:[#allocation6 + $0x11c8] sm:$0xff] }
 0x1aa   :  { %v423_v57 = vpop.f32.mrb[15].mxu1  ;;  %v19450_v56 = vsub.s32 5, %v19405_v28 }
 0x1ab   :  { %6727 = vmatpush1.bf16.msra.mxu0 %v16696_v34  ;;  %6891 = vmatpush1.bf16.msra.mxu1 %v16698_v35  ;;  %v16794_v34 = vcombine.low %v866_v19, %v874_v20  ;;  %v16809_v35 = vcombine.high %v881_v25, %v889_v26  ;;  %v188_v57 = vrot.slane %v19410_v30, %v19447_v42  ;;  %v961_v20 = vld [vmem:[#allocation6 + $0x1000] sm:$0xff] }
 0x1ac   :  { %6728 = vmatprep.subr.bf16.mxu0 %v16713_v36  ;;  %6892 = vmatprep.subr.bf16.mxu1 %v16715_v37  ;;  %v16811_v36 = vcombine.high %v882_v27, %v890_v32  ;;  %v897_v37 = vld [vmem:[#allocation6 + $0xe00] sm:$0xff] }
 0x1af   :  { %6729 = vmatpush1.bf16.msra.mxu0 %v16712_v43  ;;  %6893 = vmatpush1.bf16.msra.mxu1 %v16714_v44  ;;  %v16808_v43 = vcombine.low %v881_v25, %v889_v26  ;;  %v16810_v44 = vcombine.low %v882_v27, %v890_v32  ;;  %v16872_v26 = vcombine.low %v945_v8, %v953_v9 }
 0x1b0   :  { %6730 = vmatprep.subr.bf16.mxu0 %v16729_v46  ;;  %6894 = vmatprep.subr.bf16.mxu1 %v16731_v47  ;;  %v16825_v46 = vcombine.high %v897_v37, %v905_v38  ;;  %v16827_v47 = vcombine.high %v898_v40, %v906_v41 }
 0x1b3   :  { %6731 = vmatpush1.bf16.msra.mxu0 %v16728_v58  ;;  %6895 = vmatpush1.bf16.msra.mxu1 %v16730_v59  ;;  %v16824_v58 = vcombine.low %v897_v37, %v905_v38  ;;  %v16826_v59 = vcombine.low %v898_v40, %v906_v41 }
 0x1b4   :  { %6732 = vmatprep.subr.bf16.mxu0 %v16745_v60  ;;  %6896 = vmatprep.subr.bf16.mxu1 %v16747_v61  ;;  %v16841_v60 = vcombine.high %v913_v48, %v921_v53  ;;  %v16843_v61 = vcombine.high %v914_v54, %v922_v55 }
 0x1b7   :  { %6733 = vmatpush1.bf16.msra.mxu0 %v16744_v2  ;;  %6897 = vmatpush1.bf16.msra.mxu1 %v16746_v3  ;;  %v200_v2 = vrot.slane %v19410_v30, %v19450_v56  ;;  %v337_v3 = vadd.f32 %v19426_v51, %v188_v57  ;;  %v16873_v51 = vcombine.high %v945_v8, %v953_v9 }
 0x1b8   :  { %6734 = vmatprep.subr.bf16.mxu0 %v16761_v4  ;;  %6898 = vmatprep.subr.bf16.mxu1 %v16763_v5  ;;  %v16840_v4 = vcombine.low %v913_v48, %v921_v53  ;;  %v16842_v5 = vcombine.low %v914_v54, %v922_v55  ;;  %v994_v48 = vld [vmem:[#allocation6 + $0x1108] sm:$0xff]  ;;  %v16938_v9 = vcombine.low %v1010_v62, %v1018_v63 }
 0x1b9   :  { %v1002_v53 = vld [vmem:[#allocation6 + $0x1148] sm:$0xff] }
 0x1ba   :  { %v16922_v1 = vcombine.low %v994_v48, %v1002_v53 }
 0x1bb   :  { %6735 = vmatpush1.bf16.msra.mxu0 %v16760_v10  ;;  %6899 = vmatpush1.bf16.msra.mxu1 %v16762_v13  ;;  %v946_v10 = vld [vmem:[#allocation6 + $0xf88] sm:$0xff] }
 0x1bc   :  { %6736 = vmatprep.subr.bf16.mxu0 %v16777_v14  ;;  %6900 = vmatprep.subr.bf16.mxu1 %v16779_v15  ;;  %v954_v13 = vld [vmem:[#allocation6 + $0xfc8] sm:$0xff]  ;;  %v380_v14 = vadd.f32 %v19438_v16, %v200_v2  ;;  %v427_v15 = vmax.f32 %v337_v3, 0.0  ;;  %v16939_v3 = vcombine.high %v1010_v62, %v1018_v63 }
 0x1bd   :  { %v16875_v19 = vcombine.high %v946_v10, %v954_v13  ;;  %v16874_v27 = vcombine.low %v946_v10, %v954_v13  ;;  %v1114_v62 = vld [vmem:[#allocation6 + $0x14c8] sm:$0xff] }
 0x1be   :  { %v435_v25 = vmin.f32 %v427_v15, 6.0  ;;  %v1049_v15 = vld [vmem:[#allocation6 + $0x12c0] sm:$0xff] }
 0x1bf   :  { %6737 = vmatpush1.bf16.msra.mxu0 %v16776_v21  ;;  %6901 = vmatpush1.bf16.msra.mxu1 %v16778_v22  ;;  %v969_v21 = vld [vmem:[#allocation6 + $0x1040] sm:$0xff]  ;;  %v962_v22 = vld [vmem:[#allocation6 + $0x1008] sm:$0xff] }
 0x1c0   :  { %6738 = vmatprep.subr.bf16.mxu0 %v16793_v23  ;;  %6902 = vmatprep.subr.bf16.mxu1 %v16795_v24  ;;  %v970_v23 = vld [vmem:[#allocation6 + $0x1048] sm:$0xff]  ;;  %v430_v24 = vmax.f32 %v380_v14, 0.0  ;;  %v16889_v16 = vcombine.high %v961_v20, %v969_v21  ;;  %v19458_v38 = vpack.c.bf16 %v435_v25, %v435_v25  ;;  %v16888_v40 = vcombine.low %v961_v20, %v969_v21  ;;  %v1041_v14 = vld [vmem:[#allocation6 + $0x1280] sm:$0xff] }
 0x1c1   :  { %v16891_v32 = vcombine.high %v962_v22, %v970_v23  ;;  %v16890_v41 = vcombine.low %v962_v22, %v970_v23  ;;  %v16969_v20 = vcombine.high %v1041_v14, %v1049_v15  ;;  %v1057_v22 = vld [vmem:[#allocation6 + $0x1300] sm:$0xff]  ;;  %v1066_v25 = vld [vmem:[#allocation6 + $0x1348] sm:$0xff] }
 0x1c2   :  { %v438_v37 = vmin.f32 %v430_v24, 6.0  ;;  %v1065_v23 = vld [vmem:[#allocation6 + $0x1340] sm:$0xff]  ;;  %v1058_v24 = vld [vmem:[#allocation6 + $0x1308] sm:$0xff] }
 0x1c3   :  { %6739 = vmatpush1.bf16.msra.mxu0 %v16792_v33  ;;  %6903 = vmatpush1.bf16.msra.mxu1 %v16794_v34  ;;  %v977_v33 = vld [vmem:[#allocation6 + $0x1080] sm:$0xff] }
 0x1c4   :  { %6740 = vmatprep.subr.bf16.mxu0 %v16809_v35  ;;  %6904 = vmatprep.subr.bf16.mxu1 %v16811_v36  ;;  %v985_v34 = vld [vmem:[#allocation6 + $0x10c0] sm:$0xff]  ;;  %v978_v35 = vld [vmem:[#allocation6 + $0x1088] sm:$0xff]  ;;  %v19460_v54 = vpack.c.bf16 %v438_v37, %v438_v37  ;;  %v16984_v37 = vcombine.low %v1057_v22, %v1065_v23 }
 0x1c5   :  { %v986_v36 = vld [vmem:[#allocation6 + $0x10c8] sm:$0xff]  ;;  %v16904_v55 = vcombine.low %v977_v33, %v985_v34 }
 0x1c6   :  { %v16906_v57 = vcombine.low %v978_v35, %v986_v36 }
 0x1c7   :  { %6741 = vmatpush1.bf16.msra.mxu0 %v16808_v43  ;;  %6905 = vmatpush1.bf16.msra.mxu1 %v16810_v44  ;;  %v16905_v43 = vcombine.high %v977_v33, %v985_v34  ;;  %v16907_v44 = vcombine.high %v978_v35, %v986_v36  ;;  %v1073_v33 = vld [vmem:[#allocation6 + $0x1380] sm:$0xff]  ;;  %v1074_v35 = vld [vmem:[#allocation6 + $0x1388] sm:$0xff] }
 0x1c8   :  { %6742 = vmatprep.subr.bf16.mxu0 %v16825_v46  ;;  %6906 = vmatprep.subr.bf16.mxu1 %v16827_v47  ;;  %v993_v46 = vld [vmem:[#allocation6 + $0x1100] sm:$0xff]  ;;  %v1082_v36 = vld [vmem:[#allocation6 + $0x13c8] sm:$0xff] }
 0x1c9   :  { %v1001_v47 = vld [vmem:[#allocation6 + $0x1140] sm:$0xff] }
 0x1ca   :  { %v16920_v0 = vcombine.low %v993_v46, %v1001_v47  ;;  %v1081_v34 = vld [vmem:[#allocation6 + $0x13c0] sm:$0xff] }
 0x1cb   :  { %6743 = vmatpush1.bf16.msra.mxu0 %v16824_v58  ;;  %6907 = vmatpush1.bf16.msra.mxu1 %v16826_v59  ;;  %v16921_v58 = vcombine.high %v993_v46, %v1001_v47  ;;  %v16923_v59 = vcombine.high %v994_v48, %v1002_v53  ;;  %v1097_v46 = vld [vmem:[#allocation6 + $0x1440] sm:$0xff]  ;;  %v1090_v47 = vld [vmem:[#allocation6 + $0x1408] sm:$0xff]  ;;  %v17000_v53 = vcombine.low %v1073_v33, %v1081_v34 }
 0x1cc   :  { %6744 = vmatprep.subr.bf16.mxu0 %v16841_v60  ;;  %6908 = vmatprep.subr.bf16.mxu1 %v16843_v61  ;;  %v1009_v60 = vld [vmem:[#allocation6 + $0x1180] sm:$0xff]  ;;  %v1098_v48 = vld [vmem:[#allocation6 + $0x1448] sm:$0xff] }
 0x1cd   :  { %v1017_v61 = vld [vmem:[#allocation6 + $0x11c0] sm:$0xff] }
 0x1ce   :  { %v16937_v2 = vcombine.high %v1009_v60, %v1017_v61  ;;  %v16936_v8 = vcombine.low %v1009_v60, %v1017_v61  ;;  %v1113_v60 = vld [vmem:[#allocation6 + $0x14c0] sm:$0xff]  ;;  %v1106_v61 = vld [vmem:[#allocation6 + $0x1488] sm:$0xff] }
 0x1cf   :  { %6745 = vmatpush1.bf16.msra.mxu0 %v16840_v4  ;;  %6909 = vmatpush1.bf16.msra.mxu1 %v16842_v5  ;;  %v1025_v4 = vld [vmem:[#allocation6 + $0x1200] sm:$0xff] }
 0x1d0   :  { %6746 = vmatprep.subr.bf16.mxu0 %v16857_v6  ;;  %6910 = vmatprep.subr.bf16.mxu1 %v16859_v7  ;;  %v1033_v5 = vld [vmem:[#allocation6 + $0x1240] sm:$0xff]  ;;  %v1026_v6 = vld [vmem:[#allocation6 + $0x1208] sm:$0xff] }
 0x1d1   :  { %v1034_v7 = vld [vmem:[#allocation6 + $0x1248] sm:$0xff]  ;;  %v16953_v10 = vcombine.high %v1025_v4, %v1033_v5 }
 0x1d2   :  { %v16955_v13 = vcombine.high %v1026_v6, %v1034_v7 }
 0x1d3   :  { %6747 = vmatpush1.bf16.msra.mxu0 %v16856_v17  ;;  %6911 = vmatpush1.bf16.msra.mxu1 %v16858_v18  ;;  %v1042_v17 = vld [vmem:[#allocation6 + $0x1288] sm:$0xff] }
 0x1d4   :  { %6748 = vmatprep.subr.bf16.mxu0 %v16873_v51  ;;  %6912 = vmatprep.subr.bf16.mxu1 %v16875_v19  ;;  %v1050_v18 = vld [vmem:[#allocation6 + $0x12c8] sm:$0xff]  ;;  %v16952_v51 = vcombine.low %v1025_v4, %v1033_v5  ;;  %v16954_v19 = vcombine.low %v1026_v6, %v1034_v7  ;;  %v1129_v4 = vld [vmem:[#allocation6 + $0x1540] sm:$0xff] }
 0x1d5   :  { %v16971_v21 = vcombine.high %v1042_v17, %v1050_v18  ;;  %v1122_v5 = vld [vmem:[#allocation6 + $0x1508] sm:$0xff] }
 0x1d6   :  { %v1130_v6 = vld [vmem:[#allocation6 + $0x1548] sm:$0xff] }
 0x1d7   :  { %6749 = vmatpush1.bf16.msra.mxu0 %v16872_v26  ;;  %6913 = vmatpush1.bf16.msra.mxu1 %v16874_v27  ;;  %v16968_v26 = vcombine.low %v1041_v14, %v1049_v15  ;;  %v16970_v27 = vcombine.low %v1042_v17, %v1050_v18  ;;  %v1145_v14 = vld [vmem:[#allocation6 + $0x15c0] sm:$0xff]  ;;  %v1138_v15 = vld [vmem:[#allocation6 + $0x1588] sm:$0xff] }
 0x1d8   :  { %6759 = vmatprep.subr.bf16.mxu0 %v16889_v16  ;;  %6923 = vmatprep.subr.bf16.mxu1 %v16891_v32  ;;  %v16985_v16 = vcombine.high %v1057_v22, %v1065_v23  ;;  %v16987_v32 = vcombine.high %v1058_v24, %v1066_v25  ;;  %v1146_v17 = vld [vmem:[#allocation6 + $0x15c8] sm:$0xff]  ;;  %v1161_v22 = vld [vmem:[#allocation6 + $0x1640] sm:$0xff] }
 0x1d9   :  { %v1154_v23 = vld [vmem:[#allocation6 + $0x1608] sm:$0xff] }
 0x1da   :  { %6751 = vmatmul.mubr.bf16.vlgmr.msra.gmra.mrb[0].mxu0 %v19458_v38  ;;  %6915 = vmatmul.mubr.bf16.vlgmr.msra.gmra.mrb[16].mxu1 %v19458_v38 }
 0x1db   :  { %6760 = vmatpush1.bf16.msra.mxu0 %v16888_v40  ;;  %6924 = vmatpush1.bf16.msra.mxu1 %v16890_v41  ;;  %v16986_v40 = vcombine.low %v1058_v24, %v1066_v25  ;;  %v17001_v41 = vcombine.high %v1073_v33, %v1081_v34  ;;  %v1162_v24 = vld [vmem:[#allocation6 + $0x1648] sm:$0xff]  ;;  %v19467_v25 = vsub.s32 4, %v19405_v28  ;;  %v1169_v33 = vld [vmem:[#allocation6 + $0x1680] sm:$0xff] }
 0x1dc   :  { %6761 = vmatprep.subr.bf16.mxu0 %v16905_v43  ;;  %6925 = vmatprep.subr.bf16.mxu1 %v16907_v44  ;;  %v17003_v43 = vcombine.high %v1074_v35, %v1082_v36  ;;  %v1089_v44 = vld [vmem:[#allocation6 + $0x1400] sm:$0xff] }
 0x1dd   :  { %6791 = vmatprep.mubr.bf16.mxu0 %v19460_v54  ;;  %6955 = vmatprep.mubr.bf16.mxu1 %v19460_v54  ;;  %v17016_v63 = vcombine.low %v1089_v44, %v1097_v46  ;;  %v1177_v34 = vld [vmem:[#allocation6 + $0x16c0] sm:$0xff] }
 0x1df   :  { %6762 = vmatpush1.bf16.msra.mxu0 %v16904_v55  ;;  %6926 = vmatpush1.bf16.msra.mxu1 %v16906_v57  ;;  %v17002_v55 = vcombine.low %v1074_v35, %v1082_v36  ;;  %v17017_v57 = vcombine.high %v1089_v44, %v1097_v46  ;;  %v1170_v35 = vld [vmem:[#allocation6 + $0x1688] sm:$0xff]  ;;  %v17097_v44 = vcombine.high %v1169_v33, %v1177_v34 }
 0x1e0   :  { %6763 = vmatprep.subr.bf16.mxu0 %v16921_v58  ;;  %6927 = vmatprep.subr.bf16.mxu1 %v16923_v59  ;;  %v17019_v58 = vcombine.high %v1090_v47, %v1098_v48  ;;  %v1105_v59 = vld [vmem:[#allocation6 + $0x1480] sm:$0xff]  ;;  %v1178_v36 = vld [vmem:[#allocation6 + $0x16c8] sm:$0xff] }
 0x1e1   :  { %v17032_v7 = vcombine.low %v1105_v59, %v1113_v60  ;;  %v17099_v46 = vcombine.high %v1170_v35, %v1178_v36 }
 0x1e3   :  { %6764 = vmatpush1.bf16.msra.mxu0 %v16920_v0  ;;  %6928 = vmatpush1.bf16.msra.mxu1 %v16922_v1  ;;  %v17018_v0 = vcombine.low %v1090_v47, %v1098_v48  ;;  %v17033_v1 = vcombine.high %v1105_v59, %v1113_v60  ;;  %v1185_v47 = vld [vmem:[#allocation6 + $0x1700] sm:$0xff]  ;;  %v17096_v59 = vcombine.low %v1169_v33, %v1177_v34  ;;  %v1250_v34 = vld [vmem:[#allocation6 + $0x1908] sm:$0xff] }
 0x1e4   :  { %6765 = vmatprep.subr.bf16.mxu0 %v16937_v2  ;;  %6929 = vmatprep.subr.bf16.mxu1 %v16939_v3  ;;  %v17035_v2 = vcombine.high %v1106_v61, %v1114_v62  ;;  %v1121_v3 = vld [vmem:[#allocation6 + $0x1500] sm:$0xff]  ;;  %v17098_v60 = vcombine.low %v1170_v35, %v1178_v36  ;;  %v1258_v35 = vld [vmem:[#allocation6 + $0x1948] sm:$0xff] }
 0x1e5   :  { %v17048_v18 = vcombine.low %v1121_v3, %v1129_v4  ;;  %v1193_v48 = vld [vmem:[#allocation6 + $0x1740] sm:$0xff] }
 0x1e6   :  { %v1257_v33 = vld [vmem:[#allocation6 + $0x1940] sm:$0xff] }
 0x1e7   :  { %6766 = vmatpush1.bf16.msra.mxu0 %v16936_v8  ;;  %6930 = vmatpush1.bf16.msra.mxu1 %v16938_v9  ;;  %v17034_v8 = vcombine.low %v1106_v61, %v1114_v62  ;;  %v17049_v9 = vcombine.high %v1121_v3, %v1129_v4  ;;  %v17113_v61 = vcombine.high %v1185_v47, %v1193_v48 }
 0x1e8   :  { %6767 = vmatprep.subr.bf16.mxu0 %v16953_v10  ;;  %6931 = vmatprep.subr.bf16.mxu1 %v16955_v13  ;;  %v17051_v10 = vcombine.high %v1122_v5, %v1130_v6  ;;  %v1137_v13 = vld [vmem:[#allocation6 + $0x1580] sm:$0xff] }
 0x1eb   :  { %6768 = vmatpush1.bf16.msra.mxu0 %v16952_v51  ;;  %6932 = vmatpush1.bf16.msra.mxu1 %v16954_v19  ;;  %v17050_v51 = vcombine.low %v1122_v5, %v1130_v6  ;;  %v17065_v19 = vcombine.high %v1137_v13, %v1145_v14 }
 0x1ec   :  { %6769 = vmatprep.subr.bf16.mxu0 %v16969_v20  ;;  %6933 = vmatprep.subr.bf16.mxu1 %v16971_v21  ;;  %v17067_v20 = vcombine.high %v1138_v15, %v1146_v17  ;;  %v1153_v21 = vld [vmem:[#allocation6 + $0x1600] sm:$0xff] }
 0x1ef   :  { %6770 = vmatpush1.bf16.msra.mxu0 %v16968_v26  ;;  %6934 = vmatpush1.bf16.msra.mxu1 %v16970_v27  ;;  %v17064_v26 = vcombine.low %v1137_v13, %v1145_v14  ;;  %v17066_v27 = vcombine.low %v1138_v15, %v1146_v17 }
 0x1f0   :  { %6771 = vmatprep.subr.bf16.mxu0 %v16985_v16  ;;  %6935 = vmatprep.subr.bf16.mxu1 %v16987_v32  ;;  %v17081_v16 = vcombine.high %v1153_v21, %v1161_v22  ;;  %v17083_v32 = vcombine.high %v1154_v23, %v1162_v24 }
 0x1f3   :  { %6772 = vmatpush1.bf16.msra.mxu0 %v16984_v37  ;;  %6936 = vmatpush1.bf16.msra.mxu1 %v16986_v40  ;;  %v19470_v37 = vsub.s32 7, %v19405_v28  ;;  %v196_v40 = vrot.slane %v19410_v30, %v19467_v25 }
 0x1f4   :  { %6773 = vmatprep.subr.bf16.mxu0 %v17001_v41  ;;  %6937 = vmatprep.subr.bf16.mxu1 %v17003_v43  ;;  %v17080_v41 = vcombine.low %v1153_v21, %v1161_v22  ;;  %v17082_v43 = vcombine.low %v1154_v23, %v1162_v24  ;;  %v1242_v21 = vld [vmem:[#allocation6 + $0x18c8] sm:$0xff] }
 0x1f7   :  { %6774 = vmatpush1.bf16.msra.mxu0 %v17000_v53  ;;  %6938 = vmatpush1.bf16.msra.mxu1 %v17002_v55  ;;  %v1186_v53 = vld [vmem:[#allocation6 + $0x1708] sm:$0xff] }
 0x1f8   :  { %6775 = vmatprep.subr.bf16.mxu0 %v17017_v57  ;;  %6939 = vmatprep.subr.bf16.mxu1 %v17019_v58  ;;  %v1194_v55 = vld [vmem:[#allocation6 + $0x1748] sm:$0xff]  ;;  %v208_v57 = vrot.slane %v19410_v30, %v19470_v37  ;;  %v378_v58 = vadd.f32 %v19436_v12, %v196_v40  ;;  %v17112_v30 = vcombine.low %v1185_v47, %v1193_v48  ;;  %v1273_v47 = vld [vmem:[#allocation6 + $0x19c0] sm:$0xff] }
 0x1f9   :  { %v17115_v62 = vcombine.high %v1186_v53, %v1194_v55  ;;  %v17114_v5 = vcombine.low %v1186_v53, %v1194_v55  ;;  %v1266_v48 = vld [vmem:[#allocation6 + $0x1988] sm:$0xff] }
 0x1fa   :  { %v421_v3 = vadd.f32 %v19444_v49, %v208_v57  ;;  %v429_v4 = vmax.f32 %v378_v58, 0.0  ;;  %v1274_v53 = vld [vmem:[#allocation6 + $0x19c8] sm:$0xff]  ;;  %v17178_v57 = vcombine.low %v1250_v34, %v1258_v35 }
 0x1fb   :  { %6776 = vmatpush1.bf16.msra.mxu0 %v17016_v63  ;;  %6940 = vmatpush1.bf16.msra.mxu1 %v17018_v0  ;;  %v1201_v63 = vld [vmem:[#allocation6 + $0x1780] sm:$0xff] }
 0x1fc   :  { %6777 = vmatprep.subr.bf16.mxu0 %v17033_v1  ;;  %6941 = vmatprep.subr.bf16.mxu1 %v17035_v2  ;;  %v1209_v0 = vld [vmem:[#allocation6 + $0x17c0] sm:$0xff]  ;;  %v1202_v1 = vld [vmem:[#allocation6 + $0x1788] sm:$0xff]  ;;  %v432_v13 = vmax.f32 %v421_v3, 0.0  ;;  %v437_v14 = vmin.f32 %v429_v4, 6.0 }
 0x1fd   :  { %v1210_v2 = vld [vmem:[#allocation6 + $0x17c8] sm:$0xff]  ;;  %v17129_v12 = vcombine.high %v1201_v63, %v1209_v0  ;;  %v17128_v15 = vcombine.low %v1201_v63, %v1209_v0  ;;  %v1297_v4 = vld [vmem:[#allocation6 + $0x1a80] sm:$0xff] }
 0x1fe   :  { %v17131_v6 = vcombine.high %v1202_v1, %v1210_v2  ;;  %v17130_v17 = vcombine.low %v1202_v1, %v1210_v2  ;;  %v440_v22 = vmin.f32 %v432_v13, 6.0  ;;  %v19478_v23 = vpack.c.bf16 %v437_v14, %v437_v14  ;;  %v1290_v63 = vld [vmem:[#allocation6 + $0x1a48] sm:$0xff]  ;;  %v1321_v13 = vld [vmem:[#allocation6 + $0x1b40] sm:$0xff] }
 0x1ff   :  { %6778 = vmatpush1.bf16.msra.mxu0 %v17032_v7  ;;  %6942 = vmatpush1.bf16.msra.mxu1 %v17034_v8  ;;  %v1217_v7 = vld [vmem:[#allocation6 + $0x1800] sm:$0xff]  ;;  %v17194_v1 = vcombine.low %v1266_v48, %v1274_v53  ;;  %v1314_v14 = vld [vmem:[#allocation6 + $0x1b08] sm:$0xff] }
 0x200   :  { %6779 = vmatprep.subr.bf16.mxu0 %v17049_v9  ;;  %6943 = vmatprep.subr.bf16.mxu1 %v17051_v10  ;;  %v1225_v8 = vld [vmem:[#allocation6 + $0x1840] sm:$0xff]  ;;  %v1218_v9 = vld [vmem:[#allocation6 + $0x1808] sm:$0xff]  ;;  %v19480_v36 = vpack.c.bf16 %v440_v22, %v440_v22 }
 0x201   :  { %v1226_v10 = vld [vmem:[#allocation6 + $0x1848] sm:$0xff]  ;;  %v17145_v49 = vcombine.high %v1217_v7, %v1225_v8  ;;  %v17144_v24 = vcombine.low %v1217_v7, %v1225_v8 }
 0x202   :  { %v1338_v22 = vld [vmem:[#allocation6 + $0x1bc8] sm:$0xff] }
 0x203   :  { %6780 = vmatpush1.bf16.msra.mxu0 %v17048_v18  ;;  %6944 = vmatpush1.bf16.msra.mxu1 %v17050_v51  ;;  %v17147_v18 = vcombine.high %v1218_v9, %v1226_v10  ;;  %v1233_v51 = vld [vmem:[#allocation6 + $0x1880] sm:$0xff] }
 0x204   :  { %6781 = vmatprep.subr.bf16.mxu0 %v17065_v19  ;;  %6945 = vmatprep.subr.bf16.mxu1 %v17067_v20  ;;  %v1241_v19 = vld [vmem:[#allocation6 + $0x18c0] sm:$0xff]  ;;  %v1234_v20 = vld [vmem:[#allocation6 + $0x1888] sm:$0xff] }
 0x205   :  { %v17160_v40 = vcombine.low %v1233_v51, %v1241_v19 }
 0x207   :  { %6782 = vmatpush1.bf16.msra.mxu0 %v17064_v26  ;;  %6946 = vmatpush1.bf16.msra.mxu1 %v17066_v27  ;;  %v17146_v26 = vcombine.low %v1218_v9, %v1226_v10  ;;  %v17161_v27 = vcombine.high %v1233_v51, %v1241_v19  ;;  %v1313_v10 = vld [vmem:[#allocation6 + $0x1b00] sm:$0xff] }
 0x208   :  { %6783 = vmatprep.subr.bf16.mxu0 %v17081_v16  ;;  %6947 = vmatprep.subr.bf16.mxu1 %v17083_v32  ;;  %v17163_v16 = vcombine.high %v1234_v20, %v1242_v21  ;;  %v1249_v32 = vld [vmem:[#allocation6 + $0x1900] sm:$0xff] }
 0x209   :  { %v17176_v55 = vcombine.low %v1249_v32, %v1257_v33  ;;  %v1329_v19 = vld [vmem:[#allocation6 + $0x1b80] sm:$0xff] }
 0x20b   :  { %6784 = vmatpush1.bf16.msra.mxu0 %v17080_v41  ;;  %6948 = vmatpush1.bf16.msra.mxu1 %v17082_v43  ;;  %v17162_v41 = vcombine.low %v1234_v20, %v1242_v21  ;;  %v17177_v43 = vcombine.high %v1249_v32, %v1257_v33  ;;  %v1337_v20 = vld [vmem:[#allocation6 + $0x1bc0] sm:$0xff]  ;;  %v1330_v21 = vld [vmem:[#allocation6 + $0x1b88] sm:$0xff] }
 0x20c   :  { %6785 = vmatprep.subr.bf16.mxu0 %v17097_v44  ;;  %6949 = vmatprep.subr.bf16.mxu1 %v17099_v46  ;;  %v17179_v44 = vcombine.high %v1250_v34, %v1258_v35  ;;  %v1265_v46 = vld [vmem:[#allocation6 + $0x1980] sm:$0xff]  ;;  %v1346_v34 = vld [vmem:[#allocation6 + $0x1c08] sm:$0xff] }
 0x20d   :  { %v17193_v58 = vcombine.high %v1265_v46, %v1273_v47  ;;  %v17192_v0 = vcombine.low %v1265_v46, %v1273_v47  ;;  %v1345_v32 = vld [vmem:[#allocation6 + $0x1c00] sm:$0xff]  ;;  %v1354_v35 = vld [vmem:[#allocation6 + $0x1c48] sm:$0xff] }
 0x20e   :  { %v1353_v33 = vld [vmem:[#allocation6 + $0x1c40] sm:$0xff] }
 0x20f   :  { %6786 = vmatpush1.bf16.msra.mxu0 %v17096_v59  ;;  %6950 = vmatpush1.bf16.msra.mxu1 %v17098_v60  ;;  %v17195_v59 = vcombine.high %v1266_v48, %v1274_v53  ;;  %v1281_v60 = vld [vmem:[#allocation6 + $0x1a00] sm:$0xff]  ;;  %v1362_v48 = vld [vmem:[#allocation6 + $0x1c88] sm:$0xff] }
 0x210   :  { %6787 = vmatprep.subr.bf16.mxu0 %v17113_v61  ;;  %6951 = vmatprep.subr.bf16.mxu1 %v17115_v62  ;;  %v1289_v61 = vld [vmem:[#allocation6 + $0x1a40] sm:$0xff]  ;;  %v1282_v62 = vld [vmem:[#allocation6 + $0x1a08] sm:$0xff] }
 0x211   :  { %v17209_v2 = vcombine.high %v1281_v60, %v1289_v61  ;;  %v17211_v3 = vcombine.high %v1282_v62, %v1290_v63  ;;  %v17210_v7 = vcombine.low %v1282_v62, %v1290_v63  ;;  %v1361_v46 = vld [vmem:[#allocation6 + $0x1c80] sm:$0xff]  ;;  %v1370_v53 = vld [vmem:[#allocation6 + $0x1cc8] sm:$0xff] }
 0x212   :  { %v1369_v47 = vld [vmem:[#allocation6 + $0x1cc0] sm:$0xff]  ;;  %v1378_v62 = vld [vmem:[#allocation6 + $0x1d08] sm:$0xff] }
 0x213   :  { %6788 = vmatpush1.bf16.msra.mxu0 %v17112_v30  ;;  %6952 = vmatpush1.bf16.msra.mxu1 %v17114_v5  ;;  %v1305_v30 = vld [vmem:[#allocation6 + $0x1ac0] sm:$0xff]  ;;  %v1298_v5 = vld [vmem:[#allocation6 + $0x1a88] sm:$0xff] }
 0x214   :  { %6789 = vmatprep.subr.bf16.mxu0 %v17129_v12  ;;  %6953 = vmatprep.subr.bf16.mxu1 %v17131_v6  ;;  %v1306_v12 = vld [vmem:[#allocation6 + $0x1ac8] sm:$0xff]  ;;  %v17208_v6 = vcombine.low %v1281_v60, %v1289_v61  ;;  %v17225_v8 = vcombine.high %v1297_v4, %v1305_v30  ;;  %v1377_v60 = vld [vmem:[#allocation6 + $0x1d00] sm:$0xff] }
 0x215   :  { %v17227_v9 = vcombine.high %v1298_v5, %v1306_v12  ;;  %v1385_v61 = vld [vmem:[#allocation6 + $0x1d40] sm:$0xff]  ;;  %v1386_v63 = vld [vmem:[#allocation6 + $0x1d48] sm:$0xff] }
 0x217   :  { %6790 = vmatpush1.bf16.msra.mxu0 %v17128_v15  ;;  %6954 = vmatpush1.bf16.msra.mxu1 %v17130_v17  ;;  %v1322_v15 = vld [vmem:[#allocation6 + $0x1b48] sm:$0xff]  ;;  %v17224_v17 = vcombine.low %v1297_v4, %v1305_v30  ;;  %v1393_v4 = vld [vmem:[#allocation6 + $0x1d80] sm:$0xff] }
 0x218   :  { %6800 = vmatprep.subr.bf16.mxu0 %v17145_v49  ;;  %6964 = vmatprep.subr.bf16.mxu1 %v17147_v18  ;;  %v17226_v49 = vcombine.low %v1298_v5, %v1306_v12  ;;  %v17241_v18 = vcombine.high %v1313_v10, %v1321_v13  ;;  %v17243_v51 = vcombine.high %v1314_v14, %v1322_v15  ;;  %v1401_v30 = vld [vmem:[#allocation6 + $0x1dc0] sm:$0xff]  ;;  %v1394_v5 = vld [vmem:[#allocation6 + $0x1d88] sm:$0xff] }
 0x219   :  { %v1402_v12 = vld [vmem:[#allocation6 + $0x1dc8] sm:$0xff] }
 0x21a   :  { %6792 = vmatmul.mubr.bf16.vlgmr.msra.gmra.mrb[0].mxu0 %v19478_v23  ;;  %6956 = vmatmul.mubr.bf16.vlgmr.msra.gmra.mrb[16].mxu1 %v19478_v23 }
 0x21b   :  { %6801 = vmatpush1.bf16.msra.mxu0 %v17144_v24  ;;  %6965 = vmatpush1.bf16.msra.mxu1 %v17146_v26  ;;  %v17240_v24 = vcombine.low %v1313_v10, %v1321_v13  ;;  %v17242_v26 = vcombine.low %v1314_v14, %v1322_v15  ;;  %v1409_v10 = vld [vmem:[#allocation6 + $0x1e00] sm:$0xff]  ;;  %v1410_v14 = vld [vmem:[#allocation6 + $0x1e08] sm:$0xff] }
 0x21c   :  { %6802 = vmatprep.subr.bf16.mxu0 %v17161_v27  ;;  %6966 = vmatprep.subr.bf16.mxu1 %v17163_v16  ;;  %v17257_v27 = vcombine.high %v1329_v19, %v1337_v20  ;;  %v17259_v16 = vcombine.high %v1330_v21, %v1338_v22  ;;  %v1417_v13 = vld [vmem:[#allocation6 + $0x1e40] sm:$0xff]  ;;  %v1418_v15 = vld [vmem:[#allocation6 + $0x1e48] sm:$0xff] }
 0x21d   :  { %6832 = vmatprep.mubr.bf16.mxu0 %v19480_v36  ;;  %6996 = vmatprep.mubr.bf16.mxu1 %v19480_v36 }
 0x21f   :  { %6803 = vmatpush1.bf16.msra.mxu0 %v17160_v40  ;;  %6967 = vmatpush1.bf16.msra.mxu1 %v17162_v41  ;;  %v17256_v40 = vcombine.low %v1329_v19, %v1337_v20  ;;  %v17258_v41 = vcombine.low %v1330_v21, %v1338_v22  ;;  %v17339_v19 = vcombine.high %v1410_v14, %v1418_v15  ;;  %v1425_v20 = vld [vmem:[#allocation6 + $0x1e80] sm:$0xff]  ;;  %v1426_v22 = vld [vmem:[#allocation6 + $0x1e88] sm:$0xff] }
 0x220   :  { %6804 = vmatprep.subr.bf16.mxu0 %v17177_v43  ;;  %6968 = vmatprep.subr.bf16.mxu1 %v17179_v44  ;;  %v17273_v43 = vcombine.high %v1345_v32, %v1353_v33  ;;  %v17275_v44 = vcombine.high %v1346_v34, %v1354_v35  ;;  %v1433_v21 = vld [vmem:[#allocation6 + $0x1ec0] sm:$0xff] }
 0x223   :  { %6805 = vmatpush1.bf16.msra.mxu0 %v17176_v55  ;;  %6969 = vmatpush1.bf16.msra.mxu1 %v17178_v57  ;;  %v17272_v55 = vcombine.low %v1345_v32, %v1353_v33  ;;  %v17274_v57 = vcombine.low %v1346_v34, %v1354_v35  ;;  %v17353_v33 = vcombine.high %v1425_v20, %v1433_v21  ;;  %v1441_v34 = vld [vmem:[#allocation6 + $0x1f00] sm:$0xff] }
 0x224   :  { %6806 = vmatprep.subr.bf16.mxu0 %v17193_v58  ;;  %6970 = vmatprep.subr.bf16.mxu1 %v17195_v59  ;;  %v17289_v58 = vcombine.high %v1361_v46, %v1369_v47  ;;  %v17291_v59 = vcombine.high %v1362_v48, %v1370_v53  ;;  %v1449_v35 = vld [vmem:[#allocation6 + $0x1f40] sm:$0xff] }
 0x227   :  { %6807 = vmatpush1.bf16.msra.mxu0 %v17192_v0  ;;  %6971 = vmatpush1.bf16.msra.mxu1 %v17194_v1  ;;  %v17288_v0 = vcombine.low %v1361_v46, %v1369_v47  ;;  %v17290_v1 = vcombine.low %v1362_v48, %v1370_v53  ;;  %v17369_v47 = vcombine.high %v1441_v34, %v1449_v35  ;;  %v1457_v53 = vld [vmem:[#allocation6 + $0x1f80] sm:$0xff] }
 0x228   :  { %6808 = vmatprep.subr.bf16.mxu0 %v17209_v2  ;;  %6972 = vmatprep.subr.bf16.mxu1 %v17211_v3  ;;  %v17305_v2 = vcombine.high %v1377_v60, %v1385_v61  ;;  %v17307_v3 = vcombine.high %v1378_v62, %v1386_v63 }
 0x22b   :  { %6809 = vmatpush1.bf16.msra.mxu0 %v17208_v6  ;;  %6973 = vmatpush1.bf16.msra.mxu1 %v17210_v7  ;;  %v17304_v6 = vcombine.low %v1377_v60, %v1385_v61  ;;  %v17306_v7 = vcombine.low %v1378_v62, %v1386_v63 }
 0x22c   :  { %6810 = vmatprep.subr.bf16.mxu0 %v17225_v8  ;;  %6974 = vmatprep.subr.bf16.mxu1 %v17227_v9  ;;  %v17321_v8 = vcombine.high %v1393_v4, %v1401_v30  ;;  %v17323_v9 = vcombine.high %v1394_v5, %v1402_v12 }
 0x22f   :  { %6811 = vmatpush1.bf16.msra.mxu0 %v17224_v17  ;;  %6975 = vmatpush1.bf16.msra.mxu1 %v17226_v49  ;;  %v17320_v17 = vcombine.low %v1393_v4, %v1401_v30  ;;  %v17322_v49 = vcombine.low %v1394_v5, %v1402_v12 }
 0x230   :  { %6812 = vmatprep.subr.bf16.mxu0 %v17241_v18  ;;  %6976 = vmatprep.subr.bf16.mxu1 %v17243_v51  ;;  %v19487_v18 = vsub.s32 6, %v19405_v28  ;;  %v17337_v51 = vcombine.high %v1409_v10, %v1417_v13 }
 0x233   :  { %6813 = vmatpush1.bf16.msra.mxu0 %v17240_v24  ;;  %6977 = vmatpush1.bf16.msra.mxu1 %v17242_v26  ;;  %v1434_v24 = vld [vmem:[#allocation6 + $0x1ec8] sm:$0xff]  ;;  %v17336_v26 = vcombine.low %v1409_v10, %v1417_v13 }
 0x234   :  { %6814 = vmatprep.subr.bf16.mxu0 %v17257_v27  ;;  %6978 = vmatprep.subr.bf16.mxu1 %v17259_v16  ;;  %v17338_v27 = vcombine.low %v1410_v14, %v1418_v15  ;;  %v18937_v16 = vld [vmem:[#allocation4] sm:$0xff]  ;;  %v17355_v28 = vcombine.high %v1426_v22, %v1434_v24 }
 0x235   :  { %v204_v32 = vrot.slane %v18937_v16, %v19487_v18  ;;  %v507_v16 = vld [vmem:[#allocation6 + $0x1d0] sm:$0xff] }
 0x237   :  { %6815 = vmatpush1.bf16.msra.mxu0 %v17256_v40  ;;  %6979 = vmatpush1.bf16.msra.mxu1 %v17258_v41  ;;  %v1442_v40 = vld [vmem:[#allocation6 + $0x1f08] sm:$0xff]  ;;  %v419_v46 = vadd.f32 %v19442_v45, %v204_v32  ;;  %v452_v45 = vld [vmem:[#allocation6 + $0x18] sm:$0xff] }
 0x238   :  { %6816 = vmatprep.subr.bf16.mxu0 %v17273_v43  ;;  %6980 = vmatprep.subr.bf16.mxu1 %v17275_v44  ;;  %v1450_v41 = vld [vmem:[#allocation6 + $0x1f48] sm:$0xff]  ;;  %v17352_v43 = vcombine.low %v1425_v20, %v1433_v21  ;;  %v17354_v44 = vcombine.low %v1426_v22, %v1434_v24  ;;  %v492_v20 = vld [vmem:[#allocation6 + $0x158] sm:$0xff] }
 0x239   :  { %v17371_v48 = vcombine.high %v1442_v40, %v1450_v41  ;;  %v17370_v60 = vcombine.low %v1442_v40, %v1450_v41  ;;  %v431_v61 = vmax.f32 %v419_v46, 0.0  ;;  %v500_v32 = vld [vmem:[#allocation6 + $0x198] sm:$0xff]  ;;  %v515_v41 = vld [vmem:[#allocation6 + $0x210] sm:$0xff] }
 0x23a   :  { %v524_v46 = vld [vmem:[#allocation6 + $0x258] sm:$0xff] }
 0x23b   :  { %6817 = vmatpush1.bf16.msra.mxu0 %v17272_v55  ;;  %6981 = vmatpush1.bf16.msra.mxu1 %v17274_v57  ;;  %v1465_v55 = vld [vmem:[#allocation6 + $0x1fc0] sm:$0xff]  ;;  %v1458_v57 = vld [vmem:[#allocation6 + $0x1f88] sm:$0xff]  ;;  %v439_v30 = vmin.f32 %v431_v61, 6.0 }
 0x23c   :  { %6818 = vmatprep.subr.bf16.mxu0 %v17289_v58  ;;  %6982 = vmatprep.subr.bf16.mxu1 %v17291_v59  ;;  %v1466_v58 = vld [vmem:[#allocation6 + $0x1fc8] sm:$0xff]  ;;  %v17368_v59 = vcombine.low %v1441_v34, %v1449_v35  ;;  %v17385_v62 = vcombine.high %v1457_v53, %v1465_v55 }
 0x23d   :  { %v17387_v63 = vcombine.high %v1458_v57, %v1466_v58  ;;  %v17386_v4 = vcombine.low %v1458_v57, %v1466_v58  ;;  %v19491_v13 = vpack.c.bf16 %v439_v30, %v439_v30  ;;  %v531_v57 = vld [vmem:[#allocation6 + $0x290] sm:$0xff] }
 0x23e   :  { %v539_v58 = vld [vmem:[#allocation6 + $0x2d0] sm:$0xff] }
 0x23f   :  { %6819 = vmatpush1.bf16.msra.mxu0 %v17288_v0  ;;  %6983 = vmatpush1.bf16.msra.mxu1 %v17290_v1  ;;  %v451_v0 = vld [vmem:[#allocation6 + $0x10] sm:$0xff] }
 0x240   :  { %6820 = vmatprep.subr.bf16.mxu0 %v17305_v2  ;;  %6984 = vmatprep.subr.bf16.mxu1 %v17307_v3  ;;  %v459_v1 = vld [vmem:[#allocation6 + $0x50] sm:$0xff]  ;;  %v460_v2 = vld [vmem:[#allocation6 + $0x58] sm:$0xff]  ;;  %v17384_v3 = vcombine.low %v1457_v53, %v1465_v55 }
 0x241   :  { %v16381_v5 = vcombine.high %v451_v0, %v459_v1  ;;  %v16383_v12 = vcombine.high %v452_v45, %v460_v2  ;;  %v16380_v10 = vcombine.low %v451_v0, %v459_v1  ;;  %v16382_v14 = vcombine.low %v452_v45, %v460_v2  ;;  %v547_v1 = vld [vmem:[#allocation6 + $0x310] sm:$0xff]  ;;  %v548_v2 = vld [vmem:[#allocation6 + $0x318] sm:$0xff] }
 0x242   :  { %v555_v45 = vld [vmem:[#allocation6 + $0x350] sm:$0xff] }
 0x243   :  { %6821 = vmatpush1.bf16.msra.mxu0 %v17304_v6  ;;  %6985 = vmatpush1.bf16.msra.mxu1 %v17306_v7  ;;  %v467_v6 = vld [vmem:[#allocation6 + $0x90] sm:$0xff] }
 0x244   :  { %6822 = vmatprep.subr.bf16.mxu0 %v17321_v8  ;;  %6986 = vmatprep.subr.bf16.mxu1 %v17323_v9  ;;  %v475_v7 = vld [vmem:[#allocation6 + $0xd0] sm:$0xff]  ;;  %v468_v8 = vld [vmem:[#allocation6 + $0x98] sm:$0xff] }
 0x245   :  { %v476_v9 = vld [vmem:[#allocation6 + $0xd8] sm:$0xff]  ;;  %v16397_v15 = vcombine.high %v467_v6, %v475_v7  ;;  %v16396_v21 = vcombine.low %v467_v6, %v475_v7  ;;  %v563_v6 = vld [vmem:[#allocation6 + $0x390] sm:$0xff] }
 0x246   :  { %v16398_v22 = vcombine.low %v468_v8, %v476_v9  ;;  %v571_v7 = vld [vmem:[#allocation6 + $0x3d0] sm:$0xff] }
 0x247   :  { %6823 = vmatpush1.bf16.msra.mxu0 %v17320_v17  ;;  %6987 = vmatpush1.bf16.msra.mxu1 %v17322_v49  ;;  %v16399_v17 = vcombine.high %v468_v8, %v476_v9  ;;  %v483_v49 = vld [vmem:[#allocation6 + $0x110] sm:$0xff]  ;;  %v564_v8 = vld [vmem:[#allocation6 + $0x398] sm:$0xff] }
 0x248   :  { %6824 = vmatprep.subr.bf16.mxu0 %v17337_v51  ;;  %6988 = vmatprep.subr.bf16.mxu1 %v17339_v19  ;;  %v491_v51 = vld [vmem:[#allocation6 + $0x150] sm:$0xff]  ;;  %v484_v19 = vld [vmem:[#allocation6 + $0x118] sm:$0xff] }
 0x249   :  { %v16413_v24 = vcombine.high %v483_v49, %v491_v51  ;;  %v16414_v34 = vcombine.low %v484_v19, %v492_v20  ;;  %v572_v9 = vld [vmem:[#allocation6 + $0x3d8] sm:$0xff] }
 0x24b   :  { %6825 = vmatpush1.bf16.msra.mxu0 %v17336_v26  ;;  %6989 = vmatpush1.bf16.msra.mxu1 %v17338_v27  ;;  %v16415_v26 = vcombine.high %v484_v19, %v492_v20  ;;  %v499_v27 = vld [vmem:[#allocation6 + $0x190] sm:$0xff]  ;;  %v580_v19 = vld [vmem:[#allocation6 + $0x418] sm:$0xff] }
 0x24c   :  { %6826 = vmatprep.subr.bf16.mxu0 %v17353_v33  ;;  %6990 = vmatprep.subr.bf16.mxu1 %v17355_v28  ;;  %v508_v33 = vld [vmem:[#allocation6 + $0x1d8] sm:$0xff]  ;;  %v16412_v28 = vcombine.low %v483_v49, %v491_v51  ;;  %v16429_v35 = vcombine.high %v499_v27, %v507_v16  ;;  %v579_v49 = vld [vmem:[#allocation6 + $0x410] sm:$0xff] }
 0x24d   :  { %v16431_v40 = vcombine.high %v500_v32, %v508_v33  ;;  %v587_v51 = vld [vmem:[#allocation6 + $0x450] sm:$0xff]  ;;  %v588_v20 = vld [vmem:[#allocation6 + $0x458] sm:$0xff] }
 0x24f   :  { %6827 = vmatpush1.bf16.msra.mxu0 %v17352_v43  ;;  %6991 = vmatpush1.bf16.msra.mxu1 %v17354_v44  ;;  %v523_v43 = vld [vmem:[#allocation6 + $0x250] sm:$0xff]  ;;  %v516_v44 = vld [vmem:[#allocation6 + $0x218] sm:$0xff] }
 0x250   :  { %6828 = vmatprep.subr.bf16.mxu0 %v17369_v47  ;;  %6992 = vmatprep.subr.bf16.mxu1 %v17371_v48  ;;  %v16428_v47 = vcombine.low %v499_v27, %v507_v16  ;;  %v16430_v48 = vcombine.low %v500_v32, %v508_v33  ;;  %v16445_v53 = vcombine.high %v515_v41, %v523_v43  ;;  %v595_v27 = vld [vmem:[#allocation6 + $0x490] sm:$0xff]  ;;  %v596_v32 = vld [vmem:[#allocation6 + $0x498] sm:$0xff] }
 0x251   :  { %v16447_v55 = vcombine.high %v516_v44, %v524_v46  ;;  %v16444_v61 = vcombine.low %v515_v41, %v523_v43  ;;  %v603_v16 = vld [vmem:[#allocation6 + $0x4d0] sm:$0xff]  ;;  %v604_v33 = vld [vmem:[#allocation6 + $0x4d8] sm:$0xff] }
 0x252   :  { %v611_v41 = vld [vmem:[#allocation6 + $0x510] sm:$0xff] }
 0x253   :  { %6829 = vmatpush1.bf16.msra.mxu0 %v17368_v59  ;;  %6993 = vmatpush1.bf16.msra.mxu1 %v17370_v60  ;;  %v532_v59 = vld [vmem:[#allocation6 + $0x298] sm:$0xff]  ;;  %v619_v43 = vld [vmem:[#allocation6 + $0x550] sm:$0xff] }
 0x254   :  { %6830 = vmatprep.subr.bf16.mxu0 %v17385_v62  ;;  %6994 = vmatprep.subr.bf16.mxu1 %v17387_v63  ;;  %v540_v60 = vld [vmem:[#allocation6 + $0x2d8] sm:$0xff]  ;;  %v16446_v62 = vcombine.low %v516_v44, %v524_v46  ;;  %v16461_v63 = vcombine.high %v531_v57, %v539_v58 }
 0x255   :  { %v16463_v0 = vcombine.high %v532_v59, %v540_v60  ;;  %v16462_v30 = vcombine.low %v532_v59, %v540_v60  ;;  %v612_v44 = vld [vmem:[#allocation6 + $0x518] sm:$0xff] }
 0x256   :  { %v620_v46 = vld [vmem:[#allocation6 + $0x558] sm:$0xff] }
 0x257   :  { %6831 = vmatpush1.bf16.msra.mxu0 %v17384_v3  ;;  %6995 = vmatpush1.bf16.msra.mxu1 %v17386_v4  ;;  %v556_v3 = vld [vmem:[#allocation6 + $0x358] sm:$0xff]  ;;  %v16460_v4 = vcombine.low %v531_v57, %v539_v58  ;;  %v627_v57 = vld [vmem:[#allocation6 + $0x590] sm:$0xff] }
 0x258   :  { %7005 = vmatprep.subr.bf16.mxu0 %v16381_v5  ;;  %7169 = vmatprep.subr.bf16.mxu1 %v16383_v12  ;;  %v16477_v5 = vcombine.high %v547_v1, %v555_v45  ;;  %v16479_v12 = vcombine.high %v548_v2, %v556_v3  ;;  %v635_v58 = vld [vmem:[#allocation6 + $0x5d0] sm:$0xff]  ;;  %v628_v59 = vld [vmem:[#allocation6 + $0x598] sm:$0xff] }
 0x259   :  { %v636_v60 = vld [vmem:[#allocation6 + $0x5d8] sm:$0xff] }
 0x25a   :  { %6833 = vmatmul.mubr.bf16.vlgmr.msra.gmra.mrb[0].mxu0 %v19491_v13  ;;  %6997 = vmatmul.mubr.bf16.vlgmr.msra.gmra.mrb[16].mxu1 %v19491_v13 }
 0x25b   :  { %7006 = vmatpush1.bf16.msra.mxu0 %v16380_v10  ;;  %7037 = vmatprep.mubr.bf16.mxu0 %v19424_v50  ;;  %v16476_v10 = vcombine.low %v547_v1, %v555_v45  ;;  %v643_v1 = vld [vmem:[#allocation6 + $0x610] sm:$0xff] }
 0x25c   :  { %7170 = vmatpush1.bf16.msra.mxu1 %v16382_v14  ;;  %7201 = vmatprep.mubr.bf16.mxu1 %v19424_v50  ;;  %v16478_v14 = vcombine.low %v548_v2, %v556_v3  ;;  %v651_v45 = vld [vmem:[#allocation6 + $0x650] sm:$0xff]  ;;  %v644_v2 = vld [vmem:[#allocation6 + $0x618] sm:$0xff] }
 0x25d   :  { %7007 = vmatprep.subr.bf16.mxu0 %v16397_v15  ;;  %7171 = vmatprep.subr.bf16.mxu1 %v16399_v17  ;;  %v16493_v15 = vcombine.high %v563_v6, %v571_v7  ;;  %v16495_v17 = vcombine.high %v564_v8, %v572_v9  ;;  %v652_v3 = vld [vmem:[#allocation6 + $0x658] sm:$0xff] }
 0x25f   :  { %7008 = vmatpush1.bf16.msra.mxu0 %v16396_v21  ;;  %v16492_v21 = vcombine.low %v563_v6, %v571_v7  ;;  %v659_v6 = vld [vmem:[#allocation6 + $0x690] sm:$0xff] }
 0x260   :  { %7172 = vmatpush1.bf16.msra.mxu1 %v16398_v22  ;;  %7009 = vmatprep.subr.bf16.mxu0 %v16413_v24  ;;  %v16494_v22 = vcombine.low %v564_v8, %v572_v9  ;;  %v16509_v24 = vcombine.high %v579_v49, %v587_v51  ;;  %v667_v7 = vld [vmem:[#allocation6 + $0x6d0] sm:$0xff]  ;;  %v660_v8 = vld [vmem:[#allocation6 + $0x698] sm:$0xff] }
 0x261   :  { %7173 = vmatprep.subr.bf16.mxu1 %v16415_v26  ;;  %v16511_v26 = vcombine.high %v580_v19, %v588_v20  ;;  %v668_v9 = vld [vmem:[#allocation6 + $0x6d8] sm:$0xff] }
 0x263   :  { %7010 = vmatpush1.bf16.msra.mxu0 %v16412_v28  ;;  %v16508_v28 = vcombine.low %v579_v49, %v587_v51  ;;  %v675_v49 = vld [vmem:[#allocation6 + $0x710] sm:$0xff] }
 0x264   :  { %7174 = vmatpush1.bf16.msra.mxu1 %v16414_v34  ;;  %7011 = vmatprep.subr.bf16.mxu0 %v16429_v35  ;;  %v16510_v34 = vcombine.low %v580_v19, %v588_v20  ;;  %v16525_v35 = vcombine.high %v595_v27, %v603_v16  ;;  %v683_v51 = vld [vmem:[#allocation6 + $0x750] sm:$0xff]  ;;  %v676_v19 = vld [vmem:[#allocation6 + $0x718] sm:$0xff] }
 0x265   :  { %7175 = vmatprep.subr.bf16.mxu1 %v16431_v40  ;;  %v16527_v40 = vcombine.high %v596_v32, %v604_v33  ;;  %v684_v20 = vld [vmem:[#allocation6 + $0x758] sm:$0xff] }
 0x267   :  { %7012 = vmatpush1.bf16.msra.mxu0 %v16428_v47  ;;  %v16524_v47 = vcombine.low %v595_v27, %v603_v16  ;;  %v691_v27 = vld [vmem:[#allocation6 + $0x790] sm:$0xff] }
 0x268   :  { %7176 = vmatpush1.bf16.msra.mxu1 %v16430_v48  ;;  %7013 = vmatprep.subr.bf16.mxu0 %v16445_v53  ;;  %v16526_v48 = vcombine.low %v596_v32, %v604_v33  ;;  %v16541_v53 = vcombine.high %v611_v41, %v619_v43  ;;  %v699_v16 = vld [vmem:[#allocation6 + $0x7d0] sm:$0xff]  ;;  %v692_v32 = vld [vmem:[#allocation6 + $0x798] sm:$0xff] }
 0x269   :  { %7177 = vmatprep.subr.bf16.mxu1 %v16447_v55  ;;  %v16543_v55 = vcombine.high %v612_v44, %v620_v46  ;;  %v700_v33 = vld [vmem:[#allocation6 + $0x7d8] sm:$0xff] }
 0x26b   :  { %7014 = vmatpush1.bf16.msra.mxu0 %v16444_v61  ;;  %v16540_v61 = vcombine.low %v611_v41, %v619_v43  ;;  %v707_v41 = vld [vmem:[#allocation6 + $0x810] sm:$0xff] }
 0x26c   :  { %7178 = vmatpush1.bf16.msra.mxu1 %v16446_v62  ;;  %7015 = vmatprep.subr.bf16.mxu0 %v16461_v63  ;;  %v16542_v62 = vcombine.low %v612_v44, %v620_v46  ;;  %v16557_v63 = vcombine.high %v627_v57, %v635_v58  ;;  %v715_v43 = vld [vmem:[#allocation6 + $0x850] sm:$0xff]  ;;  %v708_v44 = vld [vmem:[#allocation6 + $0x818] sm:$0xff] }
 0x26d   :  { %7179 = vmatprep.subr.bf16.mxu1 %v16463_v0  ;;  %v16559_v0 = vcombine.high %v628_v59, %v636_v60  ;;  %v716_v46 = vld [vmem:[#allocation6 + $0x858] sm:$0xff] }
 0x26f   :  { %7016 = vmatpush1.bf16.msra.mxu0 %v16460_v4  ;;  %v16556_v4 = vcombine.low %v627_v57, %v635_v58  ;;  %v723_v57 = vld [vmem:[#allocation6 + $0x890] sm:$0xff] }
 0x270   :  { %7180 = vmatpush1.bf16.msra.mxu1 %v16462_v30  ;;  %7017 = vmatprep.subr.bf16.mxu0 %v16477_v5  ;;  %v16558_v30 = vcombine.low %v628_v59, %v636_v60  ;;  %v16573_v5 = vcombine.high %v643_v1, %v651_v45  ;;  %v731_v58 = vld [vmem:[#allocation6 + $0x8d0] sm:$0xff]  ;;  %v16636_v59 = vcombine.low %v707_v41, %v715_v43  ;;  %v724_v60 = vld [vmem:[#allocation6 + $0x898] sm:$0xff] }
 0x271   :  { %7181 = vmatprep.subr.bf16.mxu1 %v16479_v12  ;;  %v16575_v12 = vcombine.high %v644_v2, %v652_v3 }
 0x273   :  { %7018 = vmatpush1.bf16.msra.mxu0 %v16476_v10  ;;  %v16572_v10 = vcombine.low %v643_v1, %v651_v45  ;;  %v747_v1 = vld [vmem:[#allocation6 + $0x950] sm:$0xff] }
 0x274   :  { %7182 = vmatpush1.bf16.msra.mxu1 %v16478_v14  ;;  %7019 = vmatprep.subr.bf16.mxu0 %v16493_v15  ;;  %v16574_v14 = vcombine.low %v644_v2, %v652_v3  ;;  %v16589_v15 = vcombine.high %v659_v6, %v667_v7  ;;  %v740_v2 = vld [vmem:[#allocation6 + $0x918] sm:$0xff] }
 0x275   :  { %7183 = vmatprep.subr.bf16.mxu1 %v16495_v17  ;;  %v16591_v17 = vcombine.high %v660_v8, %v668_v9  ;;  %v748_v3 = vld [vmem:[#allocation6 + $0x958] sm:$0xff] }
 0x277   :  { %7020 = vmatpush1.bf16.msra.mxu0 %v16492_v21  ;;  %v16588_v21 = vcombine.low %v659_v6, %v667_v7  ;;  %v755_v6 = vld [vmem:[#allocation6 + $0x990] sm:$0xff] }
 0x278   :  { %7184 = vmatpush1.bf16.msra.mxu1 %v16494_v22  ;;  %7021 = vmatprep.subr.bf16.mxu0 %v16509_v24  ;;  %v16590_v22 = vcombine.low %v660_v8, %v668_v9  ;;  %v16605_v24 = vcombine.high %v675_v49, %v683_v51  ;;  %v763_v7 = vld [vmem:[#allocation6 + $0x9d0] sm:$0xff]  ;;  %v756_v8 = vld [vmem:[#allocation6 + $0x998] sm:$0xff] }
 0x279   :  { %7185 = vmatprep.subr.bf16.mxu1 %v16511_v26  ;;  %v16607_v26 = vcombine.high %v676_v19, %v684_v20  ;;  %v764_v9 = vld [vmem:[#allocation6 + $0x9d8] sm:$0xff] }
 0x27b   :  { %7022 = vmatpush1.bf16.msra.mxu0 %v16508_v28  ;;  %v16604_v28 = vcombine.low %v675_v49, %v683_v51  ;;  %v771_v49 = vld [vmem:[#allocation6 + $0xa10] sm:$0xff] }
 0x27c   :  { %7186 = vmatpush1.bf16.msra.mxu1 %v16510_v34  ;;  %7023 = vmatprep.subr.bf16.mxu0 %v16525_v35  ;;  %v16606_v34 = vcombine.low %v676_v19, %v684_v20  ;;  %v16621_v35 = vcombine.high %v691_v27, %v699_v16  ;;  %v779_v51 = vld [vmem:[#allocation6 + $0xa50] sm:$0xff]  ;;  %v772_v19 = vld [vmem:[#allocation6 + $0xa18] sm:$0xff] }
 0x27d   :  { %7187 = vmatprep.subr.bf16.mxu1 %v16527_v40  ;;  %v16623_v40 = vcombine.high %v692_v32, %v700_v33  ;;  %v780_v20 = vld [vmem:[#allocation6 + $0xa58] sm:$0xff] }
 0x27f   :  { %7024 = vmatpush1.bf16.msra.mxu0 %v16524_v47  ;;  %v16620_v47 = vcombine.low %v691_v27, %v699_v16  ;;  %v787_v27 = vld [vmem:[#allocation6 + $0xa90] sm:$0xff] }
 0x280   :  { %7188 = vmatpush1.bf16.msra.mxu1 %v16526_v48  ;;  %7025 = vmatprep.subr.bf16.mxu0 %v16541_v53  ;;  %v16622_v48 = vcombine.low %v692_v32, %v700_v33  ;;  %v16637_v53 = vcombine.high %v707_v41, %v715_v43  ;;  %v795_v16 = vld [vmem:[#allocation6 + $0xad0] sm:$0xff]  ;;  %v788_v32 = vld [vmem:[#allocation6 + $0xa98] sm:$0xff] }
 0x281   :  { %7189 = vmatprep.subr.bf16.mxu1 %v16543_v55  ;;  %v16639_v55 = vcombine.high %v708_v44, %v716_v46  ;;  %v796_v33 = vld [vmem:[#allocation6 + $0xad8] sm:$0xff]  ;;  %v803_v41 = vld [vmem:[#allocation6 + $0xb10] sm:$0xff] }
 0x282   :  { %v811_v43 = vld [vmem:[#allocation6 + $0xb50] sm:$0xff] }
 0x283   :  { %7026 = vmatpush1.bf16.msra.mxu0 %v16540_v61  ;;  %v732_v61 = vld [vmem:[#allocation6 + $0x8d8] sm:$0xff] }
 0x284   :  { %7190 = vmatpush1.bf16.msra.mxu1 %v16542_v62  ;;  %7027 = vmatprep.subr.bf16.mxu0 %v16557_v63  ;;  %v16638_v62 = vcombine.low %v708_v44, %v716_v46  ;;  %v16653_v63 = vcombine.high %v723_v57, %v731_v58  ;;  %v16655_v45 = vcombine.high %v724_v60, %v732_v61  ;;  %v804_v44 = vld [vmem:[#allocation6 + $0xb18] sm:$0xff] }
 0x285   :  { %7191 = vmatprep.subr.bf16.mxu1 %v16559_v0  ;;  %v739_v0 = vld [vmem:[#allocation6 + $0x910] sm:$0xff]  ;;  %v812_v46 = vld [vmem:[#allocation6 + $0xb58] sm:$0xff] }
 0x287   :  { %7028 = vmatpush1.bf16.msra.mxu0 %v16556_v4  ;;  %v16652_v4 = vcombine.low %v723_v57, %v731_v58  ;;  %v819_v57 = vld [vmem:[#allocation6 + $0xb90] sm:$0xff] }
 0x288   :  { %7192 = vmatpush1.bf16.msra.mxu1 %v16558_v30  ;;  %7029 = vmatprep.subr.bf16.mxu0 %v16573_v5  ;;  %v16654_v30 = vcombine.low %v724_v60, %v732_v61  ;;  %v16669_v5 = vcombine.high %v739_v0, %v747_v1  ;;  %v827_v58 = vld [vmem:[#allocation6 + $0xbd0] sm:$0xff]  ;;  %v828_v60 = vld [vmem:[#allocation6 + $0xbd8] sm:$0xff]  ;;  %v16732_v61 = vcombine.low %v803_v41, %v811_v43 }
 0x289   :  { %7193 = vmatprep.subr.bf16.mxu1 %v16575_v12  ;;  %v16671_v12 = vcombine.high %v740_v2, %v748_v3 }
 0x28b   :  { %7030 = vmatpush1.bf16.msra.mxu0 %v16572_v10  ;;  %v16668_v10 = vcombine.low %v739_v0, %v747_v1  ;;  %v835_v1 = vld [vmem:[#allocation6 + $0xc10] sm:$0xff] }
 0x28c   :  { %7194 = vmatpush1.bf16.msra.mxu1 %v16574_v14  ;;  %7031 = vmatprep.subr.bf16.mxu0 %v16589_v15  ;;  %v16670_v14 = vcombine.low %v740_v2, %v748_v3  ;;  %v16685_v15 = vcombine.high %v755_v6, %v763_v7  ;;  %v836_v2 = vld [vmem:[#allocation6 + $0xc18] sm:$0xff] }
 0x28d   :  { %7195 = vmatprep.subr.bf16.mxu1 %v16591_v17  ;;  %v16687_v17 = vcombine.high %v756_v8, %v764_v9  ;;  %v844_v3 = vld [vmem:[#allocation6 + $0xc58] sm:$0xff] }
 0x28f   :  { %7032 = vmatpush1.bf16.msra.mxu0 %v16588_v21  ;;  %v16684_v21 = vcombine.low %v755_v6, %v763_v7  ;;  %v851_v6 = vld [vmem:[#allocation6 + $0xc90] sm:$0xff] }
 0x290   :  { %7196 = vmatpush1.bf16.msra.mxu1 %v16590_v22  ;;  %7033 = vmatprep.subr.bf16.mxu0 %v16605_v24  ;;  %v16686_v22 = vcombine.low %v756_v8, %v764_v9  ;;  %v16701_v24 = vcombine.high %v771_v49, %v779_v51  ;;  %v859_v7 = vld [vmem:[#allocation6 + $0xcd0] sm:$0xff]  ;;  %v852_v8 = vld [vmem:[#allocation6 + $0xc98] sm:$0xff] }
 0x291   :  { %7197 = vmatprep.subr.bf16.mxu1 %v16607_v26  ;;  %v16703_v26 = vcombine.high %v772_v19, %v780_v20  ;;  %v860_v9 = vld [vmem:[#allocation6 + $0xcd8] sm:$0xff] }
 0x293   :  { %7034 = vmatpush1.bf16.msra.mxu0 %v16604_v28  ;;  %v16700_v28 = vcombine.low %v771_v49, %v779_v51  ;;  %v867_v49 = vld [vmem:[#allocation6 + $0xd10] sm:$0xff] }
 0x294   :  { %7198 = vmatpush1.bf16.msra.mxu1 %v16606_v34  ;;  %7035 = vmatprep.subr.bf16.mxu0 %v16621_v35  ;;  %v16702_v34 = vcombine.low %v772_v19, %v780_v20  ;;  %v16717_v35 = vcombine.high %v787_v27, %v795_v16  ;;  %v875_v51 = vld [vmem:[#allocation6 + $0xd50] sm:$0xff]  ;;  %v868_v19 = vld [vmem:[#allocation6 + $0xd18] sm:$0xff] }
 0x295   :  { %7199 = vmatprep.subr.bf16.mxu1 %v16623_v40  ;;  %v16719_v40 = vcombine.high %v788_v32, %v796_v33  ;;  %v876_v20 = vld [vmem:[#allocation6 + $0xd58] sm:$0xff] }
 0x297   :  { %7036 = vmatpush1.bf16.msra.mxu0 %v16620_v47  ;;  %v16716_v47 = vcombine.low %v787_v27, %v795_v16  ;;  %v883_v27 = vld [vmem:[#allocation6 + $0xd90] sm:$0xff] }
 0x298   :  { %7200 = vmatpush1.bf16.msra.mxu1 %v16622_v48  ;;  %7046 = vmatprep.subr.bf16.mxu0 %v16637_v53  ;;  %v16718_v48 = vcombine.low %v788_v32, %v796_v33  ;;  %v16733_v53 = vcombine.high %v803_v41, %v811_v43  ;;  %v891_v16 = vld [vmem:[#allocation6 + $0xdd0] sm:$0xff]  ;;  %v884_v32 = vld [vmem:[#allocation6 + $0xd98] sm:$0xff] }
 0x299   :  { %7210 = vmatprep.subr.bf16.mxu1 %v16639_v55  ;;  %v16735_v55 = vcombine.high %v804_v44, %v812_v46  ;;  %v892_v33 = vld [vmem:[#allocation6 + $0xdd8] sm:$0xff]  ;;  %v899_v41 = vld [vmem:[#allocation6 + $0xe10] sm:$0xff] }
 0x29a   :  { %7038 = vmatmul.mubr.bf16.vlgmr.msra.gmra.mrb[4].mxu0 %v19428_v52  ;;  %v907_v43 = vld [vmem:[#allocation6 + $0xe50] sm:$0xff] }
 0x29b   :  { %7202 = vmatmul.mubr.bf16.vlgmr.msra.gmra.mrb[20].mxu1 %v19428_v52  ;;  %7047 = vmatpush1.bf16.msra.mxu0 %v16636_v59  ;;  %v820_v59 = vld [vmem:[#allocation6 + $0xb98] sm:$0xff] }
 0x29c   :  { %7078 = vmatprep.mubr.bf16.mxu0 %v19434_v11  ;;  %7211 = vmatpush1.bf16.msra.mxu1 %v16638_v62  ;;  %v16734_v62 = vcombine.low %v804_v44, %v812_v46  ;;  %v16751_v0 = vcombine.high %v820_v59, %v828_v60  ;;  %v900_v44 = vld [vmem:[#allocation6 + $0xe18] sm:$0xff] }
 0x29d   :  { %7242 = vmatprep.mubr.bf16.mxu1 %v19434_v11  ;;  %7048 = vmatprep.subr.bf16.mxu0 %v16653_v63  ;;  %v16749_v63 = vcombine.high %v819_v57, %v827_v58  ;;  %v908_v46 = vld [vmem:[#allocation6 + $0xe58] sm:$0xff] }
 0x29e   :  { %7212 = vmatprep.subr.bf16.mxu1 %v16655_v45  ;;  %v843_v45 = vld [vmem:[#allocation6 + $0xc50] sm:$0xff] }
 0x29f   :  { %7049 = vmatpush1.bf16.msra.mxu0 %v16652_v4  ;;  %v16748_v4 = vcombine.low %v819_v57, %v827_v58  ;;  %v915_v57 = vld [vmem:[#allocation6 + $0xe90] sm:$0xff] }
 0x2a0   :  { %7213 = vmatpush1.bf16.msra.mxu1 %v16654_v30  ;;  %7050 = vmatprep.subr.bf16.mxu0 %v16669_v5  ;;  %v16750_v30 = vcombine.low %v820_v59, %v828_v60  ;;  %v16765_v5 = vcombine.high %v835_v1, %v843_v45  ;;  %v923_v58 = vld [vmem:[#allocation6 + $0xed0] sm:$0xff]  ;;  %v916_v59 = vld [vmem:[#allocation6 + $0xe98] sm:$0xff] }
 0x2a1   :  { %7214 = vmatprep.subr.bf16.mxu1 %v16671_v12  ;;  %v16767_v12 = vcombine.high %v836_v2, %v844_v3  ;;  %v924_v60 = vld [vmem:[#allocation6 + $0xed8] sm:$0xff] }
 0x2a3   :  { %7051 = vmatpush1.bf16.msra.mxu0 %v16668_v10  ;;  %v16764_v10 = vcombine.low %v835_v1, %v843_v45  ;;  %v931_v1 = vld [vmem:[#allocation6 + $0xf10] sm:$0xff] }
 0x2a4   :  { %7215 = vmatpush1.bf16.msra.mxu1 %v16670_v14  ;;  %7052 = vmatprep.subr.bf16.mxu0 %v16685_v15  ;;  %v16766_v14 = vcombine.low %v836_v2, %v844_v3  ;;  %v16781_v15 = vcombine.high %v851_v6, %v859_v7  ;;  %v939_v45 = vld [vmem:[#allocation6 + $0xf50] sm:$0xff]  ;;  %v932_v2 = vld [vmem:[#allocation6 + $0xf18] sm:$0xff] }
 0x2a5   :  { %7216 = vmatprep.subr.bf16.mxu1 %v16687_v17  ;;  %v16783_v17 = vcombine.high %v852_v8, %v860_v9  ;;  %v940_v3 = vld [vmem:[#allocation6 + $0xf58] sm:$0xff] }
 0x2a7   :  { %7053 = vmatpush1.bf16.msra.mxu0 %v16684_v21  ;;  %v16780_v21 = vcombine.low %v851_v6, %v859_v7  ;;  %v947_v6 = vld [vmem:[#allocation6 + $0xf90] sm:$0xff] }
 0x2a8   :  { %7217 = vmatpush1.bf16.msra.mxu1 %v16686_v22  ;;  %7054 = vmatprep.subr.bf16.mxu0 %v16701_v24  ;;  %v16782_v22 = vcombine.low %v852_v8, %v860_v9  ;;  %v16797_v24 = vcombine.high %v867_v49, %v875_v51  ;;  %v955_v7 = vld [vmem:[#allocation6 + $0xfd0] sm:$0xff]  ;;  %v948_v8 = vld [vmem:[#allocation6 + $0xf98] sm:$0xff] }
 0x2a9   :  { %7218 = vmatprep.subr.bf16.mxu1 %v16703_v26  ;;  %v16799_v26 = vcombine.high %v868_v19, %v876_v20  ;;  %v956_v9 = vld [vmem:[#allocation6 + $0xfd8] sm:$0xff] }
 0x2ab   :  { %7055 = vmatpush1.bf16.msra.mxu0 %v16700_v28  ;;  %v16796_v28 = vcombine.low %v867_v49, %v875_v51  ;;  %v963_v49 = vld [vmem:[#allocation6 + $0x1010] sm:$0xff] }
 0x2ac   :  { %7219 = vmatpush1.bf16.msra.mxu1 %v16702_v34  ;;  %7056 = vmatprep.subr.bf16.mxu0 %v16717_v35  ;;  %v16798_v34 = vcombine.low %v868_v19, %v876_v20  ;;  %v16813_v35 = vcombine.high %v883_v27, %v891_v16  ;;  %v971_v51 = vld [vmem:[#allocation6 + $0x1050] sm:$0xff]  ;;  %v964_v19 = vld [vmem:[#allocation6 + $0x1018] sm:$0xff] }
 0x2ad   :  { %7220 = vmatprep.subr.bf16.mxu1 %v16719_v40  ;;  %v16815_v40 = vcombine.high %v884_v32, %v892_v33  ;;  %v972_v20 = vld [vmem:[#allocation6 + $0x1058] sm:$0xff] }
 0x2af   :  { %7057 = vmatpush1.bf16.msra.mxu0 %v16716_v47  ;;  %v16812_v47 = vcombine.low %v883_v27, %v891_v16  ;;  %v979_v27 = vld [vmem:[#allocation6 + $0x1090] sm:$0xff] }
 0x2b0   :  { %7221 = vmatpush1.bf16.msra.mxu1 %v16718_v48  ;;  %7058 = vmatprep.subr.bf16.mxu0 %v16733_v53  ;;  %v16814_v48 = vcombine.low %v884_v32, %v892_v33  ;;  %v16829_v53 = vcombine.high %v899_v41, %v907_v43  ;;  %v987_v16 = vld [vmem:[#allocation6 + $0x10d0] sm:$0xff]  ;;  %v16892_v32 = vcombine.low %v963_v49, %v971_v51  ;;  %v980_v33 = vld [vmem:[#allocation6 + $0x1098] sm:$0xff] }
 0x2b1   :  { %7222 = vmatprep.subr.bf16.mxu1 %v16735_v55  ;;  %v16831_v55 = vcombine.high %v900_v44, %v908_v46 }
 0x2b3   :  { %7059 = vmatpush1.bf16.msra.mxu0 %v16732_v61  ;;  %v16828_v61 = vcombine.low %v899_v41, %v907_v43  ;;  %v1003_v41 = vld [vmem:[#allocation6 + $0x1150] sm:$0xff] }
 0x2b4   :  { %7223 = vmatpush1.bf16.msra.mxu1 %v16734_v62  ;;  %7060 = vmatprep.subr.bf16.mxu0 %v16749_v63  ;;  %v16830_v62 = vcombine.low %v900_v44, %v908_v46  ;;  %v16845_v63 = vcombine.high %v915_v57, %v923_v58  ;;  %v996_v44 = vld [vmem:[#allocation6 + $0x1118] sm:$0xff] }
 0x2b5   :  { %7224 = vmatprep.subr.bf16.mxu1 %v16751_v0  ;;  %v16847_v0 = vcombine.high %v916_v59, %v924_v60  ;;  %v1004_v46 = vld [vmem:[#allocation6 + $0x1158] sm:$0xff] }
 0x2b7   :  { %7061 = vmatpush1.bf16.msra.mxu0 %v16748_v4  ;;  %v16844_v4 = vcombine.low %v915_v57, %v923_v58  ;;  %v1011_v57 = vld [vmem:[#allocation6 + $0x1190] sm:$0xff] }
 0x2b8   :  { %7225 = vmatpush1.bf16.msra.mxu1 %v16750_v30  ;;  %7062 = vmatprep.subr.bf16.mxu0 %v16765_v5  ;;  %v16846_v30 = vcombine.low %v916_v59, %v924_v60  ;;  %v16861_v5 = vcombine.high %v931_v1, %v939_v45  ;;  %v1019_v58 = vld [vmem:[#allocation6 + $0x11d0] sm:$0xff]  ;;  %v1012_v59 = vld [vmem:[#allocation6 + $0x1198] sm:$0xff] }
 0x2b9   :  { %7226 = vmatprep.subr.bf16.mxu1 %v16767_v12  ;;  %v16863_v12 = vcombine.high %v932_v2, %v940_v3  ;;  %v1020_v60 = vld [vmem:[#allocation6 + $0x11d8] sm:$0xff] }
 0x2bb   :  { %7063 = vmatpush1.bf16.msra.mxu0 %v16764_v10  ;;  %v16860_v10 = vcombine.low %v931_v1, %v939_v45  ;;  %v1027_v1 = vld [vmem:[#allocation6 + $0x1210] sm:$0xff] }
 0x2bc   :  { %7227 = vmatpush1.bf16.msra.mxu1 %v16766_v14  ;;  %7064 = vmatprep.subr.bf16.mxu0 %v16781_v15  ;;  %v16862_v14 = vcombine.low %v932_v2, %v940_v3  ;;  %v16877_v15 = vcombine.high %v947_v6, %v955_v7  ;;  %v1035_v45 = vld [vmem:[#allocation6 + $0x1250] sm:$0xff]  ;;  %v1028_v2 = vld [vmem:[#allocation6 + $0x1218] sm:$0xff] }
 0x2bd   :  { %7228 = vmatprep.subr.bf16.mxu1 %v16783_v17  ;;  %v16879_v17 = vcombine.high %v948_v8, %v956_v9  ;;  %v1036_v3 = vld [vmem:[#allocation6 + $0x1258] sm:$0xff] }
 0x2bf   :  { %7065 = vmatpush1.bf16.msra.mxu0 %v16780_v21  ;;  %v16876_v21 = vcombine.low %v947_v6, %v955_v7  ;;  %v1043_v6 = vld [vmem:[#allocation6 + $0x1290] sm:$0xff] }
 0x2c0   :  { %7229 = vmatpush1.bf16.msra.mxu1 %v16782_v22  ;;  %7066 = vmatprep.subr.bf16.mxu0 %v16797_v24  ;;  %v16878_v22 = vcombine.low %v948_v8, %v956_v9  ;;  %v16893_v24 = vcombine.high %v963_v49, %v971_v51  ;;  %v1051_v7 = vld [vmem:[#allocation6 + $0x12d0] sm:$0xff]  ;;  %v1044_v8 = vld [vmem:[#allocation6 + $0x1298] sm:$0xff] }
 0x2c1   :  { %7230 = vmatprep.subr.bf16.mxu1 %v16799_v26  ;;  %v16895_v26 = vcombine.high %v964_v19, %v972_v20  ;;  %v1052_v9 = vld [vmem:[#allocation6 + $0x12d8] sm:$0xff]  ;;  %v1059_v49 = vld [vmem:[#allocation6 + $0x1310] sm:$0xff] }
 0x2c2   :  { %v1067_v51 = vld [vmem:[#allocation6 + $0x1350] sm:$0xff] }
 0x2c3   :  { %7067 = vmatpush1.bf16.msra.mxu0 %v16796_v28  ;;  %v988_v28 = vld [vmem:[#allocation6 + $0x10d8] sm:$0xff] }
 0x2c4   :  { %7231 = vmatpush1.bf16.msra.mxu1 %v16798_v34  ;;  %7068 = vmatprep.subr.bf16.mxu0 %v16813_v35  ;;  %v16894_v34 = vcombine.low %v964_v19, %v972_v20  ;;  %v16909_v35 = vcombine.high %v979_v27, %v987_v16  ;;  %v16911_v43 = vcombine.high %v980_v33, %v988_v28  ;;  %v1060_v19 = vld [vmem:[#allocation6 + $0x1318] sm:$0xff] }
 0x2c5   :  { %7232 = vmatprep.subr.bf16.mxu1 %v16815_v40  ;;  %v995_v40 = vld [vmem:[#allocation6 + $0x1110] sm:$0xff]  ;;  %v1068_v20 = vld [vmem:[#allocation6 + $0x1358] sm:$0xff] }
 0x2c7   :  { %7069 = vmatpush1.bf16.msra.mxu0 %v16812_v47  ;;  %v16908_v47 = vcombine.low %v979_v27, %v987_v16  ;;  %v1075_v27 = vld [vmem:[#allocation6 + $0x1390] sm:$0xff] }
 0x2c8   :  { %7233 = vmatpush1.bf16.msra.mxu1 %v16814_v48  ;;  %7070 = vmatprep.subr.bf16.mxu0 %v16829_v53  ;;  %v16910_v48 = vcombine.low %v980_v33, %v988_v28  ;;  %v16925_v53 = vcombine.high %v995_v40, %v1003_v41  ;;  %v1083_v16 = vld [vmem:[#allocation6 + $0x13d0] sm:$0xff]  ;;  %v1084_v33 = vld [vmem:[#allocation6 + $0x13d8] sm:$0xff]  ;;  %v16988_v28 = vcombine.low %v1059_v49, %v1067_v51 }
 0x2c9   :  { %7234 = vmatprep.subr.bf16.mxu1 %v16831_v55  ;;  %v16927_v55 = vcombine.high %v996_v44, %v1004_v46 }
 0x2cb   :  { %7071 = vmatpush1.bf16.msra.mxu0 %v16828_v61  ;;  %v16924_v61 = vcombine.low %v995_v40, %v1003_v41  ;;  %v1091_v41 = vld [vmem:[#allocation6 + $0x1410] sm:$0xff] }
 0x2cc   :  { %7235 = vmatpush1.bf16.msra.mxu1 %v16830_v62  ;;  %7072 = vmatprep.subr.bf16.mxu0 %v16845_v63  ;;  %v16926_v62 = vcombine.low %v996_v44, %v1004_v46  ;;  %v16941_v63 = vcombine.high %v1011_v57, %v1019_v58  ;;  %v1092_v44 = vld [vmem:[#allocation6 + $0x1418] sm:$0xff] }
 0x2cd   :  { %7236 = vmatprep.subr.bf16.mxu1 %v16847_v0  ;;  %v16943_v0 = vcombine.high %v1012_v59, %v1020_v60  ;;  %v1100_v46 = vld [vmem:[#allocation6 + $0x1458] sm:$0xff] }
 0x2cf   :  { %7073 = vmatpush1.bf16.msra.mxu0 %v16844_v4  ;;  %v16940_v4 = vcombine.low %v1011_v57, %v1019_v58  ;;  %v1107_v57 = vld [vmem:[#allocation6 + $0x1490] sm:$0xff] }
 0x2d0   :  { %7237 = vmatpush1.bf16.msra.mxu1 %v16846_v30  ;;  %7074 = vmatprep.subr.bf16.mxu0 %v16861_v5  ;;  %v16942_v30 = vcombine.low %v1012_v59, %v1020_v60  ;;  %v16957_v5 = vcombine.high %v1027_v1, %v1035_v45  ;;  %v1115_v58 = vld [vmem:[#allocation6 + $0x14d0] sm:$0xff]  ;;  %v1108_v59 = vld [vmem:[#allocation6 + $0x1498] sm:$0xff] }
 0x2d1   :  { %7238 = vmatprep.subr.bf16.mxu1 %v16863_v12  ;;  %v16959_v12 = vcombine.high %v1028_v2, %v1036_v3  ;;  %v1116_v60 = vld [vmem:[#allocation6 + $0x14d8] sm:$0xff] }
 0x2d3   :  { %7075 = vmatpush1.bf16.msra.mxu0 %v16860_v10  ;;  %v16956_v10 = vcombine.low %v1027_v1, %v1035_v45  ;;  %v1123_v1 = vld [vmem:[#allocation6 + $0x1510] sm:$0xff] }
 0x2d4   :  { %7239 = vmatpush1.bf16.msra.mxu1 %v16862_v14  ;;  %7076 = vmatprep.subr.bf16.mxu0 %v16877_v15  ;;  %v16958_v14 = vcombine.low %v1028_v2, %v1036_v3  ;;  %v16973_v15 = vcombine.high %v1043_v6, %v1051_v7  ;;  %v1131_v45 = vld [vmem:[#allocation6 + $0x1550] sm:$0xff]  ;;  %v1124_v2 = vld [vmem:[#allocation6 + $0x1518] sm:$0xff] }
 0x2d5   :  { %7240 = vmatprep.subr.bf16.mxu1 %v16879_v17  ;;  %v16975_v17 = vcombine.high %v1044_v8, %v1052_v9  ;;  %v1132_v3 = vld [vmem:[#allocation6 + $0x1558] sm:$0xff] }
 0x2d7   :  { %7077 = vmatpush1.bf16.msra.mxu0 %v16876_v21  ;;  %v16972_v21 = vcombine.low %v1043_v6, %v1051_v7  ;;  %v1139_v6 = vld [vmem:[#allocation6 + $0x1590] sm:$0xff] }
 0x2d8   :  { %7241 = vmatpush1.bf16.msra.mxu1 %v16878_v22  ;;  %7087 = vmatprep.subr.bf16.mxu0 %v16893_v24  ;;  %v16974_v22 = vcombine.low %v1044_v8, %v1052_v9  ;;  %v16989_v24 = vcombine.high %v1059_v49, %v1067_v51  ;;  %v1147_v7 = vld [vmem:[#allocation6 + $0x15d0] sm:$0xff]  ;;  %v1140_v8 = vld [vmem:[#allocation6 + $0x1598] sm:$0xff] }
 0x2d9   :  { %7251 = vmatprep.subr.bf16.mxu1 %v16895_v26  ;;  %v16991_v26 = vcombine.high %v1060_v19, %v1068_v20  ;;  %v1148_v9 = vld [vmem:[#allocation6 + $0x15d8] sm:$0xff]  ;;  %v1155_v49 = vld [vmem:[#allocation6 + $0x1610] sm:$0xff] }
 0x2da   :  { %7079 = vmatmul.mubr.bf16.vlgmr.msra.gmra.mrb[4].mxu0 %v19458_v38  ;;  %v1163_v51 = vld [vmem:[#allocation6 + $0x1650] sm:$0xff] }
 0x2db   :  { %7243 = vmatmul.mubr.bf16.vlgmr.msra.gmra.mrb[20].mxu1 %v19458_v38  ;;  %7088 = vmatpush1.bf16.msra.mxu0 %v16892_v32  ;;  %v1076_v32 = vld [vmem:[#allocation6 + $0x1398] sm:$0xff] }
 0x2dc   :  { %7119 = vmatprep.mubr.bf16.mxu0 %v19460_v54  ;;  %7252 = vmatpush1.bf16.msra.mxu1 %v16894_v34  ;;  %v16990_v34 = vcombine.low %v1060_v19, %v1068_v20  ;;  %v17007_v40 = vcombine.high %v1076_v32, %v1084_v33  ;;  %v1156_v19 = vld [vmem:[#allocation6 + $0x1618] sm:$0xff] }
 0x2dd   :  { %7283 = vmatprep.mubr.bf16.mxu1 %v19460_v54  ;;  %7089 = vmatprep.subr.bf16.mxu0 %v16909_v35  ;;  %v17005_v35 = vcombine.high %v1075_v27, %v1083_v16  ;;  %v1164_v20 = vld [vmem:[#allocation6 + $0x1658] sm:$0xff] }
 0x2de   :  { %7253 = vmatprep.subr.bf16.mxu1 %v16911_v43  ;;  %v1099_v43 = vld [vmem:[#allocation6 + $0x1450] sm:$0xff] }
 0x2df   :  { %7090 = vmatpush1.bf16.msra.mxu0 %v16908_v47  ;;  %v17004_v47 = vcombine.low %v1075_v27, %v1083_v16  ;;  %v1171_v27 = vld [vmem:[#allocation6 + $0x1690] sm:$0xff] }
 0x2e0   :  { %7254 = vmatpush1.bf16.msra.mxu1 %v16910_v48  ;;  %7091 = vmatprep.subr.bf16.mxu0 %v16925_v53  ;;  %v17006_v48 = vcombine.low %v1076_v32, %v1084_v33  ;;  %v17021_v53 = vcombine.high %v1091_v41, %v1099_v43  ;;  %v1179_v16 = vld [vmem:[#allocation6 + $0x16d0] sm:$0xff]  ;;  %v1172_v32 = vld [vmem:[#allocation6 + $0x1698] sm:$0xff] }
 0x2e1   :  { %7255 = vmatprep.subr.bf16.mxu1 %v16927_v55  ;;  %v17023_v55 = vcombine.high %v1092_v44, %v1100_v46  ;;  %v1180_v33 = vld [vmem:[#allocation6 + $0x16d8] sm:$0xff] }
 0x2e3   :  { %7092 = vmatpush1.bf16.msra.mxu0 %v16924_v61  ;;  %v17020_v61 = vcombine.low %v1091_v41, %v1099_v43  ;;  %v1187_v41 = vld [vmem:[#allocation6 + $0x1710] sm:$0xff] }
 0x2e4   :  { %7256 = vmatpush1.bf16.msra.mxu1 %v16926_v62  ;;  %7093 = vmatprep.subr.bf16.mxu0 %v16941_v63  ;;  %v17022_v62 = vcombine.low %v1092_v44, %v1100_v46  ;;  %v17037_v63 = vcombine.high %v1107_v57, %v1115_v58  ;;  %v1195_v43 = vld [vmem:[#allocation6 + $0x1750] sm:$0xff]  ;;  %v1188_v44 = vld [vmem:[#allocation6 + $0x1718] sm:$0xff] }
 0x2e5   :  { %7257 = vmatprep.subr.bf16.mxu1 %v16943_v0  ;;  %v17039_v0 = vcombine.high %v1108_v59, %v1116_v60  ;;  %v1196_v46 = vld [vmem:[#allocation6 + $0x1758] sm:$0xff] }
 0x2e7   :  { %7094 = vmatpush1.bf16.msra.mxu0 %v16940_v4  ;;  %v17036_v4 = vcombine.low %v1107_v57, %v1115_v58  ;;  %v1203_v57 = vld [vmem:[#allocation6 + $0x1790] sm:$0xff] }
 0x2e8   :  { %7258 = vmatpush1.bf16.msra.mxu1 %v16942_v30  ;;  %7095 = vmatprep.subr.bf16.mxu0 %v16957_v5  ;;  %v17038_v30 = vcombine.low %v1108_v59, %v1116_v60  ;;  %v17053_v5 = vcombine.high %v1123_v1, %v1131_v45  ;;  %v1211_v58 = vld [vmem:[#allocation6 + $0x17d0] sm:$0xff]  ;;  %v1204_v59 = vld [vmem:[#allocation6 + $0x1798] sm:$0xff] }
 0x2e9   :  { %7259 = vmatprep.subr.bf16.mxu1 %v16959_v12  ;;  %v17055_v12 = vcombine.high %v1124_v2, %v1132_v3  ;;  %v1212_v60 = vld [vmem:[#allocation6 + $0x17d8] sm:$0xff] }
 0x2eb   :  { %7096 = vmatpush1.bf16.msra.mxu0 %v16956_v10  ;;  %v17052_v10 = vcombine.low %v1123_v1, %v1131_v45  ;;  %v1219_v1 = vld [vmem:[#allocation6 + $0x1810] sm:$0xff] }
 0x2ec   :  { %7260 = vmatpush1.bf16.msra.mxu1 %v16958_v14  ;;  %7097 = vmatprep.subr.bf16.mxu0 %v16973_v15  ;;  %v17054_v14 = vcombine.low %v1124_v2, %v1132_v3  ;;  %v17069_v15 = vcombine.high %v1139_v6, %v1147_v7  ;;  %v1227_v45 = vld [vmem:[#allocation6 + $0x1850] sm:$0xff]  ;;  %v1220_v2 = vld [vmem:[#allocation6 + $0x1818] sm:$0xff] }
 0x2ed   :  { %7261 = vmatprep.subr.bf16.mxu1 %v16975_v17  ;;  %v17071_v17 = vcombine.high %v1140_v8, %v1148_v9  ;;  %v1228_v3 = vld [vmem:[#allocation6 + $0x1858] sm:$0xff] }
 0x2ef   :  { %7098 = vmatpush1.bf16.msra.mxu0 %v16972_v21  ;;  %v17068_v21 = vcombine.low %v1139_v6, %v1147_v7  ;;  %v1235_v6 = vld [vmem:[#allocation6 + $0x1890] sm:$0xff] }
 0x2f0   :  { %7262 = vmatpush1.bf16.msra.mxu1 %v16974_v22  ;;  %7099 = vmatprep.subr.bf16.mxu0 %v16989_v24  ;;  %v17070_v22 = vcombine.low %v1140_v8, %v1148_v9  ;;  %v17085_v24 = vcombine.high %v1155_v49, %v1163_v51  ;;  %v1243_v7 = vld [vmem:[#allocation6 + $0x18d0] sm:$0xff]  ;;  %v17148_v8 = vcombine.low %v1219_v1, %v1227_v45  ;;  %v1236_v9 = vld [vmem:[#allocation6 + $0x1898] sm:$0xff] }
 0x2f1   :  { %7263 = vmatprep.subr.bf16.mxu1 %v16991_v26  ;;  %v17087_v26 = vcombine.high %v1156_v19, %v1164_v20 }
 0x2f3   :  { %7100 = vmatpush1.bf16.msra.mxu0 %v16988_v28  ;;  %v17084_v28 = vcombine.low %v1155_v49, %v1163_v51  ;;  %v1259_v49 = vld [vmem:[#allocation6 + $0x1950] sm:$0xff] }
 0x2f4   :  { %7264 = vmatpush1.bf16.msra.mxu1 %v16990_v34  ;;  %7101 = vmatprep.subr.bf16.mxu0 %v17005_v35  ;;  %v17086_v34 = vcombine.low %v1156_v19, %v1164_v20  ;;  %v17101_v35 = vcombine.high %v1171_v27, %v1179_v16  ;;  %v1252_v19 = vld [vmem:[#allocation6 + $0x1918] sm:$0xff] }
 0x2f5   :  { %7265 = vmatprep.subr.bf16.mxu1 %v17007_v40  ;;  %v17103_v40 = vcombine.high %v1172_v32, %v1180_v33  ;;  %v1260_v20 = vld [vmem:[#allocation6 + $0x1958] sm:$0xff] }
 0x2f7   :  { %7102 = vmatpush1.bf16.msra.mxu0 %v17004_v47  ;;  %v17100_v47 = vcombine.low %v1171_v27, %v1179_v16  ;;  %v1267_v27 = vld [vmem:[#allocation6 + $0x1990] sm:$0xff] }
 0x2f8   :  { %7266 = vmatpush1.bf16.msra.mxu1 %v17006_v48  ;;  %7103 = vmatprep.subr.bf16.mxu0 %v17021_v53  ;;  %v17102_v48 = vcombine.low %v1172_v32, %v1180_v33  ;;  %v17117_v53 = vcombine.high %v1187_v41, %v1195_v43  ;;  %v1275_v16 = vld [vmem:[#allocation6 + $0x19d0] sm:$0xff]  ;;  %v1268_v32 = vld [vmem:[#allocation6 + $0x1998] sm:$0xff] }
 0x2f9   :  { %7267 = vmatprep.subr.bf16.mxu1 %v17023_v55  ;;  %v17119_v55 = vcombine.high %v1188_v44, %v1196_v46  ;;  %v1276_v33 = vld [vmem:[#allocation6 + $0x19d8] sm:$0xff] }
 0x2fb   :  { %7104 = vmatpush1.bf16.msra.mxu0 %v17020_v61  ;;  %v17116_v61 = vcombine.low %v1187_v41, %v1195_v43  ;;  %v1283_v41 = vld [vmem:[#allocation6 + $0x1a10] sm:$0xff] }
 0x2fc   :  { %7268 = vmatpush1.bf16.msra.mxu1 %v17022_v62  ;;  %7105 = vmatprep.subr.bf16.mxu0 %v17037_v63  ;;  %v17118_v62 = vcombine.low %v1188_v44, %v1196_v46  ;;  %v17133_v63 = vcombine.high %v1203_v57, %v1211_v58  ;;  %v1291_v43 = vld [vmem:[#allocation6 + $0x1a50] sm:$0xff]  ;;  %v1284_v44 = vld [vmem:[#allocation6 + $0x1a18] sm:$0xff] }
 0x2fd   :  { %7269 = vmatprep.subr.bf16.mxu1 %v17039_v0  ;;  %v17135_v0 = vcombine.high %v1204_v59, %v1212_v60  ;;  %v1292_v46 = vld [vmem:[#allocation6 + $0x1a58] sm:$0xff] }
 0x2ff   :  { %7106 = vmatpush1.bf16.msra.mxu0 %v17036_v4  ;;  %v17132_v4 = vcombine.low %v1203_v57, %v1211_v58  ;;  %v1299_v57 = vld [vmem:[#allocation6 + $0x1a90] sm:$0xff] }
 0x300   :  { %7270 = vmatpush1.bf16.msra.mxu1 %v17038_v30  ;;  %7107 = vmatprep.subr.bf16.mxu0 %v17053_v5  ;;  %v17134_v30 = vcombine.low %v1204_v59, %v1212_v60  ;;  %v17149_v5 = vcombine.high %v1219_v1, %v1227_v45  ;;  %v1307_v58 = vld [vmem:[#allocation6 + $0x1ad0] sm:$0xff]  ;;  %v1300_v59 = vld [vmem:[#allocation6 + $0x1a98] sm:$0xff] }
 0x301   :  { %7271 = vmatprep.subr.bf16.mxu1 %v17055_v12  ;;  %v17151_v12 = vcombine.high %v1220_v2, %v1228_v3  ;;  %v1308_v60 = vld [vmem:[#allocation6 + $0x1ad8] sm:$0xff]  ;;  %v1315_v1 = vld [vmem:[#allocation6 + $0x1b10] sm:$0xff] }
 0x302   :  { %v1323_v45 = vld [vmem:[#allocation6 + $0x1b50] sm:$0xff] }
 0x303   :  { %7108 = vmatpush1.bf16.msra.mxu0 %v17052_v10  ;;  %v1244_v10 = vld [vmem:[#allocation6 + $0x18d8] sm:$0xff] }
 0x304   :  { %7272 = vmatpush1.bf16.msra.mxu1 %v17054_v14  ;;  %7109 = vmatprep.subr.bf16.mxu0 %v17069_v15  ;;  %v17150_v14 = vcombine.low %v1220_v2, %v1228_v3  ;;  %v17165_v15 = vcombine.high %v1235_v6, %v1243_v7  ;;  %v17167_v51 = vcombine.high %v1236_v9, %v1244_v10  ;;  %v1316_v2 = vld [vmem:[#allocation6 + $0x1b18] sm:$0xff] }
 0x305   :  { %7273 = vmatprep.subr.bf16.mxu1 %v17071_v17  ;;  %v1251_v17 = vld [vmem:[#allocation6 + $0x1910] sm:$0xff]  ;;  %v1324_v3 = vld [vmem:[#allocation6 + $0x1b58] sm:$0xff] }
 0x307   :  { %7110 = vmatpush1.bf16.msra.mxu0 %v17068_v21  ;;  %v17164_v21 = vcombine.low %v1235_v6, %v1243_v7  ;;  %v17247_v7 = vcombine.high %v1316_v2, %v1324_v3 }
 0x308   :  { %7274 = vmatpush1.bf16.msra.mxu1 %v17070_v22  ;;  %7111 = vmatprep.subr.bf16.mxu0 %v17085_v24  ;;  %v17166_v22 = vcombine.low %v1236_v9, %v1244_v10  ;;  %v17181_v24 = vcombine.high %v1251_v17, %v1259_v49  ;;  %v1339_v9 = vld [vmem:[#allocation6 + $0x1bd0] sm:$0xff] }
 0x309   :  { %7275 = vmatprep.subr.bf16.mxu1 %v17087_v26  ;;  %v17183_v26 = vcombine.high %v1252_v19, %v1260_v20 }
 0x30b   :  { %7112 = vmatpush1.bf16.msra.mxu0 %v17084_v28  ;;  %v17180_v28 = vcombine.low %v1251_v17, %v1259_v49  ;;  %v1340_v17 = vld [vmem:[#allocation6 + $0x1bd8] sm:$0xff] }
 0x30c   :  { %7276 = vmatpush1.bf16.msra.mxu1 %v17086_v34  ;;  %7113 = vmatprep.subr.bf16.mxu0 %v17101_v35  ;;  %v17182_v34 = vcombine.low %v1252_v19, %v1260_v20  ;;  %v17197_v35 = vcombine.high %v1267_v27, %v1275_v16  ;;  %v17244_v19 = vcombine.low %v1315_v1, %v1323_v45 }
 0x30d   :  { %7277 = vmatprep.subr.bf16.mxu1 %v17103_v40  ;;  %v17199_v40 = vcombine.high %v1268_v32, %v1276_v33 }
 0x30f   :  { %7114 = vmatpush1.bf16.msra.mxu0 %v17100_v47  ;;  %v17196_v47 = vcombine.low %v1267_v27, %v1275_v16  ;;  %v1347_v27 = vld [vmem:[#allocation6 + $0x1c10] sm:$0xff] }
 0x310   :  { %7278 = vmatpush1.bf16.msra.mxu1 %v17102_v48  ;;  %7115 = vmatprep.subr.bf16.mxu0 %v17117_v53  ;;  %v17198_v48 = vcombine.low %v1268_v32, %v1276_v33  ;;  %v17213_v53 = vcombine.high %v1283_v41, %v1291_v43  ;;  %v1355_v16 = vld [vmem:[#allocation6 + $0x1c50] sm:$0xff]  ;;  %v1348_v32 = vld [vmem:[#allocation6 + $0x1c18] sm:$0xff] }
 0x311   :  { %7279 = vmatprep.subr.bf16.mxu1 %v17119_v55  ;;  %v17215_v55 = vcombine.high %v1284_v44, %v1292_v46  ;;  %v1356_v33 = vld [vmem:[#allocation6 + $0x1c58] sm:$0xff] }
 0x313   :  { %7116 = vmatpush1.bf16.msra.mxu0 %v17116_v61  ;;  %v17212_v61 = vcombine.low %v1283_v41, %v1291_v43  ;;  %v1363_v41 = vld [vmem:[#allocation6 + $0x1c90] sm:$0xff] }
 0x314   :  { %7280 = vmatpush1.bf16.msra.mxu1 %v17118_v62  ;;  %7117 = vmatprep.subr.bf16.mxu0 %v17133_v63  ;;  %v17214_v62 = vcombine.low %v1284_v44, %v1292_v46  ;;  %v17229_v63 = vcombine.high %v1299_v57, %v1307_v58  ;;  %v1371_v43 = vld [vmem:[#allocation6 + $0x1cd0] sm:$0xff]  ;;  %v1364_v44 = vld [vmem:[#allocation6 + $0x1c98] sm:$0xff] }
 0x315   :  { %7281 = vmatprep.subr.bf16.mxu1 %v17135_v0  ;;  %v17231_v0 = vcombine.high %v1300_v59, %v1308_v60  ;;  %v1372_v46 = vld [vmem:[#allocation6 + $0x1cd8] sm:$0xff] }
 0x317   :  { %7118 = vmatpush1.bf16.msra.mxu0 %v17132_v4  ;;  %v17228_v4 = vcombine.low %v1299_v57, %v1307_v58  ;;  %v1379_v57 = vld [vmem:[#allocation6 + $0x1d10] sm:$0xff] }
 0x318   :  { %7282 = vmatpush1.bf16.msra.mxu1 %v17134_v30  ;;  %7128 = vmatprep.subr.bf16.mxu0 %v17149_v5  ;;  %v17230_v30 = vcombine.low %v1300_v59, %v1308_v60  ;;  %v17245_v5 = vcombine.high %v1315_v1, %v1323_v45  ;;  %v1387_v58 = vld [vmem:[#allocation6 + $0x1d50] sm:$0xff]  ;;  %v1380_v59 = vld [vmem:[#allocation6 + $0x1d18] sm:$0xff] }
 0x319   :  { %7292 = vmatprep.subr.bf16.mxu1 %v17151_v12  ;;  %v1388_v60 = vld [vmem:[#allocation6 + $0x1d58] sm:$0xff]  ;;  %v1395_v1 = vld [vmem:[#allocation6 + $0x1d90] sm:$0xff] }
 0x31a   :  { %7120 = vmatmul.mubr.bf16.vlgmr.msra.gmra.mrb[4].mxu0 %v19478_v23  ;;  %v1403_v45 = vld [vmem:[#allocation6 + $0x1dd0] sm:$0xff] }
 0x31b   :  { %7284 = vmatmul.mubr.bf16.vlgmr.msra.gmra.mrb[20].mxu1 %v19478_v23  ;;  %7129 = vmatpush1.bf16.msra.mxu0 %v17148_v8  ;;  %v1331_v8 = vld [vmem:[#allocation6 + $0x1b90] sm:$0xff] }
 0x31c   :  { %7160 = vmatprep.mubr.bf16.mxu0 %v19480_v36  ;;  %7293 = vmatpush1.bf16.msra.mxu1 %v17150_v14 }
 0x31d   :  { %7324 = vmatprep.mubr.bf16.mxu1 %v19480_v36  ;;  %7130 = vmatprep.subr.bf16.mxu0 %v17165_v15  ;;  %v1332_v15 = vld [vmem:[#allocation6 + $0x1b98] sm:$0xff] }
 0x31e   :  { %7294 = vmatprep.subr.bf16.mxu1 %v17167_v51 }
 0x31f   :  { %7131 = vmatpush1.bf16.msra.mxu0 %v17164_v21 }
 0x320   :  { %7295 = vmatpush1.bf16.msra.mxu1 %v17166_v22  ;;  %7132 = vmatprep.subr.bf16.mxu0 %v17181_v24  ;;  %v17246_v22 = vcombine.low %v1316_v2, %v1324_v3  ;;  %v17261_v24 = vcombine.high %v1331_v8, %v1339_v9  ;;  %v1396_v2 = vld [vmem:[#allocation6 + $0x1d98] sm:$0xff] }
 0x321   :  { %7296 = vmatprep.subr.bf16.mxu1 %v17183_v26  ;;  %v17263_v26 = vcombine.high %v1332_v15, %v1340_v17  ;;  %v1404_v3 = vld [vmem:[#allocation6 + $0x1dd8] sm:$0xff] }
 0x323   :  { %7133 = vmatpush1.bf16.msra.mxu0 %v17180_v28  ;;  %v17260_v28 = vcombine.low %v1331_v8, %v1339_v9  ;;  %v1411_v8 = vld [vmem:[#allocation6 + $0x1e10] sm:$0xff] }
 0x324   :  { %7297 = vmatpush1.bf16.msra.mxu1 %v17182_v34  ;;  %7134 = vmatprep.subr.bf16.mxu0 %v17197_v35  ;;  %v17262_v34 = vcombine.low %v1332_v15, %v1340_v17  ;;  %v17277_v35 = vcombine.high %v1347_v27, %v1355_v16  ;;  %v1419_v9 = vld [vmem:[#allocation6 + $0x1e50] sm:$0xff]  ;;  %v1412_v15 = vld [vmem:[#allocation6 + $0x1e18] sm:$0xff] }
 0x325   :  { %7298 = vmatprep.subr.bf16.mxu1 %v17199_v40  ;;  %v17279_v40 = vcombine.high %v1348_v32, %v1356_v33  ;;  %v1420_v17 = vld [vmem:[#allocation6 + $0x1e58] sm:$0xff] }
 0x327   :  { %7135 = vmatpush1.bf16.msra.mxu0 %v17196_v47  ;;  %v17276_v47 = vcombine.low %v1347_v27, %v1355_v16  ;;  %v17340_v27 = vcombine.low %v1411_v8, %v1419_v9  ;;  %v17342_v16 = vcombine.low %v1412_v15, %v1420_v17 }
 0x328   :  { %7299 = vmatpush1.bf16.msra.mxu1 %v17198_v48  ;;  %7136 = vmatprep.subr.bf16.mxu0 %v17213_v53  ;;  %v17278_v48 = vcombine.low %v1348_v32, %v1356_v33  ;;  %v17293_v53 = vcombine.high %v1363_v41, %v1371_v43 }
 0x329   :  { %7300 = vmatprep.subr.bf16.mxu1 %v17215_v55  ;;  %v17295_v55 = vcombine.high %v1364_v44, %v1372_v46 }
 0x32b   :  { %7137 = vmatpush1.bf16.msra.mxu0 %v17212_v61  ;;  %v17292_v61 = vcombine.low %v1363_v41, %v1371_v43 }
 0x32c   :  { %7301 = vmatpush1.bf16.msra.mxu1 %v17214_v62  ;;  %7138 = vmatprep.subr.bf16.mxu0 %v17229_v63  ;;  %v17294_v62 = vcombine.low %v1364_v44, %v1372_v46  ;;  %v17309_v63 = vcombine.high %v1379_v57, %v1387_v58 }
 0x32d   :  { %v19509_v12 = vpop.f32.mrb[0].mxu0  ;;  %v19511_v6 = vpop.f32.mrb[16].mxu1  ;;  %7302 = vmatprep.subr.bf16.mxu1 %v17231_v0  ;;  %v17311_v0 = vcombine.high %v1380_v59, %v1388_v60 }
 0x32e   :  { %v19513_v10 = vpop.f32.mrb[1].mxu0  ;;  %v19515_v14 = vpop.f32.mrb[17].mxu1 }
 0x32f   :  { %v6838_v49 = vpop.f32.mrb[2].mxu0  ;;  %v7002_v51 = vpop.f32.mrb[18].mxu1  ;;  %7139 = vmatpush1.bf16.msra.mxu0 %v17228_v4  ;;  %v17308_v4 = vcombine.low %v1379_v57, %v1387_v58 }
 0x330   :  { %7303 = vmatpush1.bf16.msra.mxu1 %v17230_v30  ;;  %v6839_v20 = vpop.f32.mrb[3].mxu0  ;;  %v7003_v21 = vpop.f32.mrb[19].mxu1  ;;  %7140 = vmatprep.subr.bf16.mxu0 %v17245_v5  ;;  %v17310_v30 = vcombine.low %v1380_v59, %v1388_v60  ;;  %v17325_v5 = vcombine.high %v1395_v1, %v1403_v45  ;;  %v17324_v49 = vcombine.low %v1395_v1, %v1403_v45 }
 0x331   :  { %7304 = vmatprep.subr.bf16.mxu1 %v17247_v7  ;;  %v17327_v7 = vcombine.high %v1396_v2, %v1404_v3  ;;  %v17326_v51 = vcombine.low %v1396_v2, %v1404_v3  ;;  %v17343_v20 = vcombine.high %v1412_v15, %v1420_v17  ;;  %v1427_v21 = vld [vmem:[#allocation6 + $0x1e90] sm:$0xff]  ;;  %v485_v17 = vld [vmem:[#allocation6 + $0x120] sm:$0xff] }
 0x333   :  { %7141 = vmatpush1.bf16.msra.mxu0 %v17244_v19  ;;  %v17341_v19 = vcombine.high %v1411_v8, %v1419_v9  ;;  %v478_v8 = vld [vmem:[#allocation6 + $0xe8] sm:$0xff] }
 0x334   :  { %7305 = vmatpush1.bf16.msra.mxu1 %v17246_v22  ;;  %7142 = vmatprep.subr.bf16.mxu0 %v17261_v24  ;;  %v1435_v22 = vld [vmem:[#allocation6 + $0x1ed0] sm:$0xff]  ;;  %v1428_v24 = vld [vmem:[#allocation6 + $0x1e98] sm:$0xff] }
 0x335   :  { %7306 = vmatprep.subr.bf16.mxu1 %v17263_v26  ;;  %v1436_v26 = vld [vmem:[#allocation6 + $0x1ed8] sm:$0xff]  ;;  %v17357_v32 = vcombine.high %v1427_v21, %v1435_v22  ;;  %v17356_v41 = vcombine.low %v1427_v21, %v1435_v22 }
 0x336   :  { %v17359_v33 = vcombine.high %v1428_v24, %v1436_v26  ;;  %v17358_v43 = vcombine.low %v1428_v24, %v1436_v26 }
 0x337   :  { %7143 = vmatpush1.bf16.msra.mxu0 %v17260_v28  ;;  %v1443_v28 = vld [vmem:[#allocation6 + $0x1f10] sm:$0xff] }
 0x338   :  { %7307 = vmatpush1.bf16.msra.mxu1 %v17262_v34  ;;  %7144 = vmatprep.subr.bf16.mxu0 %v17277_v35  ;;  %v1451_v34 = vld [vmem:[#allocation6 + $0x1f50] sm:$0xff]  ;;  %v1444_v35 = vld [vmem:[#allocation6 + $0x1f18] sm:$0xff] }
 0x339   :  { %7308 = vmatprep.subr.bf16.mxu1 %v17279_v40  ;;  %v1452_v40 = vld [vmem:[#allocation6 + $0x1f58] sm:$0xff]  ;;  %v17373_v44 = vcombine.high %v1443_v28, %v1451_v34  ;;  %v17372_v57 = vcombine.low %v1443_v28, %v1451_v34 }
 0x33a   :  { %v17375_v46 = vcombine.high %v1444_v35, %v1452_v40  ;;  %v17374_v58 = vcombine.low %v1444_v35, %v1452_v40 }
 0x33b   :  { %7145 = vmatpush1.bf16.msra.mxu0 %v17276_v47  ;;  %v1459_v47 = vld [vmem:[#allocation6 + $0x1f90] sm:$0xff] }
 0x33c   :  { %7309 = vmatpush1.bf16.msra.mxu1 %v17278_v48  ;;  %7146 = vmatprep.subr.bf16.mxu0 %v17293_v53  ;;  %v1467_v48 = vld [vmem:[#allocation6 + $0x1fd0] sm:$0xff]  ;;  %v1460_v53 = vld [vmem:[#allocation6 + $0x1f98] sm:$0xff] }
 0x33d   :  { %7310 = vmatprep.subr.bf16.mxu1 %v17295_v55  ;;  %v1468_v55 = vld [vmem:[#allocation6 + $0x1fd8] sm:$0xff]  ;;  %v17389_v59 = vcombine.high %v1459_v47, %v1467_v48  ;;  %v17388_v1 = vcombine.low %v1459_v47, %v1467_v48 }
 0x33e   :  { %v17391_v60 = vcombine.high %v1460_v53, %v1468_v55  ;;  %v17390_v45 = vcombine.low %v1460_v53, %v1468_v55 }
 0x33f   :  { %7147 = vmatpush1.bf16.msra.mxu0 %v17292_v61  ;;  %v453_v61 = vld [vmem:[#allocation6 + $0x20] sm:$0xff] }
 0x340   :  { %7311 = vmatpush1.bf16.msra.mxu1 %v17294_v62  ;;  %7148 = vmatprep.subr.bf16.mxu0 %v17309_v63  ;;  %v461_v62 = vld [vmem:[#allocation6 + $0x60] sm:$0xff]  ;;  %v454_v63 = vld [vmem:[#allocation6 + $0x28] sm:$0xff] }
 0x341   :  { %7312 = vmatprep.subr.bf16.mxu1 %v17311_v0  ;;  %v462_v0 = vld [vmem:[#allocation6 + $0x68] sm:$0xff]  ;;  %v16385_v2 = vcombine.high %v453_v61, %v461_v62 }
 0x342   :  { %v16387_v3 = vcombine.high %v454_v63, %v462_v0  ;;  %v16386_v9 = vcombine.low %v454_v63, %v462_v0 }
 0x343   :  { %7149 = vmatpush1.bf16.msra.mxu0 %v17308_v4  ;;  %v469_v4 = vld [vmem:[#allocation6 + $0xa0] sm:$0xff] }
 0x344   :  { %7313 = vmatpush1.bf16.msra.mxu1 %v17310_v30  ;;  %7150 = vmatprep.subr.bf16.mxu0 %v17325_v5  ;;  %v477_v30 = vld [vmem:[#allocation6 + $0xe0] sm:$0xff]  ;;  %v16384_v5 = vcombine.low %v453_v61, %v461_v62 }
 0x345   :  { %7314 = vmatprep.subr.bf16.mxu1 %v17327_v7  ;;  %v470_v7 = vld [vmem:[#allocation6 + $0xa8] sm:$0xff]  ;;  %v16401_v15 = vcombine.high %v469_v4, %v477_v30  ;;  %v16400_v21 = vcombine.low %v469_v4, %v477_v30 }
 0x346   :  { %v16402_v22 = vcombine.low %v470_v7, %v478_v8 }
 0x347   :  { %7151 = vmatpush1.bf16.msra.mxu0 %v17324_v49  ;;  %v493_v49 = vld [vmem:[#allocation6 + $0x160] sm:$0xff] }
 0x348   :  { %7315 = vmatpush1.bf16.msra.mxu1 %v17326_v51  ;;  %7152 = vmatprep.subr.bf16.mxu0 %v17341_v19  ;;  %v16403_v51 = vcombine.high %v470_v7, %v478_v8  ;;  %v486_v19 = vld [vmem:[#allocation6 + $0x128] sm:$0xff]  ;;  %v16417_v24 = vcombine.high %v485_v17, %v493_v49  ;;  %v16416_v28 = vcombine.low %v485_v17, %v493_v49  ;;  %v565_v8 = vld [vmem:[#allocation6 + $0x3a0] sm:$0xff] }
 0x349   :  { %7316 = vmatprep.subr.bf16.mxu1 %v17343_v20  ;;  %v494_v20 = vld [vmem:[#allocation6 + $0x168] sm:$0xff] }
 0x34a   :  { %v16419_v26 = vcombine.high %v486_v19, %v494_v20  ;;  %v16418_v34 = vcombine.low %v486_v19, %v494_v20  ;;  %v574_v17 = vld [vmem:[#allocation6 + $0x3e8] sm:$0xff] }
 0x34b   :  { %7153 = vmatpush1.bf16.msra.mxu0 %v17340_v27  ;;  %v501_v27 = vld [vmem:[#allocation6 + $0x1a0] sm:$0xff] }
 0x34c   :  { %7317 = vmatpush1.bf16.msra.mxu1 %v17342_v16  ;;  %7154 = vmatprep.subr.bf16.mxu0 %v17357_v32  ;;  %v509_v16 = vld [vmem:[#allocation6 + $0x1e0] sm:$0xff]  ;;  %v502_v32 = vld [vmem:[#allocation6 + $0x1a8] sm:$0xff] }
 0x34d   :  { %7318 = vmatprep.subr.bf16.mxu1 %v17359_v33  ;;  %v510_v33 = vld [vmem:[#allocation6 + $0x1e8] sm:$0xff]  ;;  %v16433_v35 = vcombine.high %v501_v27, %v509_v16  ;;  %v16432_v47 = vcombine.low %v501_v27, %v509_v16 }
 0x34e   :  { %v16435_v40 = vcombine.high %v502_v32, %v510_v33  ;;  %v16434_v48 = vcombine.low %v502_v32, %v510_v33 }
 0x34f   :  { %7155 = vmatpush1.bf16.msra.mxu0 %v17356_v41  ;;  %v517_v41 = vld [vmem:[#allocation6 + $0x220] sm:$0xff] }
 0x350   :  { %7319 = vmatpush1.bf16.msra.mxu1 %v17358_v43  ;;  %7156 = vmatprep.subr.bf16.mxu0 %v17373_v44  ;;  %v525_v43 = vld [vmem:[#allocation6 + $0x260] sm:$0xff]  ;;  %v518_v44 = vld [vmem:[#allocation6 + $0x228] sm:$0xff] }
 0x351   :  { %7320 = vmatprep.subr.bf16.mxu1 %v17375_v46  ;;  %v526_v46 = vld [vmem:[#allocation6 + $0x268] sm:$0xff]  ;;  %v16449_v53 = vcombine.high %v517_v41, %v525_v43  ;;  %v16448_v61 = vcombine.low %v517_v41, %v525_v43 }
 0x352   :  { %v16451_v55 = vcombine.high %v518_v44, %v526_v46  ;;  %v16450_v62 = vcombine.low %v518_v44, %v526_v46 }
 0x353   :  { %7157 = vmatpush1.bf16.msra.mxu0 %v17372_v57  ;;  %v533_v57 = vld [vmem:[#allocation6 + $0x2a0] sm:$0xff] }
 0x354   :  { %7321 = vmatpush1.bf16.msra.mxu1 %v17374_v58  ;;  %7158 = vmatprep.subr.bf16.mxu0 %v17389_v59  ;;  %v541_v58 = vld [vmem:[#allocation6 + $0x2e0] sm:$0xff]  ;;  %v534_v59 = vld [vmem:[#allocation6 + $0x2a8] sm:$0xff] }
 0x355   :  { %7322 = vmatprep.subr.bf16.mxu1 %v17391_v60  ;;  %v542_v60 = vld [vmem:[#allocation6 + $0x2e8] sm:$0xff]  ;;  %v16465_v63 = vcombine.high %v533_v57, %v541_v58  ;;  %v16464_v4 = vcombine.low %v533_v57, %v541_v58 }
 0x356   :  { %v16467_v0 = vcombine.high %v534_v59, %v542_v60  ;;  %v16466_v30 = vcombine.low %v534_v59, %v542_v60 }
 0x357   :  { %7159 = vmatpush1.bf16.msra.mxu0 %v17388_v1  ;;  %v549_v1 = vld [vmem:[#allocation6 + $0x320] sm:$0xff] }
 0x358   :  { %7323 = vmatpush1.bf16.msra.mxu1 %v17390_v45  ;;  %7333 = vmatprep.subr.bf16.mxu0 %v16385_v2  ;;  %v557_v45 = vld [vmem:[#allocation6 + $0x360] sm:$0xff]  ;;  %v550_v2 = vld [vmem:[#allocation6 + $0x328] sm:$0xff] }
 0x359   :  { %7497 = vmatprep.subr.bf16.mxu1 %v16387_v3  ;;  %v558_v3 = vld [vmem:[#allocation6 + $0x368] sm:$0xff]  ;;  %v16480_v49 = vcombine.low %v549_v1, %v557_v45 }
 0x35a   :  { %7161 = vmatmul.mubr.bf16.vlgmr.msra.gmra.mrb[4].mxu0 %v19491_v13  ;;  %v16483_v7 = vcombine.high %v550_v2, %v558_v3 }
 0x35b   :  { %7325 = vmatmul.mubr.bf16.vlgmr.msra.gmra.mrb[20].mxu1 %v19491_v13  ;;  %7334 = vmatpush1.bf16.msra.mxu0 %v16384_v5  ;;  %v16481_v5 = vcombine.high %v549_v1, %v557_v45 }
 0x35c   :  { %7365 = vmatprep.mubr.bf16.mxu0 %v19424_v50  ;;  %7498 = vmatpush1.bf16.msra.mxu1 %v16386_v9  ;;  %v573_v9 = vld [vmem:[#allocation6 + $0x3e0] sm:$0xff] }
 0x35d   :  { %7529 = vmatprep.mubr.bf16.mxu1 %v19424_v50  ;;  %7335 = vmatprep.subr.bf16.mxu0 %v16401_v15  ;;  %v566_v15 = vld [vmem:[#allocation6 + $0x3a8] sm:$0xff]  ;;  %v16497_v19 = vcombine.high %v565_v8, %v573_v9  ;;  %v16496_v27 = vcombine.low %v565_v8, %v573_v9 }
 0x35e   :  { %7499 = vmatprep.subr.bf16.mxu1 %v16403_v51  ;;  %v16482_v51 = vcombine.low %v550_v2, %v558_v3  ;;  %v16499_v20 = vcombine.high %v566_v15, %v574_v17  ;;  %v16498_v16 = vcombine.low %v566_v15, %v574_v17 }
 0x35f   :  { %7336 = vmatpush1.bf16.msra.mxu0 %v16400_v21  ;;  %v581_v21 = vld [vmem:[#allocation6 + $0x420] sm:$0xff] }
 0x360   :  { %7500 = vmatpush1.bf16.msra.mxu1 %v16402_v22  ;;  %7337 = vmatprep.subr.bf16.mxu0 %v16417_v24  ;;  %v589_v22 = vld [vmem:[#allocation6 + $0x460] sm:$0xff]  ;;  %v582_v24 = vld [vmem:[#allocation6 + $0x428] sm:$0xff] }
 0x361   :  { %7501 = vmatprep.subr.bf16.mxu1 %v16419_v26  ;;  %v590_v26 = vld [vmem:[#allocation6 + $0x468] sm:$0xff]  ;;  %v16513_v32 = vcombine.high %v581_v21, %v589_v22  ;;  %v16512_v41 = vcombine.low %v581_v21, %v589_v22 }
 0x362   :  { %v16515_v33 = vcombine.high %v582_v24, %v590_v26  ;;  %v16514_v43 = vcombine.low %v582_v24, %v590_v26 }
 0x363   :  { %7338 = vmatpush1.bf16.msra.mxu0 %v16416_v28  ;;  %v597_v28 = vld [vmem:[#allocation6 + $0x4a0] sm:$0xff] }
 0x364   :  { %7502 = vmatpush1.bf16.msra.mxu1 %v16418_v34  ;;  %7339 = vmatprep.subr.bf16.mxu0 %v16433_v35  ;;  %v605_v34 = vld [vmem:[#allocation6 + $0x4e0] sm:$0xff]  ;;  %v598_v35 = vld [vmem:[#allocation6 + $0x4a8] sm:$0xff] }
 0x365   :  { %7503 = vmatprep.subr.bf16.mxu1 %v16435_v40  ;;  %v606_v40 = vld [vmem:[#allocation6 + $0x4e8] sm:$0xff]  ;;  %v16529_v44 = vcombine.high %v597_v28, %v605_v34  ;;  %v16528_v57 = vcombine.low %v597_v28, %v605_v34 }
 0x366   :  { %v16531_v46 = vcombine.high %v598_v35, %v606_v40  ;;  %v16530_v58 = vcombine.low %v598_v35, %v606_v40 }
 0x367   :  { %7340 = vmatpush1.bf16.msra.mxu0 %v16432_v47  ;;  %v613_v47 = vld [vmem:[#allocation6 + $0x520] sm:$0xff] }
 0x368   :  { %7504 = vmatpush1.bf16.msra.mxu1 %v16434_v48  ;;  %7341 = vmatprep.subr.bf16.mxu0 %v16449_v53  ;;  %v621_v48 = vld [vmem:[#allocation6 + $0x560] sm:$0xff]  ;;  %v614_v53 = vld [vmem:[#allocation6 + $0x528] sm:$0xff] }
 0x369   :  { %7505 = vmatprep.subr.bf16.mxu1 %v16451_v55  ;;  %v622_v55 = vld [vmem:[#allocation6 + $0x568] sm:$0xff]  ;;  %v16545_v59 = vcombine.high %v613_v47, %v621_v48  ;;  %v16544_v1 = vcombine.low %v613_v47, %v621_v48 }
 0x36a   :  { %v16547_v60 = vcombine.high %v614_v53, %v622_v55  ;;  %v16546_v45 = vcombine.low %v614_v53, %v622_v55 }
 0x36b   :  { %7342 = vmatpush1.bf16.msra.mxu0 %v16448_v61  ;;  %v629_v61 = vld [vmem:[#allocation6 + $0x5a0] sm:$0xff] }
 0x36c   :  { %7506 = vmatpush1.bf16.msra.mxu1 %v16450_v62  ;;  %7343 = vmatprep.subr.bf16.mxu0 %v16465_v63  ;;  %v637_v62 = vld [vmem:[#allocation6 + $0x5e0] sm:$0xff]  ;;  %v630_v63 = vld [vmem:[#allocation6 + $0x5a8] sm:$0xff] }
 0x36d   :  { %7507 = vmatprep.subr.bf16.mxu1 %v16467_v0  ;;  %v638_v0 = vld [vmem:[#allocation6 + $0x5e8] sm:$0xff]  ;;  %v16561_v2 = vcombine.high %v629_v61, %v637_v62  ;;  %v16560_v8 = vcombine.low %v629_v61, %v637_v62 }
 0x36e   :  { %v16563_v3 = vcombine.high %v630_v63, %v638_v0  ;;  %v16562_v9 = vcombine.low %v630_v63, %v638_v0 }
 0x36f   :  { %7344 = vmatpush1.bf16.msra.mxu0 %v16464_v4  ;;  %v645_v4 = vld [vmem:[#allocation6 + $0x620] sm:$0xff] }
 0x370   :  { %7508 = vmatpush1.bf16.msra.mxu1 %v16466_v30  ;;  %7345 = vmatprep.subr.bf16.mxu0 %v16481_v5  ;;  %v653_v30 = vld [vmem:[#allocation6 + $0x660] sm:$0xff]  ;;  %v646_v5 = vld [vmem:[#allocation6 + $0x628] sm:$0xff] }
 0x371   :  { %7509 = vmatprep.subr.bf16.mxu1 %v16483_v7  ;;  %v654_v7 = vld [vmem:[#allocation6 + $0x668] sm:$0xff]  ;;  %v16577_v15 = vcombine.high %v645_v4, %v653_v30  ;;  %v16576_v21 = vcombine.low %v645_v4, %v653_v30 }
 0x372   :  { %v16579_v17 = vcombine.high %v646_v5, %v654_v7  ;;  %v16578_v22 = vcombine.low %v646_v5, %v654_v7  ;;  %v734_v4 = vld [vmem:[#allocation6 + $0x8e8] sm:$0xff]  ;;  %v741_v7 = vld [vmem:[#allocation6 + $0x920] sm:$0xff] }
 0x373   :  { %7346 = vmatpush1.bf16.msra.mxu0 %v16480_v49  ;;  %v661_v49 = vld [vmem:[#allocation6 + $0x6a0] sm:$0xff] }
 0x374   :  { %7510 = vmatpush1.bf16.msra.mxu1 %v16482_v51  ;;  %7347 = vmatprep.subr.bf16.mxu0 %v16497_v19  ;;  %v669_v51 = vld [vmem:[#allocation6 + $0x6e0] sm:$0xff]  ;;  %v662_v19 = vld [vmem:[#allocation6 + $0x6a8] sm:$0xff] }
 0x375   :  { %7511 = vmatprep.subr.bf16.mxu1 %v16499_v20  ;;  %v670_v20 = vld [vmem:[#allocation6 + $0x6e8] sm:$0xff]  ;;  %v16593_v24 = vcombine.high %v661_v49, %v669_v51  ;;  %v16592_v28 = vcombine.low %v661_v49, %v669_v51 }
 0x376   :  { %v16595_v26 = vcombine.high %v662_v19, %v670_v20  ;;  %v16594_v34 = vcombine.low %v662_v19, %v670_v20 }
 0x377   :  { %7348 = vmatpush1.bf16.msra.mxu0 %v16496_v27  ;;  %v677_v27 = vld [vmem:[#allocation6 + $0x720] sm:$0xff] }
 0x378   :  { %7512 = vmatpush1.bf16.msra.mxu1 %v16498_v16  ;;  %7349 = vmatprep.subr.bf16.mxu0 %v16513_v32  ;;  %v685_v16 = vld [vmem:[#allocation6 + $0x760] sm:$0xff]  ;;  %v678_v32 = vld [vmem:[#allocation6 + $0x728] sm:$0xff] }
 0x379   :  { %7513 = vmatprep.subr.bf16.mxu1 %v16515_v33  ;;  %v686_v33 = vld [vmem:[#allocation6 + $0x768] sm:$0xff]  ;;  %v16609_v35 = vcombine.high %v677_v27, %v685_v16  ;;  %v16608_v47 = vcombine.low %v677_v27, %v685_v16 }
 0x37a   :  { %v16611_v40 = vcombine.high %v678_v32, %v686_v33  ;;  %v16610_v48 = vcombine.low %v678_v32, %v686_v33 }
 0x37b   :  { %7350 = vmatpush1.bf16.msra.mxu0 %v16512_v41  ;;  %v693_v41 = vld [vmem:[#allocation6 + $0x7a0] sm:$0xff] }
 0x37c   :  { %7514 = vmatpush1.bf16.msra.mxu1 %v16514_v43  ;;  %7351 = vmatprep.subr.bf16.mxu0 %v16529_v44  ;;  %v701_v43 = vld [vmem:[#allocation6 + $0x7e0] sm:$0xff]  ;;  %v694_v44 = vld [vmem:[#allocation6 + $0x7a8] sm:$0xff] }
 0x37d   :  { %7515 = vmatprep.subr.bf16.mxu1 %v16531_v46  ;;  %v702_v46 = vld [vmem:[#allocation6 + $0x7e8] sm:$0xff]  ;;  %v16625_v53 = vcombine.high %v693_v41, %v701_v43  ;;  %v16624_v61 = vcombine.low %v693_v41, %v701_v43 }
 0x37e   :  { %v16627_v55 = vcombine.high %v694_v44, %v702_v46  ;;  %v16626_v62 = vcombine.low %v694_v44, %v702_v46 }
 0x37f   :  { %7352 = vmatpush1.bf16.msra.mxu0 %v16528_v57  ;;  %v709_v57 = vld [vmem:[#allocation6 + $0x820] sm:$0xff] }
 0x380   :  { %7516 = vmatpush1.bf16.msra.mxu1 %v16530_v58  ;;  %7353 = vmatprep.subr.bf16.mxu0 %v16545_v59  ;;  %v717_v58 = vld [vmem:[#allocation6 + $0x860] sm:$0xff]  ;;  %v710_v59 = vld [vmem:[#allocation6 + $0x828] sm:$0xff] }
 0x381   :  { %7517 = vmatprep.subr.bf16.mxu1 %v16547_v60  ;;  %v718_v60 = vld [vmem:[#allocation6 + $0x868] sm:$0xff]  ;;  %v16641_v63 = vcombine.high %v709_v57, %v717_v58 }
 0x382   :  { %v16643_v0 = vcombine.high %v710_v59, %v718_v60  ;;  %v16642_v30 = vcombine.low %v710_v59, %v718_v60 }
 0x383   :  { %7354 = vmatpush1.bf16.msra.mxu0 %v16544_v1  ;;  %v725_v1 = vld [vmem:[#allocation6 + $0x8a0] sm:$0xff] }
 0x384   :  { %7518 = vmatpush1.bf16.msra.mxu1 %v16546_v45  ;;  %7355 = vmatprep.subr.bf16.mxu0 %v16561_v2  ;;  %v733_v45 = vld [vmem:[#allocation6 + $0x8e0] sm:$0xff]  ;;  %v16640_v2 = vcombine.low %v709_v57, %v717_v58 }
 0x385   :  { %7519 = vmatprep.subr.bf16.mxu1 %v16563_v3  ;;  %v726_v3 = vld [vmem:[#allocation6 + $0x8a8] sm:$0xff]  ;;  %v16657_v5 = vcombine.high %v725_v1, %v733_v45  ;;  %v16656_v49 = vcombine.low %v725_v1, %v733_v45 }
 0x386   :  { %v16658_v51 = vcombine.low %v726_v3, %v734_v4 }
 0x387   :  { %7356 = vmatpush1.bf16.msra.mxu0 %v16560_v8  ;;  %v749_v8 = vld [vmem:[#allocation6 + $0x960] sm:$0xff] }
 0x388   :  { %7520 = vmatpush1.bf16.msra.mxu1 %v16562_v9  ;;  %7357 = vmatprep.subr.bf16.mxu0 %v16577_v15  ;;  %v16659_v9 = vcombine.high %v726_v3, %v734_v4  ;;  %v742_v15 = vld [vmem:[#allocation6 + $0x928] sm:$0xff]  ;;  %v16673_v19 = vcombine.high %v741_v7, %v749_v8  ;;  %v16672_v27 = vcombine.low %v741_v7, %v749_v8  ;;  %v821_v4 = vld [vmem:[#allocation6 + $0xba0] sm:$0xff] }
 0x389   :  { %7521 = vmatprep.subr.bf16.mxu1 %v16579_v17  ;;  %v750_v17 = vld [vmem:[#allocation6 + $0x968] sm:$0xff] }
 0x38a   :  { %v16675_v20 = vcombine.high %v742_v15, %v750_v17  ;;  %v16674_v16 = vcombine.low %v742_v15, %v750_v17  ;;  %v830_v7 = vld [vmem:[#allocation6 + $0xbe8] sm:$0xff] }
 0x38b   :  { %7358 = vmatpush1.bf16.msra.mxu0 %v16576_v21  ;;  %v757_v21 = vld [vmem:[#allocation6 + $0x9a0] sm:$0xff] }
 0x38c   :  { %7522 = vmatpush1.bf16.msra.mxu1 %v16578_v22  ;;  %7359 = vmatprep.subr.bf16.mxu0 %v16593_v24  ;;  %v765_v22 = vld [vmem:[#allocation6 + $0x9e0] sm:$0xff]  ;;  %v758_v24 = vld [vmem:[#allocation6 + $0x9a8] sm:$0xff] }
 0x38d   :  { %7523 = vmatprep.subr.bf16.mxu1 %v16595_v26  ;;  %v766_v26 = vld [vmem:[#allocation6 + $0x9e8] sm:$0xff]  ;;  %v16689_v32 = vcombine.high %v757_v21, %v765_v22  ;;  %v16688_v41 = vcombine.low %v757_v21, %v765_v22 }
 0x38e   :  { %v16691_v33 = vcombine.high %v758_v24, %v766_v26  ;;  %v16690_v43 = vcombine.low %v758_v24, %v766_v26 }
 0x38f   :  { %7360 = vmatpush1.bf16.msra.mxu0 %v16592_v28  ;;  %v773_v28 = vld [vmem:[#allocation6 + $0xa20] sm:$0xff] }
 0x390   :  { %7524 = vmatpush1.bf16.msra.mxu1 %v16594_v34  ;;  %7361 = vmatprep.subr.bf16.mxu0 %v16609_v35  ;;  %v781_v34 = vld [vmem:[#allocation6 + $0xa60] sm:$0xff]  ;;  %v774_v35 = vld [vmem:[#allocation6 + $0xa28] sm:$0xff] }
 0x391   :  { %7525 = vmatprep.subr.bf16.mxu1 %v16611_v40  ;;  %v782_v40 = vld [vmem:[#allocation6 + $0xa68] sm:$0xff]  ;;  %v16705_v44 = vcombine.high %v773_v28, %v781_v34  ;;  %v16704_v57 = vcombine.low %v773_v28, %v781_v34 }
 0x392   :  { %v16707_v46 = vcombine.high %v774_v35, %v782_v40  ;;  %v16706_v58 = vcombine.low %v774_v35, %v782_v40 }
 0x393   :  { %7362 = vmatpush1.bf16.msra.mxu0 %v16608_v47  ;;  %v789_v47 = vld [vmem:[#allocation6 + $0xaa0] sm:$0xff] }
 0x394   :  { %7526 = vmatpush1.bf16.msra.mxu1 %v16610_v48  ;;  %7363 = vmatprep.subr.bf16.mxu0 %v16625_v53  ;;  %v797_v48 = vld [vmem:[#allocation6 + $0xae0] sm:$0xff]  ;;  %v790_v53 = vld [vmem:[#allocation6 + $0xaa8] sm:$0xff] }
 0x395   :  { %7527 = vmatprep.subr.bf16.mxu1 %v16627_v55  ;;  %v798_v55 = vld [vmem:[#allocation6 + $0xae8] sm:$0xff]  ;;  %v16721_v59 = vcombine.high %v789_v47, %v797_v48  ;;  %v16720_v1 = vcombine.low %v789_v47, %v797_v48 }
 0x396   :  { %v16723_v60 = vcombine.high %v790_v53, %v798_v55  ;;  %v16722_v45 = vcombine.low %v790_v53, %v798_v55 }
 0x397   :  { %7364 = vmatpush1.bf16.msra.mxu0 %v16624_v61  ;;  %v805_v61 = vld [vmem:[#allocation6 + $0xb20] sm:$0xff] }
 0x398   :  { %7528 = vmatpush1.bf16.msra.mxu1 %v16626_v62  ;;  %7374 = vmatprep.subr.bf16.mxu0 %v16641_v63  ;;  %v813_v62 = vld [vmem:[#allocation6 + $0xb60] sm:$0xff]  ;;  %v806_v63 = vld [vmem:[#allocation6 + $0xb28] sm:$0xff] }
 0x399   :  { %7538 = vmatprep.subr.bf16.mxu1 %v16643_v0  ;;  %v814_v0 = vld [vmem:[#allocation6 + $0xb68] sm:$0xff]  ;;  %v16736_v8 = vcombine.low %v805_v61, %v813_v62 }
 0x39a   :  { %7366 = vmatmul.mubr.bf16.vlgmr.msra.gmra.mrb[8].mxu0 %v19428_v52  ;;  %v16739_v3 = vcombine.high %v806_v63, %v814_v0 }
 0x39b   :  { %7530 = vmatmul.mubr.bf16.vlgmr.msra.gmra.mrb[24].mxu1 %v19428_v52  ;;  %7375 = vmatpush1.bf16.msra.mxu0 %v16640_v2  ;;  %v16737_v2 = vcombine.high %v805_v61, %v813_v62 }
 0x39c   :  { %7406 = vmatprep.mubr.bf16.mxu0 %v19434_v11  ;;  %7539 = vmatpush1.bf16.msra.mxu1 %v16642_v30  ;;  %v829_v30 = vld [vmem:[#allocation6 + $0xbe0] sm:$0xff] }
 0x39d   :  { %7570 = vmatprep.mubr.bf16.mxu1 %v19434_v11  ;;  %7376 = vmatprep.subr.bf16.mxu0 %v16657_v5  ;;  %v822_v5 = vld [vmem:[#allocation6 + $0xba8] sm:$0xff]  ;;  %v16753_v15 = vcombine.high %v821_v4, %v829_v30  ;;  %v16752_v21 = vcombine.low %v821_v4, %v829_v30 }
 0x39e   :  { %7540 = vmatprep.subr.bf16.mxu1 %v16659_v9  ;;  %v16738_v9 = vcombine.low %v806_v63, %v814_v0  ;;  %v16755_v17 = vcombine.high %v822_v5, %v830_v7  ;;  %v16754_v22 = vcombine.low %v822_v5, %v830_v7 }
 0x39f   :  { %7377 = vmatpush1.bf16.msra.mxu0 %v16656_v49  ;;  %v837_v49 = vld [vmem:[#allocation6 + $0xc20] sm:$0xff] }
 0x3a0   :  { %7541 = vmatpush1.bf16.msra.mxu1 %v16658_v51  ;;  %7378 = vmatprep.subr.bf16.mxu0 %v16673_v19  ;;  %v845_v51 = vld [vmem:[#allocation6 + $0xc60] sm:$0xff]  ;;  %v838_v19 = vld [vmem:[#allocation6 + $0xc28] sm:$0xff] }
 0x3a1   :  { %7542 = vmatprep.subr.bf16.mxu1 %v16675_v20  ;;  %v846_v20 = vld [vmem:[#allocation6 + $0xc68] sm:$0xff]  ;;  %v16769_v24 = vcombine.high %v837_v49, %v845_v51  ;;  %v16768_v28 = vcombine.low %v837_v49, %v845_v51 }
 0x3a2   :  { %v16771_v26 = vcombine.high %v838_v19, %v846_v20  ;;  %v16770_v34 = vcombine.low %v838_v19, %v846_v20 }
 0x3a3   :  { %7379 = vmatpush1.bf16.msra.mxu0 %v16672_v27  ;;  %v853_v27 = vld [vmem:[#allocation6 + $0xca0] sm:$0xff] }
 0x3a4   :  { %7543 = vmatpush1.bf16.msra.mxu1 %v16674_v16  ;;  %7380 = vmatprep.subr.bf16.mxu0 %v16689_v32  ;;  %v861_v16 = vld [vmem:[#allocation6 + $0xce0] sm:$0xff]  ;;  %v854_v32 = vld [vmem:[#allocation6 + $0xca8] sm:$0xff] }
 0x3a5   :  { %7544 = vmatprep.subr.bf16.mxu1 %v16691_v33  ;;  %v862_v33 = vld [vmem:[#allocation6 + $0xce8] sm:$0xff]  ;;  %v16785_v35 = vcombine.high %v853_v27, %v861_v16  ;;  %v16784_v47 = vcombine.low %v853_v27, %v861_v16 }
 0x3a6   :  { %v16787_v40 = vcombine.high %v854_v32, %v862_v33  ;;  %v16786_v48 = vcombine.low %v854_v32, %v862_v33 }
 0x3a7   :  { %7381 = vmatpush1.bf16.msra.mxu0 %v16688_v41  ;;  %v869_v41 = vld [vmem:[#allocation6 + $0xd20] sm:$0xff] }
 0x3a8   :  { %7545 = vmatpush1.bf16.msra.mxu1 %v16690_v43  ;;  %7382 = vmatprep.subr.bf16.mxu0 %v16705_v44  ;;  %v877_v43 = vld [vmem:[#allocation6 + $0xd60] sm:$0xff]  ;;  %v870_v44 = vld [vmem:[#allocation6 + $0xd28] sm:$0xff] }
 0x3a9   :  { %7546 = vmatprep.subr.bf16.mxu1 %v16707_v46  ;;  %v878_v46 = vld [vmem:[#allocation6 + $0xd68] sm:$0xff]  ;;  %v16801_v53 = vcombine.high %v869_v41, %v877_v43  ;;  %v16800_v61 = vcombine.low %v869_v41, %v877_v43 }
 0x3aa   :  { %v16803_v55 = vcombine.high %v870_v44, %v878_v46  ;;  %v16802_v62 = vcombine.low %v870_v44, %v878_v46 }
 0x3ab   :  { %7383 = vmatpush1.bf16.msra.mxu0 %v16704_v57  ;;  %v885_v57 = vld [vmem:[#allocation6 + $0xda0] sm:$0xff] }
 0x3ac   :  { %7547 = vmatpush1.bf16.msra.mxu1 %v16706_v58  ;;  %7384 = vmatprep.subr.bf16.mxu0 %v16721_v59  ;;  %v893_v58 = vld [vmem:[#allocation6 + $0xde0] sm:$0xff]  ;;  %v886_v59 = vld [vmem:[#allocation6 + $0xda8] sm:$0xff] }
 0x3ad   :  { %7548 = vmatprep.subr.bf16.mxu1 %v16723_v60  ;;  %v894_v60 = vld [vmem:[#allocation6 + $0xde8] sm:$0xff]  ;;  %v16817_v63 = vcombine.high %v885_v57, %v893_v58  ;;  %v16816_v4 = vcombine.low %v885_v57, %v893_v58 }
 0x3ae   :  { %v16819_v0 = vcombine.high %v886_v59, %v894_v60  ;;  %v16818_v30 = vcombine.low %v886_v59, %v894_v60 }
 0x3af   :  { %7385 = vmatpush1.bf16.msra.mxu0 %v16720_v1  ;;  %v901_v1 = vld [vmem:[#allocation6 + $0xe20] sm:$0xff] }
 0x3b0   :  { %7549 = vmatpush1.bf16.msra.mxu1 %v16722_v45  ;;  %7386 = vmatprep.subr.bf16.mxu0 %v16737_v2  ;;  %v909_v45 = vld [vmem:[#allocation6 + $0xe60] sm:$0xff]  ;;  %v902_v2 = vld [vmem:[#allocation6 + $0xe28] sm:$0xff] }
 0x3b1   :  { %7550 = vmatprep.subr.bf16.mxu1 %v16739_v3  ;;  %v910_v3 = vld [vmem:[#allocation6 + $0xe68] sm:$0xff]  ;;  %v16833_v5 = vcombine.high %v901_v1, %v909_v45  ;;  %v16832_v49 = vcombine.low %v901_v1, %v909_v45 }
 0x3b2   :  { %v16835_v7 = vcombine.high %v902_v2, %v910_v3  ;;  %v16834_v51 = vcombine.low %v902_v2, %v910_v3  ;;  %v990_v1 = vld [vmem:[#allocation6 + $0x10e8] sm:$0xff]  ;;  %v997_v3 = vld [vmem:[#allocation6 + $0x1120] sm:$0xff] }
 0x3b3   :  { %7387 = vmatpush1.bf16.msra.mxu0 %v16736_v8  ;;  %v917_v8 = vld [vmem:[#allocation6 + $0xea0] sm:$0xff] }
 0x3b4   :  { %7551 = vmatpush1.bf16.msra.mxu1 %v16738_v9  ;;  %7388 = vmatprep.subr.bf16.mxu0 %v16753_v15  ;;  %v925_v9 = vld [vmem:[#allocation6 + $0xee0] sm:$0xff]  ;;  %v918_v15 = vld [vmem:[#allocation6 + $0xea8] sm:$0xff] }
 0x3b5   :  { %7552 = vmatprep.subr.bf16.mxu1 %v16755_v17  ;;  %v926_v17 = vld [vmem:[#allocation6 + $0xee8] sm:$0xff]  ;;  %v16849_v19 = vcombine.high %v917_v8, %v925_v9  ;;  %v16848_v27 = vcombine.low %v917_v8, %v925_v9 }
 0x3b6   :  { %v16851_v20 = vcombine.high %v918_v15, %v926_v17  ;;  %v16850_v16 = vcombine.low %v918_v15, %v926_v17 }
 0x3b7   :  { %7389 = vmatpush1.bf16.msra.mxu0 %v16752_v21  ;;  %v933_v21 = vld [vmem:[#allocation6 + $0xf20] sm:$0xff] }
 0x3b8   :  { %7553 = vmatpush1.bf16.msra.mxu1 %v16754_v22  ;;  %7390 = vmatprep.subr.bf16.mxu0 %v16769_v24  ;;  %v941_v22 = vld [vmem:[#allocation6 + $0xf60] sm:$0xff]  ;;  %v934_v24 = vld [vmem:[#allocation6 + $0xf28] sm:$0xff] }
 0x3b9   :  { %7554 = vmatprep.subr.bf16.mxu1 %v16771_v26  ;;  %v942_v26 = vld [vmem:[#allocation6 + $0xf68] sm:$0xff]  ;;  %v16865_v32 = vcombine.high %v933_v21, %v941_v22  ;;  %v16864_v41 = vcombine.low %v933_v21, %v941_v22 }
 0x3ba   :  { %v16867_v33 = vcombine.high %v934_v24, %v942_v26  ;;  %v16866_v43 = vcombine.low %v934_v24, %v942_v26 }
 0x3bb   :  { %7391 = vmatpush1.bf16.msra.mxu0 %v16768_v28  ;;  %v949_v28 = vld [vmem:[#allocation6 + $0xfa0] sm:$0xff] }
 0x3bc   :  { %7555 = vmatpush1.bf16.msra.mxu1 %v16770_v34  ;;  %7392 = vmatprep.subr.bf16.mxu0 %v16785_v35  ;;  %v957_v34 = vld [vmem:[#allocation6 + $0xfe0] sm:$0xff]  ;;  %v950_v35 = vld [vmem:[#allocation6 + $0xfa8] sm:$0xff] }
 0x3bd   :  { %7556 = vmatprep.subr.bf16.mxu1 %v16787_v40  ;;  %v958_v40 = vld [vmem:[#allocation6 + $0xfe8] sm:$0xff]  ;;  %v16881_v44 = vcombine.high %v949_v28, %v957_v34  ;;  %v16880_v57 = vcombine.low %v949_v28, %v957_v34 }
 0x3be   :  { %v16883_v46 = vcombine.high %v950_v35, %v958_v40  ;;  %v16882_v58 = vcombine.low %v950_v35, %v958_v40 }
 0x3bf   :  { %7393 = vmatpush1.bf16.msra.mxu0 %v16784_v47  ;;  %v965_v47 = vld [vmem:[#allocation6 + $0x1020] sm:$0xff] }
 0x3c0   :  { %7557 = vmatpush1.bf16.msra.mxu1 %v16786_v48  ;;  %7394 = vmatprep.subr.bf16.mxu0 %v16801_v53  ;;  %v973_v48 = vld [vmem:[#allocation6 + $0x1060] sm:$0xff]  ;;  %v966_v53 = vld [vmem:[#allocation6 + $0x1028] sm:$0xff] }
 0x3c1   :  { %7558 = vmatprep.subr.bf16.mxu1 %v16803_v55  ;;  %v974_v55 = vld [vmem:[#allocation6 + $0x1068] sm:$0xff]  ;;  %v16897_v59 = vcombine.high %v965_v47, %v973_v48 }
 0x3c2   :  { %v16899_v60 = vcombine.high %v966_v53, %v974_v55  ;;  %v16898_v45 = vcombine.low %v966_v53, %v974_v55 }
 0x3c3   :  { %7395 = vmatpush1.bf16.msra.mxu0 %v16800_v61  ;;  %v981_v61 = vld [vmem:[#allocation6 + $0x10a0] sm:$0xff] }
 0x3c4   :  { %7559 = vmatpush1.bf16.msra.mxu1 %v16802_v62  ;;  %7396 = vmatprep.subr.bf16.mxu0 %v16817_v63  ;;  %v989_v62 = vld [vmem:[#allocation6 + $0x10e0] sm:$0xff]  ;;  %v16896_v63 = vcombine.low %v965_v47, %v973_v48 }
 0x3c5   :  { %7560 = vmatprep.subr.bf16.mxu1 %v16819_v0  ;;  %v982_v0 = vld [vmem:[#allocation6 + $0x10a8] sm:$0xff]  ;;  %v16913_v2 = vcombine.high %v981_v61, %v989_v62  ;;  %v16912_v8 = vcombine.low %v981_v61, %v989_v62 }
 0x3c6   :  { %v16914_v9 = vcombine.low %v982_v0, %v990_v1 }
 0x3c7   :  { %7397 = vmatpush1.bf16.msra.mxu0 %v16816_v4  ;;  %v1005_v4 = vld [vmem:[#allocation6 + $0x1160] sm:$0xff] }
 0x3c8   :  { %7561 = vmatpush1.bf16.msra.mxu1 %v16818_v30  ;;  %7398 = vmatprep.subr.bf16.mxu0 %v16833_v5  ;;  %v16915_v30 = vcombine.high %v982_v0, %v990_v1  ;;  %v998_v5 = vld [vmem:[#allocation6 + $0x1128] sm:$0xff]  ;;  %v16929_v15 = vcombine.high %v997_v3, %v1005_v4  ;;  %v16928_v21 = vcombine.low %v997_v3, %v1005_v4  ;;  %v1077_v1 = vld [vmem:[#allocation6 + $0x13a0] sm:$0xff] }
 0x3c9   :  { %7562 = vmatprep.subr.bf16.mxu1 %v16835_v7  ;;  %v1006_v7 = vld [vmem:[#allocation6 + $0x1168] sm:$0xff] }
 0x3ca   :  { %v16931_v17 = vcombine.high %v998_v5, %v1006_v7  ;;  %v16930_v22 = vcombine.low %v998_v5, %v1006_v7  ;;  %v1086_v3 = vld [vmem:[#allocation6 + $0x13e8] sm:$0xff] }
 0x3cb   :  { %7399 = vmatpush1.bf16.msra.mxu0 %v16832_v49  ;;  %v1013_v49 = vld [vmem:[#allocation6 + $0x11a0] sm:$0xff] }
 0x3cc   :  { %7563 = vmatpush1.bf16.msra.mxu1 %v16834_v51  ;;  %7400 = vmatprep.subr.bf16.mxu0 %v16849_v19  ;;  %v1021_v51 = vld [vmem:[#allocation6 + $0x11e0] sm:$0xff]  ;;  %v1014_v19 = vld [vmem:[#allocation6 + $0x11a8] sm:$0xff] }
 0x3cd   :  { %7564 = vmatprep.subr.bf16.mxu1 %v16851_v20  ;;  %v1022_v20 = vld [vmem:[#allocation6 + $0x11e8] sm:$0xff]  ;;  %v16945_v24 = vcombine.high %v1013_v49, %v1021_v51  ;;  %v16944_v28 = vcombine.low %v1013_v49, %v1021_v51 }
 0x3ce   :  { %v16947_v26 = vcombine.high %v1014_v19, %v1022_v20  ;;  %v16946_v34 = vcombine.low %v1014_v19, %v1022_v20 }
 0x3cf   :  { %7401 = vmatpush1.bf16.msra.mxu0 %v16848_v27  ;;  %v1029_v27 = vld [vmem:[#allocation6 + $0x1220] sm:$0xff] }
 0x3d0   :  { %7565 = vmatpush1.bf16.msra.mxu1 %v16850_v16  ;;  %7402 = vmatprep.subr.bf16.mxu0 %v16865_v32  ;;  %v1037_v16 = vld [vmem:[#allocation6 + $0x1260] sm:$0xff]  ;;  %v1030_v32 = vld [vmem:[#allocation6 + $0x1228] sm:$0xff] }
 0x3d1   :  { %7566 = vmatprep.subr.bf16.mxu1 %v16867_v33  ;;  %v1038_v33 = vld [vmem:[#allocation6 + $0x1268] sm:$0xff]  ;;  %v16961_v35 = vcombine.high %v1029_v27, %v1037_v16  ;;  %v16960_v47 = vcombine.low %v1029_v27, %v1037_v16 }
 0x3d2   :  { %v16963_v40 = vcombine.high %v1030_v32, %v1038_v33  ;;  %v16962_v48 = vcombine.low %v1030_v32, %v1038_v33 }
 0x3d3   :  { %7403 = vmatpush1.bf16.msra.mxu0 %v16864_v41  ;;  %v1045_v41 = vld [vmem:[#allocation6 + $0x12a0] sm:$0xff] }
 0x3d4   :  { %7567 = vmatpush1.bf16.msra.mxu1 %v16866_v43  ;;  %7404 = vmatprep.subr.bf16.mxu0 %v16881_v44  ;;  %v1053_v43 = vld [vmem:[#allocation6 + $0x12e0] sm:$0xff]  ;;  %v1046_v44 = vld [vmem:[#allocation6 + $0x12a8] sm:$0xff] }
 0x3d5   :  { %7568 = vmatprep.subr.bf16.mxu1 %v16883_v46  ;;  %v1054_v46 = vld [vmem:[#allocation6 + $0x12e8] sm:$0xff]  ;;  %v16977_v53 = vcombine.high %v1045_v41, %v1053_v43  ;;  %v16976_v61 = vcombine.low %v1045_v41, %v1053_v43 }
 0x3d6   :  { %v16979_v55 = vcombine.high %v1046_v44, %v1054_v46  ;;  %v16978_v62 = vcombine.low %v1046_v44, %v1054_v46 }
 0x3d7   :  { %7405 = vmatpush1.bf16.msra.mxu0 %v16880_v57  ;;  %v1061_v57 = vld [vmem:[#allocation6 + $0x1320] sm:$0xff] }
 0x3d8   :  { %7569 = vmatpush1.bf16.msra.mxu1 %v16882_v58  ;;  %7415 = vmatprep.subr.bf16.mxu0 %v16897_v59  ;;  %v1069_v58 = vld [vmem:[#allocation6 + $0x1360] sm:$0xff]  ;;  %v1062_v59 = vld [vmem:[#allocation6 + $0x1328] sm:$0xff] }
 0x3d9   :  { %7579 = vmatprep.subr.bf16.mxu1 %v16899_v60  ;;  %v1070_v60 = vld [vmem:[#allocation6 + $0x1368] sm:$0xff]  ;;  %v16992_v4 = vcombine.low %v1061_v57, %v1069_v58 }
 0x3da   :  { %7407 = vmatmul.mubr.bf16.vlgmr.msra.gmra.mrb[8].mxu0 %v19458_v38  ;;  %v16995_v0 = vcombine.high %v1062_v59, %v1070_v60 }
 0x3db   :  { %7571 = vmatmul.mubr.bf16.vlgmr.msra.gmra.mrb[24].mxu1 %v19458_v38  ;;  %7416 = vmatpush1.bf16.msra.mxu0 %v16896_v63  ;;  %v16993_v63 = vcombine.high %v1061_v57, %v1069_v58 }
 0x3dc   :  { %7447 = vmatprep.mubr.bf16.mxu0 %v19460_v54  ;;  %7580 = vmatpush1.bf16.msra.mxu1 %v16898_v45  ;;  %v1085_v45 = vld [vmem:[#allocation6 + $0x13e0] sm:$0xff] }
 0x3dd   :  { %7611 = vmatprep.mubr.bf16.mxu1 %v19460_v54  ;;  %7417 = vmatprep.subr.bf16.mxu0 %v16913_v2  ;;  %v1078_v2 = vld [vmem:[#allocation6 + $0x13a8] sm:$0xff]  ;;  %v17009_v5 = vcombine.high %v1077_v1, %v1085_v45  ;;  %v17008_v49 = vcombine.low %v1077_v1, %v1085_v45 }
 0x3de   :  { %7581 = vmatprep.subr.bf16.mxu1 %v16915_v30  ;;  %v16994_v30 = vcombine.low %v1062_v59, %v1070_v60  ;;  %v17011_v7 = vcombine.high %v1078_v2, %v1086_v3  ;;  %v17010_v51 = vcombine.low %v1078_v2, %v1086_v3 }
 0x3df   :  { %7418 = vmatpush1.bf16.msra.mxu0 %v16912_v8  ;;  %v1093_v8 = vld [vmem:[#allocation6 + $0x1420] sm:$0xff] }
 0x3e0   :  { %7582 = vmatpush1.bf16.msra.mxu1 %v16914_v9  ;;  %7419 = vmatprep.subr.bf16.mxu0 %v16929_v15  ;;  %v1101_v9 = vld [vmem:[#allocation6 + $0x1460] sm:$0xff]  ;;  %v1094_v15 = vld [vmem:[#allocation6 + $0x1428] sm:$0xff] }
 0x3e1   :  { %7583 = vmatprep.subr.bf16.mxu1 %v16931_v17  ;;  %v1102_v17 = vld [vmem:[#allocation6 + $0x1468] sm:$0xff]  ;;  %v17025_v19 = vcombine.high %v1093_v8, %v1101_v9  ;;  %v17024_v27 = vcombine.low %v1093_v8, %v1101_v9 }
 0x3e2   :  { %v17027_v20 = vcombine.high %v1094_v15, %v1102_v17  ;;  %v17026_v16 = vcombine.low %v1094_v15, %v1102_v17 }
 0x3e3   :  { %7420 = vmatpush1.bf16.msra.mxu0 %v16928_v21  ;;  %v1109_v21 = vld [vmem:[#allocation6 + $0x14a0] sm:$0xff] }
 0x3e4   :  { %7584 = vmatpush1.bf16.msra.mxu1 %v16930_v22  ;;  %7421 = vmatprep.subr.bf16.mxu0 %v16945_v24  ;;  %v1117_v22 = vld [vmem:[#allocation6 + $0x14e0] sm:$0xff]  ;;  %v1110_v24 = vld [vmem:[#allocation6 + $0x14a8] sm:$0xff] }
 0x3e5   :  { %7585 = vmatprep.subr.bf16.mxu1 %v16947_v26  ;;  %v1118_v26 = vld [vmem:[#allocation6 + $0x14e8] sm:$0xff]  ;;  %v17041_v32 = vcombine.high %v1109_v21, %v1117_v22  ;;  %v17040_v41 = vcombine.low %v1109_v21, %v1117_v22 }
 0x3e6   :  { %v17043_v33 = vcombine.high %v1110_v24, %v1118_v26  ;;  %v17042_v43 = vcombine.low %v1110_v24, %v1118_v26 }
 0x3e7   :  { %7422 = vmatpush1.bf16.msra.mxu0 %v16944_v28  ;;  %v1125_v28 = vld [vmem:[#allocation6 + $0x1520] sm:$0xff] }
 0x3e8   :  { %7586 = vmatpush1.bf16.msra.mxu1 %v16946_v34  ;;  %7423 = vmatprep.subr.bf16.mxu0 %v16961_v35  ;;  %v1133_v34 = vld [vmem:[#allocation6 + $0x1560] sm:$0xff]  ;;  %v1126_v35 = vld [vmem:[#allocation6 + $0x1528] sm:$0xff] }
 0x3e9   :  { %7587 = vmatprep.subr.bf16.mxu1 %v16963_v40  ;;  %v1134_v40 = vld [vmem:[#allocation6 + $0x1568] sm:$0xff]  ;;  %v17057_v44 = vcombine.high %v1125_v28, %v1133_v34  ;;  %v17056_v57 = vcombine.low %v1125_v28, %v1133_v34 }
 0x3ea   :  { %v17059_v46 = vcombine.high %v1126_v35, %v1134_v40  ;;  %v17058_v58 = vcombine.low %v1126_v35, %v1134_v40 }
 0x3eb   :  { %7424 = vmatpush1.bf16.msra.mxu0 %v16960_v47  ;;  %v1141_v47 = vld [vmem:[#allocation6 + $0x15a0] sm:$0xff] }
 0x3ec   :  { %7588 = vmatpush1.bf16.msra.mxu1 %v16962_v48  ;;  %7425 = vmatprep.subr.bf16.mxu0 %v16977_v53  ;;  %v1149_v48 = vld [vmem:[#allocation6 + $0x15e0] sm:$0xff]  ;;  %v1142_v53 = vld [vmem:[#allocation6 + $0x15a8] sm:$0xff] }
 0x3ed   :  { %7589 = vmatprep.subr.bf16.mxu1 %v16979_v55  ;;  %v1150_v55 = vld [vmem:[#allocation6 + $0x15e8] sm:$0xff]  ;;  %v17073_v59 = vcombine.high %v1141_v47, %v1149_v48  ;;  %v17072_v1 = vcombine.low %v1141_v47, %v1149_v48 }
 0x3ee   :  { %v17075_v60 = vcombine.high %v1142_v53, %v1150_v55  ;;  %v17074_v45 = vcombine.low %v1142_v53, %v1150_v55 }
 0x3ef   :  { %7426 = vmatpush1.bf16.msra.mxu0 %v16976_v61  ;;  %v1157_v61 = vld [vmem:[#allocation6 + $0x1620] sm:$0xff] }
 0x3f0   :  { %7590 = vmatpush1.bf16.msra.mxu1 %v16978_v62  ;;  %7427 = vmatprep.subr.bf16.mxu0 %v16993_v63  ;;  %v1165_v62 = vld [vmem:[#allocation6 + $0x1660] sm:$0xff]  ;;  %v1158_v63 = vld [vmem:[#allocation6 + $0x1628] sm:$0xff] }
 0x3f1   :  { %7591 = vmatprep.subr.bf16.mxu1 %v16995_v0  ;;  %v1166_v0 = vld [vmem:[#allocation6 + $0x1668] sm:$0xff]  ;;  %v17089_v2 = vcombine.high %v1157_v61, %v1165_v62  ;;  %v17088_v8 = vcombine.low %v1157_v61, %v1165_v62 }
 0x3f2   :  { %v17091_v3 = vcombine.high %v1158_v63, %v1166_v0  ;;  %v17090_v9 = vcombine.low %v1158_v63, %v1166_v0  ;;  %v1246_v61 = vld [vmem:[#allocation6 + $0x18e8] sm:$0xff]  ;;  %v1253_v0 = vld [vmem:[#allocation6 + $0x1920] sm:$0xff] }
 0x3f3   :  { %7428 = vmatpush1.bf16.msra.mxu0 %v16992_v4  ;;  %v1173_v4 = vld [vmem:[#allocation6 + $0x16a0] sm:$0xff] }
 0x3f4   :  { %7592 = vmatpush1.bf16.msra.mxu1 %v16994_v30  ;;  %7429 = vmatprep.subr.bf16.mxu0 %v17009_v5  ;;  %v1181_v30 = vld [vmem:[#allocation6 + $0x16e0] sm:$0xff]  ;;  %v1174_v5 = vld [vmem:[#allocation6 + $0x16a8] sm:$0xff] }
 0x3f5   :  { %7593 = vmatprep.subr.bf16.mxu1 %v17011_v7  ;;  %v1182_v7 = vld [vmem:[#allocation6 + $0x16e8] sm:$0xff]  ;;  %v17105_v15 = vcombine.high %v1173_v4, %v1181_v30  ;;  %v17104_v21 = vcombine.low %v1173_v4, %v1181_v30 }
 0x3f6   :  { %v17107_v17 = vcombine.high %v1174_v5, %v1182_v7  ;;  %v17106_v22 = vcombine.low %v1174_v5, %v1182_v7 }
 0x3f7   :  { %7430 = vmatpush1.bf16.msra.mxu0 %v17008_v49  ;;  %v1189_v49 = vld [vmem:[#allocation6 + $0x1720] sm:$0xff] }
 0x3f8   :  { %7594 = vmatpush1.bf16.msra.mxu1 %v17010_v51  ;;  %7431 = vmatprep.subr.bf16.mxu0 %v17025_v19  ;;  %v1197_v51 = vld [vmem:[#allocation6 + $0x1760] sm:$0xff]  ;;  %v1190_v19 = vld [vmem:[#allocation6 + $0x1728] sm:$0xff] }
 0x3f9   :  { %7595 = vmatprep.subr.bf16.mxu1 %v17027_v20  ;;  %v1198_v20 = vld [vmem:[#allocation6 + $0x1768] sm:$0xff]  ;;  %v17121_v24 = vcombine.high %v1189_v49, %v1197_v51  ;;  %v17120_v28 = vcombine.low %v1189_v49, %v1197_v51 }
 0x3fa   :  { %v17123_v26 = vcombine.high %v1190_v19, %v1198_v20  ;;  %v17122_v34 = vcombine.low %v1190_v19, %v1198_v20 }
 0x3fb   :  { %7432 = vmatpush1.bf16.msra.mxu0 %v17024_v27  ;;  %v1205_v27 = vld [vmem:[#allocation6 + $0x17a0] sm:$0xff] }
 0x3fc   :  { %7596 = vmatpush1.bf16.msra.mxu1 %v17026_v16  ;;  %7433 = vmatprep.subr.bf16.mxu0 %v17041_v32  ;;  %v1213_v16 = vld [vmem:[#allocation6 + $0x17e0] sm:$0xff]  ;;  %v1206_v32 = vld [vmem:[#allocation6 + $0x17a8] sm:$0xff] }
 0x3fd   :  { %7597 = vmatprep.subr.bf16.mxu1 %v17043_v33  ;;  %v1214_v33 = vld [vmem:[#allocation6 + $0x17e8] sm:$0xff]  ;;  %v17137_v35 = vcombine.high %v1205_v27, %v1213_v16  ;;  %v17136_v47 = vcombine.low %v1205_v27, %v1213_v16 }
 0x3fe   :  { %v17139_v40 = vcombine.high %v1206_v32, %v1214_v33  ;;  %v17138_v48 = vcombine.low %v1206_v32, %v1214_v33 }
 0x3ff   :  { %7434 = vmatpush1.bf16.msra.mxu0 %v17040_v41  ;;  %v1221_v41 = vld [vmem:[#allocation6 + $0x1820] sm:$0xff] }
 0x400   :  { %7598 = vmatpush1.bf16.msra.mxu1 %v17042_v43  ;;  %7435 = vmatprep.subr.bf16.mxu0 %v17057_v44  ;;  %v1229_v43 = vld [vmem:[#allocation6 + $0x1860] sm:$0xff]  ;;  %v1222_v44 = vld [vmem:[#allocation6 + $0x1828] sm:$0xff] }
 0x401   :  { %7599 = vmatprep.subr.bf16.mxu1 %v17059_v46  ;;  %v1230_v46 = vld [vmem:[#allocation6 + $0x1868] sm:$0xff]  ;;  %v17153_v53 = vcombine.high %v1221_v41, %v1229_v43 }
 0x402   :  { %v17155_v55 = vcombine.high %v1222_v44, %v1230_v46  ;;  %v17154_v62 = vcombine.low %v1222_v44, %v1230_v46 }
 0x403   :  { %7436 = vmatpush1.bf16.msra.mxu0 %v17056_v57  ;;  %v1237_v57 = vld [vmem:[#allocation6 + $0x18a0] sm:$0xff] }
 0x404   :  { %7600 = vmatpush1.bf16.msra.mxu1 %v17058_v58  ;;  %7437 = vmatprep.subr.bf16.mxu0 %v17073_v59  ;;  %v1245_v58 = vld [vmem:[#allocation6 + $0x18e0] sm:$0xff]  ;;  %v17152_v59 = vcombine.low %v1221_v41, %v1229_v43 }
 0x405   :  { %7601 = vmatprep.subr.bf16.mxu1 %v17075_v60  ;;  %v1238_v60 = vld [vmem:[#allocation6 + $0x18a8] sm:$0xff]  ;;  %v17169_v63 = vcombine.high %v1237_v57, %v1245_v58  ;;  %v17168_v4 = vcombine.low %v1237_v57, %v1245_v58 }
 0x406   :  { %v17170_v30 = vcombine.low %v1238_v60, %v1246_v61 }
 0x407   :  { %7438 = vmatpush1.bf16.msra.mxu0 %v17072_v1  ;;  %v1261_v1 = vld [vmem:[#allocation6 + $0x1960] sm:$0xff] }
 0x408   :  { %7602 = vmatpush1.bf16.msra.mxu1 %v17074_v45  ;;  %7439 = vmatprep.subr.bf16.mxu0 %v17089_v2  ;;  %v17171_v45 = vcombine.high %v1238_v60, %v1246_v61  ;;  %v1254_v2 = vld [vmem:[#allocation6 + $0x1928] sm:$0xff]  ;;  %v17185_v5 = vcombine.high %v1253_v0, %v1261_v1  ;;  %v17184_v49 = vcombine.low %v1253_v0, %v1261_v1 }
 0x409   :  { %7603 = vmatprep.subr.bf16.mxu1 %v17091_v3  ;;  %v1262_v3 = vld [vmem:[#allocation6 + $0x1968] sm:$0xff] }
 0x40a   :  { %v17187_v7 = vcombine.high %v1254_v2, %v1262_v3  ;;  %v17186_v51 = vcombine.low %v1254_v2, %v1262_v3  ;;  %v1342_v2 = vld [vmem:[#allocation6 + $0x1be8] sm:$0xff] }
 0x40b   :  { %7440 = vmatpush1.bf16.msra.mxu0 %v17088_v8  ;;  %v1269_v8 = vld [vmem:[#allocation6 + $0x19a0] sm:$0xff] }
 0x40c   :  { %7604 = vmatpush1.bf16.msra.mxu1 %v17090_v9  ;;  %7441 = vmatprep.subr.bf16.mxu0 %v17105_v15  ;;  %v1277_v9 = vld [vmem:[#allocation6 + $0x19e0] sm:$0xff]  ;;  %v1270_v15 = vld [vmem:[#allocation6 + $0x19a8] sm:$0xff] }
 0x40d   :  { %7605 = vmatprep.subr.bf16.mxu1 %v17107_v17  ;;  %v1278_v17 = vld [vmem:[#allocation6 + $0x19e8] sm:$0xff]  ;;  %v17201_v19 = vcombine.high %v1269_v8, %v1277_v9  ;;  %v17200_v27 = vcombine.low %v1269_v8, %v1277_v9 }
 0x40e   :  { %v17203_v20 = vcombine.high %v1270_v15, %v1278_v17  ;;  %v17202_v16 = vcombine.low %v1270_v15, %v1278_v17 }
 0x40f   :  { %7442 = vmatpush1.bf16.msra.mxu0 %v17104_v21  ;;  %v1285_v21 = vld [vmem:[#allocation6 + $0x1a20] sm:$0xff] }
 0x410   :  { %7606 = vmatpush1.bf16.msra.mxu1 %v17106_v22  ;;  %7443 = vmatprep.subr.bf16.mxu0 %v17121_v24  ;;  %v1293_v22 = vld [vmem:[#allocation6 + $0x1a60] sm:$0xff]  ;;  %v1286_v24 = vld [vmem:[#allocation6 + $0x1a28] sm:$0xff] }
 0x411   :  { %7607 = vmatprep.subr.bf16.mxu1 %v17123_v26  ;;  %v1294_v26 = vld [vmem:[#allocation6 + $0x1a68] sm:$0xff]  ;;  %v17217_v32 = vcombine.high %v1285_v21, %v1293_v22  ;;  %v17216_v41 = vcombine.low %v1285_v21, %v1293_v22 }
 0x412   :  { %v17219_v33 = vcombine.high %v1286_v24, %v1294_v26  ;;  %v17218_v43 = vcombine.low %v1286_v24, %v1294_v26 }
 0x413   :  { %7444 = vmatpush1.bf16.msra.mxu0 %v17120_v28  ;;  %v1301_v28 = vld [vmem:[#allocation6 + $0x1aa0] sm:$0xff] }
 0x414   :  { %7608 = vmatpush1.bf16.msra.mxu1 %v17122_v34  ;;  %7445 = vmatprep.subr.bf16.mxu0 %v17137_v35  ;;  %v1309_v34 = vld [vmem:[#allocation6 + $0x1ae0] sm:$0xff]  ;;  %v1302_v35 = vld [vmem:[#allocation6 + $0x1aa8] sm:$0xff] }
 0x415   :  { %7609 = vmatprep.subr.bf16.mxu1 %v17139_v40  ;;  %v1310_v40 = vld [vmem:[#allocation6 + $0x1ae8] sm:$0xff]  ;;  %v17233_v44 = vcombine.high %v1301_v28, %v1309_v34  ;;  %v17232_v57 = vcombine.low %v1301_v28, %v1309_v34 }
 0x416   :  { %v17235_v46 = vcombine.high %v1302_v35, %v1310_v40  ;;  %v17234_v58 = vcombine.low %v1302_v35, %v1310_v40 }
 0x417   :  { %7446 = vmatpush1.bf16.msra.mxu0 %v17136_v47  ;;  %v1317_v47 = vld [vmem:[#allocation6 + $0x1b20] sm:$0xff] }
 0x418   :  { %7610 = vmatpush1.bf16.msra.mxu1 %v17138_v48  ;;  %7456 = vmatprep.subr.bf16.mxu0 %v17153_v53  ;;  %v1325_v48 = vld [vmem:[#allocation6 + $0x1b60] sm:$0xff]  ;;  %v1318_v53 = vld [vmem:[#allocation6 + $0x1b28] sm:$0xff] }
 0x419   :  { %7620 = vmatprep.subr.bf16.mxu1 %v17155_v55  ;;  %v1326_v55 = vld [vmem:[#allocation6 + $0x1b68] sm:$0xff] }
 0x41a   :  { %7448 = vmatmul.mubr.bf16.vlgmr.msra.gmra.mrb[8].mxu0 %v19478_v23  ;;  %v17251_v61 = vcombine.high %v1318_v53, %v1326_v55  ;;  %v17250_v8 = vcombine.low %v1318_v53, %v1326_v55 }
 0x41b   :  { %7612 = vmatmul.mubr.bf16.vlgmr.msra.gmra.mrb[24].mxu1 %v19478_v23  ;;  %7457 = vmatpush1.bf16.msra.mxu0 %v17152_v59  ;;  %v17249_v59 = vcombine.high %v1317_v47, %v1325_v48 }
 0x41c   :  { %7488 = vmatprep.mubr.bf16.mxu0 %v19480_v36  ;;  %7621 = vmatpush1.bf16.msra.mxu1 %v17154_v62  ;;  %v1333_v62 = vld [vmem:[#allocation6 + $0x1ba0] sm:$0xff] }
 0x41d   :  { %7652 = vmatprep.mubr.bf16.mxu1 %v19480_v36  ;;  %7458 = vmatprep.subr.bf16.mxu0 %v17169_v63  ;;  %v1341_v63 = vld [vmem:[#allocation6 + $0x1be0] sm:$0xff] }
 0x41e   :  { %7622 = vmatprep.subr.bf16.mxu1 %v17171_v45  ;;  %v1334_v45 = vld [vmem:[#allocation6 + $0x1ba8] sm:$0xff]  ;;  %v17265_v9 = vcombine.high %v1333_v62, %v1341_v63  ;;  %v17264_v21 = vcombine.low %v1333_v62, %v1341_v63 }
 0x41f   :  { %7459 = vmatpush1.bf16.msra.mxu0 %v17168_v4  ;;  %v17267_v17 = vcombine.high %v1334_v45, %v1342_v2  ;;  %v17266_v22 = vcombine.low %v1334_v45, %v1342_v2 }
 0x420   :  { %7623 = vmatpush1.bf16.msra.mxu1 %v17170_v30  ;;  %7460 = vmatprep.subr.bf16.mxu0 %v17185_v5  ;;  %v17248_v30 = vcombine.low %v1317_v47, %v1325_v48 }
 0x421   :  { %7624 = vmatprep.subr.bf16.mxu1 %v17187_v7 }
 0x423   :  { %7461 = vmatpush1.bf16.msra.mxu0 %v17184_v49  ;;  %v1349_v49 = vld [vmem:[#allocation6 + $0x1c20] sm:$0xff] }
 0x424   :  { %7625 = vmatpush1.bf16.msra.mxu1 %v17186_v51  ;;  %7462 = vmatprep.subr.bf16.mxu0 %v17201_v19  ;;  %v1357_v51 = vld [vmem:[#allocation6 + $0x1c60] sm:$0xff]  ;;  %v1350_v19 = vld [vmem:[#allocation6 + $0x1c28] sm:$0xff] }
 0x425   :  { %7626 = vmatprep.subr.bf16.mxu1 %v17203_v20  ;;  %v1358_v20 = vld [vmem:[#allocation6 + $0x1c68] sm:$0xff]  ;;  %v17281_v24 = vcombine.high %v1349_v49, %v1357_v51  ;;  %v17280_v28 = vcombine.low %v1349_v49, %v1357_v51  ;;  %v1429_v49 = vld [vmem:[#allocation6 + $0x1ea0] sm:$0xff] }
 0x426   :  { %v17283_v26 = vcombine.high %v1350_v19, %v1358_v20  ;;  %v17282_v34 = vcombine.low %v1350_v19, %v1358_v20  ;;  %v1437_v51 = vld [vmem:[#allocation6 + $0x1ee0] sm:$0xff]  ;;  %v1430_v19 = vld [vmem:[#allocation6 + $0x1ea8] sm:$0xff] }
 0x427   :  { %7463 = vmatpush1.bf16.msra.mxu0 %v17200_v27  ;;  %v1365_v27 = vld [vmem:[#allocation6 + $0x1ca0] sm:$0xff]  ;;  %v1438_v20 = vld [vmem:[#allocation6 + $0x1ee8] sm:$0xff] }
 0x428   :  { %7627 = vmatpush1.bf16.msra.mxu1 %v17202_v16  ;;  %7464 = vmatprep.subr.bf16.mxu0 %v17217_v32  ;;  %v1373_v16 = vld [vmem:[#allocation6 + $0x1ce0] sm:$0xff]  ;;  %v1366_v32 = vld [vmem:[#allocation6 + $0x1ca8] sm:$0xff] }
 0x429   :  { %7628 = vmatprep.subr.bf16.mxu1 %v17219_v33  ;;  %v1374_v33 = vld [vmem:[#allocation6 + $0x1ce8] sm:$0xff]  ;;  %v17297_v35 = vcombine.high %v1365_v27, %v1373_v16  ;;  %v17296_v47 = vcombine.low %v1365_v27, %v1373_v16  ;;  %v1445_v27 = vld [vmem:[#allocation6 + $0x1f20] sm:$0xff] }
 0x42a   :  { %v17299_v40 = vcombine.high %v1366_v32, %v1374_v33  ;;  %v17298_v48 = vcombine.low %v1366_v32, %v1374_v33  ;;  %v1453_v16 = vld [vmem:[#allocation6 + $0x1f60] sm:$0xff]  ;;  %v1446_v32 = vld [vmem:[#allocation6 + $0x1f28] sm:$0xff] }
 0x42b   :  { %7465 = vmatpush1.bf16.msra.mxu0 %v17216_v41  ;;  %v1381_v41 = vld [vmem:[#allocation6 + $0x1d20] sm:$0xff]  ;;  %v1454_v33 = vld [vmem:[#allocation6 + $0x1f68] sm:$0xff] }
 0x42c   :  { %7629 = vmatpush1.bf16.msra.mxu1 %v17218_v43  ;;  %7466 = vmatprep.subr.bf16.mxu0 %v17233_v44  ;;  %v1389_v43 = vld [vmem:[#allocation6 + $0x1d60] sm:$0xff]  ;;  %v1382_v44 = vld [vmem:[#allocation6 + $0x1d28] sm:$0xff] }
 0x42d   :  { %v19533_v60 = vpop.f32.mrb[4].mxu0  ;;  %7630 = vmatprep.subr.bf16.mxu1 %v17235_v46  ;;  %v1390_v46 = vld [vmem:[#allocation6 + $0x1d68] sm:$0xff]  ;;  %v17313_v53 = vcombine.high %v1381_v41, %v1389_v43  ;;  %v17312_v62 = vcombine.low %v1381_v41, %v1389_v43  ;;  %v1461_v41 = vld [vmem:[#allocation6 + $0x1fa0] sm:$0xff] }
 0x42e   :  { %v19535_v0 = vpop.f32.mrb[20].mxu1  ;;  %v19537_v1 = vpop.f32.mrb[5].mxu0  ;;  %v17315_v55 = vcombine.high %v1382_v44, %v1390_v46  ;;  %v17314_v63 = vcombine.low %v1382_v44, %v1390_v46  ;;  %v1469_v43 = vld [vmem:[#allocation6 + $0x1fe0] sm:$0xff]  ;;  %v1462_v44 = vld [vmem:[#allocation6 + $0x1fa8] sm:$0xff] }
 0x42f   :  { %v19539_v3 = vpop.f32.mrb[21].mxu1  ;;  %v7166_v4 = vpop.f32.mrb[6].mxu0  ;;  %7467 = vmatpush1.bf16.msra.mxu0 %v17232_v57  ;;  %v1397_v57 = vld [vmem:[#allocation6 + $0x1da0] sm:$0xff]  ;;  %v1470_v46 = vld [vmem:[#allocation6 + $0x1fe8] sm:$0xff] }
 0x430   :  { %v7330_v5 = vpop.f32.mrb[22].mxu1  ;;  %7631 = vmatpush1.bf16.msra.mxu1 %v17234_v58  ;;  %v7167_v7 = vpop.f32.mrb[7].mxu0  ;;  %7468 = vmatprep.subr.bf16.mxu0 %v17249_v59  ;;  %v1405_v58 = vld [vmem:[#allocation6 + $0x1de0] sm:$0xff]  ;;  %v1398_v59 = vld [vmem:[#allocation6 + $0x1da8] sm:$0xff] }
 0x431   :  { %v7331_v15 = vpop.f32.mrb[23].mxu1  ;;  %7632 = vmatprep.subr.bf16.mxu1 %v17251_v61  ;;  %v1406_v61 = vld [vmem:[#allocation6 + $0x1de8] sm:$0xff]  ;;  %v17329_v45 = vcombine.high %v1397_v57, %v1405_v58  ;;  %v1413_v4 = vld [vmem:[#allocation6 + $0x1e20] sm:$0xff] }
 0x432   :  { %v17331_v2 = vcombine.high %v1398_v59, %v1406_v61  ;;  %v1414_v5 = vld [vmem:[#allocation6 + $0x1e28] sm:$0xff] }
 0x433   :  { %7469 = vmatpush1.bf16.msra.mxu0 %v17248_v30  ;;  %v1421_v30 = vld [vmem:[#allocation6 + $0x1e60] sm:$0xff]  ;;  %v1422_v7 = vld [vmem:[#allocation6 + $0x1e68] sm:$0xff] }
 0x434   :  { %7633 = vmatpush1.bf16.msra.mxu1 %v17250_v8  ;;  %7470 = vmatprep.subr.bf16.mxu0 %v17265_v9  ;;  %v17328_v8 = vcombine.low %v1397_v57, %v1405_v58  ;;  %v17330_v9 = vcombine.low %v1398_v59, %v1406_v61  ;;  %v17345_v15 = vcombine.high %v1413_v4, %v1421_v30  ;;  %v455_v57 = vld [vmem:[#allocation6 + $0x30] sm:$0xff]  ;;  %v456_v59 = vld [vmem:[#allocation6 + $0x38] sm:$0xff] }
 0x435   :  { %7634 = vmatprep.subr.bf16.mxu1 %v17267_v17  ;;  %v17347_v17 = vcombine.high %v1414_v5, %v1422_v7  ;;  %v463_v58 = vld [vmem:[#allocation6 + $0x70] sm:$0xff]  ;;  %v464_v61 = vld [vmem:[#allocation6 + $0x78] sm:$0xff] }
 0x437   :  { %7471 = vmatpush1.bf16.msra.mxu0 %v17264_v21  ;;  %v17344_v21 = vcombine.low %v1413_v4, %v1421_v30  ;;  %v471_v4 = vld [vmem:[#allocation6 + $0xb0] sm:$0xff] }
 0x438   :  { %7635 = vmatpush1.bf16.msra.mxu1 %v17266_v22  ;;  %7472 = vmatprep.subr.bf16.mxu0 %v17281_v24  ;;  %v17346_v22 = vcombine.low %v1414_v5, %v1422_v7  ;;  %v17361_v24 = vcombine.high %v1429_v49, %v1437_v51  ;;  %v479_v30 = vld [vmem:[#allocation6 + $0xf0] sm:$0xff]  ;;  %v16388_v5 = vcombine.low %v455_v57, %v463_v58  ;;  %v472_v7 = vld [vmem:[#allocation6 + $0xb8] sm:$0xff] }
 0x439   :  { %7636 = vmatprep.subr.bf16.mxu1 %v17283_v26  ;;  %v17363_v26 = vcombine.high %v1430_v19, %v1438_v20 }
 0x43b   :  { %7473 = vmatpush1.bf16.msra.mxu0 %v17280_v28  ;;  %v17360_v28 = vcombine.low %v1429_v49, %v1437_v51  ;;  %v495_v49 = vld [vmem:[#allocation6 + $0x170] sm:$0xff] }
 0x43c   :  { %7637 = vmatpush1.bf16.msra.mxu1 %v17282_v34  ;;  %7474 = vmatprep.subr.bf16.mxu0 %v17297_v35  ;;  %v17362_v34 = vcombine.low %v1430_v19, %v1438_v20  ;;  %v17377_v35 = vcombine.high %v1445_v27, %v1453_v16  ;;  %v488_v19 = vld [vmem:[#allocation6 + $0x138] sm:$0xff] }
 0x43d   :  { %7638 = vmatprep.subr.bf16.mxu1 %v17299_v40  ;;  %v17379_v40 = vcombine.high %v1446_v32, %v1454_v33  ;;  %v496_v20 = vld [vmem:[#allocation6 + $0x178] sm:$0xff] }
 0x43f   :  { %7475 = vmatpush1.bf16.msra.mxu0 %v17296_v47  ;;  %v17376_v47 = vcombine.low %v1445_v27, %v1453_v16  ;;  %v503_v27 = vld [vmem:[#allocation6 + $0x1b0] sm:$0xff] }
 0x440   :  { %7639 = vmatpush1.bf16.msra.mxu1 %v17298_v48  ;;  %7476 = vmatprep.subr.bf16.mxu0 %v17313_v53  ;;  %v17378_v48 = vcombine.low %v1446_v32, %v1454_v33  ;;  %v17393_v53 = vcombine.high %v1461_v41, %v1469_v43  ;;  %v511_v16 = vld [vmem:[#allocation6 + $0x1f0] sm:$0xff]  ;;  %v504_v32 = vld [vmem:[#allocation6 + $0x1b8] sm:$0xff] }
 0x441   :  { %7640 = vmatprep.subr.bf16.mxu1 %v17315_v55  ;;  %v17395_v55 = vcombine.high %v1462_v44, %v1470_v46  ;;  %v512_v33 = vld [vmem:[#allocation6 + $0x1f8] sm:$0xff] }
 0x443   :  { %7477 = vmatpush1.bf16.msra.mxu0 %v17312_v62  ;;  %v17392_v62 = vcombine.low %v1461_v41, %v1469_v43  ;;  %v519_v41 = vld [vmem:[#allocation6 + $0x230] sm:$0xff] }
 0x444   :  { %7641 = vmatpush1.bf16.msra.mxu1 %v17314_v63  ;;  %7478 = vmatprep.subr.bf16.mxu0 %v17329_v45  ;;  %v17394_v63 = vcombine.low %v1462_v44, %v1470_v46  ;;  %v16389_v45 = vcombine.high %v455_v57, %v463_v58  ;;  %v527_v43 = vld [vmem:[#allocation6 + $0x270] sm:$0xff]  ;;  %v520_v44 = vld [vmem:[#allocation6 + $0x238] sm:$0xff] }
 0x445   :  { %7642 = vmatprep.subr.bf16.mxu1 %v17331_v2  ;;  %v16391_v2 = vcombine.high %v456_v59, %v464_v61  ;;  %v528_v46 = vld [vmem:[#allocation6 + $0x278] sm:$0xff]  ;;  %v543_v57 = vld [vmem:[#allocation6 + $0x2f0] sm:$0xff] }
 0x446   :  { %v536_v58 = vld [vmem:[#allocation6 + $0x2b8] sm:$0xff] }
 0x447   :  { %7479 = vmatpush1.bf16.msra.mxu0 %v17328_v8  ;;  %v480_v8 = vld [vmem:[#allocation6 + $0xf8] sm:$0xff] }
 0x448   :  { %7643 = vmatpush1.bf16.msra.mxu1 %v17330_v9  ;;  %7480 = vmatprep.subr.bf16.mxu0 %v17345_v15  ;;  %v16390_v9 = vcombine.low %v456_v59, %v464_v61  ;;  %v16405_v15 = vcombine.high %v471_v4, %v479_v30  ;;  %v16407_v51 = vcombine.high %v472_v7, %v480_v8  ;;  %v544_v59 = vld [vmem:[#allocation6 + $0x2f8] sm:$0xff] }
 0x449   :  { %7644 = vmatprep.subr.bf16.mxu1 %v17347_v17  ;;  %v487_v17 = vld [vmem:[#allocation6 + $0x130] sm:$0xff]  ;;  %v16452_v61 = vcombine.low %v519_v41, %v527_v43 }
 0x44b   :  { %7481 = vmatpush1.bf16.msra.mxu0 %v17344_v21  ;;  %v16404_v21 = vcombine.low %v471_v4, %v479_v30  ;;  %v559_v4 = vld [vmem:[#allocation6 + $0x370] sm:$0xff]  ;;  %v552_v30 = vld [vmem:[#allocation6 + $0x338] sm:$0xff] }
 0x44c   :  { %7645 = vmatpush1.bf16.msra.mxu1 %v17346_v22  ;;  %7482 = vmatprep.subr.bf16.mxu0 %v17361_v24  ;;  %v16406_v22 = vcombine.low %v472_v7, %v480_v8  ;;  %v16421_v24 = vcombine.high %v487_v17, %v495_v49  ;;  %v16470_v8 = vcombine.low %v536_v58, %v544_v59 }
 0x44d   :  { %7646 = vmatprep.subr.bf16.mxu1 %v17363_v26  ;;  %v16423_v26 = vcombine.high %v488_v19, %v496_v20 }
 0x44f   :  { %7483 = vmatpush1.bf16.msra.mxu0 %v17360_v28  ;;  %v16420_v28 = vcombine.low %v487_v17, %v495_v49  ;;  %v567_v17 = vld [vmem:[#allocation6 + $0x3b0] sm:$0xff] }
 0x450   :  { %7647 = vmatpush1.bf16.msra.mxu1 %v17362_v34  ;;  %7484 = vmatprep.subr.bf16.mxu0 %v17377_v35  ;;  %v16422_v34 = vcombine.low %v488_v19, %v496_v20  ;;  %v16437_v35 = vcombine.high %v503_v27, %v511_v16  ;;  %v575_v49 = vld [vmem:[#allocation6 + $0x3f0] sm:$0xff]  ;;  %v576_v19 = vld [vmem:[#allocation6 + $0x3f8] sm:$0xff] }
 0x451   :  { %7648 = vmatprep.subr.bf16.mxu1 %v17379_v40  ;;  %v16439_v40 = vcombine.high %v504_v32, %v512_v33 }
 0x453   :  { %7485 = vmatpush1.bf16.msra.mxu0 %v17376_v47  ;;  %v16438_v47 = vcombine.low %v504_v32, %v512_v33  ;;  %v592_v32 = vld [vmem:[#allocation6 + $0x478] sm:$0xff]  ;;  %v16500_v33 = vcombine.low %v567_v17, %v575_v49 }
 0x454   :  { %7649 = vmatpush1.bf16.msra.mxu1 %v17378_v48  ;;  %7486 = vmatprep.subr.bf16.mxu0 %v17393_v53  ;;  %v16453_v48 = vcombine.high %v519_v41, %v527_v43  ;;  %v16455_v53 = vcombine.high %v520_v44, %v528_v46  ;;  %v607_v41 = vld [vmem:[#allocation6 + $0x4f0] sm:$0xff]  ;;  %v600_v43 = vld [vmem:[#allocation6 + $0x4b8] sm:$0xff] }
 0x455   :  { %7650 = vmatprep.subr.bf16.mxu1 %v17395_v55  ;;  %v535_v55 = vld [vmem:[#allocation6 + $0x2b0] sm:$0xff] }
 0x456   :  { %v16468_v7 = vcombine.low %v535_v55, %v543_v57 }
 0x457   :  { %7487 = vmatpush1.bf16.msra.mxu0 %v17392_v62  ;;  %v16454_v62 = vcombine.low %v520_v44, %v528_v46  ;;  %v608_v44 = vld [vmem:[#allocation6 + $0x4f8] sm:$0xff] }
 0x458   :  { %7651 = vmatpush1.bf16.msra.mxu1 %v17394_v63  ;;  %7661 = vmatprep.subr.bf16.mxu0 %v16389_v45  ;;  %v16469_v63 = vcombine.high %v535_v55, %v543_v57  ;;  %v16471_v45 = vcombine.high %v536_v58, %v544_v59  ;;  %v623_v55 = vld [vmem:[#allocation6 + $0x570] sm:$0xff]  ;;  %v616_v57 = vld [vmem:[#allocation6 + $0x538] sm:$0xff] }
 0x459   :  { %7825 = vmatprep.subr.bf16.mxu1 %v16391_v2  ;;  %v551_v2 = vld [vmem:[#allocation6 + $0x330] sm:$0xff]  ;;  %v624_v58 = vld [vmem:[#allocation6 + $0x578] sm:$0xff] }
 0x45a   :  { %7489 = vmatmul.mubr.bf16.vlgmr.msra.gmra.mrb[8].mxu0 %v19491_v13  ;;  %v16484_v20 = vcombine.low %v551_v2, %v559_v4 }
 0x45b   :  { %7653 = vmatmul.mubr.bf16.vlgmr.msra.gmra.mrb[24].mxu1 %v19491_v13  ;;  %7662 = vmatpush1.bf16.msra.mxu0 %v16388_v5  ;;  %v560_v5 = vld [vmem:[#allocation6 + $0x378] sm:$0xff] }
 0x45c   :  { %7693 = vmatprep.mubr.bf16.mxu0 %v19424_v50  ;;  %7826 = vmatpush1.bf16.msra.mxu1 %v16390_v9  ;;  %v16485_v9 = vcombine.high %v551_v2, %v559_v4  ;;  %v639_v2 = vld [vmem:[#allocation6 + $0x5f0] sm:$0xff]  ;;  %v632_v4 = vld [vmem:[#allocation6 + $0x5b8] sm:$0xff] }
 0x45d   :  { %7857 = vmatprep.mubr.bf16.mxu1 %v19424_v50  ;;  %7663 = vmatprep.subr.bf16.mxu0 %v16405_v15  ;;  %v16436_v50 = vcombine.low %v503_v27, %v511_v16  ;;  %v16487_v15 = vcombine.high %v552_v30, %v560_v5  ;;  %v591_v27 = vld [vmem:[#allocation6 + $0x470] sm:$0xff]  ;;  %v584_v16 = vld [vmem:[#allocation6 + $0x438] sm:$0xff] }
 0x45e   :  { %7827 = vmatprep.subr.bf16.mxu1 %v16407_v51  ;;  %v568_v51 = vld [vmem:[#allocation6 + $0x3b8] sm:$0xff] }
 0x45f   :  { %7664 = vmatpush1.bf16.msra.mxu0 %v16404_v21  ;;  %v16486_v21 = vcombine.low %v552_v30, %v560_v5  ;;  %v640_v30 = vld [vmem:[#allocation6 + $0x5f8] sm:$0xff] }
 0x460   :  { %7828 = vmatpush1.bf16.msra.mxu1 %v16406_v22  ;;  %7665 = vmatprep.subr.bf16.mxu0 %v16421_v24  ;;  %v16501_v22 = vcombine.high %v567_v17, %v575_v49  ;;  %v16503_v24 = vcombine.high %v568_v51, %v576_v19  ;;  %v655_v17 = vld [vmem:[#allocation6 + $0x670] sm:$0xff]  ;;  %v648_v49 = vld [vmem:[#allocation6 + $0x638] sm:$0xff] }
 0x461   :  { %7829 = vmatprep.subr.bf16.mxu1 %v16423_v26  ;;  %v583_v26 = vld [vmem:[#allocation6 + $0x430] sm:$0xff] }
 0x462   :  { %v16516_v46 = vcombine.low %v583_v26, %v591_v27 }
 0x463   :  { %7666 = vmatpush1.bf16.msra.mxu0 %v16420_v28  ;;  %v16502_v28 = vcombine.low %v568_v51, %v576_v19  ;;  %v656_v51 = vld [vmem:[#allocation6 + $0x678] sm:$0xff] }
 0x464   :  { %7830 = vmatpush1.bf16.msra.mxu1 %v16422_v34  ;;  %7667 = vmatprep.subr.bf16.mxu0 %v16437_v35  ;;  %v16517_v34 = vcombine.high %v583_v26, %v591_v27  ;;  %v16519_v35 = vcombine.high %v584_v16, %v592_v32  ;;  %v671_v26 = vld [vmem:[#allocation6 + $0x6f0] sm:$0xff]  ;;  %v664_v27 = vld [vmem:[#allocation6 + $0x6b8] sm:$0xff] }
 0x465   :  { %7831 = vmatprep.subr.bf16.mxu1 %v16439_v40  ;;  %v599_v40 = vld [vmem:[#allocation6 + $0x4b0] sm:$0xff] }
 0x466   :  { %v16532_v59 = vcombine.low %v599_v40, %v607_v41 }
 0x467   :  { %7668 = vmatpush1.bf16.msra.mxu0 %v16436_v50  ;;  %v16518_v50 = vcombine.low %v584_v16, %v592_v32  ;;  %v672_v16 = vld [vmem:[#allocation6 + $0x6f8] sm:$0xff] }
 0x468   :  { %7832 = vmatpush1.bf16.msra.mxu1 %v16438_v47  ;;  %7669 = vmatprep.subr.bf16.mxu0 %v16453_v48  ;;  %v16533_v47 = vcombine.high %v599_v40, %v607_v41  ;;  %v16535_v48 = vcombine.high %v600_v43, %v608_v44  ;;  %v687_v40 = vld [vmem:[#allocation6 + $0x770] sm:$0xff]  ;;  %v680_v41 = vld [vmem:[#allocation6 + $0x738] sm:$0xff] }
 0x469   :  { %7833 = vmatprep.subr.bf16.mxu1 %v16455_v53  ;;  %v615_v53 = vld [vmem:[#allocation6 + $0x530] sm:$0xff] }
 0x46a   :  { %v16548_v5 = vcombine.low %v615_v53, %v623_v55 }
 0x46b   :  { %7670 = vmatpush1.bf16.msra.mxu0 %v16452_v61  ;;  %v16534_v61 = vcombine.low %v600_v43, %v608_v44  ;;  %v688_v43 = vld [vmem:[#allocation6 + $0x778] sm:$0xff] }
 0x46c   :  { %7834 = vmatpush1.bf16.msra.mxu1 %v16454_v62  ;;  %7671 = vmatprep.subr.bf16.mxu0 %v16469_v63  ;;  %v16549_v62 = vcombine.high %v615_v53, %v623_v55  ;;  %v16551_v63 = vcombine.high %v616_v57, %v624_v58  ;;  %v703_v53 = vld [vmem:[#allocation6 + $0x7f0] sm:$0xff]  ;;  %v696_v55 = vld [vmem:[#allocation6 + $0x7b8] sm:$0xff] }
 0x46d   :  { %7835 = vmatprep.subr.bf16.mxu1 %v16471_v45  ;;  %v631_v45 = vld [vmem:[#allocation6 + $0x5b0] sm:$0xff] }
 0x46e   :  { %v16564_v19 = vcombine.low %v631_v45, %v639_v2 }
 0x46f   :  { %7672 = vmatpush1.bf16.msra.mxu0 %v16468_v7  ;;  %v16550_v7 = vcombine.low %v616_v57, %v624_v58  ;;  %v704_v57 = vld [vmem:[#allocation6 + $0x7f8] sm:$0xff] }
 0x470   :  { %7836 = vmatpush1.bf16.msra.mxu1 %v16470_v8  ;;  %7673 = vmatprep.subr.bf16.mxu0 %v16485_v9  ;;  %v16565_v8 = vcombine.high %v631_v45, %v639_v2  ;;  %v16567_v9 = vcombine.high %v632_v4, %v640_v30  ;;  %v719_v45 = vld [vmem:[#allocation6 + $0x870] sm:$0xff]  ;;  %v712_v2 = vld [vmem:[#allocation6 + $0x838] sm:$0xff] }
 0x471   :  { %7837 = vmatprep.subr.bf16.mxu1 %v16487_v15  ;;  %v647_v15 = vld [vmem:[#allocation6 + $0x630] sm:$0xff] }
 0x472   :  { %v16580_v32 = vcombine.low %v647_v15, %v655_v17 }
 0x473   :  { %7674 = vmatpush1.bf16.msra.mxu0 %v16484_v20  ;;  %v16566_v20 = vcombine.low %v632_v4, %v640_v30  ;;  %v720_v4 = vld [vmem:[#allocation6 + $0x878] sm:$0xff] }
 0x474   :  { %7838 = vmatpush1.bf16.msra.mxu1 %v16486_v21  ;;  %7675 = vmatprep.subr.bf16.mxu0 %v16501_v22  ;;  %v16581_v21 = vcombine.high %v647_v15, %v655_v17  ;;  %v16583_v22 = vcombine.high %v648_v49, %v656_v51  ;;  %v735_v15 = vld [vmem:[#allocation6 + $0x8f0] sm:$0xff] }
 0x475   :  { %7839 = vmatprep.subr.bf16.mxu1 %v16503_v24  ;;  %v663_v24 = vld [vmem:[#allocation6 + $0x6b0] sm:$0xff] }
 0x476   :  { %v16596_v44 = vcombine.low %v663_v24, %v671_v26 }
 0x477   :  { %7676 = vmatpush1.bf16.msra.mxu0 %v16500_v33  ;;  %v16582_v33 = vcombine.low %v648_v49, %v656_v51  ;;  %v728_v49 = vld [vmem:[#allocation6 + $0x8b8] sm:$0xff] }
 0x478   :  { %7840 = vmatpush1.bf16.msra.mxu1 %v16502_v28  ;;  %7677 = vmatprep.subr.bf16.mxu0 %v16517_v34  ;;  %v16597_v28 = vcombine.high %v663_v24, %v671_v26  ;;  %v16599_v34 = vcombine.high %v664_v27, %v672_v16  ;;  %v736_v51 = vld [vmem:[#allocation6 + $0x8f8] sm:$0xff] }
 0x479   :  { %7841 = vmatprep.subr.bf16.mxu1 %v16519_v35  ;;  %v679_v35 = vld [vmem:[#allocation6 + $0x730] sm:$0xff]  ;;  %v16663_v24 = vcombine.high %v728_v49, %v736_v51  ;;  %v744_v26 = vld [vmem:[#allocation6 + $0x938] sm:$0xff] }
 0x47a   :  { %v16612_v58 = vcombine.low %v679_v35, %v687_v40 }
 0x47b   :  { %7678 = vmatpush1.bf16.msra.mxu0 %v16516_v46  ;;  %v16598_v46 = vcombine.low %v664_v27, %v672_v16  ;;  %v752_v27 = vld [vmem:[#allocation6 + $0x978] sm:$0xff] }
 0x47c   :  { %7842 = vmatpush1.bf16.msra.mxu1 %v16518_v50  ;;  %7679 = vmatprep.subr.bf16.mxu0 %v16533_v47  ;;  %v16613_v50 = vcombine.high %v679_v35, %v687_v40  ;;  %v16615_v47 = vcombine.high %v680_v41, %v688_v43  ;;  %v767_v35 = vld [vmem:[#allocation6 + $0x9f0] sm:$0xff]  ;;  %v760_v40 = vld [vmem:[#allocation6 + $0x9b8] sm:$0xff] }
 0x47d   :  { %7843 = vmatprep.subr.bf16.mxu1 %v16535_v48  ;;  %v695_v48 = vld [vmem:[#allocation6 + $0x7b0] sm:$0xff] }
 0x47e   :  { %v16628_v30 = vcombine.low %v695_v48, %v703_v53 }
 0x47f   :  { %7680 = vmatpush1.bf16.msra.mxu0 %v16532_v59  ;;  %v16614_v59 = vcombine.low %v680_v41, %v688_v43  ;;  %v768_v41 = vld [vmem:[#allocation6 + $0x9f8] sm:$0xff] }
 0x480   :  { %7844 = vmatpush1.bf16.msra.mxu1 %v16534_v61  ;;  %7681 = vmatprep.subr.bf16.mxu0 %v16549_v62  ;;  %v16629_v61 = vcombine.high %v695_v48, %v703_v53  ;;  %v16631_v62 = vcombine.high %v696_v55, %v704_v57  ;;  %v776_v48 = vld [vmem:[#allocation6 + $0xa38] sm:$0xff] }
 0x481   :  { %7845 = vmatprep.subr.bf16.mxu1 %v16551_v63  ;;  %v711_v63 = vld [vmem:[#allocation6 + $0x830] sm:$0xff]  ;;  %v784_v53 = vld [vmem:[#allocation6 + $0xa78] sm:$0xff] }
 0x482   :  { %v16644_v17 = vcombine.low %v711_v63, %v719_v45 }
 0x483   :  { %7682 = vmatpush1.bf16.msra.mxu0 %v16548_v5  ;;  %v16630_v5 = vcombine.low %v696_v55, %v704_v57  ;;  %v16694_v55 = vcombine.low %v760_v40, %v768_v41 }
 0x484   :  { %7846 = vmatpush1.bf16.msra.mxu1 %v16550_v7  ;;  %7683 = vmatprep.subr.bf16.mxu0 %v16565_v8  ;;  %v16645_v7 = vcombine.high %v711_v63, %v719_v45  ;;  %v16647_v8 = vcombine.high %v712_v2, %v720_v4  ;;  %v800_v63 = vld [vmem:[#allocation6 + $0xaf8] sm:$0xff] }
 0x485   :  { %7847 = vmatprep.subr.bf16.mxu1 %v16567_v9  ;;  %v727_v9 = vld [vmem:[#allocation6 + $0x8b0] sm:$0xff] }
 0x486   :  { %v16660_v16 = vcombine.low %v727_v9, %v735_v15 }
 0x487   :  { %7684 = vmatpush1.bf16.msra.mxu0 %v16564_v19  ;;  %v16646_v19 = vcombine.low %v712_v2, %v720_v4  ;;  %v16710_v2 = vcombine.low %v776_v48, %v784_v53 }
 0x488   :  { %7848 = vmatpush1.bf16.msra.mxu1 %v16566_v20  ;;  %7685 = vmatprep.subr.bf16.mxu0 %v16581_v21  ;;  %v16661_v20 = vcombine.high %v727_v9, %v735_v15  ;;  %v743_v21 = vld [vmem:[#allocation6 + $0x930] sm:$0xff]  ;;  %v816_v9 = vld [vmem:[#allocation6 + $0xb78] sm:$0xff] }
 0x489   :  { %7849 = vmatprep.subr.bf16.mxu1 %v16583_v22  ;;  %v751_v22 = vld [vmem:[#allocation6 + $0x970] sm:$0xff] }
 0x48a   :  { %v16676_v43 = vcombine.low %v743_v21, %v751_v22 }
 0x48b   :  { %7686 = vmatpush1.bf16.msra.mxu0 %v16580_v32  ;;  %v16662_v32 = vcombine.low %v728_v49, %v736_v51 }
 0x48c   :  { %7850 = vmatpush1.bf16.msra.mxu1 %v16582_v33  ;;  %7687 = vmatprep.subr.bf16.mxu0 %v16597_v28  ;;  %v16677_v33 = vcombine.high %v743_v21, %v751_v22  ;;  %v16679_v28 = vcombine.high %v744_v26, %v752_v27  ;;  %v824_v21 = vld [vmem:[#allocation6 + $0xbb8] sm:$0xff] }
 0x48d   :  { %7851 = vmatprep.subr.bf16.mxu1 %v16599_v34  ;;  %v759_v34 = vld [vmem:[#allocation6 + $0x9b0] sm:$0xff]  ;;  %v832_v22 = vld [vmem:[#allocation6 + $0xbf8] sm:$0xff] }
 0x48f   :  { %7688 = vmatpush1.bf16.msra.mxu0 %v16596_v44  ;;  %v16693_v44 = vcombine.high %v759_v34, %v767_v35 }
 0x490   :  { %7852 = vmatpush1.bf16.msra.mxu1 %v16598_v46  ;;  %7689 = vmatprep.subr.bf16.mxu0 %v16613_v50  ;;  %v16695_v46 = vcombine.high %v760_v40, %v768_v41  ;;  %v775_v50 = vld [vmem:[#allocation6 + $0xa30] sm:$0xff]  ;;  %v16758_v40 = vcombine.low %v824_v21, %v832_v22 }
 0x491   :  { %7853 = vmatprep.subr.bf16.mxu1 %v16615_v47  ;;  %v783_v47 = vld [vmem:[#allocation6 + $0xa70] sm:$0xff] }
 0x492   :  { %v16709_v57 = vcombine.high %v775_v50, %v783_v47  ;;  %v16708_v45 = vcombine.low %v775_v50, %v783_v47  ;;  %v864_v50 = vld [vmem:[#allocation6 + $0xcf8] sm:$0xff] }
 0x493   :  { %7690 = vmatpush1.bf16.msra.mxu0 %v16612_v58  ;;  %v16711_v58 = vcombine.high %v776_v48, %v784_v53 }
 0x494   :  { %7854 = vmatpush1.bf16.msra.mxu1 %v16614_v59  ;;  %7691 = vmatprep.subr.bf16.mxu0 %v16629_v61  ;;  %v791_v59 = vld [vmem:[#allocation6 + $0xab0] sm:$0xff] }
 0x495   :  { %7855 = vmatprep.subr.bf16.mxu1 %v16631_v62  ;;  %v799_v61 = vld [vmem:[#allocation6 + $0xaf0] sm:$0xff]  ;;  %v792_v62 = vld [vmem:[#allocation6 + $0xab8] sm:$0xff] }
 0x496   :  { %v16725_v4 = vcombine.high %v791_v59, %v799_v61  ;;  %v16724_v15 = vcombine.low %v791_v59, %v799_v61  ;;  %v880_v59 = vld [vmem:[#allocation6 + $0xd78] sm:$0xff] }
 0x497   :  { %7692 = vmatpush1.bf16.msra.mxu0 %v16628_v30  ;;  %v16727_v30 = vcombine.high %v792_v62, %v800_v63 }
 0x498   :  { %7856 = vmatpush1.bf16.msra.mxu1 %v16630_v5  ;;  %7702 = vmatprep.subr.bf16.mxu0 %v16645_v7  ;;  %v807_v5 = vld [vmem:[#allocation6 + $0xb30] sm:$0xff] }
 0x499   :  { %7866 = vmatprep.subr.bf16.mxu1 %v16647_v8  ;;  %v815_v7 = vld [vmem:[#allocation6 + $0xb70] sm:$0xff]  ;;  %v808_v8 = vld [vmem:[#allocation6 + $0xb38] sm:$0xff] }
 0x49a   :  { %7694 = vmatmul.mubr.bf16.vlgmr.msra.gmra.mrb[12].mxu0 %v19428_v52  ;;  %v16741_v49 = vcombine.high %v807_v5, %v815_v7  ;;  %v16743_v51 = vcombine.high %v808_v8, %v816_v9 }
 0x49b   :  { %7858 = vmatmul.mubr.bf16.vlgmr.msra.gmra.mrb[28].mxu1 %v19428_v52  ;;  %7703 = vmatpush1.bf16.msra.mxu0 %v16644_v17  ;;  %v16678_v52 = vcombine.low %v744_v26, %v752_v27  ;;  %v16726_v17 = vcombine.low %v792_v62, %v800_v63  ;;  %v16742_v26 = vcombine.low %v808_v8, %v816_v9 }
 0x49c   :  { %7734 = vmatprep.mubr.bf16.mxu0 %v19434_v11  ;;  %7867 = vmatpush1.bf16.msra.mxu1 %v16646_v19  ;;  %v823_v19 = vld [vmem:[#allocation6 + $0xbb0] sm:$0xff] }
 0x49d   :  { %7898 = vmatprep.mubr.bf16.mxu1 %v19434_v11  ;;  %7704 = vmatprep.subr.bf16.mxu0 %v16661_v20  ;;  %v16692_v11 = vcombine.low %v759_v34, %v767_v35  ;;  %v831_v20 = vld [vmem:[#allocation6 + $0xbf0] sm:$0xff]  ;;  %v848_v34 = vld [vmem:[#allocation6 + $0xc78] sm:$0xff] }
 0x49e   :  { %7868 = vmatprep.subr.bf16.mxu1 %v16663_v24  ;;  %v16740_v24 = vcombine.low %v807_v5, %v815_v7  ;;  %v16757_v27 = vcombine.high %v823_v19, %v831_v20  ;;  %v16756_v35 = vcombine.low %v823_v19, %v831_v20  ;;  %v896_v5 = vld [vmem:[#allocation6 + $0xdf8] sm:$0xff] }
 0x49f   :  { %7705 = vmatpush1.bf16.msra.mxu0 %v16660_v16  ;;  %v16759_v16 = vcombine.high %v824_v21, %v832_v22  ;;  %v912_v19 = vld [vmem:[#allocation6 + $0xe78] sm:$0xff] }
 0x4a0   :  { %7869 = vmatpush1.bf16.msra.mxu1 %v16662_v32  ;;  %7706 = vmatprep.subr.bf16.mxu0 %v16677_v33  ;;  %v839_v32 = vld [vmem:[#allocation6 + $0xc30] sm:$0xff] }
 0x4a1   :  { %7870 = vmatprep.subr.bf16.mxu1 %v16679_v28  ;;  %v847_v33 = vld [vmem:[#allocation6 + $0xc70] sm:$0xff]  ;;  %v840_v28 = vld [vmem:[#allocation6 + $0xc38] sm:$0xff] }
 0x4a2   :  { %v16773_v41 = vcombine.high %v839_v32, %v847_v33  ;;  %v16772_v47 = vcombine.low %v839_v32, %v847_v33  ;;  %v16774_v48 = vcombine.low %v840_v28, %v848_v34  ;;  %v928_v32 = vld [vmem:[#allocation6 + $0xef8] sm:$0xff] }
 0x4a3   :  { %7707 = vmatpush1.bf16.msra.mxu0 %v16676_v43  ;;  %v16775_v43 = vcombine.high %v840_v28, %v848_v34 }
 0x4a4   :  { %7871 = vmatpush1.bf16.msra.mxu1 %v16678_v52  ;;  %7708 = vmatprep.subr.bf16.mxu0 %v16693_v44  ;;  %v855_v52 = vld [vmem:[#allocation6 + $0xcb0] sm:$0xff] }
 0x4a5   :  { %7872 = vmatprep.subr.bf16.mxu1 %v16695_v46  ;;  %v863_v44 = vld [vmem:[#allocation6 + $0xcf0] sm:$0xff]  ;;  %v856_v46 = vld [vmem:[#allocation6 + $0xcb8] sm:$0xff] }
 0x4a6   :  { %v16789_v53 = vcombine.high %v855_v52, %v863_v44  ;;  %v16788_v61 = vcombine.low %v855_v52, %v863_v44  ;;  %v16790_v62 = vcombine.low %v856_v46, %v864_v50  ;;  %v944_v52 = vld [vmem:[#allocation6 + $0xf78] sm:$0xff] }
 0x4a7   :  { %7709 = vmatpush1.bf16.msra.mxu0 %v16692_v11  ;;  %v16791_v11 = vcombine.high %v856_v46, %v864_v50 }
 0x4a8   :  { %7873 = vmatpush1.bf16.msra.mxu1 %v16694_v55  ;;  %7710 = vmatprep.subr.bf16.mxu0 %v16709_v57  ;;  %v871_v55 = vld [vmem:[#allocation6 + $0xd30] sm:$0xff] }
 0x4a9   :  { %7874 = vmatprep.subr.bf16.mxu1 %v16711_v58  ;;  %v879_v57 = vld [vmem:[#allocation6 + $0xd70] sm:$0xff]  ;;  %v872_v58 = vld [vmem:[#allocation6 + $0xd38] sm:$0xff] }
 0x4aa   :  { %v16805_v63 = vcombine.high %v871_v55, %v879_v57  ;;  %v16804_v7 = vcombine.low %v871_v55, %v879_v57  ;;  %v16806_v8 = vcombine.low %v872_v58, %v880_v59  ;;  %v960_v55 = vld [vmem:[#allocation6 + $0xff8] sm:$0xff] }
 0x4ab   :  { %7711 = vmatpush1.bf16.msra.mxu0 %v16708_v45  ;;  %v16807_v45 = vcombine.high %v872_v58, %v880_v59 }
 0x4ac   :  { %7875 = vmatpush1.bf16.msra.mxu1 %v16710_v2  ;;  %7712 = vmatprep.subr.bf16.mxu0 %v16725_v4  ;;  %v887_v2 = vld [vmem:[#allocation6 + $0xdb0] sm:$0xff] }
 0x4ad   :  { %7876 = vmatprep.subr.bf16.mxu1 %v16727_v30  ;;  %v895_v4 = vld [vmem:[#allocation6 + $0xdf0] sm:$0xff]  ;;  %v888_v30 = vld [vmem:[#allocation6 + $0xdb8] sm:$0xff] }
 0x4ae   :  { %v16821_v9 = vcombine.high %v887_v2, %v895_v4  ;;  %v16820_v20 = vcombine.low %v887_v2, %v895_v4  ;;  %v16822_v21 = vcombine.low %v888_v30, %v896_v5  ;;  %v976_v2 = vld [vmem:[#allocation6 + $0x1078] sm:$0xff] }
 0x4af   :  { %7713 = vmatpush1.bf16.msra.mxu0 %v16724_v15  ;;  %v16823_v15 = vcombine.high %v888_v30, %v896_v5 }
 0x4b0   :  { %7877 = vmatpush1.bf16.msra.mxu1 %v16726_v17  ;;  %7714 = vmatprep.subr.bf16.mxu0 %v16741_v49  ;;  %v903_v17 = vld [vmem:[#allocation6 + $0xe30] sm:$0xff] }
 0x4b1   :  { %7878 = vmatprep.subr.bf16.mxu1 %v16743_v51  ;;  %v911_v49 = vld [vmem:[#allocation6 + $0xe70] sm:$0xff]  ;;  %v904_v51 = vld [vmem:[#allocation6 + $0xe38] sm:$0xff] }
 0x4b2   :  { %v16837_v22 = vcombine.high %v903_v17, %v911_v49  ;;  %v16836_v33 = vcombine.low %v903_v17, %v911_v49  ;;  %v16838_v28 = vcombine.low %v904_v51, %v912_v19  ;;  %v984_v17 = vld [vmem:[#allocation6 + $0x10b8] sm:$0xff] }
 0x4b3   :  { %7715 = vmatpush1.bf16.msra.mxu0 %v16740_v24  ;;  %v16839_v24 = vcombine.high %v904_v51, %v912_v19  ;;  %v992_v49 = vld [vmem:[#allocation6 + $0x10f8] sm:$0xff] }
 0x4b4   :  { %7879 = vmatpush1.bf16.msra.mxu1 %v16742_v26  ;;  %7716 = vmatprep.subr.bf16.mxu0 %v16757_v27  ;;  %v919_v26 = vld [vmem:[#allocation6 + $0xeb0] sm:$0xff] }
 0x4b5   :  { %7880 = vmatprep.subr.bf16.mxu1 %v16759_v16  ;;  %v927_v27 = vld [vmem:[#allocation6 + $0xef0] sm:$0xff]  ;;  %v920_v16 = vld [vmem:[#allocation6 + $0xeb8] sm:$0xff] }
 0x4b6   :  { %v16853_v34 = vcombine.high %v919_v26, %v927_v27  ;;  %v16852_v44 = vcombine.low %v919_v26, %v927_v27  ;;  %v16854_v46 = vcombine.low %v920_v16, %v928_v32  ;;  %v1008_v26 = vld [vmem:[#allocation6 + $0x1178] sm:$0xff] }
 0x4b7   :  { %7717 = vmatpush1.bf16.msra.mxu0 %v16756_v35  ;;  %v16855_v35 = vcombine.high %v920_v16, %v928_v32  ;;  %v16918_v16 = vcombine.low %v984_v17, %v992_v49 }
 0x4b8   :  { %7881 = vmatpush1.bf16.msra.mxu1 %v16758_v40  ;;  %7718 = vmatprep.subr.bf16.mxu0 %v16773_v41  ;;  %v935_v40 = vld [vmem:[#allocation6 + $0xf30] sm:$0xff] }
 0x4b9   :  { %7882 = vmatprep.subr.bf16.mxu1 %v16775_v43  ;;  %v943_v41 = vld [vmem:[#allocation6 + $0xf70] sm:$0xff]  ;;  %v936_v43 = vld [vmem:[#allocation6 + $0xf38] sm:$0xff] }
 0x4ba   :  { %v16869_v50 = vcombine.high %v935_v40, %v943_v41  ;;  %v16868_v57 = vcombine.low %v935_v40, %v943_v41  ;;  %v16870_v58 = vcombine.low %v936_v43, %v944_v52  ;;  %v1024_v40 = vld [vmem:[#allocation6 + $0x11f8] sm:$0xff] }
 0x4bb   :  { %7719 = vmatpush1.bf16.msra.mxu0 %v16772_v47  ;;  %v16871_v47 = vcombine.high %v936_v43, %v944_v52 }
 0x4bc   :  { %7883 = vmatpush1.bf16.msra.mxu1 %v16774_v48  ;;  %7720 = vmatprep.subr.bf16.mxu0 %v16789_v53  ;;  %v951_v48 = vld [vmem:[#allocation6 + $0xfb0] sm:$0xff] }
 0x4bd   :  { %7884 = vmatprep.subr.bf16.mxu1 %v16791_v11  ;;  %v959_v53 = vld [vmem:[#allocation6 + $0xff0] sm:$0xff]  ;;  %v952_v11 = vld [vmem:[#allocation6 + $0xfb8] sm:$0xff] }
 0x4be   :  { %v16885_v59 = vcombine.high %v951_v48, %v959_v53  ;;  %v16884_v4 = vcombine.low %v951_v48, %v959_v53  ;;  %v16886_v30 = vcombine.low %v952_v11, %v960_v55 }
 0x4bf   :  { %7721 = vmatpush1.bf16.msra.mxu0 %v16788_v61  ;;  %v16887_v61 = vcombine.high %v952_v11, %v960_v55  ;;  %v1047_v55 = vld [vmem:[#allocation6 + $0x12b0] sm:$0xff] }
 0x4c0   :  { %7885 = vmatpush1.bf16.msra.mxu1 %v16790_v62  ;;  %7722 = vmatprep.subr.bf16.mxu0 %v16805_v63  ;;  %v967_v62 = vld [vmem:[#allocation6 + $0x1030] sm:$0xff] }
 0x4c1   :  { %7886 = vmatprep.subr.bf16.mxu1 %v16807_v45  ;;  %v975_v63 = vld [vmem:[#allocation6 + $0x1070] sm:$0xff]  ;;  %v968_v45 = vld [vmem:[#allocation6 + $0x1038] sm:$0xff] }
 0x4c2   :  { %v16901_v5 = vcombine.high %v967_v62, %v975_v63  ;;  %v16902_v51 = vcombine.low %v968_v45, %v976_v2 }
 0x4c3   :  { %7723 = vmatpush1.bf16.msra.mxu0 %v16804_v7  ;;  %v16903_v7 = vcombine.high %v968_v45, %v976_v2  ;;  %v1063_v2 = vld [vmem:[#allocation6 + $0x1330] sm:$0xff] }
 0x4c4   :  { %7887 = vmatpush1.bf16.msra.mxu1 %v16806_v8  ;;  %7724 = vmatprep.subr.bf16.mxu0 %v16821_v9  ;;  %v983_v8 = vld [vmem:[#allocation6 + $0x10b0] sm:$0xff] }
 0x4c5   :  { %7888 = vmatprep.subr.bf16.mxu1 %v16823_v15  ;;  %v991_v9 = vld [vmem:[#allocation6 + $0x10f0] sm:$0xff]  ;;  %v16900_v15 = vcombine.low %v967_v62, %v975_v63 }
 0x4c6   :  { %v16917_v19 = vcombine.high %v983_v8, %v991_v9  ;;  %v16916_v27 = vcombine.low %v983_v8, %v991_v9 }
 0x4c7   :  { %7725 = vmatpush1.bf16.msra.mxu0 %v16820_v20  ;;  %v999_v20 = vld [vmem:[#allocation6 + $0x1130] sm:$0xff] }
 0x4c8   :  { %7889 = vmatpush1.bf16.msra.mxu1 %v16822_v21  ;;  %7726 = vmatprep.subr.bf16.mxu0 %v16837_v22  ;;  %v1007_v21 = vld [vmem:[#allocation6 + $0x1170] sm:$0xff]  ;;  %v16919_v22 = vcombine.high %v984_v17, %v992_v49 }
 0x4c9   :  { %7890 = vmatprep.subr.bf16.mxu1 %v16839_v24  ;;  %v1000_v24 = vld [vmem:[#allocation6 + $0x1138] sm:$0xff]  ;;  %v16933_v32 = vcombine.high %v999_v20, %v1007_v21  ;;  %v16932_v41 = vcombine.low %v999_v20, %v1007_v21  ;;  %v1079_v17 = vld [vmem:[#allocation6 + $0x13b0] sm:$0xff] }
 0x4ca   :  { %v1087_v49 = vld [vmem:[#allocation6 + $0x13f0] sm:$0xff] }
 0x4cb   :  { %7727 = vmatpush1.bf16.msra.mxu0 %v16836_v33  ;;  %v16935_v33 = vcombine.high %v1000_v24, %v1008_v26 }
 0x4cc   :  { %7891 = vmatpush1.bf16.msra.mxu1 %v16838_v28  ;;  %7728 = vmatprep.subr.bf16.mxu0 %v16853_v34  ;;  %v1015_v28 = vld [vmem:[#allocation6 + $0x11b0] sm:$0xff] }
 0x4cd   :  { %7892 = vmatprep.subr.bf16.mxu1 %v16855_v35  ;;  %v1023_v34 = vld [vmem:[#allocation6 + $0x11f0] sm:$0xff]  ;;  %v1016_v35 = vld [vmem:[#allocation6 + $0x11b8] sm:$0xff] }
 0x4ce   :  { %v16949_v43 = vcombine.high %v1015_v28, %v1023_v34  ;;  %v16951_v52 = vcombine.high %v1016_v35, %v1024_v40  ;;  %v16950_v48 = vcombine.low %v1016_v35, %v1024_v40  ;;  %v1111_v40 = vld [vmem:[#allocation6 + $0x14b0] sm:$0xff] }
 0x4cf   :  { %7729 = vmatpush1.bf16.msra.mxu0 %v16852_v44  ;;  %v1031_v44 = vld [vmem:[#allocation6 + $0x1230] sm:$0xff] }
 0x4d0   :  { %7893 = vmatpush1.bf16.msra.mxu1 %v16854_v46  ;;  %7730 = vmatprep.subr.bf16.mxu0 %v16869_v50  ;;  %v1039_v46 = vld [vmem:[#allocation6 + $0x1270] sm:$0xff]  ;;  %v1032_v50 = vld [vmem:[#allocation6 + $0x1238] sm:$0xff] }
 0x4d1   :  { %7894 = vmatprep.subr.bf16.mxu1 %v16871_v47  ;;  %v1040_v47 = vld [vmem:[#allocation6 + $0x1278] sm:$0xff]  ;;  %v16965_v53 = vcombine.high %v1031_v44, %v1039_v46 }
 0x4d2   :  { %v16967_v11 = vcombine.high %v1032_v50, %v1040_v47  ;;  %v16966_v62 = vcombine.low %v1032_v50, %v1040_v47  ;;  %v1127_v47 = vld [vmem:[#allocation6 + $0x1530] sm:$0xff] }
 0x4d3   :  { %7731 = vmatpush1.bf16.msra.mxu0 %v16868_v57  ;;  %v1055_v57 = vld [vmem:[#allocation6 + $0x12f0] sm:$0xff] }
 0x4d4   :  { %7895 = vmatpush1.bf16.msra.mxu1 %v16870_v58  ;;  %7732 = vmatprep.subr.bf16.mxu0 %v16885_v59  ;;  %v1048_v58 = vld [vmem:[#allocation6 + $0x12b8] sm:$0xff]  ;;  %v16981_v63 = vcombine.high %v1047_v55, %v1055_v57 }
 0x4d5   :  { %7896 = vmatprep.subr.bf16.mxu1 %v16887_v61  ;;  %v1056_v59 = vld [vmem:[#allocation6 + $0x12f8] sm:$0xff]  ;;  %v16964_v61 = vcombine.low %v1031_v44, %v1039_v46 }
 0x4d6   :  { %v16983_v45 = vcombine.high %v1048_v58, %v1056_v59  ;;  %v16982_v8 = vcombine.low %v1048_v58, %v1056_v59  ;;  %v1143_v59 = vld [vmem:[#allocation6 + $0x15b0] sm:$0xff] }
 0x4d7   :  { %7733 = vmatpush1.bf16.msra.mxu0 %v16884_v4  ;;  %v1071_v4 = vld [vmem:[#allocation6 + $0x1370] sm:$0xff] }
 0x4d8   :  { %7897 = vmatpush1.bf16.msra.mxu1 %v16886_v30  ;;  %7743 = vmatprep.subr.bf16.mxu0 %v16901_v5  ;;  %v1064_v30 = vld [vmem:[#allocation6 + $0x1338] sm:$0xff]  ;;  %v16997_v9 = vcombine.high %v1063_v2, %v1071_v4  ;;  %v16996_v20 = vcombine.low %v1063_v2, %v1071_v4 }
 0x4d9   :  { %7907 = vmatprep.subr.bf16.mxu1 %v16903_v7  ;;  %v1072_v5 = vld [vmem:[#allocation6 + $0x1378] sm:$0xff]  ;;  %v16980_v7 = vcombine.low %v1047_v55, %v1055_v57 }
 0x4da   :  { %7735 = vmatmul.mubr.bf16.vlgmr.msra.gmra.mrb[12].mxu0 %v19458_v38  ;;  %v16998_v21 = vcombine.low %v1064_v30, %v1072_v5 }
 0x4db   :  { %7899 = vmatmul.mubr.bf16.vlgmr.msra.gmra.mrb[28].mxu1 %v19458_v38  ;;  %7744 = vmatpush1.bf16.msra.mxu0 %v16900_v15  ;;  %v16934_v38 = vcombine.low %v1000_v24, %v1008_v26  ;;  %v16999_v15 = vcombine.high %v1064_v30, %v1072_v5  ;;  %v1095_v26 = vld [vmem:[#allocation6 + $0x1430] sm:$0xff] }
 0x4dc   :  { %7775 = vmatprep.mubr.bf16.mxu0 %v19460_v54  ;;  %7908 = vmatpush1.bf16.msra.mxu1 %v16902_v51  ;;  %v1080_v51 = vld [vmem:[#allocation6 + $0x13b8] sm:$0xff]  ;;  %v1159_v5 = vld [vmem:[#allocation6 + $0x1630] sm:$0xff] }
 0x4dd   :  { %7939 = vmatprep.mubr.bf16.mxu1 %v19460_v54  ;;  %7745 = vmatprep.subr.bf16.mxu0 %v16917_v19  ;;  %v16948_v54 = vcombine.low %v1015_v28, %v1023_v34  ;;  %v1088_v19 = vld [vmem:[#allocation6 + $0x13f8] sm:$0xff] }
 0x4de   :  { %7909 = vmatprep.subr.bf16.mxu1 %v16919_v22  ;;  %v17013_v22 = vcombine.high %v1079_v17, %v1087_v49  ;;  %v17015_v24 = vcombine.high %v1080_v51, %v1088_v19  ;;  %v17014_v28 = vcombine.low %v1080_v51, %v1088_v19  ;;  %v1175_v19 = vld [vmem:[#allocation6 + $0x16b0] sm:$0xff] }
 0x4df   :  { %7746 = vmatpush1.bf16.msra.mxu0 %v16916_v27  ;;  %v1103_v27 = vld [vmem:[#allocation6 + $0x1470] sm:$0xff] }
 0x4e0   :  { %7910 = vmatpush1.bf16.msra.mxu1 %v16918_v16  ;;  %7747 = vmatprep.subr.bf16.mxu0 %v16933_v32  ;;  %v1096_v16 = vld [vmem:[#allocation6 + $0x1438] sm:$0xff]  ;;  %v17029_v34 = vcombine.high %v1095_v26, %v1103_v27 }
 0x4e1   :  { %7911 = vmatprep.subr.bf16.mxu1 %v16935_v33  ;;  %v1104_v32 = vld [vmem:[#allocation6 + $0x1478] sm:$0xff]  ;;  %v17012_v33 = vcombine.low %v1079_v17, %v1087_v49 }
 0x4e2   :  { %v17031_v35 = vcombine.high %v1096_v16, %v1104_v32  ;;  %v17030_v44 = vcombine.low %v1096_v16, %v1104_v32  ;;  %v1191_v32 = vld [vmem:[#allocation6 + $0x1730] sm:$0xff] }
 0x4e3   :  { %7748 = vmatpush1.bf16.msra.mxu0 %v16932_v41  ;;  %v1119_v41 = vld [vmem:[#allocation6 + $0x14f0] sm:$0xff] }
 0x4e4   :  { %7912 = vmatpush1.bf16.msra.mxu1 %v16934_v38  ;;  %7749 = vmatprep.subr.bf16.mxu0 %v16949_v43  ;;  %v1112_v38 = vld [vmem:[#allocation6 + $0x14b8] sm:$0xff]  ;;  %v17045_v46 = vcombine.high %v1111_v40, %v1119_v41 }
 0x4e5   :  { %7913 = vmatprep.subr.bf16.mxu1 %v16951_v52  ;;  %v1120_v43 = vld [vmem:[#allocation6 + $0x14f8] sm:$0xff]  ;;  %v17028_v52 = vcombine.low %v1095_v26, %v1103_v27 }
 0x4e6   :  { %v17047_v50 = vcombine.high %v1112_v38, %v1120_v43  ;;  %v17046_v55 = vcombine.low %v1112_v38, %v1120_v43  ;;  %v1207_v43 = vld [vmem:[#allocation6 + $0x17b0] sm:$0xff] }
 0x4e7   :  { %7750 = vmatpush1.bf16.msra.mxu0 %v16948_v54  ;;  %v1135_v54 = vld [vmem:[#allocation6 + $0x1570] sm:$0xff] }
 0x4e8   :  { %7914 = vmatpush1.bf16.msra.mxu1 %v16950_v48  ;;  %7751 = vmatprep.subr.bf16.mxu0 %v16965_v53  ;;  %v1128_v48 = vld [vmem:[#allocation6 + $0x1538] sm:$0xff]  ;;  %v17061_v57 = vcombine.high %v1127_v47, %v1135_v54 }
 0x4e9   :  { %7915 = vmatprep.subr.bf16.mxu1 %v16967_v11  ;;  %v1136_v53 = vld [vmem:[#allocation6 + $0x1578] sm:$0xff]  ;;  %v17044_v11 = vcombine.low %v1111_v40, %v1119_v41 }
 0x4ea   :  { %v17063_v58 = vcombine.high %v1128_v48, %v1136_v53  ;;  %v17062_v2 = vcombine.low %v1128_v48, %v1136_v53  ;;  %v1223_v53 = vld [vmem:[#allocation6 + $0x1830] sm:$0xff] }
 0x4eb   :  { %7752 = vmatpush1.bf16.msra.mxu0 %v16964_v61  ;;  %v1151_v61 = vld [vmem:[#allocation6 + $0x15f0] sm:$0xff] }
 0x4ec   :  { %7916 = vmatpush1.bf16.msra.mxu1 %v16966_v62  ;;  %7753 = vmatprep.subr.bf16.mxu0 %v16981_v63  ;;  %v1144_v62 = vld [vmem:[#allocation6 + $0x15b8] sm:$0xff]  ;;  %v17077_v4 = vcombine.high %v1143_v59, %v1151_v61 }
 0x4ed   :  { %7917 = vmatprep.subr.bf16.mxu1 %v16983_v45  ;;  %v1152_v63 = vld [vmem:[#allocation6 + $0x15f8] sm:$0xff]  ;;  %v17060_v45 = vcombine.low %v1127_v47, %v1135_v54 }
 0x4ee   :  { %v17079_v30 = vcombine.high %v1144_v62, %v1152_v63  ;;  %v17078_v17 = vcombine.low %v1144_v62, %v1152_v63  ;;  %v1239_v63 = vld [vmem:[#allocation6 + $0x18b0] sm:$0xff] }
 0x4ef   :  { %7754 = vmatpush1.bf16.msra.mxu0 %v16980_v7  ;;  %v1167_v7 = vld [vmem:[#allocation6 + $0x1670] sm:$0xff] }
 0x4f0   :  { %7918 = vmatpush1.bf16.msra.mxu1 %v16982_v8  ;;  %7755 = vmatprep.subr.bf16.mxu0 %v16997_v9  ;;  %v1160_v8 = vld [vmem:[#allocation6 + $0x1638] sm:$0xff]  ;;  %v17093_v49 = vcombine.high %v1159_v5, %v1167_v7 }
 0x4f1   :  { %7919 = vmatprep.subr.bf16.mxu1 %v16999_v15  ;;  %v1168_v9 = vld [vmem:[#allocation6 + $0x1678] sm:$0xff]  ;;  %v17076_v15 = vcombine.low %v1143_v59, %v1151_v61 }
 0x4f2   :  { %v17095_v51 = vcombine.high %v1160_v8, %v1168_v9  ;;  %v17094_v26 = vcombine.low %v1160_v8, %v1168_v9  ;;  %v1255_v8 = vld [vmem:[#allocation6 + $0x1930] sm:$0xff] }
 0x4f3   :  { %7756 = vmatpush1.bf16.msra.mxu0 %v16996_v20  ;;  %v1183_v20 = vld [vmem:[#allocation6 + $0x16f0] sm:$0xff] }
 0x4f4   :  { %7920 = vmatpush1.bf16.msra.mxu1 %v16998_v21  ;;  %7757 = vmatprep.subr.bf16.mxu0 %v17013_v22  ;;  %v1176_v21 = vld [vmem:[#allocation6 + $0x16b8] sm:$0xff]  ;;  %v17109_v27 = vcombine.high %v1175_v19, %v1183_v20  ;;  %v1263_v9 = vld [vmem:[#allocation6 + $0x1970] sm:$0xff] }
 0x4f5   :  { %7921 = vmatprep.subr.bf16.mxu1 %v17015_v24  ;;  %v1184_v22 = vld [vmem:[#allocation6 + $0x16f8] sm:$0xff]  ;;  %v17092_v24 = vcombine.low %v1159_v5, %v1167_v7 }
 0x4f6   :  { %v17111_v16 = vcombine.high %v1176_v21, %v1184_v22  ;;  %v17110_v40 = vcombine.low %v1176_v21, %v1184_v22  ;;  %v1271_v22 = vld [vmem:[#allocation6 + $0x19b0] sm:$0xff] }
 0x4f7   :  { %7758 = vmatpush1.bf16.msra.mxu0 %v17012_v33  ;;  %v1199_v33 = vld [vmem:[#allocation6 + $0x1770] sm:$0xff] }
 0x4f8   :  { %7922 = vmatpush1.bf16.msra.mxu1 %v17014_v28  ;;  %7759 = vmatprep.subr.bf16.mxu0 %v17029_v34  ;;  %v1192_v28 = vld [vmem:[#allocation6 + $0x1738] sm:$0xff]  ;;  %v17125_v41 = vcombine.high %v1191_v32, %v1199_v33 }
 0x4f9   :  { %7923 = vmatprep.subr.bf16.mxu1 %v17031_v35  ;;  %v1200_v34 = vld [vmem:[#allocation6 + $0x1778] sm:$0xff]  ;;  %v17108_v35 = vcombine.low %v1175_v19, %v1183_v20  ;;  %v17189_v20 = vcombine.high %v1255_v8, %v1263_v9 }
 0x4fa   :  { %v17127_v38 = vcombine.high %v1192_v28, %v1200_v34  ;;  %v17126_v47 = vcombine.low %v1192_v28, %v1200_v34  ;;  %v1287_v28 = vld [vmem:[#allocation6 + $0x1a30] sm:$0xff] }
 0x4fb   :  { %7760 = vmatpush1.bf16.msra.mxu0 %v17028_v52  ;;  %v1215_v52 = vld [vmem:[#allocation6 + $0x17f0] sm:$0xff] }
 0x4fc   :  { %7924 = vmatpush1.bf16.msra.mxu1 %v17030_v44  ;;  %7761 = vmatprep.subr.bf16.mxu0 %v17045_v46  ;;  %v1208_v44 = vld [vmem:[#allocation6 + $0x17b8] sm:$0xff]  ;;  %v17141_v54 = vcombine.high %v1207_v43, %v1215_v52  ;;  %v1295_v34 = vld [vmem:[#allocation6 + $0x1a70] sm:$0xff] }
 0x4fd   :  { %7925 = vmatprep.subr.bf16.mxu1 %v17047_v50  ;;  %v1216_v46 = vld [vmem:[#allocation6 + $0x17f8] sm:$0xff]  ;;  %v17124_v50 = vcombine.low %v1191_v32, %v1199_v33 }
 0x4fe   :  { %v17143_v48 = vcombine.high %v1208_v44, %v1216_v46  ;;  %v17142_v59 = vcombine.low %v1208_v44, %v1216_v46  ;;  %v1311_v44 = vld [vmem:[#allocation6 + $0x1af0] sm:$0xff]  ;;  %v1304_v46 = vld [vmem:[#allocation6 + $0x1ab8] sm:$0xff] }
 0x4ff   :  { %7762 = vmatpush1.bf16.msra.mxu0 %v17044_v11  ;;  %v1231_v11 = vld [vmem:[#allocation6 + $0x1870] sm:$0xff] }
 0x500   :  { %7926 = vmatpush1.bf16.msra.mxu1 %v17046_v55  ;;  %7763 = vmatprep.subr.bf16.mxu0 %v17061_v57  ;;  %v1224_v55 = vld [vmem:[#allocation6 + $0x1838] sm:$0xff]  ;;  %v17157_v61 = vcombine.high %v1223_v53, %v1231_v11 }
 0x501   :  { %7927 = vmatprep.subr.bf16.mxu1 %v17063_v58  ;;  %v1232_v57 = vld [vmem:[#allocation6 + $0x1878] sm:$0xff]  ;;  %v17140_v58 = vcombine.low %v1207_v43, %v1215_v52  ;;  %v1303_v52 = vld [vmem:[#allocation6 + $0x1ab0] sm:$0xff] }
 0x502   :  { %v17159_v62 = vcombine.high %v1224_v55, %v1232_v57  ;;  %v17158_v5 = vcombine.low %v1224_v55, %v1232_v57  ;;  %v1327_v55 = vld [vmem:[#allocation6 + $0x1b70] sm:$0xff]  ;;  %v1320_v57 = vld [vmem:[#allocation6 + $0x1b38] sm:$0xff] }
 0x503   :  { %7764 = vmatpush1.bf16.msra.mxu0 %v17060_v45  ;;  %v1247_v45 = vld [vmem:[#allocation6 + $0x18f0] sm:$0xff] }
 0x504   :  { %7928 = vmatpush1.bf16.msra.mxu1 %v17062_v2  ;;  %7765 = vmatprep.subr.bf16.mxu0 %v17077_v4  ;;  %v17156_v2 = vcombine.low %v1223_v53, %v1231_v11  ;;  %v1240_v4 = vld [vmem:[#allocation6 + $0x18b8] sm:$0xff]  ;;  %v17173_v7 = vcombine.high %v1239_v63, %v1247_v45  ;;  %v1319_v11 = vld [vmem:[#allocation6 + $0x1b30] sm:$0xff] }
 0x505   :  { %7929 = vmatprep.subr.bf16.mxu1 %v17079_v30  ;;  %v1248_v30 = vld [vmem:[#allocation6 + $0x18f8] sm:$0xff] }
 0x506   :  { %v17174_v19 = vcombine.low %v1240_v4, %v1248_v30 }
 0x507   :  { %7766 = vmatpush1.bf16.msra.mxu0 %v17076_v15  ;;  %v17175_v15 = vcombine.high %v1240_v4, %v1248_v30  ;;  %v1343_v4 = vld [vmem:[#allocation6 + $0x1bf0] sm:$0xff] }
 0x508   :  { %7930 = vmatpush1.bf16.msra.mxu1 %v17078_v17  ;;  %7767 = vmatprep.subr.bf16.mxu0 %v17093_v49  ;;  %v1256_v17 = vld [vmem:[#allocation6 + $0x1938] sm:$0xff] }
 0x509   :  { %7931 = vmatprep.subr.bf16.mxu1 %v17095_v51  ;;  %v1264_v49 = vld [vmem:[#allocation6 + $0x1978] sm:$0xff]  ;;  %v17172_v51 = vcombine.low %v1239_v63, %v1247_v45 }
 0x50a   :  { %v17191_v21 = vcombine.high %v1256_v17, %v1264_v49 }
 0x50b   :  { %7768 = vmatpush1.bf16.msra.mxu0 %v17092_v24  ;;  %v1279_v24 = vld [vmem:[#allocation6 + $0x19f0] sm:$0xff] }
 0x50c   :  { %7932 = vmatpush1.bf16.msra.mxu1 %v17094_v26  ;;  %7769 = vmatprep.subr.bf16.mxu0 %v17109_v27  ;;  %v1272_v26 = vld [vmem:[#allocation6 + $0x19b8] sm:$0xff]  ;;  %v17205_v32 = vcombine.high %v1271_v22, %v1279_v24 }
 0x50d   :  { %7933 = vmatprep.subr.bf16.mxu1 %v17111_v16  ;;  %v1280_v27 = vld [vmem:[#allocation6 + $0x19f8] sm:$0xff]  ;;  %v17188_v16 = vcombine.low %v1255_v8, %v1263_v9 }
 0x50e   :  { %v17207_v33 = vcombine.high %v1272_v26, %v1280_v27  ;;  %v1344_v8 = vld [vmem:[#allocation6 + $0x1bf8] sm:$0xff] }
 0x50f   :  { %7770 = vmatpush1.bf16.msra.mxu0 %v17108_v35  ;;  %v1288_v35 = vld [vmem:[#allocation6 + $0x1a38] sm:$0xff] }
 0x510   :  { %7934 = vmatpush1.bf16.msra.mxu1 %v17110_v40  ;;  %7771 = vmatprep.subr.bf16.mxu0 %v17125_v41  ;;  %v1296_v40 = vld [vmem:[#allocation6 + $0x1a78] sm:$0xff]  ;;  %v17206_v41 = vcombine.low %v1272_v26, %v1280_v27  ;;  %v1359_v26 = vld [vmem:[#allocation6 + $0x1c70] sm:$0xff] }
 0x511   :  { %7935 = vmatprep.subr.bf16.mxu1 %v17127_v38  ;;  %v17221_v38 = vcombine.high %v1287_v28, %v1295_v34  ;;  %v17223_v43 = vcombine.high %v1288_v35, %v1296_v40  ;;  %v1352_v27 = vld [vmem:[#allocation6 + $0x1c38] sm:$0xff] }
 0x513   :  { %7772 = vmatpush1.bf16.msra.mxu0 %v17124_v50  ;;  %v1312_v50 = vld [vmem:[#allocation6 + $0x1af8] sm:$0xff] }
 0x514   :  { %7936 = vmatpush1.bf16.msra.mxu1 %v17126_v47  ;;  %7773 = vmatprep.subr.bf16.mxu0 %v17141_v54  ;;  %v17220_v47 = vcombine.low %v1287_v28, %v1295_v34  ;;  %v17222_v54 = vcombine.low %v1288_v35, %v1296_v40  ;;  %v17239_v53 = vcombine.high %v1304_v46, %v1312_v50  ;;  %v1367_v34 = vld [vmem:[#allocation6 + $0x1cb0] sm:$0xff]  ;;  %v1368_v40 = vld [vmem:[#allocation6 + $0x1cb8] sm:$0xff] }
 0x515   :  { %7937 = vmatprep.subr.bf16.mxu1 %v17143_v48  ;;  %v17237_v48 = vcombine.high %v1303_v52, %v1311_v44  ;;  %v1375_v35 = vld [vmem:[#allocation6 + $0x1cf0] sm:$0xff] }
 0x517   :  { %7774 = vmatpush1.bf16.msra.mxu0 %v17140_v58  ;;  %v1328_v58 = vld [vmem:[#allocation6 + $0x1b78] sm:$0xff] }
 0x518   :  { %7938 = vmatpush1.bf16.msra.mxu1 %v17142_v59  ;;  %7784 = vmatprep.subr.bf16.mxu0 %v17157_v61  ;;  %v17236_v59 = vcombine.low %v1303_v52, %v1311_v44  ;;  %v17238_v61 = vcombine.low %v1304_v46, %v1312_v50  ;;  %v17255_v45 = vcombine.high %v1320_v57, %v1328_v58  ;;  %v1383_v44 = vld [vmem:[#allocation6 + $0x1d30] sm:$0xff]  ;;  %v1384_v50 = vld [vmem:[#allocation6 + $0x1d38] sm:$0xff] }
 0x519   :  { %7948 = vmatprep.subr.bf16.mxu1 %v17159_v62  ;;  %v17253_v62 = vcombine.high %v1319_v11, %v1327_v55  ;;  %v1391_v46 = vld [vmem:[#allocation6 + $0x1d70] sm:$0xff] }
 0x51a   :  { %7776 = vmatmul.mubr.bf16.vlgmr.msra.gmra.mrb[12].mxu0 %v19478_v23 }
 0x51b   :  { %7940 = vmatmul.mubr.bf16.vlgmr.msra.gmra.mrb[28].mxu1 %v19478_v23  ;;  %7785 = vmatpush1.bf16.msra.mxu0 %v17156_v2  ;;  %v17190_v23 = vcombine.low %v1256_v17, %v1264_v49  ;;  %v1335_v2 = vld [vmem:[#allocation6 + $0x1bb0] sm:$0xff]  ;;  %v17252_v17 = vcombine.low %v1319_v11, %v1327_v55 }
 0x51c   :  { %7816 = vmatprep.mubr.bf16.mxu0 %v19480_v36  ;;  %7949 = vmatpush1.bf16.msra.mxu1 %v17158_v5  ;;  %v1399_v55 = vld [vmem:[#allocation6 + $0x1db0] sm:$0xff] }
 0x51d   :  { %7980 = vmatprep.mubr.bf16.mxu1 %v19480_v36  ;;  %7786 = vmatprep.subr.bf16.mxu0 %v17173_v7  ;;  %v17204_v36 = vcombine.low %v1271_v22, %v1279_v24  ;;  %v1336_v7 = vld [vmem:[#allocation6 + $0x1bb8] sm:$0xff]  ;;  %v1351_v24 = vld [vmem:[#allocation6 + $0x1c30] sm:$0xff] }
 0x51e   :  { %7950 = vmatprep.subr.bf16.mxu1 %v17175_v15  ;;  %v17271_v22 = vcombine.high %v1336_v7, %v1344_v8 }
 0x51f   :  { %7787 = vmatpush1.bf16.msra.mxu0 %v17172_v51 }
 0x520   :  { %7951 = vmatpush1.bf16.msra.mxu1 %v17174_v19  ;;  %7788 = vmatprep.subr.bf16.mxu0 %v17189_v20  ;;  %v17254_v19 = vcombine.low %v1320_v57, %v1328_v58  ;;  %v17269_v20 = vcombine.high %v1335_v2, %v1343_v4  ;;  %v1407_v57 = vld [vmem:[#allocation6 + $0x1df0] sm:$0xff]  ;;  %v1400_v58 = vld [vmem:[#allocation6 + $0x1db8] sm:$0xff] }
 0x521   :  { %7952 = vmatprep.subr.bf16.mxu1 %v17191_v21 }
 0x523   :  { %7789 = vmatpush1.bf16.msra.mxu0 %v17188_v16  ;;  %v1360_v16 = vld [vmem:[#allocation6 + $0x1c78] sm:$0xff] }
 0x524   :  { %7953 = vmatpush1.bf16.msra.mxu1 %v17190_v23  ;;  %7790 = vmatprep.subr.bf16.mxu0 %v17205_v32  ;;  %v17268_v23 = vcombine.low %v1335_v2, %v1343_v4  ;;  %v17270_v32 = vcombine.low %v1336_v7, %v1344_v8  ;;  %v17287_v28 = vcombine.high %v1352_v27, %v1360_v16  ;;  %v1415_v4 = vld [vmem:[#allocation6 + $0x1e30] sm:$0xff]  ;;  %v1416_v8 = vld [vmem:[#allocation6 + $0x1e38] sm:$0xff] }
 0x525   :  { %7954 = vmatprep.subr.bf16.mxu1 %v17207_v33  ;;  %v17285_v33 = vcombine.high %v1351_v24, %v1359_v26  ;;  %v1423_v7 = vld [vmem:[#allocation6 + $0x1e70] sm:$0xff] }
 0x527   :  { %7791 = vmatpush1.bf16.msra.mxu0 %v17204_v36  ;;  %v1376_v36 = vld [vmem:[#allocation6 + $0x1cf8] sm:$0xff] }
 0x528   :  { %7955 = vmatpush1.bf16.msra.mxu1 %v17206_v41  ;;  %7792 = vmatprep.subr.bf16.mxu0 %v17221_v38  ;;  %v17284_v41 = vcombine.low %v1351_v24, %v1359_v26  ;;  %v17286_v38 = vcombine.low %v1352_v27, %v1360_v16  ;;  %v17303_v52 = vcombine.high %v1368_v40, %v1376_v36  ;;  %v1440_v24 = vld [vmem:[#allocation6 + $0x1ef8] sm:$0xff]  ;;  %v19565_v26 = vld [vmem:[#allocation7] sm:$0xff] }
 0x529   :  { %7956 = vmatprep.subr.bf16.mxu1 %v17223_v43  ;;  %v17301_v43 = vcombine.high %v1367_v34, %v1375_v35  ;;  %v17348_v27 = vcombine.low %v1415_v4, %v1423_v7 }
 0x52b   :  { %7793 = vmatpush1.bf16.msra.mxu0 %v17220_v47  ;;  %v1392_v47 = vld [vmem:[#allocation6 + $0x1d78] sm:$0xff] }
 0x52c   :  { %7957 = vmatpush1.bf16.msra.mxu1 %v17222_v54  ;;  %7794 = vmatprep.subr.bf16.mxu0 %v17237_v48  ;;  %v17300_v54 = vcombine.low %v1367_v34, %v1375_v35  ;;  %v17302_v48 = vcombine.low %v1368_v40, %v1376_v36  ;;  %v17319_v11 = vcombine.high %v1384_v50, %v1392_v47  ;;  %v1448_v35 = vld [vmem:[#allocation6 + $0x1f38] sm:$0xff] }
 0x52d   :  { %v19557_v63 = vpop.f32.mrb[8].mxu0  ;;  %7958 = vmatprep.subr.bf16.mxu1 %v17239_v53  ;;  %v17317_v53 = vcombine.high %v1383_v44, %v1391_v46  ;;  %v1484_v34 = vrot.slane %v19565_v26, %v19413_v31  ;;  %v1456_v40 = vld [vmem:[#allocation6 + $0x1f78] sm:$0xff] }
 0x52e   :  { %v19559_v30 = vpop.f32.mrb[24].mxu1  ;;  %v19561_v5 = vpop.f32.mrb[9].mxu0 }
 0x52f   :  { %v19563_v9 = vpop.f32.mrb[25].mxu1  ;;  %v7494_v15 = vpop.f32.mrb[10].mxu0  ;;  %7795 = vmatpush1.bf16.msra.mxu0 %v17236_v59  ;;  %v1408_v59 = vld [vmem:[#allocation6 + $0x1df8] sm:$0xff] }
 0x530   :  { %v7658_v49 = vpop.f32.mrb[26].mxu1  ;;  %7959 = vmatpush1.bf16.msra.mxu1 %v17238_v61  ;;  %v7495_v51 = vpop.f32.mrb[11].mxu0  ;;  %7796 = vmatprep.subr.bf16.mxu0 %v17253_v62  ;;  %v17316_v61 = vcombine.low %v1383_v44, %v1391_v46  ;;  %v17318_v62 = vcombine.low %v1384_v50, %v1392_v47  ;;  %v17335_v2 = vcombine.high %v1400_v58, %v1408_v59  ;;  %v1424_v15 = vld [vmem:[#allocation6 + $0x1e78] sm:$0xff]  ;;  %v1471_v44 = vld [vmem:[#allocation6 + $0x1ff0] sm:$0xff] }
 0x531   :  { %v7659_v21 = vpop.f32.mrb[27].mxu1  ;;  %7960 = vmatprep.subr.bf16.mxu1 %v17255_v45  ;;  %v17333_v45 = vcombine.high %v1399_v55, %v1407_v57  ;;  %v17334_v49 = vcombine.low %v1400_v58, %v1408_v59  ;;  %v17349_v51 = vcombine.high %v1415_v4, %v1423_v7  ;;  %v17350_v16 = vcombine.low %v1416_v8, %v1424_v15  ;;  %v1464_v50 = vld [vmem:[#allocation6 + $0x1fb8] sm:$0xff]  ;;  %v8045_v7 = vld [vmem:[#allocation9 + $0x40] sm:$0xff] }
 0x532   :  { %v1439_v21 = vld [vmem:[#allocation6 + $0x1ef0] sm:$0xff]  ;;  %v18616_v46 = vadd.f32 %v19513_v10, %v1484_v34  ;;  %v1472_v47 = vld [vmem:[#allocation6 + $0x1ff8] sm:$0xff] }
 0x533   :  { %7797 = vmatpush1.bf16.msra.mxu0 %v17252_v17  ;;  %v17332_v17 = vcombine.low %v1399_v55, %v1407_v57  ;;  %v8037_v55 = vld [vmem:[#allocation9] sm:$0xff]  ;;  %v8038_v59 = vld [vmem:[#allocation9 + $0x8] sm:$0xff]  ;;  %v17398_v10 = vcombine.low %v1464_v50, %v1472_v47 }
 0x534   :  { %7961 = vmatpush1.bf16.msra.mxu1 %v17254_v19  ;;  %7798 = vmatprep.subr.bf16.mxu0 %v17269_v20  ;;  %v17351_v19 = vcombine.high %v1416_v8, %v1424_v15  ;;  %v1431_v20 = vld [vmem:[#allocation6 + $0x1eb0] sm:$0xff]  ;;  %v7990_v58 = vmax.f32 %v18616_v46, 0.0  ;;  %v8070_v46 = vld [vmem:[#allocation9 + $0x108] sm:$0xff] }
 0x535   :  { %7962 = vmatprep.subr.bf16.mxu1 %v17271_v22  ;;  %v1432_v22 = vld [vmem:[#allocation6 + $0x1eb8] sm:$0xff]  ;;  %v17364_v36 = vcombine.low %v1431_v20, %v1439_v21  ;;  %v8041_v57 = vld [vmem:[#allocation9 + $0x20] sm:$0xff] }
 0x536   :  { %v8006_v4 = vmin.f32 %v7990_v58, 6.0  ;;  %v8049_v8 = vld [vmem:[#allocation9 + $0x60] sm:$0xff]  ;;  %v17400_v15 = vcombine.low %v8037_v55, %v8041_v57  ;;  %v8082_v58 = vld [vmem:[#allocation9 + $0x168] sm:$0xff] }
 0x537   :  { %7799 = vmatpush1.bf16.msra.mxu0 %v17268_v23  ;;  %v17365_v23 = vcombine.high %v1431_v20, %v1439_v21  ;;  %v8053_v20 = vld [vmem:[#allocation9 + $0x80] sm:$0xff] }
 0x538   :  { %7963 = vmatpush1.bf16.msra.mxu1 %v17270_v32  ;;  %7800 = vmatprep.subr.bf16.mxu0 %v17285_v33  ;;  %v17367_v32 = vcombine.high %v1432_v22, %v1440_v24  ;;  %v1447_v33 = vld [vmem:[#allocation6 + $0x1f30] sm:$0xff] }
 0x539   :  { %7964 = vmatprep.subr.bf16.mxu1 %v17287_v28  ;;  %v1455_v28 = vld [vmem:[#allocation6 + $0x1f70] sm:$0xff] }
 0x53a   :  { %v8057_v21 = vld [vmem:[#allocation9 + $0xa0] sm:$0xff] }
 0x53b   :  { %7801 = vmatpush1.bf16.msra.mxu0 %v17284_v41  ;;  %v17366_v41 = vcombine.low %v1432_v22, %v1440_v24  ;;  %v19570_v22 = vpack.c.bf16 %v8006_v4, %v8006_v4  ;;  %v8061_v34 = vld [vmem:[#allocation9 + $0xc0] sm:$0xff]  ;;  %v8086_v4 = vld [vmem:[#allocation9 + $0x188] sm:$0xff] }
 0x53c   :  { %7965 = vmatpush1.bf16.msra.mxu1 %v17286_v38  ;;  %7802 = vmatprep.subr.bf16.mxu0 %v17301_v43  ;;  %v17381_v38 = vcombine.high %v1447_v33, %v1455_v28  ;;  %v17383_v43 = vcombine.high %v1448_v35, %v1456_v40 }
 0x53d   :  { %7966 = vmatprep.subr.bf16.mxu1 %v17303_v52  ;;  %v1463_v52 = vld [vmem:[#allocation6 + $0x1fb0] sm:$0xff] }
 0x53f   :  { %7803 = vmatpush1.bf16.msra.mxu0 %v17300_v54  ;;  %v17380_v54 = vcombine.low %v1447_v33, %v1455_v28  ;;  %v17417_v33 = vcombine.high %v8053_v20, %v8057_v21 }
 0x540   :  { %7967 = vmatpush1.bf16.msra.mxu1 %v17302_v48  ;;  %7804 = vmatprep.subr.bf16.mxu0 %v17317_v53  ;;  %v17382_v48 = vcombine.low %v1448_v35, %v1456_v40  ;;  %v17397_v53 = vcombine.high %v1463_v52, %v1471_v44  ;;  %v8065_v35 = vld [vmem:[#allocation9 + $0xe0] sm:$0xff]  ;;  %v8062_v40 = vld [vmem:[#allocation9 + $0xc8] sm:$0xff] }
 0x541   :  { %7968 = vmatprep.subr.bf16.mxu1 %v17319_v11  ;;  %v17399_v11 = vcombine.high %v1464_v50, %v1472_v47  ;;  %v8074_v50 = vld [vmem:[#allocation9 + $0x128] sm:$0xff]  ;;  %v17424_v47 = vcombine.low %v8061_v34, %v8065_v35 }
 0x543   :  { %7805 = vmatpush1.bf16.msra.mxu0 %v17316_v61  ;;  %v8042_v61 = vld [vmem:[#allocation9 + $0x28] sm:$0xff] }
 0x544   :  { %7969 = vmatpush1.bf16.msra.mxu1 %v17318_v62  ;;  %7806 = vmatprep.subr.bf16.mxu0 %v17333_v45  ;;  %v17396_v62 = vcombine.low %v1463_v52, %v1471_v44  ;;  %v17401_v45 = vcombine.high %v8037_v55, %v8041_v57  ;;  %v8069_v52 = vld [vmem:[#allocation9 + $0x100] sm:$0xff]  ;;  %v8078_v57 = vld [vmem:[#allocation9 + $0x148] sm:$0xff] }
 0x545   :  { %7970 = vmatprep.subr.bf16.mxu1 %v17335_v2  ;;  %v17403_v2 = vcombine.high %v8038_v59, %v8042_v61  ;;  %v8073_v44 = vld [vmem:[#allocation9 + $0x120] sm:$0xff] }
 0x546   :  { %v8081_v55 = vld [vmem:[#allocation9 + $0x160] sm:$0xff] }
 0x547   :  { %7807 = vmatpush1.bf16.msra.mxu0 %v17332_v17  ;;  %v8046_v17 = vld [vmem:[#allocation9 + $0x48] sm:$0xff] }
 0x548   :  { %7971 = vmatpush1.bf16.msra.mxu1 %v17334_v49  ;;  %7808 = vmatprep.subr.bf16.mxu0 %v17349_v51  ;;  %v8050_v49 = vld [vmem:[#allocation9 + $0x68] sm:$0xff]  ;;  %v17402_v51 = vcombine.low %v8038_v59, %v8042_v61  ;;  %v17432_v59 = vcombine.low %v8069_v52, %v8073_v44  ;;  %v17434_v61 = vcombine.low %v8070_v46, %v8074_v50 }
 0x549   :  { %7972 = vmatprep.subr.bf16.mxu1 %v17351_v19  ;;  %v17409_v19 = vcombine.high %v8045_v7, %v8049_v8  ;;  %v17411_v24 = vcombine.high %v8046_v17, %v8050_v49 }
 0x54b   :  { %7809 = vmatpush1.bf16.msra.mxu0 %v17348_v27  ;;  %v8054_v27 = vld [vmem:[#allocation9 + $0x88] sm:$0xff] }
 0x54c   :  { %7973 = vmatpush1.bf16.msra.mxu1 %v17350_v16  ;;  %7810 = vmatprep.subr.bf16.mxu0 %v17365_v23  ;;  %v8058_v16 = vld [vmem:[#allocation9 + $0xa8] sm:$0xff]  ;;  %v17408_v23 = vcombine.low %v8045_v7, %v8049_v8 }
 0x54d   :  { %7974 = vmatprep.subr.bf16.mxu1 %v17367_v32  ;;  %v17410_v32 = vcombine.low %v8046_v17, %v8050_v49  ;;  %v17419_v28 = vcombine.high %v8054_v27, %v8058_v16  ;;  %v8090_v7 = vld [vmem:[#allocation9 + $0x1a8] sm:$0xff] }
 0x54e   :  { %v17451_v49 = vcombine.high %v8086_v4, %v8090_v7 }
 0x54f   :  { %7811 = vmatpush1.bf16.msra.mxu0 %v17364_v36  ;;  %v8066_v36 = vld [vmem:[#allocation9 + $0xe8] sm:$0xff] }
 0x550   :  { %7975 = vmatpush1.bf16.msra.mxu1 %v17366_v41  ;;  %7812 = vmatprep.subr.bf16.mxu0 %v17381_v38  ;;  %v17416_v41 = vcombine.low %v8053_v20, %v8057_v21  ;;  %v17425_v38 = vcombine.high %v8061_v34, %v8065_v35  ;;  %v8094_v20 = vld [vmem:[#allocation9 + $0x1c8] sm:$0xff] }
 0x551   :  { %7976 = vmatprep.subr.bf16.mxu1 %v17383_v43  ;;  %v17427_v43 = vcombine.high %v8062_v40, %v8066_v36  ;;  %v8098_v21 = vld [vmem:[#allocation9 + $0x1e8] sm:$0xff] }
 0x552   :  { %v8106_v34 = vld [vmem:[#allocation9 + $0x228] sm:$0xff] }
 0x553   :  { %7813 = vmatpush1.bf16.msra.mxu0 %v17380_v54  ;;  %v17426_v54 = vcombine.low %v8062_v40, %v8066_v36  ;;  %v17458_v40 = vcombine.low %v8094_v20, %v8098_v21 }
 0x554   :  { %7977 = vmatpush1.bf16.msra.mxu1 %v17382_v48  ;;  %7814 = vmatprep.subr.bf16.mxu0 %v17397_v53  ;;  %v17433_v48 = vcombine.high %v8069_v52, %v8073_v44  ;;  %v17435_v53 = vcombine.high %v8070_v46, %v8074_v50  ;;  %v8114_v52 = vld [vmem:[#allocation9 + $0x268] sm:$0xff] }
 0x555   :  { %7978 = vmatprep.subr.bf16.mxu1 %v17399_v11  ;;  %v8077_v11 = vld [vmem:[#allocation9 + $0x140] sm:$0xff] }
 0x556   :  { %v17440_v8 = vcombine.low %v8077_v11, %v8081_v55 }
 0x557   :  { %7815 = vmatpush1.bf16.msra.mxu0 %v17396_v62  ;;  %v17441_v62 = vcombine.high %v8077_v11, %v8081_v55  ;;  %v8122_v11 = vld [vmem:[#allocation9 + $0x2a8] sm:$0xff] }
 0x558   :  { %7979 = vmatpush1.bf16.msra.mxu1 %v17398_v10  ;;  %14223 = vmatprep.subr.bf16.mxu0 %v17401_v45  ;;  %v17443_v10 = vcombine.high %v8078_v57, %v8082_v58  ;;  %v8085_v45 = vld [vmem:[#allocation9 + $0x180] sm:$0xff] }
 0x559   :  { %14551 = vmatprep.subr.bf16.mxu1 %v17403_v2  ;;  %v8089_v2 = vld [vmem:[#allocation9 + $0x1a0] sm:$0xff] }
 0x55a   :  { %7817 = vmatmul.mubr.bf16.vlgmr.msra.gmra.mrb[12].mxu0 %v19491_v13  ;;  %v17449_v17 = vcombine.high %v8085_v45, %v8089_v2 }
 0x55b   :  { %7981 = vmatmul.mubr.bf16.vlgmr.msra.gmra.mrb[28].mxu1 %v19491_v13  ;;  %14224 = vmatpush1.bf16.msra.mxu0 %v17400_v15  ;;  %v17418_v13 = vcombine.low %v8054_v27, %v8058_v16  ;;  %v17442_v15 = vcombine.low %v8078_v57, %v8082_v58  ;;  %v17450_v27 = vcombine.low %v8086_v4, %v8090_v7 }
 0x55c   :  { %14255 = vmatprep.mubr.bf16.mxu0 %v19570_v22  ;;  %14552 = vmatpush1.bf16.msra.mxu1 %v17402_v51  ;;  %v8093_v51 = vld [vmem:[#allocation9 + $0x1c0] sm:$0xff] }
 0x55d   :  { %14583 = vmatprep.mubr.bf16.mxu1 %v19570_v22  ;;  %14225 = vmatprep.subr.bf16.mxu0 %v17409_v19  ;;  %v8097_v19 = vld [vmem:[#allocation9 + $0x1e0] sm:$0xff] }
 0x55e   :  { %14553 = vmatprep.subr.bf16.mxu1 %v17411_v24  ;;  %v17448_v24 = vcombine.low %v8085_v45, %v8089_v2  ;;  %v17457_v16 = vcombine.high %v8093_v51, %v8097_v19  ;;  %v17456_v35 = vcombine.low %v8093_v51, %v8097_v19  ;;  %v8130_v45 = vld [vmem:[#allocation9 + $0x2e8] sm:$0xff] }
 0x55f   :  { %14226 = vmatpush1.bf16.msra.mxu0 %v17408_v23  ;;  %v17459_v23 = vcombine.high %v8094_v20, %v8098_v21  ;;  %v8138_v51 = vld [vmem:[#allocation9 + $0x328] sm:$0xff] }
 0x560   :  { %14554 = vmatpush1.bf16.msra.mxu1 %v17410_v32  ;;  %14227 = vmatprep.subr.bf16.mxu0 %v17417_v33  ;;  %v8101_v32 = vld [vmem:[#allocation9 + $0x200] sm:$0xff] }
 0x561   :  { %14555 = vmatprep.subr.bf16.mxu1 %v17419_v28  ;;  %v8105_v33 = vld [vmem:[#allocation9 + $0x220] sm:$0xff]  ;;  %v8102_v28 = vld [vmem:[#allocation9 + $0x208] sm:$0xff] }
 0x562   :  { %v17465_v36 = vcombine.high %v8101_v32, %v8105_v33  ;;  %v17464_v44 = vcombine.low %v8101_v32, %v8105_v33  ;;  %v17466_v46 = vcombine.low %v8102_v28, %v8106_v34  ;;  %v8146_v32 = vld [vmem:[#allocation9 + $0x368] sm:$0xff] }
 0x563   :  { %14228 = vmatpush1.bf16.msra.mxu0 %v17416_v41  ;;  %v17467_v41 = vcombine.high %v8102_v28, %v8106_v34  ;;  %v1480_v28 = vrot.slane %v19565_v26, %v19408_v29 }
 0x564   :  { %14556 = vmatpush1.bf16.msra.mxu1 %v17418_v13  ;;  %14229 = vmatprep.subr.bf16.mxu0 %v17425_v38  ;;  %v8109_v13 = vld [vmem:[#allocation9 + $0x240] sm:$0xff] }
 0x565   :  { %14557 = vmatprep.subr.bf16.mxu1 %v17427_v43  ;;  %v8113_v38 = vld [vmem:[#allocation9 + $0x260] sm:$0xff]  ;;  %v8110_v43 = vld [vmem:[#allocation9 + $0x248] sm:$0xff] }
 0x566   :  { %v17473_v50 = vcombine.high %v8109_v13, %v8113_v38  ;;  %v17472_v55 = vcombine.low %v8109_v13, %v8113_v38  ;;  %v17474_v57 = vcombine.low %v8110_v43, %v8114_v52  ;;  %v1492_v13 = vrot.slane %v19565_v26, %v19420_v39  ;;  %v8150_v38 = vld [vmem:[#allocation9 + $0x388] sm:$0xff] }
 0x567   :  { %14230 = vmatpush1.bf16.msra.mxu0 %v17424_v47  ;;  %v17475_v47 = vcombine.high %v8110_v43, %v8114_v52  ;;  %v8154_v43 = vld [vmem:[#allocation9 + $0x3a8] sm:$0xff] }
 0x568   :  { %14558 = vmatpush1.bf16.msra.mxu1 %v17426_v54  ;;  %14231 = vmatprep.subr.bf16.mxu0 %v17433_v48  ;;  %v8117_v54 = vld [vmem:[#allocation9 + $0x280] sm:$0xff] }
 0x569   :  { %14559 = vmatprep.subr.bf16.mxu1 %v17435_v53  ;;  %v8121_v48 = vld [vmem:[#allocation9 + $0x2a0] sm:$0xff]  ;;  %v8118_v53 = vld [vmem:[#allocation9 + $0x288] sm:$0xff] }
 0x56a   :  { %v17481_v58 = vcombine.high %v8117_v54, %v8121_v48  ;;  %v17480_v2 = vcombine.low %v8117_v54, %v8121_v48  ;;  %v17482_v4 = vcombine.low %v8118_v53, %v8122_v11  ;;  %v8157_v54 = vld [vmem:[#allocation9 + $0x3c0] sm:$0xff] }
 0x56b   :  { %14232 = vmatpush1.bf16.msra.mxu0 %v17432_v59  ;;  %v17483_v59 = vcombine.high %v8118_v53, %v8122_v11  ;;  %v8161_v48 = vld [vmem:[#allocation9 + $0x3e0] sm:$0xff]  ;;  %v18618_v53 = vadd.f32 %v19515_v14, %v1492_v13  ;;  %v8158_v11 = vld [vmem:[#allocation9 + $0x3c8] sm:$0xff] }
 0x56c   :  { %14560 = vmatpush1.bf16.msra.mxu1 %v17434_v61  ;;  %14233 = vmatprep.subr.bf16.mxu0 %v17441_v62  ;;  %v8125_v61 = vld [vmem:[#allocation9 + $0x2c0] sm:$0xff] }
 0x56d   :  { %14561 = vmatprep.subr.bf16.mxu1 %v17443_v10  ;;  %v8129_v62 = vld [vmem:[#allocation9 + $0x2e0] sm:$0xff]  ;;  %v8126_v10 = vld [vmem:[#allocation9 + $0x2c8] sm:$0xff] }
 0x56e   :  { %v17489_v7 = vcombine.high %v8125_v61, %v8129_v62  ;;  %v17488_v19 = vcombine.low %v8125_v61, %v8129_v62  ;;  %v17490_v20 = vcombine.low %v8126_v10, %v8130_v45  ;;  %v17521_v61 = vcombine.high %v8157_v54, %v8161_v48  ;;  %v8165_v62 = vld [vmem:[#allocation9 + $0x400] sm:$0xff] }
 0x56f   :  { %14234 = vmatpush1.bf16.msra.mxu0 %v17440_v8  ;;  %v17491_v8 = vcombine.high %v8126_v10, %v8130_v45  ;;  %v8169_v10 = vld [vmem:[#allocation9 + $0x420] sm:$0xff]  ;;  %v7992_v45 = vmax.f32 %v18618_v53, 0.0 }
 0x570   :  { %14562 = vmatpush1.bf16.msra.mxu1 %v17442_v15  ;;  %14235 = vmatprep.subr.bf16.mxu0 %v17449_v17  ;;  %v8133_v15 = vld [vmem:[#allocation9 + $0x300] sm:$0xff] }
 0x571   :  { %14563 = vmatprep.subr.bf16.mxu1 %v17451_v49  ;;  %v8137_v17 = vld [vmem:[#allocation9 + $0x320] sm:$0xff]  ;;  %v8134_v49 = vld [vmem:[#allocation9 + $0x308] sm:$0xff] }
 0x572   :  { %v17497_v21 = vcombine.high %v8133_v15, %v8137_v17  ;;  %v17496_v33 = vcombine.low %v8133_v15, %v8137_v17  ;;  %v17498_v34 = vcombine.low %v8134_v49, %v8138_v51  ;;  %v17529_v15 = vcombine.high %v8165_v62, %v8169_v10  ;;  %v8197_v53 = vld [vmem:[#allocation9 + $0x500] sm:$0xff] }
 0x573   :  { %14236 = vmatpush1.bf16.msra.mxu0 %v17448_v24  ;;  %v17499_v24 = vcombine.high %v8134_v49, %v8138_v51  ;;  %v8008_v49 = vmin.f32 %v7992_v45, 6.0  ;;  %v8173_v51 = vld [vmem:[#allocation9 + $0x440] sm:$0xff]  ;;  %v8206_v45 = vld [vmem:[#allocation9 + $0x548] sm:$0xff] }
 0x574   :  { %14564 = vmatpush1.bf16.msra.mxu1 %v17450_v27  ;;  %14237 = vmatprep.subr.bf16.mxu0 %v17457_v16  ;;  %v8141_v27 = vld [vmem:[#allocation9 + $0x340] sm:$0xff] }
 0x575   :  { %14565 = vmatprep.subr.bf16.mxu1 %v17459_v23  ;;  %v8145_v16 = vld [vmem:[#allocation9 + $0x360] sm:$0xff]  ;;  %v8142_v23 = vld [vmem:[#allocation9 + $0x348] sm:$0xff] }
 0x576   :  { %v17504_v52 = vcombine.low %v8141_v27, %v8145_v16 }
 0x577   :  { %14238 = vmatpush1.bf16.msra.mxu0 %v17456_v35  ;;  %v17505_v35 = vcombine.high %v8141_v27, %v8145_v16 }
 0x578   :  { %14566 = vmatpush1.bf16.msra.mxu1 %v17458_v40  ;;  %14239 = vmatprep.subr.bf16.mxu0 %v17465_v36  ;;  %v17507_v40 = vcombine.high %v8142_v23, %v8146_v32  ;;  %v8149_v36 = vld [vmem:[#allocation9 + $0x380] sm:$0xff] }
 0x579   :  { %14567 = vmatprep.subr.bf16.mxu1 %v17467_v41  ;;  %v8153_v41 = vld [vmem:[#allocation9 + $0x3a0] sm:$0xff] }
 0x57b   :  { %14240 = vmatpush1.bf16.msra.mxu0 %v17464_v44  ;;  %v18615_v44 = vadd.f32 %v19509_v12, %v1480_v28  ;;  %v19584_v28 = vpack.c.bf16 %v8008_v49, %v8008_v49  ;;  %v8214_v49 = vld [vmem:[#allocation9 + $0x588] sm:$0xff] }
 0x57c   :  { %14568 = vmatpush1.bf16.msra.mxu1 %v17466_v46  ;;  %14241 = vmatprep.subr.bf16.mxu0 %v17473_v50  ;;  %v17506_v46 = vcombine.low %v8142_v23, %v8146_v32  ;;  %v17513_v50 = vcombine.high %v8149_v36, %v8153_v41  ;;  %v8181_v32 = vld [vmem:[#allocation9 + $0x480] sm:$0xff] }
 0x57d   :  { %14569 = vmatprep.subr.bf16.mxu1 %v17475_v47  ;;  %v17515_v47 = vcombine.high %v8150_v38, %v8154_v43 }
 0x57f   :  { %14242 = vmatpush1.bf16.msra.mxu0 %v17472_v55  ;;  %v8162_v55 = vld [vmem:[#allocation9 + $0x3e8] sm:$0xff] }
 0x580   :  { %14570 = vmatpush1.bf16.msra.mxu1 %v17474_v57  ;;  %14243 = vmatprep.subr.bf16.mxu0 %v17481_v58  ;;  %v17512_v57 = vcombine.low %v8149_v36, %v8153_v41  ;;  %v7989_v58 = vmax.f32 %v18615_v44, 0.0  ;;  %v17523_v12 = vcombine.high %v8158_v11, %v8162_v55  ;;  %v17522_v14 = vcombine.low %v8158_v11, %v8162_v55  ;;  %v8190_v44 = vld [vmem:[#allocation9 + $0x4c8] sm:$0xff]  ;;  %v8201_v11 = vld [vmem:[#allocation9 + $0x520] sm:$0xff] }
 0x581   :  { %14571 = vmatprep.subr.bf16.mxu1 %v17483_v59  ;;  %v17514_v59 = vcombine.low %v8150_v38, %v8154_v43  ;;  %v8189_v43 = vld [vmem:[#allocation9 + $0x4c0] sm:$0xff]  ;;  %v8198_v55 = vld [vmem:[#allocation9 + $0x508] sm:$0xff] }
 0x583   :  { %14244 = vmatpush1.bf16.msra.mxu0 %v17480_v2  ;;  %v8166_v2 = vld [vmem:[#allocation9 + $0x408] sm:$0xff] }
 0x584   :  { %14572 = vmatpush1.bf16.msra.mxu1 %v17482_v4  ;;  %14245 = vmatprep.subr.bf16.mxu0 %v17489_v7  ;;  %v8170_v4 = vld [vmem:[#allocation9 + $0x428] sm:$0xff]  ;;  %v17520_v7 = vcombine.low %v8157_v54, %v8161_v48 }
 0x585   :  { %14573 = vmatprep.subr.bf16.mxu1 %v17491_v8  ;;  %v8005_v8 = vmin.f32 %v7989_v58, 6.0  ;;  %v17531_v17 = vcombine.high %v8166_v2, %v8170_v4  ;;  %v17530_v16 = vcombine.low %v8166_v2, %v8170_v4  ;;  %v8210_v2 = vld [vmem:[#allocation9 + $0x568] sm:$0xff]  ;;  %v17560_v4 = vcombine.low %v8197_v53, %v8201_v11 }
 0x587   :  { %14246 = vmatpush1.bf16.msra.mxu0 %v17488_v19  ;;  %v8177_v19 = vld [vmem:[#allocation9 + $0x460] sm:$0xff]  ;;  %v19582_v27 = vpack.c.bf16 %v8005_v8, %v8005_v8 }
 0x588   :  { %14574 = vmatpush1.bf16.msra.mxu1 %v17490_v20  ;;  %14247 = vmatprep.subr.bf16.mxu0 %v17497_v21  ;;  %v17528_v20 = vcombine.low %v8165_v62, %v8169_v10  ;;  %v8174_v21 = vld [vmem:[#allocation9 + $0x448] sm:$0xff]  ;;  %v17537_v23 = vcombine.high %v8173_v51, %v8177_v19  ;;  %v17536_v36 = vcombine.low %v8173_v51, %v8177_v19  ;;  %v8205_v62 = vld [vmem:[#allocation9 + $0x540] sm:$0xff] }
 0x589   :  { %14575 = vmatprep.subr.bf16.mxu1 %v17499_v24  ;;  %v8178_v24 = vld [vmem:[#allocation9 + $0x468] sm:$0xff]  ;;  %v8209_v10 = vld [vmem:[#allocation9 + $0x560] sm:$0xff] }
 0x58a   :  { %v17538_v41 = vcombine.low %v8174_v21, %v8178_v24  ;;  %v17569_v8 = vcombine.high %v8205_v62, %v8209_v10  ;;  %v8218_v51 = vld [vmem:[#allocation9 + $0x5a8] sm:$0xff]  ;;  %v17568_v19 = vcombine.low %v8205_v62, %v8209_v10 }
 0x58b   :  { %14248 = vmatpush1.bf16.msra.mxu0 %v17496_v33  ;;  %v8185_v33 = vld [vmem:[#allocation9 + $0x4a0] sm:$0xff]  ;;  %v8250_v62 = vld [vmem:[#allocation9 + $0x6a8] sm:$0xff] }
 0x58c   :  { %14576 = vmatpush1.bf16.msra.mxu1 %v17498_v34  ;;  %14249 = vmatprep.subr.bf16.mxu0 %v17505_v35  ;;  %v17539_v34 = vcombine.high %v8174_v21, %v8178_v24  ;;  %v8182_v35 = vld [vmem:[#allocation9 + $0x488] sm:$0xff]  ;;  %v17545_v13 = vcombine.high %v8181_v32, %v8185_v33  ;;  %v17579_v24 = vcombine.high %v8214_v49, %v8218_v51 }
 0x58d   :  { %14577 = vmatprep.subr.bf16.mxu1 %v17507_v40  ;;  %v8186_v40 = vld [vmem:[#allocation9 + $0x4a8] sm:$0xff] }
 0x58e   :  { %v17547_v38 = vcombine.high %v8182_v35, %v8186_v40 }
 0x58f   :  { %14250 = vmatpush1.bf16.msra.mxu0 %v17504_v52  ;;  %v8193_v52 = vld [vmem:[#allocation9 + $0x4e0] sm:$0xff] }
 0x590   :  { %14578 = vmatpush1.bf16.msra.mxu1 %v17506_v46  ;;  %14251 = vmatprep.subr.bf16.mxu0 %v17513_v50  ;;  %v8194_v46 = vld [vmem:[#allocation9 + $0x4e8] sm:$0xff]  ;;  %v17544_v50 = vcombine.low %v8181_v32, %v8185_v33  ;;  %v17553_v54 = vcombine.high %v8189_v43, %v8193_v52  ;;  %v17552_v58 = vcombine.low %v8189_v43, %v8193_v52 }
 0x591   :  { %14579 = vmatprep.subr.bf16.mxu1 %v17515_v47  ;;  %v17546_v47 = vcombine.low %v8182_v35, %v8186_v40  ;;  %v17555_v48 = vcombine.high %v8190_v44, %v8194_v46  ;;  %v8222_v32 = vld [vmem:[#allocation9 + $0x5c8] sm:$0xff]  ;;  %v17578_v35 = vcombine.low %v8214_v49, %v8218_v51 }
 0x592   :  { %v8226_v33 = vld [vmem:[#allocation9 + $0x5e8] sm:$0xff] }
 0x593   :  { %14252 = vmatpush1.bf16.msra.mxu0 %v17512_v57  ;;  %v8202_v57 = vld [vmem:[#allocation9 + $0x528] sm:$0xff] }
 0x594   :  { %14580 = vmatpush1.bf16.msra.mxu1 %v17514_v59  ;;  %14253 = vmatprep.subr.bf16.mxu0 %v17521_v61  ;;  %v17554_v59 = vcombine.low %v8190_v44, %v8194_v46  ;;  %v17561_v61 = vcombine.high %v8197_v53, %v8201_v11  ;;  %v8234_v43 = vld [vmem:[#allocation9 + $0x628] sm:$0xff]  ;;  %v17586_v44 = vcombine.low %v8222_v32, %v8226_v33 }
 0x595   :  { %14581 = vmatprep.subr.bf16.mxu1 %v17523_v12  ;;  %v17563_v12 = vcombine.high %v8198_v55, %v8202_v57  ;;  %v8242_v53 = vld [vmem:[#allocation9 + $0x668] sm:$0xff] }
 0x597   :  { %14254 = vmatpush1.bf16.msra.mxu0 %v17520_v7  ;;  %v17562_v7 = vcombine.low %v8198_v55, %v8202_v57 }
 0x598   :  { %14582 = vmatpush1.bf16.msra.mxu1 %v17522_v14  ;;  %14264 = vmatprep.subr.bf16.mxu0 %v17529_v15  ;;  %v17571_v14 = vcombine.high %v8206_v45, %v8210_v2  ;;  %v8213_v15 = vld [vmem:[#allocation9 + $0x580] sm:$0xff] }
 0x599   :  { %14592 = vmatprep.subr.bf16.mxu1 %v17531_v17  ;;  %v8217_v17 = vld [vmem:[#allocation9 + $0x5a0] sm:$0xff] }
 0x59a   :  { %14256 = vmatmul.mubr.bf16.vlgmr.msra.gmra.mrb[16].mxu0 %v19582_v27  ;;  %v17577_v21 = vcombine.high %v8213_v15, %v8217_v17 }
 0x59b   :  { %14584 = vmatmul.mubr.bf16.vlgmr.msra.gmra.mrb[32].mxu1 %v19582_v27  ;;  %14265 = vmatpush1.bf16.msra.mxu0 %v17528_v20  ;;  %v17570_v20 = vcombine.low %v8206_v45, %v8210_v2 }
 0x59c   :  { %14296 = vmatprep.mubr.bf16.mxu0 %v19584_v28  ;;  %14593 = vmatpush1.bf16.msra.mxu1 %v17530_v16  ;;  %v8221_v16 = vld [vmem:[#allocation9 + $0x5c0] sm:$0xff] }
 0x59d   :  { %14624 = vmatprep.mubr.bf16.mxu1 %v19584_v28  ;;  %14266 = vmatprep.subr.bf16.mxu0 %v17537_v23  ;;  %v8225_v23 = vld [vmem:[#allocation9 + $0x5e0] sm:$0xff] }
 0x59e   :  { %14594 = vmatprep.subr.bf16.mxu1 %v17539_v34  ;;  %v17576_v34 = vcombine.low %v8213_v15, %v8217_v17  ;;  %v17585_v40 = vcombine.high %v8221_v16, %v8225_v23  ;;  %v17584_v52 = vcombine.low %v8221_v16, %v8225_v23  ;;  %v8258_v15 = vld [vmem:[#allocation9 + $0x6e8] sm:$0xff] }
 0x59f   :  { %14267 = vmatpush1.bf16.msra.mxu0 %v17536_v36  ;;  %v17587_v36 = vcombine.high %v8222_v32, %v8226_v33  ;;  %v8266_v16 = vld [vmem:[#allocation9 + $0x728] sm:$0xff] }
 0x5a0   :  { %14595 = vmatpush1.bf16.msra.mxu1 %v17538_v41  ;;  %14268 = vmatprep.subr.bf16.mxu0 %v17545_v13  ;;  %v8229_v41 = vld [vmem:[#allocation9 + $0x600] sm:$0xff] }
 0x5a1   :  { %14596 = vmatprep.subr.bf16.mxu1 %v17547_v38  ;;  %v8233_v13 = vld [vmem:[#allocation9 + $0x620] sm:$0xff]  ;;  %v8230_v38 = vld [vmem:[#allocation9 + $0x608] sm:$0xff] }
 0x5a2   :  { %v17593_v46 = vcombine.high %v8229_v41, %v8233_v13  ;;  %v17592_v11 = vcombine.low %v8229_v41, %v8233_v13  ;;  %v17594_v55 = vcombine.low %v8230_v38, %v8234_v43  ;;  %v8274_v41 = vld [vmem:[#allocation9 + $0x768] sm:$0xff] }
 0x5a3   :  { %14269 = vmatpush1.bf16.msra.mxu0 %v17544_v50  ;;  %v17595_v50 = vcombine.high %v8230_v38, %v8234_v43  ;;  %v1488_v38 = vrot.slane %v19565_v26, %v19447_v42 }
 0x5a4   :  { %14597 = vmatpush1.bf16.msra.mxu1 %v17546_v47  ;;  %14270 = vmatprep.subr.bf16.mxu0 %v17553_v54  ;;  %v8237_v47 = vld [vmem:[#allocation9 + $0x640] sm:$0xff] }
 0x5a5   :  { %14598 = vmatprep.subr.bf16.mxu1 %v17555_v48  ;;  %v8241_v54 = vld [vmem:[#allocation9 + $0x660] sm:$0xff]  ;;  %v8238_v48 = vld [vmem:[#allocation9 + $0x648] sm:$0xff] }
 0x5a6   :  { %v17601_v57 = vcombine.high %v8237_v47, %v8241_v54  ;;  %v17600_v10 = vcombine.low %v8237_v47, %v8241_v54  ;;  %v17602_v45 = vcombine.low %v8238_v48, %v8242_v53  ;;  %v1500_v47 = vrot.slane %v19565_v26, %v19450_v56  ;;  %v8278_v54 = vld [vmem:[#allocation9 + $0x788] sm:$0xff] }
 0x5a7   :  { %14271 = vmatpush1.bf16.msra.mxu0 %v17552_v58  ;;  %v17603_v58 = vcombine.high %v8238_v48, %v8242_v53  ;;  %v8282_v48 = vld [vmem:[#allocation9 + $0x7a8] sm:$0xff] }
 0x5a8   :  { %14599 = vmatpush1.bf16.msra.mxu1 %v17554_v59  ;;  %14272 = vmatprep.subr.bf16.mxu0 %v17561_v61  ;;  %v8245_v59 = vld [vmem:[#allocation9 + $0x680] sm:$0xff] }
 0x5a9   :  { %14600 = vmatprep.subr.bf16.mxu1 %v17563_v12  ;;  %v8249_v61 = vld [vmem:[#allocation9 + $0x6a0] sm:$0xff]  ;;  %v8246_v12 = vld [vmem:[#allocation9 + $0x688] sm:$0xff] }
 0x5aa   :  { %v17609_v2 = vcombine.high %v8245_v59, %v8249_v61  ;;  %v17608_v17 = vcombine.low %v8245_v59, %v8249_v61  ;;  %v17610_v49 = vcombine.low %v8246_v12, %v8250_v62  ;;  %v8285_v59 = vld [vmem:[#allocation9 + $0x7c0] sm:$0xff] }
 0x5ab   :  { %14273 = vmatpush1.bf16.msra.mxu0 %v17560_v4  ;;  %v17611_v4 = vcombine.high %v8246_v12, %v8250_v62  ;;  %v8289_v61 = vld [vmem:[#allocation9 + $0x7e0] sm:$0xff]  ;;  %v18620_v12 = vadd.f32 %v19537_v1, %v1500_v47  ;;  %v8286_v62 = vld [vmem:[#allocation9 + $0x7c8] sm:$0xff] }
 0x5ac   :  { %14601 = vmatpush1.bf16.msra.mxu1 %v17562_v7  ;;  %14274 = vmatprep.subr.bf16.mxu0 %v17569_v8  ;;  %v8253_v7 = vld [vmem:[#allocation9 + $0x6c0] sm:$0xff] }
 0x5ad   :  { %14602 = vmatprep.subr.bf16.mxu1 %v17571_v14  ;;  %v8257_v8 = vld [vmem:[#allocation9 + $0x6e0] sm:$0xff]  ;;  %v8254_v14 = vld [vmem:[#allocation9 + $0x6c8] sm:$0xff] }
 0x5ae   :  { %v17617_v51 = vcombine.high %v8253_v7, %v8257_v8  ;;  %v17616_v23 = vcombine.low %v8253_v7, %v8257_v8  ;;  %v17618_v32 = vcombine.low %v8254_v14, %v8258_v15  ;;  %v8293_v7 = vld [vmem:[#allocation9 + $0x800] sm:$0xff] }
 0x5af   :  { %14275 = vmatpush1.bf16.msra.mxu0 %v17568_v19  ;;  %v17619_v19 = vcombine.high %v8254_v14, %v8258_v15  ;;  %v8297_v8 = vld [vmem:[#allocation9 + $0x820] sm:$0xff]  ;;  %v7994_v14 = vmax.f32 %v18620_v12, 0.0  ;;  %v8294_v15 = vld [vmem:[#allocation9 + $0x808] sm:$0xff] }
 0x5b0   :  { %14603 = vmatpush1.bf16.msra.mxu1 %v17570_v20  ;;  %14276 = vmatprep.subr.bf16.mxu0 %v17577_v21  ;;  %v8261_v20 = vld [vmem:[#allocation9 + $0x700] sm:$0xff] }
 0x5b1   :  { %14604 = vmatprep.subr.bf16.mxu1 %v17579_v24  ;;  %v8265_v21 = vld [vmem:[#allocation9 + $0x720] sm:$0xff]  ;;  %v8262_v24 = vld [vmem:[#allocation9 + $0x708] sm:$0xff] }
 0x5b2   :  { %v17625_v33 = vcombine.high %v8261_v20, %v8265_v21  ;;  %v17624_v13 = vcombine.low %v8261_v20, %v8265_v21  ;;  %v17626_v43 = vcombine.low %v8262_v24, %v8266_v16  ;;  %v8010_v21 = vmin.f32 %v7994_v14, 6.0  ;;  %v8329_v12 = vld [vmem:[#allocation9 + $0x920] sm:$0xff]  ;;  %v8338_v14 = vld [vmem:[#allocation9 + $0x968] sm:$0xff] }
 0x5b3   :  { %14277 = vmatpush1.bf16.msra.mxu0 %v17576_v34  ;;  %v17627_v34 = vcombine.high %v8262_v24, %v8266_v16  ;;  %v8301_v24 = vld [vmem:[#allocation9 + $0x840] sm:$0xff] }
 0x5b4   :  { %14605 = vmatpush1.bf16.msra.mxu1 %v17578_v35  ;;  %14278 = vmatprep.subr.bf16.mxu0 %v17585_v40  ;;  %v8269_v35 = vld [vmem:[#allocation9 + $0x740] sm:$0xff] }
 0x5b5   :  { %14606 = vmatprep.subr.bf16.mxu1 %v17587_v36  ;;  %v8273_v40 = vld [vmem:[#allocation9 + $0x760] sm:$0xff]  ;;  %v8270_v36 = vld [vmem:[#allocation9 + $0x748] sm:$0xff] }
 0x5b6   :  { %v17632_v53 = vcombine.low %v8269_v35, %v8273_v40  ;;  %v8305_v16 = vld [vmem:[#allocation9 + $0x860] sm:$0xff] }
 0x5b7   :  { %14279 = vmatpush1.bf16.msra.mxu0 %v17584_v52  ;;  %v17633_v52 = vcombine.high %v8269_v35, %v8273_v40  ;;  %v17665_v40 = vcombine.high %v8301_v24, %v8305_v16 }
 0x5b8   :  { %14607 = vmatpush1.bf16.msra.mxu1 %v17586_v44  ;;  %14280 = vmatprep.subr.bf16.mxu0 %v17593_v46  ;;  %v17635_v44 = vcombine.high %v8270_v36, %v8274_v41  ;;  %v8277_v46 = vld [vmem:[#allocation9 + $0x780] sm:$0xff] }
 0x5b9   :  { %14608 = vmatprep.subr.bf16.mxu1 %v17595_v50  ;;  %v8281_v50 = vld [vmem:[#allocation9 + $0x7a0] sm:$0xff] }
 0x5ba   :  { %v17640_v26 = vcombine.low %v8277_v46, %v8281_v50 }
 0x5bb   :  { %14281 = vmatpush1.bf16.msra.mxu0 %v17592_v11  ;;  %v18617_v11 = vadd.f32 %v19511_v6, %v1488_v38 }
 0x5bc   :  { %14609 = vmatpush1.bf16.msra.mxu1 %v17594_v55  ;;  %14282 = vmatprep.subr.bf16.mxu0 %v17601_v57  ;;  %v17634_v55 = vcombine.low %v8270_v36, %v8274_v41  ;;  %v17641_v57 = vcombine.high %v8277_v46, %v8281_v50  ;;  %v8309_v36 = vld [vmem:[#allocation9 + $0x880] sm:$0xff] }
 0x5bd   :  { %14610 = vmatprep.subr.bf16.mxu1 %v17603_v58  ;;  %v17643_v58 = vcombine.high %v8278_v54, %v8282_v48  ;;  %v8313_v41 = vld [vmem:[#allocation9 + $0x8a0] sm:$0xff] }
 0x5be   :  { %v17673_v50 = vcombine.high %v8309_v36, %v8313_v41 }
 0x5bf   :  { %14283 = vmatpush1.bf16.msra.mxu0 %v17600_v10  ;;  %v8290_v10 = vld [vmem:[#allocation9 + $0x7e8] sm:$0xff] }
 0x5c0   :  { %14611 = vmatpush1.bf16.msra.mxu1 %v17602_v45  ;;  %14284 = vmatprep.subr.bf16.mxu0 %v17609_v2  ;;  %v7991_v45 = vmax.f32 %v18617_v11, 0.0  ;;  %v17642_v2 = vcombine.low %v8278_v54, %v8282_v48  ;;  %v17651_v6 = vcombine.high %v8286_v62, %v8290_v10  ;;  %v17650_v1 = vcombine.low %v8286_v62, %v8290_v10  ;;  %v8317_v54 = vld [vmem:[#allocation9 + $0x8c0] sm:$0xff]  ;;  %v8322_v11 = vld [vmem:[#allocation9 + $0x8e8] sm:$0xff] }
 0x5c1   :  { %14612 = vmatprep.subr.bf16.mxu1 %v17611_v4  ;;  %v17649_v4 = vcombine.high %v8285_v59, %v8289_v61  ;;  %v8321_v48 = vld [vmem:[#allocation9 + $0x8e0] sm:$0xff]  ;;  %v8326_v62 = vld [vmem:[#allocation9 + $0x908] sm:$0xff] }
 0x5c2   :  { %v8330_v10 = vld [vmem:[#allocation9 + $0x928] sm:$0xff] }
 0x5c3   :  { %14285 = vmatpush1.bf16.msra.mxu0 %v17608_v17  ;;  %v8298_v17 = vld [vmem:[#allocation9 + $0x828] sm:$0xff] }
 0x5c4   :  { %14613 = vmatpush1.bf16.msra.mxu1 %v17610_v49  ;;  %14286 = vmatprep.subr.bf16.mxu0 %v17617_v51  ;;  %v17648_v49 = vcombine.low %v8285_v59, %v8289_v61  ;;  %v8007_v51 = vmin.f32 %v7991_v45, 6.0  ;;  %v17659_v20 = vcombine.high %v8294_v15, %v8298_v17  ;;  %v17658_v35 = vcombine.low %v8294_v15, %v8298_v17  ;;  %v8325_v61 = vld [vmem:[#allocation9 + $0x900] sm:$0xff] }
 0x5c5   :  { %14614 = vmatprep.subr.bf16.mxu1 %v17619_v19  ;;  %v17657_v19 = vcombine.high %v8293_v7, %v8297_v8  ;;  %v17688_v15 = vcombine.low %v8325_v61, %v8329_v12  ;;  %v17690_v17 = vcombine.low %v8326_v62, %v8330_v10 }
 0x5c7   :  { %14287 = vmatpush1.bf16.msra.mxu0 %v17616_v23  ;;  %v17656_v23 = vcombine.low %v8293_v7, %v8297_v8  ;;  %v8337_v7 = vld [vmem:[#allocation9 + $0x960] sm:$0xff]  ;;  %v8334_v8 = vld [vmem:[#allocation9 + $0x948] sm:$0xff] }
 0x5c8   :  { %14615 = vmatpush1.bf16.msra.mxu1 %v17618_v32  ;;  %14288 = vmatprep.subr.bf16.mxu0 %v17625_v33  ;;  %v8302_v32 = vld [vmem:[#allocation9 + $0x848] sm:$0xff] }
 0x5c9   :  { %14616 = vmatprep.subr.bf16.mxu1 %v17627_v34  ;;  %v8306_v33 = vld [vmem:[#allocation9 + $0x868] sm:$0xff]  ;;  %v19596_v34 = vpack.c.bf16 %v8007_v51, %v8007_v51  ;;  %v17699_v51 = vcombine.high %v8334_v8, %v8338_v14 }
 0x5ca   :  { %v17667_v38 = vcombine.high %v8302_v32, %v8306_v33  ;;  %v17666_v46 = vcombine.low %v8302_v32, %v8306_v33  ;;  %v8349_v33 = vld [vmem:[#allocation9 + $0x9c0] sm:$0xff] }
 0x5cb   :  { %14289 = vmatpush1.bf16.msra.mxu0 %v17624_v13  ;;  %v19598_v13 = vpack.c.bf16 %v8010_v21, %v8010_v21  ;;  %v8346_v21 = vld [vmem:[#allocation9 + $0x9a8] sm:$0xff] }
 0x5cc   :  { %14617 = vmatpush1.bf16.msra.mxu1 %v17626_v43  ;;  %14290 = vmatprep.subr.bf16.mxu0 %v17633_v52  ;;  %v8310_v43 = vld [vmem:[#allocation9 + $0x888] sm:$0xff] }
 0x5cd   :  { %14618 = vmatprep.subr.bf16.mxu1 %v17635_v44  ;;  %v8314_v52 = vld [vmem:[#allocation9 + $0x8a8] sm:$0xff]  ;;  %v17664_v44 = vcombine.low %v8301_v24, %v8305_v16  ;;  %v17698_v16 = vcombine.low %v8334_v8, %v8338_v14 }
 0x5ce   :  { %v17675_v47 = vcombine.high %v8310_v43, %v8314_v52 }
 0x5cf   :  { %14291 = vmatpush1.bf16.msra.mxu0 %v17632_v53  ;;  %v8318_v53 = vld [vmem:[#allocation9 + $0x8c8] sm:$0xff] }
 0x5d0   :  { %14619 = vmatpush1.bf16.msra.mxu1 %v17634_v55  ;;  %14292 = vmatprep.subr.bf16.mxu0 %v17641_v57  ;;  %v17672_v55 = vcombine.low %v8309_v36, %v8313_v41  ;;  %v17674_v57 = vcombine.low %v8310_v43, %v8314_v52  ;;  %v17683_v59 = vcombine.high %v8318_v53, %v8322_v11  ;;  %v8354_v36 = vld [vmem:[#allocation9 + $0x9e8] sm:$0xff] }
 0x5d1   :  { %14620 = vmatprep.subr.bf16.mxu1 %v17643_v58  ;;  %v17681_v58 = vcombine.high %v8317_v54, %v8321_v48  ;;  %v17682_v45 = vcombine.low %v8318_v53, %v8322_v11 }
 0x5d3   :  { %14293 = vmatpush1.bf16.msra.mxu0 %v17640_v26  ;;  %v17680_v26 = vcombine.low %v8317_v54, %v8321_v48 }
 0x5d4   :  { %14621 = vmatpush1.bf16.msra.mxu1 %v17642_v2  ;;  %14294 = vmatprep.subr.bf16.mxu0 %v17649_v4  ;;  %v17689_v2 = vcombine.high %v8325_v61, %v8329_v12  ;;  %v17691_v4 = vcombine.high %v8326_v62, %v8330_v10 }
 0x5d5   :  { %14622 = vmatprep.subr.bf16.mxu1 %v17651_v6  ;;  %v8333_v6 = vld [vmem:[#allocation9 + $0x940] sm:$0xff] }
 0x5d6   :  { %v17696_v24 = vcombine.low %v8333_v6, %v8337_v7 }
 0x5d7   :  { %14295 = vmatpush1.bf16.msra.mxu0 %v17648_v49  ;;  %v17697_v49 = vcombine.high %v8333_v6, %v8337_v7 }
 0x5d8   :  { %14623 = vmatpush1.bf16.msra.mxu1 %v17650_v1  ;;  %14305 = vmatprep.subr.bf16.mxu0 %v17657_v19  ;;  %v8341_v1 = vld [vmem:[#allocation9 + $0x980] sm:$0xff] }
 0x5d9   :  { %14633 = vmatprep.subr.bf16.mxu1 %v17659_v20  ;;  %v8345_v19 = vld [vmem:[#allocation9 + $0x9a0] sm:$0xff]  ;;  %v8342_v20 = vld [vmem:[#allocation9 + $0x988] sm:$0xff] }
 0x5da   :  { %14297 = vmatmul.mubr.bf16.vlgmr.msra.gmra.mrb[16].mxu0 %v19596_v34  ;;  %v17707_v32 = vcombine.high %v8342_v20, %v8346_v21  ;;  %v17704_v41 = vcombine.low %v8341_v1, %v8345_v19 }
 0x5db   :  { %14625 = vmatmul.mubr.bf16.vlgmr.msra.gmra.mrb[32].mxu1 %v19596_v34  ;;  %14306 = vmatpush1.bf16.msra.mxu0 %v17656_v23  ;;  %v17705_v23 = vcombine.high %v8341_v1, %v8345_v19 }
 0x5dc   :  { %14337 = vmatprep.mubr.bf16.mxu0 %v19598_v13  ;;  %14634 = vmatpush1.bf16.msra.mxu1 %v17658_v35  ;;  %v8353_v35 = vld [vmem:[#allocation9 + $0x9e0] sm:$0xff] }
 0x5dd   :  { %14665 = vmatprep.mubr.bf16.mxu1 %v19598_v13  ;;  %14307 = vmatprep.subr.bf16.mxu0 %v17665_v40  ;;  %v8350_v40 = vld [vmem:[#allocation9 + $0x9c8] sm:$0xff]  ;;  %v17713_v43 = vcombine.high %v8349_v33, %v8353_v35  ;;  %v17712_v54 = vcombine.low %v8349_v33, %v8353_v35 }
 0x5de   :  { %14635 = vmatprep.subr.bf16.mxu1 %v17667_v38  ;;  %v17706_v38 = vcombine.low %v8342_v20, %v8346_v21  ;;  %v17715_v52 = vcombine.high %v8350_v40, %v8354_v36  ;;  %v17714_v48 = vcombine.low %v8350_v40, %v8354_v36 }
 0x5df   :  { %14308 = vmatpush1.bf16.msra.mxu0 %v17664_v44  ;;  %v8357_v44 = vld [vmem:[#allocation9 + $0xa00] sm:$0xff] }
 0x5e0   :  { %14636 = vmatpush1.bf16.msra.mxu1 %v17666_v46  ;;  %14309 = vmatprep.subr.bf16.mxu0 %v17673_v50  ;;  %v8361_v46 = vld [vmem:[#allocation9 + $0xa20] sm:$0xff]  ;;  %v8358_v50 = vld [vmem:[#allocation9 + $0xa08] sm:$0xff] }
 0x5e1   :  { %14637 = vmatprep.subr.bf16.mxu1 %v17675_v47  ;;  %v8362_v47 = vld [vmem:[#allocation9 + $0xa28] sm:$0xff]  ;;  %v17721_v53 = vcombine.high %v8357_v44, %v8361_v46  ;;  %v17720_v61 = vcombine.low %v8357_v44, %v8361_v46  ;;  %v19604_v46 = vld [vmem:[#allocation7] sm:$0xff] }
 0x5e2   :  { %v17723_v11 = vcombine.high %v8358_v50, %v8362_v47  ;;  %v17722_v12 = vcombine.low %v8358_v50, %v8362_v47  ;;  %v1496_v50 = vrot.slane %v19604_v46, %v19467_v25 }
 0x5e3   :  { %14310 = vmatpush1.bf16.msra.mxu0 %v17672_v55  ;;  %v8365_v55 = vld [vmem:[#allocation9 + $0xa40] sm:$0xff] }
 0x5e4   :  { %14638 = vmatpush1.bf16.msra.mxu1 %v17674_v57  ;;  %14311 = vmatprep.subr.bf16.mxu0 %v17681_v58  ;;  %v8369_v57 = vld [vmem:[#allocation9 + $0xa60] sm:$0xff]  ;;  %v8366_v58 = vld [vmem:[#allocation9 + $0xa48] sm:$0xff] }
 0x5e5   :  { %14639 = vmatprep.subr.bf16.mxu1 %v17683_v59  ;;  %v8370_v59 = vld [vmem:[#allocation9 + $0xa68] sm:$0xff]  ;;  %v17729_v62 = vcombine.high %v8365_v55, %v8369_v57  ;;  %v17728_v6 = vcombine.low %v8365_v55, %v8369_v57  ;;  %v1508_v55 = vrot.slane %v19604_v46, %v19470_v37 }
 0x5e6   :  { %v17731_v10 = vcombine.high %v8366_v58, %v8370_v59  ;;  %v17730_v7 = vcombine.low %v8366_v58, %v8370_v59  ;;  %v8406_v57 = vld [vmem:[#allocation9 + $0xb88] sm:$0xff] }
 0x5e7   :  { %14312 = vmatpush1.bf16.msra.mxu0 %v17680_v26  ;;  %v8373_v26 = vld [vmem:[#allocation9 + $0xa80] sm:$0xff]  ;;  %v8410_v58 = vld [vmem:[#allocation9 + $0xba8] sm:$0xff] }
 0x5e8   :  { %14640 = vmatpush1.bf16.msra.mxu1 %v17682_v45  ;;  %14313 = vmatprep.subr.bf16.mxu0 %v17689_v2  ;;  %v8377_v45 = vld [vmem:[#allocation9 + $0xaa0] sm:$0xff]  ;;  %v8374_v2 = vld [vmem:[#allocation9 + $0xa88] sm:$0xff] }
 0x5e9   :  { %14641 = vmatprep.subr.bf16.mxu1 %v17691_v4  ;;  %v8378_v4 = vld [vmem:[#allocation9 + $0xaa8] sm:$0xff]  ;;  %v17737_v8 = vcombine.high %v8373_v26, %v8377_v45  ;;  %v17736_v1 = vcombine.low %v8373_v26, %v8377_v45  ;;  %v8413_v26 = vld [vmem:[#allocation9 + $0xbc0] sm:$0xff] }
 0x5ea   :  { %v17739_v14 = vcombine.high %v8374_v2, %v8378_v4  ;;  %v17738_v19 = vcombine.low %v8374_v2, %v8378_v4  ;;  %v8417_v45 = vld [vmem:[#allocation9 + $0xbe0] sm:$0xff]  ;;  %v18622_v2 = vadd.f32 %v19539_v3, %v1508_v55  ;;  %v8414_v4 = vld [vmem:[#allocation9 + $0xbc8] sm:$0xff] }
 0x5eb   :  { %14314 = vmatpush1.bf16.msra.mxu0 %v17688_v15  ;;  %v8381_v15 = vld [vmem:[#allocation9 + $0xac0] sm:$0xff] }
 0x5ec   :  { %14642 = vmatpush1.bf16.msra.mxu1 %v17690_v17  ;;  %14315 = vmatprep.subr.bf16.mxu0 %v17697_v49  ;;  %v8385_v17 = vld [vmem:[#allocation9 + $0xae0] sm:$0xff]  ;;  %v8382_v49 = vld [vmem:[#allocation9 + $0xac8] sm:$0xff] }
 0x5ed   :  { %14643 = vmatprep.subr.bf16.mxu1 %v17699_v51  ;;  %v8386_v51 = vld [vmem:[#allocation9 + $0xae8] sm:$0xff]  ;;  %v17745_v20 = vcombine.high %v8381_v15, %v8385_v17  ;;  %v17744_v33 = vcombine.low %v8381_v15, %v8385_v17  ;;  %v17777_v15 = vcombine.high %v8413_v26, %v8417_v45  ;;  %v8421_v17 = vld [vmem:[#allocation9 + $0xc00] sm:$0xff] }
 0x5ee   :  { %v17747_v21 = vcombine.high %v8382_v49, %v8386_v51  ;;  %v17746_v35 = vcombine.low %v8382_v49, %v8386_v51  ;;  %v8425_v49 = vld [vmem:[#allocation9 + $0xc20] sm:$0xff]  ;;  %v7996_v51 = vmax.f32 %v18622_v2, 0.0 }
 0x5ef   :  { %14316 = vmatpush1.bf16.msra.mxu0 %v17696_v24  ;;  %v8389_v24 = vld [vmem:[#allocation9 + $0xb00] sm:$0xff] }
 0x5f0   :  { %14644 = vmatpush1.bf16.msra.mxu1 %v17698_v16  ;;  %14317 = vmatprep.subr.bf16.mxu0 %v17705_v23  ;;  %v8393_v16 = vld [vmem:[#allocation9 + $0xb20] sm:$0xff]  ;;  %v8390_v23 = vld [vmem:[#allocation9 + $0xb08] sm:$0xff] }
 0x5f1   :  { %14645 = vmatprep.subr.bf16.mxu1 %v17707_v32  ;;  %v8394_v32 = vld [vmem:[#allocation9 + $0xb28] sm:$0xff]  ;;  %v17753_v40 = vcombine.high %v8389_v24, %v8393_v16  ;;  %v17752_v44 = vcombine.low %v8389_v24, %v8393_v16  ;;  %v17785_v24 = vcombine.high %v8421_v17, %v8425_v49  ;;  %v8453_v2 = vld [vmem:[#allocation9 + $0xd00] sm:$0xff] }
 0x5f2   :  { %v17755_v36 = vcombine.high %v8390_v23, %v8394_v32  ;;  %v17754_v47 = vcombine.low %v8390_v23, %v8394_v32  ;;  %v8012_v23 = vmin.f32 %v7996_v51, 6.0  ;;  %v8429_v32 = vld [vmem:[#allocation9 + $0xc40] sm:$0xff]  ;;  %v8462_v51 = vld [vmem:[#allocation9 + $0xd48] sm:$0xff] }
 0x5f3   :  { %14318 = vmatpush1.bf16.msra.mxu0 %v17704_v41  ;;  %v8397_v41 = vld [vmem:[#allocation9 + $0xb40] sm:$0xff] }
 0x5f4   :  { %14646 = vmatpush1.bf16.msra.mxu1 %v17706_v38  ;;  %14319 = vmatprep.subr.bf16.mxu0 %v17713_v43  ;;  %v8401_v38 = vld [vmem:[#allocation9 + $0xb60] sm:$0xff]  ;;  %v8398_v43 = vld [vmem:[#allocation9 + $0xb48] sm:$0xff] }
 0x5f5   :  { %14647 = vmatprep.subr.bf16.mxu1 %v17715_v52  ;;  %v8402_v52 = vld [vmem:[#allocation9 + $0xb68] sm:$0xff]  ;;  %v17760_v59 = vcombine.low %v8397_v41, %v8401_v38 }
 0x5f7   :  { %14320 = vmatpush1.bf16.msra.mxu0 %v17712_v54  ;;  %v17761_v54 = vcombine.high %v8397_v41, %v8401_v38 }
 0x5f8   :  { %14648 = vmatpush1.bf16.msra.mxu1 %v17714_v48  ;;  %14321 = vmatprep.subr.bf16.mxu0 %v17721_v53  ;;  %v17763_v48 = vcombine.high %v8398_v43, %v8402_v52  ;;  %v8405_v53 = vld [vmem:[#allocation9 + $0xb80] sm:$0xff] }
 0x5f9   :  { %14649 = vmatprep.subr.bf16.mxu1 %v17723_v11  ;;  %v8409_v11 = vld [vmem:[#allocation9 + $0xba0] sm:$0xff] }
 0x5fb   :  { %14322 = vmatpush1.bf16.msra.mxu0 %v17720_v61  ;;  %v18619_v61 = vadd.f32 %v19533_v60, %v1496_v50  ;;  %v19614_v50 = vpack.c.bf16 %v8012_v23, %v8012_v23  ;;  %v8470_v23 = vld [vmem:[#allocation9 + $0xd88] sm:$0xff] }
 0x5fc   :  { %14650 = vmatpush1.bf16.msra.mxu1 %v17722_v12  ;;  %14323 = vmatprep.subr.bf16.mxu0 %v17729_v62  ;;  %v17762_v12 = vcombine.low %v8398_v43, %v8402_v52  ;;  %v17769_v62 = vcombine.high %v8405_v53, %v8409_v11  ;;  %v8437_v52 = vld [vmem:[#allocation9 + $0xc80] sm:$0xff] }
 0x5fd   :  { %14651 = vmatprep.subr.bf16.mxu1 %v17731_v10  ;;  %v17771_v10 = vcombine.high %v8406_v57, %v8410_v58 }
 0x5ff   :  { %14324 = vmatpush1.bf16.msra.mxu0 %v17728_v6  ;;  %v8418_v6 = vld [vmem:[#allocation9 + $0xbe8] sm:$0xff] }
 0x600   :  { %14652 = vmatpush1.bf16.msra.mxu1 %v17730_v7  ;;  %14325 = vmatprep.subr.bf16.mxu0 %v17737_v8  ;;  %v17768_v7 = vcombine.low %v8405_v53, %v8409_v11  ;;  %v7993_v8 = vmax.f32 %v18619_v61, 0.0  ;;  %v17779_v60 = vcombine.high %v8414_v4, %v8418_v6  ;;  %v17778_v3 = vcombine.low %v8414_v4, %v8418_v6  ;;  %v8446_v61 = vld [vmem:[#allocation9 + $0xcc8] sm:$0xff]  ;;  %v8457_v4 = vld [vmem:[#allocation9 + $0xd20] sm:$0xff] }
 0x601   :  { %14653 = vmatprep.subr.bf16.mxu1 %v17739_v14  ;;  %v17770_v14 = vcombine.low %v8406_v57, %v8410_v58  ;;  %v8445_v58 = vld [vmem:[#allocation9 + $0xcc0] sm:$0xff]  ;;  %v8454_v6 = vld [vmem:[#allocation9 + $0xd08] sm:$0xff] }
 0x603   :  { %14326 = vmatpush1.bf16.msra.mxu0 %v17736_v1  ;;  %v8422_v1 = vld [vmem:[#allocation9 + $0xc08] sm:$0xff] }
 0x604   :  { %14654 = vmatpush1.bf16.msra.mxu1 %v17738_v19  ;;  %14327 = vmatprep.subr.bf16.mxu0 %v17745_v20  ;;  %v8426_v19 = vld [vmem:[#allocation9 + $0xc28] sm:$0xff]  ;;  %v17776_v20 = vcombine.low %v8413_v26, %v8417_v45 }
 0x605   :  { %14655 = vmatprep.subr.bf16.mxu1 %v17747_v21  ;;  %v8009_v21 = vmin.f32 %v7993_v8, 6.0  ;;  %v17787_v16 = vcombine.high %v8422_v1, %v8426_v19  ;;  %v17786_v38 = vcombine.low %v8422_v1, %v8426_v19  ;;  %v8466_v1 = vld [vmem:[#allocation9 + $0xd68] sm:$0xff]  ;;  %v17816_v19 = vcombine.low %v8453_v2, %v8457_v4 }
 0x607   :  { %14328 = vmatpush1.bf16.msra.mxu0 %v17744_v33  ;;  %v8433_v33 = vld [vmem:[#allocation9 + $0xc60] sm:$0xff]  ;;  %v19612_v41 = vpack.c.bf16 %v8009_v21, %v8009_v21 }
 0x608   :  { %14656 = vmatpush1.bf16.msra.mxu1 %v17746_v35  ;;  %14329 = vmatprep.subr.bf16.mxu0 %v17753_v40  ;;  %v17784_v35 = vcombine.low %v8421_v17, %v8425_v49  ;;  %v8430_v40 = vld [vmem:[#allocation9 + $0xc48] sm:$0xff]  ;;  %v17793_v43 = vcombine.high %v8429_v32, %v8433_v33  ;;  %v17792_v53 = vcombine.low %v8429_v32, %v8433_v33  ;;  %v8461_v17 = vld [vmem:[#allocation9 + $0xd40] sm:$0xff] }
 0x609   :  { %14657 = vmatprep.subr.bf16.mxu1 %v17755_v36  ;;  %v8434_v36 = vld [vmem:[#allocation9 + $0xc68] sm:$0xff]  ;;  %v8465_v49 = vld [vmem:[#allocation9 + $0xd60] sm:$0xff] }
 0x60a   :  { %v17794_v11 = vcombine.low %v8430_v40, %v8434_v36  ;;  %v17825_v21 = vcombine.high %v8461_v17, %v8465_v49  ;;  %v8474_v32 = vld [vmem:[#allocation9 + $0xda8] sm:$0xff]  ;;  %v17824_v33 = vcombine.low %v8461_v17, %v8465_v49 }
 0x60b   :  { %14330 = vmatpush1.bf16.msra.mxu0 %v17752_v44  ;;  %v8441_v44 = vld [vmem:[#allocation9 + $0xca0] sm:$0xff]  ;;  %v8498_v17 = vld [vmem:[#allocation9 + $0xe68] sm:$0xff] }
 0x60c   :  { %14658 = vmatpush1.bf16.msra.mxu1 %v17754_v47  ;;  %14331 = vmatprep.subr.bf16.mxu0 %v17761_v54  ;;  %v17795_v47 = vcombine.high %v8430_v40, %v8434_v36  ;;  %v8438_v54 = vld [vmem:[#allocation9 + $0xc88] sm:$0xff]  ;;  %v17801_v55 = vcombine.high %v8437_v52, %v8441_v44 }
 0x60d   :  { %14659 = vmatprep.subr.bf16.mxu1 %v17763_v48  ;;  %v8442_v48 = vld [vmem:[#allocation9 + $0xca8] sm:$0xff] }
 0x60e   :  { %v17803_v57 = vcombine.high %v8438_v54, %v8442_v48 }
 0x60f   :  { %14332 = vmatpush1.bf16.msra.mxu0 %v17760_v59  ;;  %v8449_v59 = vld [vmem:[#allocation9 + $0xce0] sm:$0xff] }
 0x610   :  { %14660 = vmatpush1.bf16.msra.mxu1 %v17762_v12  ;;  %14333 = vmatprep.subr.bf16.mxu0 %v17769_v62  ;;  %v8450_v12 = vld [vmem:[#allocation9 + $0xce8] sm:$0xff]  ;;  %v17800_v62 = vcombine.low %v8437_v52, %v8441_v44  ;;  %v17809_v26 = vcombine.high %v8445_v58, %v8449_v59  ;;  %v17808_v8 = vcombine.low %v8445_v58, %v8449_v59  ;;  %v8481_v52 = vld [vmem:[#allocation9 + $0xde0] sm:$0xff] }
 0x611   :  { %14661 = vmatprep.subr.bf16.mxu1 %v17771_v10  ;;  %v17802_v10 = vcombine.low %v8438_v54, %v8442_v48  ;;  %v17811_v45 = vcombine.high %v8446_v61, %v8450_v12  ;;  %v8478_v54 = vld [vmem:[#allocation9 + $0xdc8] sm:$0xff]  ;;  %v17834_v59 = vcombine.low %v8470_v23, %v8474_v32 }
 0x612   :  { %v8482_v48 = vld [vmem:[#allocation9 + $0xde8] sm:$0xff] }
 0x613   :  { %14334 = vmatpush1.bf16.msra.mxu0 %v17768_v7  ;;  %v8458_v7 = vld [vmem:[#allocation9 + $0xd28] sm:$0xff] }
 0x614   :  { %14662 = vmatpush1.bf16.msra.mxu1 %v17770_v14  ;;  %14335 = vmatprep.subr.bf16.mxu0 %v17777_v15  ;;  %v17810_v14 = vcombine.low %v8446_v61, %v8450_v12  ;;  %v17817_v15 = vcombine.high %v8453_v2, %v8457_v4  ;;  %v8490_v2 = vld [vmem:[#allocation9 + $0xe28] sm:$0xff] }
 0x615   :  { %14663 = vmatprep.subr.bf16.mxu1 %v17779_v60  ;;  %v17819_v60 = vcombine.high %v8454_v6, %v8458_v7 }
 0x617   :  { %14336 = vmatpush1.bf16.msra.mxu0 %v17776_v20  ;;  %v17818_v20 = vcombine.low %v8454_v6, %v8458_v7  ;;  %v17842_v6 = vcombine.low %v8478_v54, %v8482_v48 }
 0x618   :  { %14664 = vmatpush1.bf16.msra.mxu1 %v17778_v3  ;;  %14346 = vmatprep.subr.bf16.mxu0 %v17785_v24  ;;  %v17827_v3 = vcombine.high %v8462_v51, %v8466_v1  ;;  %v8469_v24 = vld [vmem:[#allocation9 + $0xd80] sm:$0xff] }
 0x619   :  { %14674 = vmatprep.subr.bf16.mxu1 %v17787_v16  ;;  %v8473_v16 = vld [vmem:[#allocation9 + $0xda0] sm:$0xff] }
 0x61a   :  { %14338 = vmatmul.mubr.bf16.vlgmr.msra.gmra.mrb[16].mxu0 %v19612_v41  ;;  %v17833_v40 = vcombine.high %v8469_v24, %v8473_v16 }
 0x61b   :  { %14666 = vmatmul.mubr.bf16.vlgmr.msra.gmra.mrb[32].mxu1 %v19612_v41  ;;  %14347 = vmatpush1.bf16.msra.mxu0 %v17784_v35  ;;  %v17826_v35 = vcombine.low %v8462_v51, %v8466_v1 }
 0x61c   :  { %14378 = vmatprep.mubr.bf16.mxu0 %v19614_v50  ;;  %14675 = vmatpush1.bf16.msra.mxu1 %v17786_v38  ;;  %v17835_v38 = vcombine.high %v8470_v23, %v8474_v32 }
 0x61d   :  { %14706 = vmatprep.mubr.bf16.mxu1 %v19614_v50  ;;  %14348 = vmatprep.subr.bf16.mxu0 %v17793_v43  ;;  %v8477_v43 = vld [vmem:[#allocation9 + $0xdc0] sm:$0xff] }
 0x61e   :  { %14676 = vmatprep.subr.bf16.mxu1 %v17795_v47  ;;  %v17841_v61 = vcombine.high %v8477_v43, %v8481_v52  ;;  %v17840_v4 = vcombine.low %v8477_v43, %v8481_v52  ;;  %v8514_v43 = vld [vmem:[#allocation9 + $0xee8] sm:$0xff] }
 0x61f   :  { %14349 = vmatpush1.bf16.msra.mxu0 %v17792_v53 }
 0x620   :  { %14677 = vmatpush1.bf16.msra.mxu1 %v17794_v11  ;;  %14350 = vmatprep.subr.bf16.mxu0 %v17801_v55  ;;  %v17832_v55 = vcombine.low %v8469_v24, %v8473_v16  ;;  %v8506_v24 = vld [vmem:[#allocation9 + $0xea8] sm:$0xff] }
 0x621   :  { %14678 = vmatprep.subr.bf16.mxu1 %v17803_v57 }
 0x623   :  { %14351 = vmatpush1.bf16.msra.mxu0 %v17800_v62  ;;  %v17843_v62 = vcombine.high %v8478_v54, %v8482_v48 }
 0x624   :  { %14679 = vmatpush1.bf16.msra.mxu1 %v17802_v10  ;;  %14352 = vmatprep.subr.bf16.mxu0 %v17809_v26  ;;  %v8485_v10 = vld [vmem:[#allocation9 + $0xe00] sm:$0xff] }
 0x625   :  { %14680 = vmatprep.subr.bf16.mxu1 %v17811_v45  ;;  %v8489_v26 = vld [vmem:[#allocation9 + $0xe20] sm:$0xff]  ;;  %v8486_v45 = vld [vmem:[#allocation9 + $0xe08] sm:$0xff] }
 0x626   :  { %v17849_v7 = vcombine.high %v8485_v10, %v8489_v26  ;;  %v17848_v49 = vcombine.low %v8485_v10, %v8489_v26  ;;  %v17850_v51 = vcombine.low %v8486_v45, %v8490_v2  ;;  %v8525_v26 = vld [vmem:[#allocation9 + $0xf40] sm:$0xff] }
 0x627   :  { %14353 = vmatpush1.bf16.msra.mxu0 %v17808_v8  ;;  %v17851_v8 = vcombine.high %v8486_v45, %v8490_v2  ;;  %v8529_v45 = vld [vmem:[#allocation9 + $0xf60] sm:$0xff]  ;;  %v8526_v2 = vld [vmem:[#allocation9 + $0xf48] sm:$0xff] }
 0x628   :  { %14681 = vmatpush1.bf16.msra.mxu1 %v17810_v14  ;;  %14354 = vmatprep.subr.bf16.mxu0 %v17817_v15  ;;  %v8493_v14 = vld [vmem:[#allocation9 + $0xe40] sm:$0xff] }
 0x629   :  { %14682 = vmatprep.subr.bf16.mxu1 %v17819_v60  ;;  %v8497_v15 = vld [vmem:[#allocation9 + $0xe60] sm:$0xff]  ;;  %v8494_v60 = vld [vmem:[#allocation9 + $0xe48] sm:$0xff] }
 0x62a   :  { %v17857_v1 = vcombine.high %v8493_v14, %v8497_v15  ;;  %v17856_v16 = vcombine.low %v8493_v14, %v8497_v15  ;;  %v17858_v23 = vcombine.low %v8494_v60, %v8498_v17  ;;  %v17889_v15 = vcombine.high %v8525_v26, %v8529_v45 }
 0x62b   :  { %14355 = vmatpush1.bf16.msra.mxu0 %v17816_v19  ;;  %v17859_v19 = vcombine.high %v8494_v60, %v8498_v17  ;;  %v8533_v17 = vld [vmem:[#allocation9 + $0xf80] sm:$0xff] }
 0x62c   :  { %14683 = vmatpush1.bf16.msra.mxu1 %v17818_v20  ;;  %14356 = vmatprep.subr.bf16.mxu0 %v17825_v21  ;;  %v8501_v20 = vld [vmem:[#allocation9 + $0xe80] sm:$0xff] }
 0x62d   :  { %v19620_v36 = vpop.f32.mrb[12].mxu0  ;;  %14684 = vmatprep.subr.bf16.mxu1 %v17827_v3  ;;  %v8505_v21 = vld [vmem:[#allocation9 + $0xea0] sm:$0xff]  ;;  %v8502_v3 = vld [vmem:[#allocation9 + $0xe88] sm:$0xff] }
 0x62e   :  { %v19622_v44 = vpop.f32.mrb[28].mxu1  ;;  %v19624_v47 = vpop.f32.mrb[13].mxu0  ;;  %v17865_v32 = vcombine.high %v8501_v20, %v8505_v21  ;;  %v17864_v52 = vcombine.low %v8501_v20, %v8505_v21  ;;  %v17866_v54 = vcombine.low %v8502_v3, %v8506_v24  ;;  %v17888_v20 = vcombine.low %v8525_v26, %v8529_v45  ;;  %v8561_v26 = vld [vmem:[#allocation9 + $0x1060] sm:$0xff] }
 0x62f   :  { %v19626_v53 = vpop.f32.mrb[29].mxu1  ;;  %v7822_v11 = vpop.f32.mrb[14].mxu0  ;;  %14357 = vmatpush1.bf16.msra.mxu0 %v17824_v33  ;;  %v17867_v33 = vcombine.high %v8502_v3, %v8506_v24 }
 0x630   :  { %v7986_v57 = vpop.f32.mrb[30].mxu1  ;;  %14685 = vmatpush1.bf16.msra.mxu1 %v17826_v35  ;;  %v7823_v58 = vpop.f32.mrb[15].mxu0  ;;  %14358 = vmatprep.subr.bf16.mxu0 %v17833_v40  ;;  %v8509_v35 = vld [vmem:[#allocation9 + $0xec0] sm:$0xff] }
 0x631   :  { %v7987_v12 = vpop.f32.mrb[31].mxu1  ;;  %14686 = vmatprep.subr.bf16.mxu1 %v17835_v38  ;;  %v8513_v40 = vld [vmem:[#allocation9 + $0xee0] sm:$0xff]  ;;  %v8510_v38 = vld [vmem:[#allocation9 + $0xec8] sm:$0xff] }
 0x632   :  { %v17873_v48 = vcombine.high %v8509_v35, %v8513_v40  ;;  %v17875_v11 = vcombine.high %v8510_v38, %v8514_v43  ;;  %v8521_v57 = vld [vmem:[#allocation9 + $0xf20] sm:$0xff]  ;;  %v8518_v58 = vld [vmem:[#allocation9 + $0xf08] sm:$0xff]  ;;  %v17874_v12 = vcombine.low %v8510_v38, %v8514_v43 }
 0x633   :  { %14359 = vmatpush1.bf16.msra.mxu0 %v17832_v55  ;;  %v8517_v55 = vld [vmem:[#allocation9 + $0xf00] sm:$0xff] }
 0x634   :  { %14687 = vmatpush1.bf16.msra.mxu1 %v17834_v59  ;;  %14360 = vmatprep.subr.bf16.mxu0 %v17841_v61  ;;  %v8522_v59 = vld [vmem:[#allocation9 + $0xf28] sm:$0xff]  ;;  %v17872_v61 = vcombine.low %v8509_v35, %v8513_v40 }
 0x635   :  { %14688 = vmatprep.subr.bf16.mxu1 %v17843_v62  ;;  %v17881_v62 = vcombine.high %v8517_v55, %v8521_v57  ;;  %v17883_v10 = vcombine.high %v8518_v58, %v8522_v59  ;;  %v17882_v14 = vcombine.low %v8518_v58, %v8522_v59  ;;  %v8546_v35 = vld [vmem:[#allocation9 + $0xfe8] sm:$0xff] }
 0x637   :  { %14361 = vmatpush1.bf16.msra.mxu0 %v17840_v4  ;;  %v8530_v4 = vld [vmem:[#allocation9 + $0xf68] sm:$0xff] }
 0x638   :  { %14689 = vmatpush1.bf16.msra.mxu1 %v17842_v6  ;;  %14362 = vmatprep.subr.bf16.mxu0 %v17849_v7  ;;  %v19628_v6 = vld [vmem:[#allocation7 + $0x8] sm:$0xff]  ;;  %v17880_v7 = vcombine.low %v8517_v55, %v8521_v57  ;;  %v17891_v60 = vcombine.high %v8526_v2, %v8530_v4  ;;  %v8550_v55 = vld [vmem:[#allocation9 + $0x1008] sm:$0xff] }
 0x639   :  { %14690 = vmatprep.subr.bf16.mxu1 %v17851_v8  ;;  %v1504_v8 = vrot.slane %v19604_v46, %v19487_v18  ;;  %v17890_v46 = vcombine.low %v8526_v2, %v8530_v4  ;;  %v8554_v57 = vld [vmem:[#allocation9 + $0x1028] sm:$0xff] }
 0x63a   :  { %v8558_v2 = vld [vmem:[#allocation9 + $0x1048] sm:$0xff] }
 0x63b   :  { %14363 = vmatpush1.bf16.msra.mxu0 %v17848_v49  ;;  %v8537_v49 = vld [vmem:[#allocation9 + $0xfa0] sm:$0xff]  ;;  %v18621_v21 = vadd.f32 %v19535_v0, %v1504_v8  ;;  %v8562_v4 = vld [vmem:[#allocation9 + $0x1068] sm:$0xff]  ;;  %v17914_v8 = vcombine.low %v8550_v55, %v8554_v57 }
 0x63c   :  { %14691 = vmatpush1.bf16.msra.mxu1 %v17850_v51  ;;  %14364 = vmatprep.subr.bf16.mxu0 %v17857_v1  ;;  %v1516_v51 = vrot.slane %v19628_v6, %v19413_v31  ;;  %v8534_v1 = vld [vmem:[#allocation9 + $0xf88] sm:$0xff]  ;;  %v17897_v3 = vcombine.high %v8533_v17, %v8537_v49  ;;  %v17896_v40 = vcombine.low %v8533_v17, %v8537_v49 }
 0x63d   :  { %14692 = vmatprep.subr.bf16.mxu1 %v17859_v19  ;;  %v8538_v19 = vld [vmem:[#allocation9 + $0xfa8] sm:$0xff]  ;;  %v7995_v38 = vmax.f32 %v18621_v21, 0.0  ;;  %v17923_v49 = vcombine.high %v8558_v2, %v8562_v4 }
 0x63e   :  { %v17899_v24 = vcombine.high %v8534_v1, %v8538_v19  ;;  %v17898_v43 = vcombine.low %v8534_v1, %v8538_v19  ;;  %v8570_v1 = vld [vmem:[#allocation9 + $0x10a8] sm:$0xff] }
 0x63f   :  { %14365 = vmatpush1.bf16.msra.mxu0 %v17856_v16  ;;  %v8541_v16 = vld [vmem:[#allocation9 + $0xfc0] sm:$0xff]  ;;  %v8011_v59 = vmin.f32 %v7995_v38, 6.0 }
 0x640   :  { %14693 = vmatpush1.bf16.msra.mxu1 %v17858_v23  ;;  %14366 = vmatprep.subr.bf16.mxu0 %v17865_v32  ;;  %v8545_v23 = vld [vmem:[#allocation9 + $0xfe0] sm:$0xff]  ;;  %v18624_v32 = vadd.f32 %v19561_v5, %v1516_v51  ;;  %v8566_v51 = vld [vmem:[#allocation9 + $0x1088] sm:$0xff] }
 0x641   :  { %14694 = vmatprep.subr.bf16.mxu1 %v17867_v33  ;;  %v8542_v33 = vld [vmem:[#allocation9 + $0xfc8] sm:$0xff]  ;;  %v17904_v58 = vcombine.low %v8541_v16, %v8545_v23  ;;  %v8581_v38 = vld [vmem:[#allocation9 + $0x1100] sm:$0xff] }
 0x642   :  { %v17907_v0 = vcombine.high %v8542_v33, %v8546_v35  ;;  %v17906_v5 = vcombine.low %v8542_v33, %v8546_v35  ;;  %v17930_v33 = vcombine.low %v8566_v51, %v8570_v1 }
 0x643   :  { %14367 = vmatpush1.bf16.msra.mxu0 %v17864_v52  ;;  %v17905_v52 = vcombine.high %v8541_v16, %v8545_v23  ;;  %v8574_v16 = vld [vmem:[#allocation9 + $0x10c8] sm:$0xff] }
 0x644   :  { %14695 = vmatpush1.bf16.msra.mxu1 %v17866_v54  ;;  %14368 = vmatprep.subr.bf16.mxu0 %v17873_v48  ;;  %v8549_v54 = vld [vmem:[#allocation9 + $0x1000] sm:$0xff]  ;;  %v8578_v23 = vld [vmem:[#allocation9 + $0x10e8] sm:$0xff] }
 0x645   :  { %14696 = vmatprep.subr.bf16.mxu1 %v17875_v11  ;;  %v8553_v48 = vld [vmem:[#allocation9 + $0x1020] sm:$0xff]  ;;  %v7998_v11 = vmax.f32 %v18624_v32, 0.0 }
 0x646   :  { %v17912_v45 = vcombine.low %v8549_v54, %v8553_v48 }
 0x647   :  { %14369 = vmatpush1.bf16.msra.mxu0 %v17872_v61  ;;  %v17913_v61 = vcombine.high %v8549_v54, %v8553_v48  ;;  %v17938_v48 = vcombine.low %v8574_v16, %v8578_v23 }
 0x648   :  { %14697 = vmatpush1.bf16.msra.mxu1 %v17874_v12  ;;  %14370 = vmatprep.subr.bf16.mxu0 %v17881_v62  ;;  %v17915_v12 = vcombine.high %v8550_v55, %v8554_v57  ;;  %v8014_v62 = vmin.f32 %v7998_v11, 6.0  ;;  %v8589_v57 = vld [vmem:[#allocation9 + $0x1140] sm:$0xff] }
 0x649   :  { %14698 = vmatprep.subr.bf16.mxu1 %v17883_v10  ;;  %v8557_v10 = vld [vmem:[#allocation9 + $0x1040] sm:$0xff] }
 0x64a   :  { %v19638_v17 = vpack.c.bf16 %v8014_v62, %v8014_v62  ;;  %v17920_v19 = vcombine.low %v8557_v10, %v8561_v26 }
 0x64b   :  { %14371 = vmatpush1.bf16.msra.mxu0 %v17880_v7  ;;  %v19636_v7 = vpack.c.bf16 %v8011_v59, %v8011_v59  ;;  %v8590_v59 = vld [vmem:[#allocation9 + $0x1148] sm:$0xff] }
 0x64c   :  { %14699 = vmatpush1.bf16.msra.mxu1 %v17882_v14  ;;  %14372 = vmatprep.subr.bf16.mxu0 %v17889_v15  ;;  %v17921_v14 = vcombine.high %v8557_v10, %v8561_v26  ;;  %v8565_v15 = vld [vmem:[#allocation9 + $0x1080] sm:$0xff] }
 0x64d   :  { %14700 = vmatprep.subr.bf16.mxu1 %v17891_v60  ;;  %v8569_v60 = vld [vmem:[#allocation9 + $0x10a0] sm:$0xff] }
 0x64e   :  { %v17929_v21 = vcombine.high %v8565_v15, %v8569_v60  ;;  %v17928_v32 = vcombine.low %v8565_v15, %v8569_v60  ;;  %v8597_v26 = vld [vmem:[#allocation9 + $0x1180] sm:$0xff] }
 0x64f   :  { %14373 = vmatpush1.bf16.msra.mxu0 %v17888_v20  ;;  %v17922_v20 = vcombine.low %v8558_v2, %v8562_v4  ;;  %v8598_v2 = vld [vmem:[#allocation9 + $0x1188] sm:$0xff] }
 0x650   :  { %14701 = vmatpush1.bf16.msra.mxu1 %v17890_v46  ;;  %14374 = vmatprep.subr.bf16.mxu0 %v17897_v3  ;;  %v17931_v46 = vcombine.high %v8566_v51, %v8570_v1  ;;  %v8573_v3 = vld [vmem:[#allocation9 + $0x10c0] sm:$0xff]  ;;  %v8602_v4 = vld [vmem:[#allocation9 + $0x11a8] sm:$0xff] }
 0x651   :  { %14702 = vmatprep.subr.bf16.mxu1 %v17899_v24  ;;  %v8577_v24 = vld [vmem:[#allocation9 + $0x10e0] sm:$0xff]  ;;  %v17963_v60 = vcombine.high %v8598_v2, %v8602_v4  ;;  %v8606_v1 = vld [vmem:[#allocation9 + $0x11c8] sm:$0xff] }
 0x652   :  { %v17937_v35 = vcombine.high %v8573_v3, %v8577_v24  ;;  %v17936_v54 = vcombine.low %v8573_v3, %v8577_v24  ;;  %v8609_v51 = vld [vmem:[#allocation9 + $0x11e0] sm:$0xff] }
 0x653   :  { %14375 = vmatpush1.bf16.msra.mxu0 %v17896_v40  ;;  %v17939_v40 = vcombine.high %v8574_v16, %v8578_v23  ;;  %v8613_v24 = vld [vmem:[#allocation9 + $0x1200] sm:$0xff]  ;;  %v8614_v23 = vld [vmem:[#allocation9 + $0x1208] sm:$0xff] }
 0x654   :  { %14703 = vmatpush1.bf16.msra.mxu1 %v17898_v43  ;;  %14376 = vmatprep.subr.bf16.mxu0 %v17905_v52  ;;  %v8585_v43 = vld [vmem:[#allocation9 + $0x1120] sm:$0xff]  ;;  %v8582_v52 = vld [vmem:[#allocation9 + $0x1108] sm:$0xff] }
 0x655   :  { %14704 = vmatprep.subr.bf16.mxu1 %v17907_v0  ;;  %v8586_v0 = vld [vmem:[#allocation9 + $0x1128] sm:$0xff]  ;;  %v17945_v11 = vcombine.high %v8581_v38, %v8585_v43  ;;  %v8617_v16 = vld [vmem:[#allocation9 + $0x1220] sm:$0xff] }
 0x656   :  { %v17947_v55 = vcombine.high %v8582_v52, %v8586_v0 }
 0x657   :  { %14377 = vmatpush1.bf16.msra.mxu0 %v17904_v58  ;;  %v8593_v58 = vld [vmem:[#allocation9 + $0x1160] sm:$0xff] }
 0x658   :  { %14705 = vmatpush1.bf16.msra.mxu1 %v17906_v5  ;;  %14387 = vmatprep.subr.bf16.mxu0 %v17913_v61  ;;  %v8594_v5 = vld [vmem:[#allocation9 + $0x1168] sm:$0xff]  ;;  %v17944_v61 = vcombine.low %v8581_v38, %v8585_v43  ;;  %v17953_v62 = vcombine.high %v8589_v57, %v8593_v58  ;;  %v8621_v43 = vld [vmem:[#allocation9 + $0x1240] sm:$0xff] }
 0x659   :  { %14715 = vmatprep.subr.bf16.mxu1 %v17915_v12  ;;  %v17946_v12 = vcombine.low %v8582_v52, %v8586_v0  ;;  %v17955_v10 = vcombine.high %v8590_v59, %v8594_v5  ;;  %v8625_v52 = vld [vmem:[#allocation9 + $0x1260] sm:$0xff]  ;;  %v8622_v0 = vld [vmem:[#allocation9 + $0x1248] sm:$0xff] }
 0x65a   :  { %14379 = vmatmul.mubr.bf16.vlgmr.msra.gmra.mrb[16].mxu0 %v19636_v7 }
 0x65b   :  { %14707 = vmatmul.mubr.bf16.vlgmr.msra.gmra.mrb[32].mxu1 %v19636_v7  ;;  %14388 = vmatpush1.bf16.msra.mxu0 %v17912_v45  ;;  %v8601_v45 = vld [vmem:[#allocation9 + $0x11a0] sm:$0xff] }
 0x65c   :  { %14419 = vmatprep.mubr.bf16.mxu0 %v19638_v17  ;;  %14716 = vmatpush1.bf16.msra.mxu1 %v17914_v8  ;;  %v17952_v8 = vcombine.low %v8589_v57, %v8593_v58  ;;  %v17961_v15 = vcombine.high %v8597_v26, %v8601_v45  ;;  %v8629_v58 = vld [vmem:[#allocation9 + $0x1280] sm:$0xff] }
 0x65d   :  { %14747 = vmatprep.mubr.bf16.mxu1 %v19638_v17  ;;  %14389 = vmatprep.subr.bf16.mxu0 %v17921_v14  ;;  %v17954_v14 = vcombine.low %v8590_v59, %v8594_v5  ;;  %v8633_v59 = vld [vmem:[#allocation9 + $0x12a0] sm:$0xff]  ;;  %v8630_v5 = vld [vmem:[#allocation9 + $0x1288] sm:$0xff] }
 0x65e   :  { %14717 = vmatprep.subr.bf16.mxu1 %v17923_v49  ;;  %v8605_v49 = vld [vmem:[#allocation9 + $0x11c0] sm:$0xff] }
 0x65f   :  { %14390 = vmatpush1.bf16.msra.mxu0 %v17920_v19  ;;  %v8610_v19 = vld [vmem:[#allocation9 + $0x11e8] sm:$0xff] }
 0x660   :  { %14718 = vmatpush1.bf16.msra.mxu1 %v17922_v20  ;;  %14391 = vmatprep.subr.bf16.mxu0 %v17929_v21  ;;  %v17960_v20 = vcombine.low %v8597_v26, %v8601_v45  ;;  %v17962_v21 = vcombine.low %v8598_v2, %v8602_v4  ;;  %v17971_v3 = vcombine.high %v8606_v1, %v8610_v19  ;;  %v8637_v45 = vld [vmem:[#allocation9 + $0x12c0] sm:$0xff]  ;;  %v8638_v4 = vld [vmem:[#allocation9 + $0x12c8] sm:$0xff] }
 0x661   :  { %14719 = vmatprep.subr.bf16.mxu1 %v17931_v46  ;;  %v17969_v46 = vcombine.high %v8605_v49, %v8609_v51  ;;  %v8641_v2 = vld [vmem:[#allocation9 + $0x12e0] sm:$0xff] }
 0x663   :  { %14392 = vmatpush1.bf16.msra.mxu0 %v17928_v32  ;;  %v8618_v32 = vld [vmem:[#allocation9 + $0x1228] sm:$0xff] }
 0x664   :  { %14720 = vmatpush1.bf16.msra.mxu1 %v17930_v33  ;;  %14393 = vmatprep.subr.bf16.mxu0 %v17937_v35  ;;  %v17968_v33 = vcombine.low %v8605_v49, %v8609_v51  ;;  %v17970_v35 = vcombine.low %v8606_v1, %v8610_v19  ;;  %v17979_v38 = vcombine.high %v8614_v23, %v8618_v32  ;;  %v8645_v51 = vld [vmem:[#allocation9 + $0x1300] sm:$0xff]  ;;  %v8646_v19 = vld [vmem:[#allocation9 + $0x1308] sm:$0xff] }
 0x665   :  { %14721 = vmatprep.subr.bf16.mxu1 %v17939_v40  ;;  %v17977_v40 = vcombine.high %v8613_v24, %v8617_v16  ;;  %v8649_v1 = vld [vmem:[#allocation9 + $0x1320] sm:$0xff] }
 0x667   :  { %14394 = vmatpush1.bf16.msra.mxu0 %v17936_v54  ;;  %v8626_v54 = vld [vmem:[#allocation9 + $0x1268] sm:$0xff] }
 0x668   :  { %14722 = vmatpush1.bf16.msra.mxu1 %v17938_v48  ;;  %14395 = vmatprep.subr.bf16.mxu0 %v17945_v11  ;;  %v17976_v48 = vcombine.low %v8613_v24, %v8617_v16  ;;  %v17978_v11 = vcombine.low %v8614_v23, %v8618_v32  ;;  %v17987_v57 = vcombine.high %v8622_v0, %v8626_v54  ;;  %v8653_v16 = vld [vmem:[#allocation9 + $0x1340] sm:$0xff]  ;;  %v8654_v32 = vld [vmem:[#allocation9 + $0x1348] sm:$0xff] }
 0x669   :  { %14723 = vmatprep.subr.bf16.mxu1 %v17947_v55  ;;  %v17985_v55 = vcombine.high %v8621_v43, %v8625_v52  ;;  %v8657_v23 = vld [vmem:[#allocation9 + $0x1360] sm:$0xff] }
 0x66b   :  { %14396 = vmatpush1.bf16.msra.mxu0 %v17944_v61  ;;  %v8634_v61 = vld [vmem:[#allocation9 + $0x12a8] sm:$0xff] }
 0x66c   :  { %14724 = vmatpush1.bf16.msra.mxu1 %v17946_v12  ;;  %14397 = vmatprep.subr.bf16.mxu0 %v17953_v62  ;;  %v17984_v12 = vcombine.low %v8621_v43, %v8625_v52  ;;  %v17986_v62 = vcombine.low %v8622_v0, %v8626_v54  ;;  %v17995_v26 = vcombine.high %v8630_v5, %v8634_v61  ;;  %v8661_v0 = vld [vmem:[#allocation9 + $0x1380] sm:$0xff] }
 0x66d   :  { %14725 = vmatprep.subr.bf16.mxu1 %v17955_v10  ;;  %v17993_v10 = vcombine.high %v8629_v58, %v8633_v59  ;;  %v18017_v43 = vcombine.high %v8653_v16, %v8657_v23  ;;  %v8665_v54 = vld [vmem:[#allocation9 + $0x13a0] sm:$0xff] }
 0x66f   :  { %14398 = vmatpush1.bf16.msra.mxu0 %v17952_v8  ;;  %v8642_v8 = vld [vmem:[#allocation9 + $0x12e8] sm:$0xff] }
 0x670   :  { %14726 = vmatpush1.bf16.msra.mxu1 %v17954_v14  ;;  %14399 = vmatprep.subr.bf16.mxu0 %v17961_v15  ;;  %v17992_v14 = vcombine.low %v8629_v58, %v8633_v59  ;;  %v17994_v15 = vcombine.low %v8630_v5, %v8634_v61  ;;  %v18003_v49 = vcombine.high %v8638_v4, %v8642_v8 }
 0x671   :  { %14727 = vmatprep.subr.bf16.mxu1 %v17963_v60  ;;  %v18001_v60 = vcombine.high %v8637_v45, %v8641_v2  ;;  %v18025_v5 = vcombine.high %v8661_v0, %v8665_v54 }
 0x673   :  { %14400 = vmatpush1.bf16.msra.mxu0 %v17960_v20  ;;  %v8650_v20 = vld [vmem:[#allocation9 + $0x1328] sm:$0xff] }
 0x674   :  { %14728 = vmatpush1.bf16.msra.mxu1 %v17962_v21  ;;  %14401 = vmatprep.subr.bf16.mxu0 %v17969_v46  ;;  %v18000_v21 = vcombine.low %v8637_v45, %v8641_v2  ;;  %v18002_v46 = vcombine.low %v8638_v4, %v8642_v8  ;;  %v18011_v24 = vcombine.high %v8646_v19, %v8650_v20  ;;  %v8674_v45 = vld [vmem:[#allocation9 + $0x13e8] sm:$0xff] }
 0x675   :  { %14729 = vmatprep.subr.bf16.mxu1 %v17971_v3  ;;  %v18009_v3 = vcombine.high %v8645_v51, %v8649_v1  ;;  %v18024_v2 = vcombine.low %v8661_v0, %v8665_v54 }
 0x677   :  { %14402 = vmatpush1.bf16.msra.mxu0 %v17968_v33  ;;  %v8658_v33 = vld [vmem:[#allocation9 + $0x1368] sm:$0xff] }
 0x678   :  { %14730 = vmatpush1.bf16.msra.mxu1 %v17970_v35  ;;  %14403 = vmatprep.subr.bf16.mxu0 %v17977_v40  ;;  %v18008_v35 = vcombine.low %v8645_v51, %v8649_v1  ;;  %v1512_v40 = vrot.slane %v19628_v6, %v19408_v29  ;;  %v18019_v52 = vcombine.high %v8654_v32, %v8658_v33  ;;  %v8678_v51 = vld [vmem:[#allocation9 + $0x1408] sm:$0xff] }
 0x679   :  { %14731 = vmatprep.subr.bf16.mxu1 %v17979_v38  ;;  %v18010_v38 = vcombine.low %v8646_v19, %v8650_v20  ;;  %v18018_v59 = vcombine.low %v8654_v32, %v8658_v33  ;;  %v8682_v1 = vld [vmem:[#allocation9 + $0x1428] sm:$0xff] }
 0x67a   :  { %v18623_v58 = vadd.f32 %v19557_v63, %v1512_v40  ;;  %v8686_v32 = vld [vmem:[#allocation9 + $0x1448] sm:$0xff]  ;;  %v18042_v40 = vcombine.low %v8678_v51, %v8682_v1 }
 0x67b   :  { %14404 = vmatpush1.bf16.msra.mxu0 %v17976_v48  ;;  %v1524_v48 = vrot.slane %v19628_v6, %v19420_v39  ;;  %v8690_v33 = vld [vmem:[#allocation9 + $0x1468] sm:$0xff] }
 0x67c   :  { %14732 = vmatpush1.bf16.msra.mxu1 %v17978_v11  ;;  %14405 = vmatprep.subr.bf16.mxu0 %v17985_v55  ;;  %v8662_v11 = vld [vmem:[#allocation9 + $0x1388] sm:$0xff]  ;;  %v7997_v4 = vmax.f32 %v18623_v58, 0.0  ;;  %v18051_v54 = vcombine.high %v8686_v32, %v8690_v33 }
 0x67d   :  { %14733 = vmatprep.subr.bf16.mxu1 %v17987_v57  ;;  %v8666_v55 = vld [vmem:[#allocation9 + $0x13a8] sm:$0xff]  ;;  %v18016_v57 = vcombine.low %v8653_v16, %v8657_v23  ;;  %v8689_v16 = vld [vmem:[#allocation9 + $0x1460] sm:$0xff] }
 0x67e   :  { %v18027_v61 = vcombine.high %v8662_v11, %v8666_v55  ;;  %v18026_v8 = vcombine.low %v8662_v11, %v8666_v55  ;;  %v8013_v20 = vmin.f32 %v7997_v4, 6.0  ;;  %v8698_v11 = vld [vmem:[#allocation9 + $0x14a8] sm:$0xff]  ;;  %v8709_v4 = vld [vmem:[#allocation9 + $0x1500] sm:$0xff] }
 0x67f   :  { %14406 = vmatpush1.bf16.msra.mxu0 %v17984_v12  ;;  %v8669_v12 = vld [vmem:[#allocation9 + $0x13c0] sm:$0xff] }
 0x680   :  { %14734 = vmatpush1.bf16.msra.mxu1 %v17986_v62  ;;  %14407 = vmatprep.subr.bf16.mxu0 %v17993_v10  ;;  %v8673_v62 = vld [vmem:[#allocation9 + $0x13e0] sm:$0xff]  ;;  %v18626_v10 = vadd.f32 %v19563_v9, %v1524_v48  ;;  %v8694_v48 = vld [vmem:[#allocation9 + $0x1488] sm:$0xff] }
 0x681   :  { %14735 = vmatprep.subr.bf16.mxu1 %v17995_v26  ;;  %v8670_v26 = vld [vmem:[#allocation9 + $0x13c8] sm:$0xff]  ;;  %v18032_v19 = vcombine.low %v8669_v12, %v8673_v62 }
 0x682   :  { %v18035_v63 = vcombine.high %v8670_v26, %v8674_v45  ;;  %v18034_v9 = vcombine.low %v8670_v26, %v8674_v45  ;;  %v18058_v26 = vcombine.low %v8694_v48, %v8698_v11 }
 0x683   :  { %14408 = vmatpush1.bf16.msra.mxu0 %v17992_v14  ;;  %v18033_v14 = vcombine.high %v8669_v12, %v8673_v62  ;;  %v8702_v12 = vld [vmem:[#allocation9 + $0x14c8] sm:$0xff] }
 0x684   :  { %14736 = vmatpush1.bf16.msra.mxu1 %v17994_v15  ;;  %14409 = vmatprep.subr.bf16.mxu0 %v18001_v60  ;;  %v8677_v15 = vld [vmem:[#allocation9 + $0x1400] sm:$0xff]  ;;  %v8706_v62 = vld [vmem:[#allocation9 + $0x14e8] sm:$0xff] }
 0x685   :  { %14737 = vmatprep.subr.bf16.mxu1 %v18003_v49  ;;  %v8681_v60 = vld [vmem:[#allocation9 + $0x1420] sm:$0xff]  ;;  %v8000_v49 = vmax.f32 %v18626_v10, 0.0 }
 0x686   :  { %v18040_v23 = vcombine.low %v8677_v15, %v8681_v60 }
 0x687   :  { %14410 = vmatpush1.bf16.msra.mxu0 %v18000_v21  ;;  %v18041_v21 = vcombine.high %v8677_v15, %v8681_v60  ;;  %v18066_v60 = vcombine.low %v8702_v12, %v8706_v62 }
 0x688   :  { %14738 = vmatpush1.bf16.msra.mxu1 %v18002_v46  ;;  %14411 = vmatprep.subr.bf16.mxu0 %v18009_v3  ;;  %v18043_v46 = vcombine.high %v8678_v51, %v8682_v1  ;;  %v8016_v3 = vmin.f32 %v8000_v49, 6.0  ;;  %v8717_v1 = vld [vmem:[#allocation9 + $0x1540] sm:$0xff] }
 0x689   :  { %14739 = vmatprep.subr.bf16.mxu1 %v18011_v24  ;;  %v8685_v24 = vld [vmem:[#allocation9 + $0x1440] sm:$0xff] }
 0x68a   :  { %v19652_v0 = vpack.c.bf16 %v8016_v3, %v8016_v3  ;;  %v18048_v55 = vcombine.low %v8685_v24, %v8689_v16 }
 0x68b   :  { %14412 = vmatpush1.bf16.msra.mxu0 %v18008_v35  ;;  %v19650_v35 = vpack.c.bf16 %v8013_v20, %v8013_v20  ;;  %v8718_v20 = vld [vmem:[#allocation9 + $0x1548] sm:$0xff] }
 0x68c   :  { %14740 = vmatpush1.bf16.msra.mxu1 %v18010_v38  ;;  %14413 = vmatprep.subr.bf16.mxu0 %v18017_v43  ;;  %v18049_v38 = vcombine.high %v8685_v24, %v8689_v16  ;;  %v8693_v43 = vld [vmem:[#allocation9 + $0x1480] sm:$0xff] }
 0x68d   :  { %14741 = vmatprep.subr.bf16.mxu1 %v18019_v52  ;;  %v8697_v52 = vld [vmem:[#allocation9 + $0x14a0] sm:$0xff] }
 0x68e   :  { %v18057_v58 = vcombine.high %v8693_v43, %v8697_v52  ;;  %v18056_v10 = vcombine.low %v8693_v43, %v8697_v52  ;;  %v8725_v16 = vld [vmem:[#allocation9 + $0x1580] sm:$0xff] }
 0x68f   :  { %14414 = vmatpush1.bf16.msra.mxu0 %v18016_v57  ;;  %v18050_v57 = vcombine.low %v8686_v32, %v8690_v33  ;;  %v8726_v32 = vld [vmem:[#allocation9 + $0x1588] sm:$0xff] }
 0x690   :  { %14742 = vmatpush1.bf16.msra.mxu1 %v18018_v59  ;;  %14415 = vmatprep.subr.bf16.mxu0 %v18025_v5  ;;  %v18059_v59 = vcombine.high %v8694_v48, %v8698_v11  ;;  %v8701_v5 = vld [vmem:[#allocation9 + $0x14c0] sm:$0xff]  ;;  %v8730_v33 = vld [vmem:[#allocation9 + $0x15a8] sm:$0xff] }
 0x691   :  { %14743 = vmatprep.subr.bf16.mxu1 %v18027_v61  ;;  %v8705_v61 = vld [vmem:[#allocation9 + $0x14e0] sm:$0xff]  ;;  %v18091_v52 = vcombine.high %v8726_v32, %v8730_v33  ;;  %v8734_v11 = vld [vmem:[#allocation9 + $0x15c8] sm:$0xff] }
 0x692   :  { %v18065_v45 = vcombine.high %v8701_v5, %v8705_v61  ;;  %v18064_v15 = vcombine.low %v8701_v5, %v8705_v61  ;;  %v8737_v48 = vld [vmem:[#allocation9 + $0x15e0] sm:$0xff] }
 0x693   :  { %14416 = vmatpush1.bf16.msra.mxu0 %v18024_v2  ;;  %v18067_v2 = vcombine.high %v8702_v12, %v8706_v62  ;;  %v8741_v61 = vld [vmem:[#allocation9 + $0x1600] sm:$0xff]  ;;  %v8742_v62 = vld [vmem:[#allocation9 + $0x1608] sm:$0xff] }
 0x694   :  { %14744 = vmatpush1.bf16.msra.mxu1 %v18026_v8  ;;  %14417 = vmatprep.subr.bf16.mxu0 %v18033_v14  ;;  %v8713_v8 = vld [vmem:[#allocation9 + $0x1520] sm:$0xff]  ;;  %v8710_v14 = vld [vmem:[#allocation9 + $0x1508] sm:$0xff] }
 0x695   :  { %14745 = vmatprep.subr.bf16.mxu1 %v18035_v63  ;;  %v8714_v63 = vld [vmem:[#allocation9 + $0x1528] sm:$0xff]  ;;  %v18073_v49 = vcombine.high %v8709_v4, %v8713_v8  ;;  %v8745_v12 = vld [vmem:[#allocation9 + $0x1620] sm:$0xff] }
 0x696   :  { %v18075_v51 = vcombine.high %v8710_v14, %v8714_v63 }
 0x697   :  { %14418 = vmatpush1.bf16.msra.mxu0 %v18032_v19  ;;  %v8721_v19 = vld [vmem:[#allocation9 + $0x1560] sm:$0xff] }
 0x698   :  { %14746 = vmatpush1.bf16.msra.mxu1 %v18034_v9  ;;  %14428 = vmatprep.subr.bf16.mxu0 %v18041_v21  ;;  %v8722_v9 = vld [vmem:[#allocation9 + $0x1568] sm:$0xff]  ;;  %v18072_v21 = vcombine.low %v8709_v4, %v8713_v8  ;;  %v18081_v3 = vcombine.high %v8717_v1, %v8721_v19  ;;  %v8749_v8 = vld [vmem:[#allocation9 + $0x1640] sm:$0xff] }
 0x699   :  { %14756 = vmatprep.subr.bf16.mxu1 %v18043_v46  ;;  %v18074_v46 = vcombine.low %v8710_v14, %v8714_v63  ;;  %v18083_v24 = vcombine.high %v8718_v20, %v8722_v9  ;;  %v8753_v14 = vld [vmem:[#allocation9 + $0x1660] sm:$0xff]  ;;  %v8750_v63 = vld [vmem:[#allocation9 + $0x1648] sm:$0xff] }
 0x69a   :  { %14420 = vmatmul.mubr.bf16.vlgmr.msra.gmra.mrb[16].mxu0 %v19650_v35 }
 0x69b   :  { %14748 = vmatmul.mubr.bf16.vlgmr.msra.gmra.mrb[32].mxu1 %v19650_v35  ;;  %14429 = vmatpush1.bf16.msra.mxu0 %v18040_v23  ;;  %v8729_v23 = vld [vmem:[#allocation9 + $0x15a0] sm:$0xff] }
 0x69c   :  { %14460 = vmatprep.mubr.bf16.mxu0 %v19652_v0  ;;  %14757 = vmatpush1.bf16.msra.mxu1 %v18042_v40  ;;  %v18080_v40 = vcombine.low %v8717_v1, %v8721_v19  ;;  %v18089_v43 = vcombine.high %v8725_v16, %v8729_v23  ;;  %v8757_v19 = vld [vmem:[#allocation9 + $0x1680] sm:$0xff] }
 0x69d   :  { %14788 = vmatprep.mubr.bf16.mxu1 %v19652_v0  ;;  %14430 = vmatprep.subr.bf16.mxu0 %v18049_v38  ;;  %v18082_v38 = vcombine.low %v8718_v20, %v8722_v9  ;;  %v8761_v20 = vld [vmem:[#allocation9 + $0x16a0] sm:$0xff]  ;;  %v8758_v9 = vld [vmem:[#allocation9 + $0x1688] sm:$0xff] }
 0x69e   :  { %14758 = vmatprep.subr.bf16.mxu1 %v18051_v54  ;;  %v8733_v54 = vld [vmem:[#allocation9 + $0x15c0] sm:$0xff] }
 0x69f   :  { %14431 = vmatpush1.bf16.msra.mxu0 %v18048_v55  ;;  %v8738_v55 = vld [vmem:[#allocation9 + $0x15e8] sm:$0xff] }
 0x6a0   :  { %14759 = vmatpush1.bf16.msra.mxu1 %v18050_v57  ;;  %14432 = vmatprep.subr.bf16.mxu0 %v18057_v58  ;;  %v18088_v57 = vcombine.low %v8725_v16, %v8729_v23  ;;  %v18090_v58 = vcombine.low %v8726_v32, %v8730_v33  ;;  %v18099_v5 = vcombine.high %v8734_v11, %v8738_v55  ;;  %v8765_v23 = vld [vmem:[#allocation9 + $0x16c0] sm:$0xff]  ;;  %v8766_v33 = vld [vmem:[#allocation9 + $0x16c8] sm:$0xff] }
 0x6a1   :  { %14760 = vmatprep.subr.bf16.mxu1 %v18059_v59  ;;  %v18097_v59 = vcombine.high %v8733_v54, %v8737_v48  ;;  %v8769_v32 = vld [vmem:[#allocation9 + $0x16e0] sm:$0xff] }
 0x6a3   :  { %14433 = vmatpush1.bf16.msra.mxu0 %v18056_v10  ;;  %v8746_v10 = vld [vmem:[#allocation9 + $0x1628] sm:$0xff] }
 0x6a4   :  { %14761 = vmatpush1.bf16.msra.mxu1 %v18058_v26  ;;  %14434 = vmatprep.subr.bf16.mxu0 %v18065_v45  ;;  %v18096_v26 = vcombine.low %v8733_v54, %v8737_v48  ;;  %v18098_v45 = vcombine.low %v8734_v11, %v8738_v55  ;;  %v18107_v4 = vcombine.high %v8742_v62, %v8746_v10  ;;  %v8773_v48 = vld [vmem:[#allocation9 + $0x1700] sm:$0xff]  ;;  %v8774_v55 = vld [vmem:[#allocation9 + $0x1708] sm:$0xff] }
 0x6a5   :  { %14762 = vmatprep.subr.bf16.mxu1 %v18067_v2  ;;  %v18105_v2 = vcombine.high %v8741_v61, %v8745_v12  ;;  %v8777_v11 = vld [vmem:[#allocation9 + $0x1720] sm:$0xff] }
 0x6a7   :  { %14435 = vmatpush1.bf16.msra.mxu0 %v18064_v15  ;;  %v8754_v15 = vld [vmem:[#allocation9 + $0x1668] sm:$0xff] }
 0x6a8   :  { %14763 = vmatpush1.bf16.msra.mxu1 %v18066_v60  ;;  %14436 = vmatprep.subr.bf16.mxu0 %v18073_v49  ;;  %v18104_v60 = vcombine.low %v8741_v61, %v8745_v12  ;;  %v18106_v49 = vcombine.low %v8742_v62, %v8746_v10  ;;  %v18115_v1 = vcombine.high %v8750_v63, %v8754_v15  ;;  %v8781_v12 = vld [vmem:[#allocation9 + $0x1740] sm:$0xff]  ;;  %v8782_v10 = vld [vmem:[#allocation9 + $0x1748] sm:$0xff] }
 0x6a9   :  { %14764 = vmatprep.subr.bf16.mxu1 %v18075_v51  ;;  %v18113_v51 = vcombine.high %v8749_v8, %v8753_v14  ;;  %v8785_v62 = vld [vmem:[#allocation9 + $0x1760] sm:$0xff] }
 0x6ab   :  { %14437 = vmatpush1.bf16.msra.mxu0 %v18072_v21  ;;  %v8762_v21 = vld [vmem:[#allocation9 + $0x16a8] sm:$0xff] }
 0x6ac   :  { %14765 = vmatpush1.bf16.msra.mxu1 %v18074_v46  ;;  %14438 = vmatprep.subr.bf16.mxu0 %v18081_v3  ;;  %v18112_v46 = vcombine.low %v8749_v8, %v8753_v14  ;;  %v18114_v3 = vcombine.low %v8750_v63, %v8754_v15  ;;  %v18123_v16 = vcombine.high %v8758_v9, %v8762_v21  ;;  %v8789_v63 = vld [vmem:[#allocation9 + $0x1780] sm:$0xff] }
 0x6ad   :  { %14766 = vmatprep.subr.bf16.mxu1 %v18083_v24  ;;  %v18121_v24 = vcombine.high %v8757_v19, %v8761_v20  ;;  %v18145_v8 = vcombine.high %v8781_v12, %v8785_v62  ;;  %v8793_v15 = vld [vmem:[#allocation9 + $0x17a0] sm:$0xff] }
 0x6af   :  { %14439 = vmatpush1.bf16.msra.mxu0 %v18080_v40  ;;  %v8770_v40 = vld [vmem:[#allocation9 + $0x16e8] sm:$0xff] }
 0x6b0   :  { %14767 = vmatpush1.bf16.msra.mxu1 %v18082_v38  ;;  %14440 = vmatprep.subr.bf16.mxu0 %v18089_v43  ;;  %v18120_v38 = vcombine.low %v8757_v19, %v8761_v20  ;;  %v18122_v43 = vcombine.low %v8758_v9, %v8762_v21  ;;  %v18131_v54 = vcombine.high %v8766_v33, %v8770_v40 }
 0x6b1   :  { %14768 = vmatprep.subr.bf16.mxu1 %v18091_v52  ;;  %v18129_v52 = vcombine.high %v8765_v23, %v8769_v32  ;;  %v18153_v9 = vcombine.high %v8789_v63, %v8793_v15 }
 0x6b3   :  { %14441 = vmatpush1.bf16.msra.mxu0 %v18088_v57  ;;  %v8778_v57 = vld [vmem:[#allocation9 + $0x1728] sm:$0xff] }
 0x6b4   :  { %14769 = vmatpush1.bf16.msra.mxu1 %v18090_v58  ;;  %14442 = vmatprep.subr.bf16.mxu0 %v18097_v59  ;;  %v18128_v58 = vcombine.low %v8765_v23, %v8769_v32  ;;  %v18130_v59 = vcombine.low %v8766_v33, %v8770_v40  ;;  %v18139_v61 = vcombine.high %v8774_v55, %v8778_v57  ;;  %v8802_v23 = vld [vmem:[#allocation9 + $0x17e8] sm:$0xff] }
 0x6b5   :  { %14770 = vmatprep.subr.bf16.mxu1 %v18099_v5  ;;  %v18137_v5 = vcombine.high %v8773_v48, %v8777_v11 }
 0x6b7   :  { %14443 = vmatpush1.bf16.msra.mxu0 %v18096_v26  ;;  %v8786_v26 = vld [vmem:[#allocation9 + $0x1768] sm:$0xff] }
 0x6b8   :  { %14771 = vmatpush1.bf16.msra.mxu1 %v18098_v45  ;;  %14444 = vmatprep.subr.bf16.mxu0 %v18105_v2  ;;  %v18136_v45 = vcombine.low %v8773_v48, %v8777_v11  ;;  %v1520_v2 = vrot.slane %v19628_v6, %v19447_v42  ;;  %v18147_v14 = vcombine.high %v8782_v10, %v8786_v26  ;;  %v8810_v48 = vld [vmem:[#allocation9 + $0x1828] sm:$0xff] }
 0x6b9   :  { %14772 = vmatprep.subr.bf16.mxu1 %v18107_v4  ;;  %v18138_v4 = vcombine.low %v8774_v55, %v8778_v57  ;;  %v18146_v20 = vcombine.low %v8782_v10, %v8786_v26  ;;  %v8818_v10 = vld [vmem:[#allocation9 + $0x1868] sm:$0xff] }
 0x6ba   :  { %v18625_v19 = vadd.f32 %v19559_v30, %v1520_v2 }
 0x6bb   :  { %14445 = vmatpush1.bf16.msra.mxu0 %v18104_v60  ;;  %v1532_v60 = vrot.slane %v19628_v6, %v19450_v56  ;;  %v18152_v6 = vcombine.low %v8789_v63, %v8793_v15  ;;  %v8822_v15 = vld [vmem:[#allocation9 + $0x1888] sm:$0xff] }
 0x6bc   :  { %14773 = vmatpush1.bf16.msra.mxu1 %v18106_v49  ;;  %14446 = vmatprep.subr.bf16.mxu0 %v18113_v51  ;;  %v8790_v49 = vld [vmem:[#allocation9 + $0x1788] sm:$0xff]  ;;  %v7999_v32 = vmax.f32 %v18625_v19, 0.0 }
 0x6bd   :  { %14774 = vmatprep.subr.bf16.mxu1 %v18115_v1  ;;  %v8794_v51 = vld [vmem:[#allocation9 + $0x17a8] sm:$0xff]  ;;  %v18144_v1 = vcombine.low %v8781_v12, %v8785_v62 }
 0x6be   :  { %v18155_v21 = vcombine.high %v8790_v49, %v8794_v51  ;;  %v18154_v33 = vcombine.low %v8790_v49, %v8794_v51  ;;  %v8015_v55 = vmin.f32 %v7999_v32, 6.0  ;;  %v8814_v62 = vld [vmem:[#allocation9 + $0x1848] sm:$0xff]  ;;  %v8841_v32 = vld [vmem:[#allocation9 + $0x1920] sm:$0xff] }
 0x6bf   :  { %14447 = vmatpush1.bf16.msra.mxu0 %v18112_v46  ;;  %v8797_v46 = vld [vmem:[#allocation9 + $0x17c0] sm:$0xff]  ;;  %v18179_v63 = vcombine.high %v8814_v62, %v8818_v10  ;;  %v18178_v51 = vcombine.low %v8814_v62, %v8818_v10  ;;  %v8858_v62 = vld [vmem:[#allocation9 + $0x19a8] sm:$0xff] }
 0x6c0   :  { %14775 = vmatpush1.bf16.msra.mxu1 %v18114_v3  ;;  %14448 = vmatprep.subr.bf16.mxu0 %v18121_v24  ;;  %v8801_v3 = vld [vmem:[#allocation9 + $0x17e0] sm:$0xff]  ;;  %v18628_v24 = vadd.f32 %v19624_v47, %v1532_v60  ;;  %v19664_v26 = vpack.c.bf16 %v8015_v55, %v8015_v55  ;;  %v8826_v60 = vld [vmem:[#allocation9 + $0x18a8] sm:$0xff] }
 0x6c1   :  { %14776 = vmatprep.subr.bf16.mxu1 %v18123_v16  ;;  %v8798_v16 = vld [vmem:[#allocation9 + $0x17c8] sm:$0xff]  ;;  %v18161_v40 = vcombine.high %v8797_v46, %v8801_v3  ;;  %v18160_v11 = vcombine.low %v8797_v46, %v8801_v3  ;;  %v18187_v19 = vcombine.high %v8822_v15, %v8826_v60 }
 0x6c2   :  { %v18163_v30 = vcombine.high %v8798_v16, %v8802_v23  ;;  %v18162_v47 = vcombine.low %v8798_v16, %v8802_v23  ;;  %v8834_v46 = vld [vmem:[#allocation9 + $0x18e8] sm:$0xff] }
 0x6c3   :  { %14449 = vmatpush1.bf16.msra.mxu0 %v18120_v38  ;;  %v8805_v38 = vld [vmem:[#allocation9 + $0x1800] sm:$0xff]  ;;  %v8850_v55 = vld [vmem:[#allocation9 + $0x1968] sm:$0xff] }
 0x6c4   :  { %14777 = vmatpush1.bf16.msra.mxu1 %v18122_v43  ;;  %14450 = vmatprep.subr.bf16.mxu0 %v18129_v52  ;;  %v8809_v43 = vld [vmem:[#allocation9 + $0x1820] sm:$0xff]  ;;  %v8002_v52 = vmax.f32 %v18628_v24, 0.0  ;;  %v18186_v24 = vcombine.low %v8822_v15, %v8826_v60  ;;  %v8862_v15 = vld [vmem:[#allocation9 + $0x19c8] sm:$0xff] }
 0x6c5   :  { %14778 = vmatprep.subr.bf16.mxu1 %v18131_v54  ;;  %v8806_v54 = vld [vmem:[#allocation9 + $0x1808] sm:$0xff]  ;;  %v18169_v57 = vcombine.high %v8805_v38, %v8809_v43  ;;  %v18168_v12 = vcombine.low %v8805_v38, %v8809_v43 }
 0x6c6   :  { %v8866_v60 = vld [vmem:[#allocation9 + $0x19e8] sm:$0xff] }
 0x6c7   :  { %14451 = vmatpush1.bf16.msra.mxu0 %v18128_v58  ;;  %v18171_v58 = vcombine.high %v8806_v54, %v8810_v48 }
 0x6c8   :  { %14779 = vmatpush1.bf16.msra.mxu1 %v18130_v59  ;;  %14452 = vmatprep.subr.bf16.mxu0 %v18137_v5  ;;  %v8018_v59 = vmin.f32 %v8002_v52, 6.0  ;;  %v8813_v5 = vld [vmem:[#allocation9 + $0x1840] sm:$0xff] }
 0x6c9   :  { %14780 = vmatprep.subr.bf16.mxu1 %v18139_v61  ;;  %v8817_v61 = vld [vmem:[#allocation9 + $0x1860] sm:$0xff] }
 0x6ca   :  { %v18177_v2 = vcombine.high %v8813_v5, %v8817_v61  ;;  %v18176_v49 = vcombine.low %v8813_v5, %v8817_v61  ;;  %v8853_v5 = vld [vmem:[#allocation9 + $0x1980] sm:$0xff] }
 0x6cb   :  { %14453 = vmatpush1.bf16.msra.mxu0 %v18136_v45  ;;  %v18170_v45 = vcombine.low %v8806_v54, %v8810_v48  ;;  %v8845_v54 = vld [vmem:[#allocation9 + $0x1940] sm:$0xff] }
 0x6cc   :  { %14781 = vmatpush1.bf16.msra.mxu1 %v18138_v4  ;;  %14454 = vmatprep.subr.bf16.mxu0 %v18145_v8  ;;  %v8821_v4 = vld [vmem:[#allocation9 + $0x1880] sm:$0xff] }
 0x6cd   :  { %14782 = vmatprep.subr.bf16.mxu1 %v18147_v14  ;;  %v8825_v8 = vld [vmem:[#allocation9 + $0x18a0] sm:$0xff]  ;;  %v19666_v14 = vpack.c.bf16 %v8018_v59, %v8018_v59 }
 0x6ce   :  { %v18184_v3 = vcombine.low %v8821_v4, %v8825_v8  ;;  %v8849_v48 = vld [vmem:[#allocation9 + $0x1960] sm:$0xff] }
 0x6cf   :  { %14455 = vmatpush1.bf16.msra.mxu0 %v18144_v1  ;;  %v18185_v1 = vcombine.high %v8821_v4, %v8825_v8  ;;  %v8857_v61 = vld [vmem:[#allocation9 + $0x19a0] sm:$0xff]  ;;  %v18208_v10 = vcombine.low %v8845_v54, %v8849_v48 }
 0x6d0   :  { %14783 = vmatpush1.bf16.msra.mxu1 %v18146_v20  ;;  %14456 = vmatprep.subr.bf16.mxu0 %v18153_v9  ;;  %v8829_v20 = vld [vmem:[#allocation9 + $0x18c0] sm:$0xff] }
 0x6d1   :  { %14784 = vmatprep.subr.bf16.mxu1 %v18155_v21  ;;  %v8833_v9 = vld [vmem:[#allocation9 + $0x18e0] sm:$0xff]  ;;  %v8830_v21 = vld [vmem:[#allocation9 + $0x18c8] sm:$0xff] }
 0x6d2   :  { %v18193_v16 = vcombine.high %v8829_v20, %v8833_v9  ;;  %v18195_v23 = vcombine.high %v8830_v21, %v8834_v46  ;;  %v18194_v38 = vcombine.low %v8830_v21, %v8834_v46  ;;  %v8861_v8 = vld [vmem:[#allocation9 + $0x19c0] sm:$0xff]  ;;  %v8870_v21 = vld [vmem:[#allocation9 + $0x1a08] sm:$0xff] }
 0x6d3   :  { %14457 = vmatpush1.bf16.msra.mxu0 %v18152_v6  ;;  %v8837_v6 = vld [vmem:[#allocation9 + $0x1900] sm:$0xff]  ;;  %v8874_v46 = vld [vmem:[#allocation9 + $0x1a28] sm:$0xff] }
 0x6d4   :  { %14785 = vmatpush1.bf16.msra.mxu1 %v18154_v33  ;;  %14458 = vmatprep.subr.bf16.mxu0 %v18161_v40  ;;  %v8838_v33 = vld [vmem:[#allocation9 + $0x1908] sm:$0xff]  ;;  %v18201_v43 = vcombine.high %v8837_v6, %v8841_v32 }
 0x6d5   :  { %14786 = vmatprep.subr.bf16.mxu1 %v18163_v30  ;;  %v8842_v40 = vld [vmem:[#allocation9 + $0x1928] sm:$0xff]  ;;  %v18192_v30 = vcombine.low %v8829_v20, %v8833_v9  ;;  %v8869_v20 = vld [vmem:[#allocation9 + $0x1a00] sm:$0xff] }
 0x6d6   :  { %v18203_v52 = vcombine.high %v8838_v33, %v8842_v40  ;;  %v8873_v9 = vld [vmem:[#allocation9 + $0x1a20] sm:$0xff] }
 0x6d7   :  { %14459 = vmatpush1.bf16.msra.mxu0 %v18160_v11  ;;  %v8846_v11 = vld [vmem:[#allocation9 + $0x1948] sm:$0xff] }
 0x6d8   :  { %14787 = vmatpush1.bf16.msra.mxu1 %v18162_v47  ;;  %14469 = vmatprep.subr.bf16.mxu0 %v18169_v57  ;;  %v18200_v47 = vcombine.low %v8837_v6, %v8841_v32  ;;  %v18202_v57 = vcombine.low %v8838_v33, %v8842_v40  ;;  %v18211_v59 = vcombine.high %v8846_v11, %v8850_v55  ;;  %v8877_v6 = vld [vmem:[#allocation9 + $0x1a40] sm:$0xff]  ;;  %v8878_v33 = vld [vmem:[#allocation9 + $0x1a48] sm:$0xff] }
 0x6d9   :  { %14797 = vmatprep.subr.bf16.mxu1 %v18171_v58  ;;  %v18209_v58 = vcombine.high %v8845_v54, %v8849_v48  ;;  %v8881_v32 = vld [vmem:[#allocation9 + $0x1a60] sm:$0xff]  ;;  %v8882_v40 = vld [vmem:[#allocation9 + $0x1a68] sm:$0xff] }
 0x6da   :  { %14461 = vmatmul.mubr.bf16.vlgmr.msra.gmra.mrb[16].mxu0 %v19664_v26  ;;  %v8885_v54 = vld [vmem:[#allocation9 + $0x1a80] sm:$0xff] }
 0x6db   :  { %14789 = vmatmul.mubr.bf16.vlgmr.msra.gmra.mrb[32].mxu1 %v19664_v26  ;;  %14470 = vmatpush1.bf16.msra.mxu0 %v18168_v12  ;;  %v8854_v12 = vld [vmem:[#allocation9 + $0x1988] sm:$0xff]  ;;  %v8889_v48 = vld [vmem:[#allocation9 + $0x1aa0] sm:$0xff] }
 0x6dc   :  { %14501 = vmatprep.mubr.bf16.mxu0 %v19666_v14  ;;  %14798 = vmatpush1.bf16.msra.mxu1 %v18170_v45  ;;  %v18210_v45 = vcombine.low %v8846_v11, %v8850_v55  ;;  %v18219_v4 = vcombine.high %v8854_v12, %v8858_v62  ;;  %v8886_v11 = vld [vmem:[#allocation9 + $0x1a88] sm:$0xff] }
 0x6dd   :  { %14829 = vmatprep.mubr.bf16.mxu1 %v19666_v14  ;;  %14471 = vmatprep.subr.bf16.mxu0 %v18177_v2  ;;  %v18217_v2 = vcombine.high %v8853_v5, %v8857_v61  ;;  %v8890_v55 = vld [vmem:[#allocation9 + $0x1aa8] sm:$0xff] }
 0x6de   :  { %14799 = vmatprep.subr.bf16.mxu1 %v18179_v63  ;;  %v8865_v63 = vld [vmem:[#allocation9 + $0x19e0] sm:$0xff] }
 0x6df   :  { %14472 = vmatpush1.bf16.msra.mxu0 %v18176_v49  ;;  %v18216_v49 = vcombine.low %v8853_v5, %v8857_v61  ;;  %v8893_v5 = vld [vmem:[#allocation9 + $0x1ac0] sm:$0xff] }
 0x6e0   :  { %14800 = vmatpush1.bf16.msra.mxu1 %v18178_v51  ;;  %14473 = vmatprep.subr.bf16.mxu0 %v18185_v1  ;;  %v18218_v51 = vcombine.low %v8854_v12, %v8858_v62  ;;  %v18225_v1 = vcombine.high %v8861_v8, %v8865_v63  ;;  %v8897_v61 = vld [vmem:[#allocation9 + $0x1ae0] sm:$0xff]  ;;  %v8894_v12 = vld [vmem:[#allocation9 + $0x1ac8] sm:$0xff] }
 0x6e1   :  { %14801 = vmatprep.subr.bf16.mxu1 %v18187_v19  ;;  %v18227_v19 = vcombine.high %v8862_v15, %v8866_v60  ;;  %v8898_v62 = vld [vmem:[#allocation9 + $0x1ae8] sm:$0xff] }
 0x6e3   :  { %14474 = vmatpush1.bf16.msra.mxu0 %v18184_v3  ;;  %v18224_v3 = vcombine.low %v8861_v8, %v8865_v63  ;;  %v8901_v8 = vld [vmem:[#allocation9 + $0x1b00] sm:$0xff] }
 0x6e4   :  { %14802 = vmatpush1.bf16.msra.mxu1 %v18186_v24  ;;  %14475 = vmatprep.subr.bf16.mxu0 %v18193_v16  ;;  %v18226_v24 = vcombine.low %v8862_v15, %v8866_v60  ;;  %v18233_v16 = vcombine.high %v8869_v20, %v8873_v9  ;;  %v8905_v63 = vld [vmem:[#allocation9 + $0x1b20] sm:$0xff]  ;;  %v8902_v15 = vld [vmem:[#allocation9 + $0x1b08] sm:$0xff] }
 0x6e5   :  { %14803 = vmatprep.subr.bf16.mxu1 %v18195_v23  ;;  %v18235_v23 = vcombine.high %v8870_v21, %v8874_v46  ;;  %v8906_v60 = vld [vmem:[#allocation9 + $0x1b28] sm:$0xff] }
 0x6e7   :  { %14476 = vmatpush1.bf16.msra.mxu0 %v18192_v30  ;;  %v18232_v30 = vcombine.low %v8869_v20, %v8873_v9  ;;  %v8909_v20 = vld [vmem:[#allocation9 + $0x1b40] sm:$0xff] }
 0x6e8   :  { %14804 = vmatpush1.bf16.msra.mxu1 %v18194_v38  ;;  %14477 = vmatprep.subr.bf16.mxu0 %v18201_v43  ;;  %v18234_v38 = vcombine.low %v8870_v21, %v8874_v46  ;;  %v18241_v43 = vcombine.high %v8877_v6, %v8881_v32  ;;  %v8913_v9 = vld [vmem:[#allocation9 + $0x1b60] sm:$0xff]  ;;  %v8910_v21 = vld [vmem:[#allocation9 + $0x1b48] sm:$0xff] }
 0x6e9   :  { %14805 = vmatprep.subr.bf16.mxu1 %v18203_v52  ;;  %v18243_v52 = vcombine.high %v8878_v33, %v8882_v40  ;;  %v8914_v46 = vld [vmem:[#allocation9 + $0x1b68] sm:$0xff] }
 0x6eb   :  { %14478 = vmatpush1.bf16.msra.mxu0 %v18200_v47  ;;  %v18240_v47 = vcombine.low %v8877_v6, %v8881_v32  ;;  %v18273_v6 = vcombine.high %v8909_v20, %v8913_v9  ;;  %v18275_v32 = vcombine.high %v8910_v21, %v8914_v46 }
 0x6ec   :  { %14806 = vmatpush1.bf16.msra.mxu1 %v18202_v57  ;;  %14479 = vmatprep.subr.bf16.mxu0 %v18209_v58  ;;  %v18242_v57 = vcombine.low %v8878_v33, %v8882_v40  ;;  %v18249_v58 = vcombine.high %v8885_v54, %v8889_v48  ;;  %v8917_v33 = vld [vmem:[#allocation9 + $0x1b80] sm:$0xff] }
 0x6ed   :  { %14807 = vmatprep.subr.bf16.mxu1 %v18211_v59  ;;  %v18251_v59 = vcombine.high %v8886_v11, %v8890_v55  ;;  %v8921_v40 = vld [vmem:[#allocation9 + $0x1ba0] sm:$0xff] }
 0x6ef   :  { %14480 = vmatpush1.bf16.msra.mxu0 %v18208_v10  ;;  %v18248_v10 = vcombine.low %v8885_v54, %v8889_v48  ;;  %v18274_v48 = vcombine.low %v8910_v21, %v8914_v46  ;;  %v8942_v21 = vld [vmem:[#allocation9 + $0x1c48] sm:$0xff] }
 0x6f0   :  { %14808 = vmatpush1.bf16.msra.mxu1 %v18210_v45  ;;  %14481 = vmatprep.subr.bf16.mxu0 %v18217_v2  ;;  %v18250_v45 = vcombine.low %v8886_v11, %v8890_v55  ;;  %v18257_v2 = vcombine.high %v8893_v5, %v8897_v61  ;;  %v18281_v11 = vcombine.high %v8917_v33, %v8921_v40  ;;  %v8946_v46 = vld [vmem:[#allocation9 + $0x1c68] sm:$0xff] }
 0x6f1   :  { %14809 = vmatprep.subr.bf16.mxu1 %v18219_v4  ;;  %v18259_v4 = vcombine.high %v8894_v12, %v8898_v62 }
 0x6f3   :  { %14482 = vmatpush1.bf16.msra.mxu0 %v18216_v49  ;;  %v18256_v49 = vcombine.low %v8893_v5, %v8897_v61  ;;  %v8930_v5 = vld [vmem:[#allocation9 + $0x1be8] sm:$0xff]  ;;  %v18280_v61 = vcombine.low %v8917_v33, %v8921_v40  ;;  %v18307_v40 = vcombine.high %v8942_v21, %v8946_v46 }
 0x6f4   :  { %14810 = vmatpush1.bf16.msra.mxu1 %v18218_v51  ;;  %14483 = vmatprep.subr.bf16.mxu0 %v18225_v1  ;;  %v18258_v51 = vcombine.low %v8894_v12, %v8898_v62  ;;  %v18265_v1 = vcombine.high %v8901_v8, %v8905_v63 }
 0x6f5   :  { %14811 = vmatprep.subr.bf16.mxu1 %v18227_v19  ;;  %v18267_v19 = vcombine.high %v8902_v15, %v8906_v60 }
 0x6f7   :  { %14484 = vmatpush1.bf16.msra.mxu0 %v18224_v3  ;;  %v18264_v3 = vcombine.low %v8901_v8, %v8905_v63  ;;  %v8934_v8 = vld [vmem:[#allocation9 + $0x1c08] sm:$0xff] }
 0x6f8   :  { %14812 = vmatpush1.bf16.msra.mxu1 %v18226_v24  ;;  %14485 = vmatprep.subr.bf16.mxu0 %v18233_v16  ;;  %v19672_v24 = vld [vmem:[#allocation7 + $0x8] sm:$0xff]  ;;  %v8938_v63 = vld [vmem:[#allocation9 + $0x1c28] sm:$0xff] }
 0x6f9   :  { %14813 = vmatprep.subr.bf16.mxu1 %v18235_v23  ;;  %v1528_v16 = vrot.slane %v19672_v24, %v19467_v25  ;;  %v18266_v23 = vcombine.low %v8902_v15, %v8906_v60 }
 0x6fb   :  { %14486 = vmatpush1.bf16.msra.mxu0 %v18232_v30  ;;  %v1540_v30 = vrot.slane %v19672_v24, %v19470_v37  ;;  %v18627_v54 = vadd.f32 %v19620_v36, %v1528_v16  ;;  %v18298_v16 = vcombine.low %v8934_v8, %v8938_v63 }
 0x6fc   :  { %14814 = vmatpush1.bf16.msra.mxu1 %v18234_v38  ;;  %14487 = vmatprep.subr.bf16.mxu0 %v18241_v43  ;;  %v8918_v38 = vld [vmem:[#allocation9 + $0x1b88] sm:$0xff] }
 0x6fd   :  { %14815 = vmatprep.subr.bf16.mxu1 %v18243_v52  ;;  %v8922_v43 = vld [vmem:[#allocation9 + $0x1ba8] sm:$0xff]  ;;  %v18272_v52 = vcombine.low %v8909_v20, %v8913_v9  ;;  %v8001_v12 = vmax.f32 %v18627_v54, 0.0  ;;  %v8945_v20 = vld [vmem:[#allocation9 + $0x1c60] sm:$0xff] }
 0x6fe   :  { %v18283_v55 = vcombine.high %v8918_v38, %v8922_v43  ;;  %v18282_v62 = vcombine.low %v8918_v38, %v8922_v43  ;;  %v8954_v38 = vld [vmem:[#allocation9 + $0x1ca8] sm:$0xff] }
 0x6ff   :  { %14488 = vmatpush1.bf16.msra.mxu0 %v18240_v47  ;;  %v8925_v47 = vld [vmem:[#allocation9 + $0x1bc0] sm:$0xff]  ;;  %v8017_v60 = vmin.f32 %v8001_v12, 6.0 }
 0x700   :  { %14816 = vmatpush1.bf16.msra.mxu1 %v18242_v57  ;;  %14489 = vmatprep.subr.bf16.mxu0 %v18249_v58  ;;  %v8929_v57 = vld [vmem:[#allocation9 + $0x1be0] sm:$0xff]  ;;  %v18630_v58 = vadd.f32 %v19626_v53, %v1540_v30  ;;  %v8950_v30 = vld [vmem:[#allocation9 + $0x1c88] sm:$0xff] }
 0x701   :  { %14817 = vmatprep.subr.bf16.mxu1 %v18251_v59  ;;  %v8926_v59 = vld [vmem:[#allocation9 + $0x1bc8] sm:$0xff]  ;;  %v18288_v15 = vcombine.low %v8925_v47, %v8929_v57  ;;  %v8965_v12 = vld [vmem:[#allocation9 + $0x1d00] sm:$0xff] }
 0x702   :  { %v18291_v36 = vcombine.high %v8926_v59, %v8930_v5  ;;  %v18290_v53 = vcombine.low %v8926_v59, %v8930_v5  ;;  %v18314_v59 = vcombine.low %v8950_v30, %v8954_v38 }
 0x703   :  { %14490 = vmatpush1.bf16.msra.mxu0 %v18248_v10  ;;  %v18289_v10 = vcombine.high %v8925_v47, %v8929_v57  ;;  %v8958_v47 = vld [vmem:[#allocation9 + $0x1cc8] sm:$0xff] }
 0x704   :  { %14818 = vmatpush1.bf16.msra.mxu1 %v18250_v45  ;;  %14491 = vmatprep.subr.bf16.mxu0 %v18257_v2  ;;  %v8933_v45 = vld [vmem:[#allocation9 + $0x1c00] sm:$0xff]  ;;  %v8962_v57 = vld [vmem:[#allocation9 + $0x1ce8] sm:$0xff] }
 0x705   :  { %14819 = vmatprep.subr.bf16.mxu1 %v18259_v4  ;;  %v8937_v2 = vld [vmem:[#allocation9 + $0x1c20] sm:$0xff]  ;;  %v8004_v4 = vmax.f32 %v18630_v58, 0.0 }
 0x706   :  { %v18296_v9 = vcombine.low %v8933_v45, %v8937_v2 }
 0x707   :  { %14492 = vmatpush1.bf16.msra.mxu0 %v18256_v49  ;;  %v18297_v49 = vcombine.high %v8933_v45, %v8937_v2  ;;  %v18322_v2 = vcombine.low %v8958_v47, %v8962_v57 }
 0x708   :  { %14820 = vmatpush1.bf16.msra.mxu1 %v18258_v51  ;;  %14493 = vmatprep.subr.bf16.mxu0 %v18265_v1  ;;  %v18299_v51 = vcombine.high %v8934_v8, %v8938_v63  ;;  %v8020_v1 = vmin.f32 %v8004_v4, 6.0  ;;  %v8973_v63 = vld [vmem:[#allocation9 + $0x1d40] sm:$0xff] }
 0x709   :  { %14821 = vmatprep.subr.bf16.mxu1 %v18267_v19  ;;  %v8941_v19 = vld [vmem:[#allocation9 + $0x1c40] sm:$0xff] }
 0x70a   :  { %v19682_v33 = vpack.c.bf16 %v8020_v1, %v8020_v1  ;;  %v18304_v43 = vcombine.low %v8941_v19, %v8945_v20 }
 0x70b   :  { %14494 = vmatpush1.bf16.msra.mxu0 %v18264_v3  ;;  %v19680_v3 = vpack.c.bf16 %v8017_v60, %v8017_v60  ;;  %v8974_v60 = vld [vmem:[#allocation9 + $0x1d48] sm:$0xff] }
 0x70c   :  { %14822 = vmatpush1.bf16.msra.mxu1 %v18266_v23  ;;  %14495 = vmatprep.subr.bf16.mxu0 %v18273_v6  ;;  %v18305_v23 = vcombine.high %v8941_v19, %v8945_v20  ;;  %v8949_v6 = vld [vmem:[#allocation9 + $0x1c80] sm:$0xff] }
 0x70d   :  { %14823 = vmatprep.subr.bf16.mxu1 %v18275_v32  ;;  %v8953_v32 = vld [vmem:[#allocation9 + $0x1ca0] sm:$0xff] }
 0x70e   :  { %v18313_v54 = vcombine.high %v8949_v6, %v8953_v32  ;;  %v18312_v58 = vcombine.low %v8949_v6, %v8953_v32  ;;  %v8981_v20 = vld [vmem:[#allocation9 + $0x1d80] sm:$0xff] }
 0x70f   :  { %14496 = vmatpush1.bf16.msra.mxu0 %v18272_v52  ;;  %v18306_v52 = vcombine.low %v8942_v21, %v8946_v46  ;;  %v8982_v21 = vld [vmem:[#allocation9 + $0x1d88] sm:$0xff] }
 0x710   :  { %14824 = vmatpush1.bf16.msra.mxu1 %v18274_v48  ;;  %14497 = vmatprep.subr.bf16.mxu0 %v18281_v11  ;;  %v18315_v48 = vcombine.high %v8950_v30, %v8954_v38  ;;  %v8957_v11 = vld [vmem:[#allocation9 + $0x1cc0] sm:$0xff]  ;;  %v8986_v46 = vld [vmem:[#allocation9 + $0x1da8] sm:$0xff] }
 0x711   :  { %14825 = vmatprep.subr.bf16.mxu1 %v18283_v55  ;;  %v8961_v55 = vld [vmem:[#allocation9 + $0x1ce0] sm:$0xff]  ;;  %v18347_v32 = vcombine.high %v8982_v21, %v8986_v46  ;;  %v8990_v38 = vld [vmem:[#allocation9 + $0x1dc8] sm:$0xff] }
 0x712   :  { %v18321_v5 = vcombine.high %v8957_v11, %v8961_v55  ;;  %v18320_v45 = vcombine.low %v8957_v11, %v8961_v55  ;;  %v8993_v30 = vld [vmem:[#allocation9 + $0x1de0] sm:$0xff] }
 0x713   :  { %14498 = vmatpush1.bf16.msra.mxu0 %v18280_v61  ;;  %v18323_v61 = vcombine.high %v8958_v47, %v8962_v57  ;;  %v8997_v55 = vld [vmem:[#allocation9 + $0x1e00] sm:$0xff]  ;;  %v8998_v57 = vld [vmem:[#allocation9 + $0x1e08] sm:$0xff] }
 0x714   :  { %14826 = vmatpush1.bf16.msra.mxu1 %v18282_v62  ;;  %14499 = vmatprep.subr.bf16.mxu0 %v18289_v10  ;;  %v8969_v62 = vld [vmem:[#allocation9 + $0x1d20] sm:$0xff]  ;;  %v8966_v10 = vld [vmem:[#allocation9 + $0x1d08] sm:$0xff] }
 0x715   :  { %14827 = vmatprep.subr.bf16.mxu1 %v18291_v36  ;;  %v8970_v36 = vld [vmem:[#allocation9 + $0x1d28] sm:$0xff]  ;;  %v18329_v4 = vcombine.high %v8965_v12, %v8969_v62  ;;  %v9001_v47 = vld [vmem:[#allocation9 + $0x1e20] sm:$0xff] }
 0x716   :  { %v18331_v8 = vcombine.high %v8966_v10, %v8970_v36 }
 0x717   :  { %14500 = vmatpush1.bf16.msra.mxu0 %v18288_v15  ;;  %v8977_v15 = vld [vmem:[#allocation9 + $0x1d60] sm:$0xff] }
 0x718   :  { %14828 = vmatpush1.bf16.msra.mxu1 %v18290_v53  ;;  %14510 = vmatprep.subr.bf16.mxu0 %v18297_v49  ;;  %v8978_v53 = vld [vmem:[#allocation9 + $0x1d68] sm:$0xff]  ;;  %v18328_v49 = vcombine.low %v8965_v12, %v8969_v62  ;;  %v18337_v1 = vcombine.high %v8973_v63, %v8977_v15  ;;  %v9005_v62 = vld [vmem:[#allocation9 + $0x1e40] sm:$0xff] }
 0x719   :  { %14838 = vmatprep.subr.bf16.mxu1 %v18299_v51  ;;  %v18330_v51 = vcombine.low %v8966_v10, %v8970_v36  ;;  %v18339_v19 = vcombine.high %v8974_v60, %v8978_v53  ;;  %v9009_v10 = vld [vmem:[#allocation9 + $0x1e60] sm:$0xff]  ;;  %v9006_v36 = vld [vmem:[#allocation9 + $0x1e48] sm:$0xff] }
 0x71a   :  { %14502 = vmatmul.mubr.bf16.vlgmr.msra.gmra.mrb[16].mxu0 %v19680_v3 }
 0x71b   :  { %14830 = vmatmul.mubr.bf16.vlgmr.msra.gmra.mrb[32].mxu1 %v19680_v3  ;;  %14511 = vmatpush1.bf16.msra.mxu0 %v18296_v9  ;;  %v8985_v9 = vld [vmem:[#allocation9 + $0x1da0] sm:$0xff] }
 0x71c   :  { %14542 = vmatprep.mubr.bf16.mxu0 %v19682_v33  ;;  %14839 = vmatpush1.bf16.msra.mxu1 %v18298_v16  ;;  %v18336_v16 = vcombine.low %v8973_v63, %v8977_v15  ;;  %v18345_v6 = vcombine.high %v8981_v20, %v8985_v9  ;;  %v9013_v15 = vld [vmem:[#allocation9 + $0x1e80] sm:$0xff] }
 0x71d   :  { %14870 = vmatprep.mubr.bf16.mxu1 %v19682_v33  ;;  %14512 = vmatprep.subr.bf16.mxu0 %v18305_v23  ;;  %v18338_v23 = vcombine.low %v8974_v60, %v8978_v53  ;;  %v9017_v60 = vld [vmem:[#allocation9 + $0x1ea0] sm:$0xff]  ;;  %v9014_v53 = vld [vmem:[#allocation9 + $0x1e88] sm:$0xff] }
 0x71e   :  { %14840 = vmatprep.subr.bf16.mxu1 %v18307_v40  ;;  %v8989_v40 = vld [vmem:[#allocation9 + $0x1dc0] sm:$0xff] }
 0x71f   :  { %14513 = vmatpush1.bf16.msra.mxu0 %v18304_v43  ;;  %v8994_v43 = vld [vmem:[#allocation9 + $0x1de8] sm:$0xff] }
 0x720   :  { %14841 = vmatpush1.bf16.msra.mxu1 %v18306_v52  ;;  %14514 = vmatprep.subr.bf16.mxu0 %v18313_v54  ;;  %v18344_v52 = vcombine.low %v8981_v20, %v8985_v9  ;;  %v18346_v54 = vcombine.low %v8982_v21, %v8986_v46  ;;  %v18355_v11 = vcombine.high %v8990_v38, %v8994_v43  ;;  %v9021_v9 = vld [vmem:[#allocation9 + $0x1ec0] sm:$0xff]  ;;  %v9022_v46 = vld [vmem:[#allocation9 + $0x1ec8] sm:$0xff] }
 0x721   :  { %14842 = vmatprep.subr.bf16.mxu1 %v18315_v48  ;;  %v18353_v48 = vcombine.high %v8989_v40, %v8993_v30  ;;  %v9025_v21 = vld [vmem:[#allocation9 + $0x1ee0] sm:$0xff] }
 0x723   :  { %14515 = vmatpush1.bf16.msra.mxu0 %v18312_v58  ;;  %v9002_v58 = vld [vmem:[#allocation9 + $0x1e28] sm:$0xff] }
 0x724   :  { %14843 = vmatpush1.bf16.msra.mxu1 %v18314_v59  ;;  %14516 = vmatprep.subr.bf16.mxu0 %v18321_v5  ;;  %v18352_v59 = vcombine.low %v8989_v40, %v8993_v30  ;;  %v18354_v5 = vcombine.low %v8990_v38, %v8994_v43  ;;  %v18363_v12 = vcombine.high %v8998_v57, %v9002_v58  ;;  %v9029_v30 = vld [vmem:[#allocation9 + $0x1f00] sm:$0xff]  ;;  %v9030_v43 = vld [vmem:[#allocation9 + $0x1f08] sm:$0xff] }
 0x725   :  { %14844 = vmatprep.subr.bf16.mxu1 %v18323_v61  ;;  %v18361_v61 = vcombine.high %v8997_v55, %v9001_v47  ;;  %v9033_v38 = vld [vmem:[#allocation9 + $0x1f20] sm:$0xff] }
 0x727   :  { %14517 = vmatpush1.bf16.msra.mxu0 %v18320_v45  ;;  %v9010_v45 = vld [vmem:[#allocation9 + $0x1e68] sm:$0xff] }
 0x728   :  { %14845 = vmatpush1.bf16.msra.mxu1 %v18322_v2  ;;  %14518 = vmatprep.subr.bf16.mxu0 %v18329_v4  ;;  %v18360_v2 = vcombine.low %v8997_v55, %v9001_v47  ;;  %v18362_v4 = vcombine.low %v8998_v57, %v9002_v58  ;;  %v18371_v63 = vcombine.high %v9006_v36, %v9010_v45  ;;  %v9037_v47 = vld [vmem:[#allocation9 + $0x1f40] sm:$0xff]  ;;  %v9038_v58 = vld [vmem:[#allocation9 + $0x1f48] sm:$0xff] }
 0x729   :  { %14846 = vmatprep.subr.bf16.mxu1 %v18331_v8  ;;  %v18369_v8 = vcombine.high %v9005_v62, %v9009_v10  ;;  %v9041_v57 = vld [vmem:[#allocation9 + $0x1f60] sm:$0xff] }
 0x72b   :  { %14519 = vmatpush1.bf16.msra.mxu0 %v18328_v49  ;;  %v9018_v49 = vld [vmem:[#allocation9 + $0x1ea8] sm:$0xff] }
 0x72c   :  { %14847 = vmatpush1.bf16.msra.mxu1 %v18330_v51  ;;  %14520 = vmatprep.subr.bf16.mxu0 %v18337_v1  ;;  %v18368_v51 = vcombine.low %v9005_v62, %v9009_v10  ;;  %v18370_v1 = vcombine.low %v9006_v36, %v9010_v45  ;;  %v18379_v20 = vcombine.high %v9014_v53, %v9018_v49  ;;  %v9045_v36 = vld [vmem:[#allocation9 + $0x1f80] sm:$0xff] }
 0x72d   :  { %14848 = vmatprep.subr.bf16.mxu1 %v18339_v19  ;;  %v18377_v19 = vcombine.high %v9013_v15, %v9017_v60  ;;  %v18401_v62 = vcombine.high %v9037_v47, %v9041_v57  ;;  %v9049_v45 = vld [vmem:[#allocation9 + $0x1fa0] sm:$0xff] }
 0x72f   :  { %14521 = vmatpush1.bf16.msra.mxu0 %v18336_v16  ;;  %v9026_v16 = vld [vmem:[#allocation9 + $0x1ee8] sm:$0xff] }
 0x730   :  { %14849 = vmatpush1.bf16.msra.mxu1 %v18338_v23  ;;  %14522 = vmatprep.subr.bf16.mxu0 %v18345_v6  ;;  %v18376_v23 = vcombine.low %v9013_v15, %v9017_v60  ;;  %v18378_v6 = vcombine.low %v9014_v53, %v9018_v49  ;;  %v18387_v40 = vcombine.high %v9022_v46, %v9026_v16  ;;  %v9053_v53 = vld [vmem:[#allocation9 + $0x1fc0] sm:$0xff] }
 0x731   :  { %14850 = vmatprep.subr.bf16.mxu1 %v18347_v32  ;;  %v18385_v32 = vcombine.high %v9021_v9, %v9025_v21  ;;  %v18409_v60 = vcombine.high %v9045_v36, %v9049_v45  ;;  %v9057_v49 = vld [vmem:[#allocation9 + $0x1fe0] sm:$0xff] }
 0x733   :  { %14523 = vmatpush1.bf16.msra.mxu0 %v18344_v52  ;;  %v9034_v52 = vld [vmem:[#allocation9 + $0x1f28] sm:$0xff] }
 0x734   :  { %14851 = vmatpush1.bf16.msra.mxu1 %v18346_v54  ;;  %14524 = vmatprep.subr.bf16.mxu0 %v18353_v48  ;;  %v18384_v54 = vcombine.low %v9021_v9, %v9025_v21  ;;  %v18386_v48 = vcombine.low %v9022_v46, %v9026_v16  ;;  %v18395_v55 = vcombine.high %v9030_v43, %v9034_v52  ;;  %v8043_v16 = vld [vmem:[#allocation9 + $0x30] sm:$0xff] }
 0x735   :  { %14852 = vmatprep.subr.bf16.mxu1 %v18355_v11  ;;  %v18393_v11 = vcombine.high %v9029_v30, %v9033_v38  ;;  %v18417_v21 = vcombine.high %v9053_v53, %v9057_v49 }
 0x737   :  { %14525 = vmatpush1.bf16.msra.mxu0 %v18352_v59  ;;  %v9042_v59 = vld [vmem:[#allocation9 + $0x1f68] sm:$0xff] }
 0x738   :  { %14853 = vmatpush1.bf16.msra.mxu1 %v18354_v5  ;;  %14526 = vmatprep.subr.bf16.mxu0 %v18361_v61  ;;  %v18392_v5 = vcombine.low %v9029_v30, %v9033_v38  ;;  %v1536_v61 = vrot.slane %v19672_v24, %v19487_v18  ;;  %v18403_v10 = vcombine.high %v9038_v58, %v9042_v59 }
 0x739   :  { %14854 = vmatprep.subr.bf16.mxu1 %v18363_v12  ;;  %v18394_v12 = vcombine.low %v9030_v43, %v9034_v52  ;;  %v18402_v15 = vcombine.low %v9038_v58, %v9042_v59  ;;  %v8047_v52 = vld [vmem:[#allocation9 + $0x50] sm:$0xff] }
 0x73a   :  { %v8055_v59 = vld [vmem:[#allocation9 + $0x90] sm:$0xff] }
 0x73b   :  { %14527 = vmatpush1.bf16.msra.mxu0 %v18360_v2  ;;  %v9046_v2 = vld [vmem:[#allocation9 + $0x1f88] sm:$0xff] }
 0x73c   :  { %14855 = vmatpush1.bf16.msra.mxu1 %v18362_v4  ;;  %14528 = vmatprep.subr.bf16.mxu0 %v18369_v8  ;;  %v9050_v4 = vld [vmem:[#allocation9 + $0x1fa8] sm:$0xff]  ;;  %v18400_v8 = vcombine.low %v9037_v47, %v9041_v57 }
 0x73d   :  { %14856 = vmatprep.subr.bf16.mxu1 %v18371_v63  ;;  %v18629_v63 = vadd.f32 %v19622_v44, %v1536_v61  ;;  %v18411_v24 = vcombine.high %v9046_v2, %v9050_v4  ;;  %v18410_v9 = vcombine.low %v9046_v2, %v9050_v4  ;;  %v8039_v44 = vld [vmem:[#allocation9 + $0x10] sm:$0xff] }
 0x73e   :  { %v17405_v38 = vcombine.high %v8039_v44, %v8043_v16  ;;  %v8063_v4 = vld [vmem:[#allocation9 + $0xd0] sm:$0xff] }
 0x73f   :  { %14529 = vmatpush1.bf16.msra.mxu0 %v18368_v51  ;;  %v9054_v51 = vld [vmem:[#allocation9 + $0x1fc8] sm:$0xff] }
 0x740   :  { %14857 = vmatpush1.bf16.msra.mxu1 %v18370_v1  ;;  %14530 = vmatprep.subr.bf16.mxu0 %v18377_v19  ;;  %v9058_v1 = vld [vmem:[#allocation9 + $0x1fe8] sm:$0xff]  ;;  %v18408_v19 = vcombine.low %v9045_v36, %v9049_v45 }
 0x741   :  { %14858 = vmatprep.subr.bf16.mxu1 %v18379_v20  ;;  %v8003_v20 = vmax.f32 %v18629_v63, 0.0  ;;  %v18419_v46 = vcombine.high %v9054_v51, %v9058_v1  ;;  %v18418_v30 = vcombine.low %v9054_v51, %v9058_v1  ;;  %v8064_v63 = vld [vmem:[#allocation9 + $0xd8] sm:$0xff]  ;;  %v8071_v51 = vld [vmem:[#allocation9 + $0x110] sm:$0xff] }
 0x742   :  { %v8075_v1 = vld [vmem:[#allocation9 + $0x130] sm:$0xff] }
 0x743   :  { %14531 = vmatpush1.bf16.msra.mxu0 %v18376_v23  ;;  %v8040_v23 = vld [vmem:[#allocation9 + $0x18] sm:$0xff] }
 0x744   :  { %14859 = vmatpush1.bf16.msra.mxu1 %v18378_v6  ;;  %14532 = vmatprep.subr.bf16.mxu0 %v18385_v32  ;;  %v8044_v6 = vld [vmem:[#allocation9 + $0x38] sm:$0xff]  ;;  %v18416_v32 = vcombine.low %v9053_v53, %v9057_v49 }
 0x745   :  { %14860 = vmatprep.subr.bf16.mxu1 %v18387_v40  ;;  %v8019_v40 = vmin.f32 %v8003_v20, 6.0  ;;  %v17407_v43 = vcombine.high %v8040_v23, %v8044_v6  ;;  %v17406_v57 = vcombine.low %v8040_v23, %v8044_v6  ;;  %v8076_v20 = vld [vmem:[#allocation9 + $0x138] sm:$0xff] }
 0x746   :  { %v8080_v23 = vld [vmem:[#allocation9 + $0x158] sm:$0xff] }
 0x747   :  { %14533 = vmatpush1.bf16.msra.mxu0 %v18384_v54  ;;  %v8051_v54 = vld [vmem:[#allocation9 + $0x70] sm:$0xff]  ;;  %v19691_v47 = vpack.c.bf16 %v8019_v40, %v8019_v40  ;;  %v8084_v6 = vld [vmem:[#allocation9 + $0x178] sm:$0xff] }
 0x748   :  { %14861 = vmatpush1.bf16.msra.mxu1 %v18386_v48  ;;  %14534 = vmatprep.subr.bf16.mxu0 %v18393_v11  ;;  %v17404_v48 = vcombine.low %v8039_v44, %v8043_v16  ;;  %v8048_v11 = vld [vmem:[#allocation9 + $0x58] sm:$0xff]  ;;  %v17413_v58 = vcombine.high %v8047_v52, %v8051_v54  ;;  %v8079_v44 = vld [vmem:[#allocation9 + $0x150] sm:$0xff] }
 0x749   :  { %14862 = vmatprep.subr.bf16.mxu1 %v18395_v55  ;;  %v8052_v55 = vld [vmem:[#allocation9 + $0x78] sm:$0xff]  ;;  %v8083_v16 = vld [vmem:[#allocation9 + $0x170] sm:$0xff] }
 0x74a   :  { %v17415_v61 = vcombine.high %v8048_v11, %v8052_v55  ;;  %v17414_v36 = vcombine.low %v8048_v11, %v8052_v55  ;;  %v17444_v11 = vcombine.low %v8079_v44, %v8083_v16  ;;  %v17446_v55 = vcombine.low %v8080_v23, %v8084_v6 }
 0x74b   :  { %14535 = vmatpush1.bf16.msra.mxu0 %v18392_v5  ;;  %v8059_v5 = vld [vmem:[#allocation9 + $0xb0] sm:$0xff] }
 0x74c   :  { %14863 = vmatpush1.bf16.msra.mxu1 %v18394_v12  ;;  %14536 = vmatprep.subr.bf16.mxu0 %v18401_v62  ;;  %v8056_v12 = vld [vmem:[#allocation9 + $0x98] sm:$0xff]  ;;  %v17421_v45 = vcombine.high %v8055_v59, %v8059_v5 }
 0x74d   :  { %14864 = vmatprep.subr.bf16.mxu1 %v18403_v10  ;;  %v8060_v62 = vld [vmem:[#allocation9 + $0xb8] sm:$0xff]  ;;  %v17412_v10 = vcombine.low %v8047_v52, %v8051_v54  ;;  %v8091_v52 = vld [vmem:[#allocation9 + $0x1b0] sm:$0xff] }
 0x74e   :  { %v17423_v2 = vcombine.high %v8056_v12, %v8060_v62  ;;  %v8088_v54 = vld [vmem:[#allocation9 + $0x198] sm:$0xff] }
 0x74f   :  { %14537 = vmatpush1.bf16.msra.mxu0 %v18400_v8  ;;  %v8067_v8 = vld [vmem:[#allocation9 + $0xf0] sm:$0xff] }
 0x750   :  { %14865 = vmatpush1.bf16.msra.mxu1 %v18402_v15  ;;  %14538 = vmatprep.subr.bf16.mxu0 %v18409_v60  ;;  %v8068_v15 = vld [vmem:[#allocation9 + $0xf8] sm:$0xff]  ;;  %v17420_v60 = vcombine.low %v8055_v59, %v8059_v5  ;;  %v17429_v53 = vcombine.high %v8063_v4, %v8067_v8  ;;  %v8095_v59 = vld [vmem:[#allocation9 + $0x1d0] sm:$0xff] }
 0x751   :  { %14866 = vmatprep.subr.bf16.mxu1 %v18411_v24  ;;  %v17422_v24 = vcombine.low %v8056_v12, %v8060_v62  ;;  %v17431_v49 = vcombine.high %v8064_v63, %v8068_v15  ;;  %v8099_v5 = vld [vmem:[#allocation9 + $0x1f0] sm:$0xff]  ;;  %v8100_v12 = vld [vmem:[#allocation9 + $0x1f8] sm:$0xff] }
 0x753   :  { %14539 = vmatpush1.bf16.msra.mxu0 %v18408_v19  ;;  %v8072_v19 = vld [vmem:[#allocation9 + $0x118] sm:$0xff] }
 0x754   :  { %14867 = vmatpush1.bf16.msra.mxu1 %v18410_v9  ;;  %14540 = vmatprep.subr.bf16.mxu0 %v18417_v21  ;;  %v17430_v9 = vcombine.low %v8064_v63, %v8068_v15  ;;  %v17437_v21 = vcombine.high %v8071_v51, %v8075_v1  ;;  %v17438_v40 = vcombine.low %v8072_v19, %v8076_v20  ;;  %v8108_v63 = vld [vmem:[#allocation9 + $0x238] sm:$0xff] }
 0x755   :  { %14868 = vmatprep.subr.bf16.mxu1 %v18419_v46  ;;  %v17439_v46 = vcombine.high %v8072_v19, %v8076_v20  ;;  %v17460_v15 = vcombine.low %v8095_v59, %v8099_v5  ;;  %v8116_v19 = vld [vmem:[#allocation9 + $0x278] sm:$0xff] }
 0x757   :  { %14541 = vmatpush1.bf16.msra.mxu0 %v18416_v32  ;;  %v17436_v32 = vcombine.low %v8071_v51, %v8075_v1  ;;  %v8115_v51 = vld [vmem:[#allocation9 + $0x270] sm:$0xff]  ;;  %v8112_v1 = vld [vmem:[#allocation9 + $0x258] sm:$0xff] }
 0x758   :  { %14869 = vmatpush1.bf16.msra.mxu1 %v18418_v30  ;;  %14879 = vmatprep.subr.bf16.mxu0 %v17405_v38  ;;  %v17445_v30 = vcombine.high %v8079_v44, %v8083_v16  ;;  %v17447_v38 = vcombine.high %v8080_v23, %v8084_v6  ;;  %v8123_v44 = vld [vmem:[#allocation9 + $0x2b0] sm:$0xff]  ;;  %v8120_v16 = vld [vmem:[#allocation9 + $0x298] sm:$0xff] }
 0x759   :  { %15207 = vmatprep.subr.bf16.mxu1 %v17407_v43  ;;  %v8087_v43 = vld [vmem:[#allocation9 + $0x190] sm:$0xff]  ;;  %v8124_v23 = vld [vmem:[#allocation9 + $0x2b8] sm:$0xff] }
 0x75a   :  { %14543 = vmatmul.mubr.bf16.vlgmr.msra.gmra.mrb[16].mxu0 %v19691_v47  ;;  %v17452_v62 = vcombine.low %v8087_v43, %v8091_v52 }
 0x75b   :  { %14871 = vmatmul.mubr.bf16.vlgmr.msra.gmra.mrb[32].mxu1 %v19691_v47  ;;  %14880 = vmatpush1.bf16.msra.mxu0 %v17404_v48  ;;  %v8092_v48 = vld [vmem:[#allocation9 + $0x1b8] sm:$0xff] }
 0x75c   :  { %14911 = vmatprep.mubr.bf16.mxu0 %v19570_v22  ;;  %15208 = vmatpush1.bf16.msra.mxu1 %v17406_v57  ;;  %v17453_v57 = vcombine.high %v8087_v43, %v8091_v52  ;;  %v8131_v43 = vld [vmem:[#allocation9 + $0x2f0] sm:$0xff]  ;;  %v8128_v52 = vld [vmem:[#allocation9 + $0x2d8] sm:$0xff] }
 0x75d   :  { %15239 = vmatprep.mubr.bf16.mxu1 %v19570_v22  ;;  %14881 = vmatprep.subr.bf16.mxu0 %v17413_v58  ;;  %v17428_v22 = vcombine.low %v8063_v4, %v8067_v8  ;;  %v17455_v58 = vcombine.high %v8088_v54, %v8092_v48  ;;  %v8107_v4 = vld [vmem:[#allocation9 + $0x230] sm:$0xff]  ;;  %v8104_v8 = vld [vmem:[#allocation9 + $0x218] sm:$0xff] }
 0x75e   :  { %15209 = vmatprep.subr.bf16.mxu1 %v17415_v61  ;;  %v8096_v61 = vld [vmem:[#allocation9 + $0x1d8] sm:$0xff] }
 0x75f   :  { %14882 = vmatpush1.bf16.msra.mxu0 %v17412_v10  ;;  %v17454_v10 = vcombine.low %v8088_v54, %v8092_v48  ;;  %v8132_v54 = vld [vmem:[#allocation9 + $0x2f8] sm:$0xff] }
 0x760   :  { %15210 = vmatpush1.bf16.msra.mxu1 %v17414_v36  ;;  %14883 = vmatprep.subr.bf16.mxu0 %v17421_v45  ;;  %v17461_v36 = vcombine.high %v8095_v59, %v8099_v5  ;;  %v17463_v45 = vcombine.high %v8096_v61, %v8100_v12  ;;  %v8139_v59 = vld [vmem:[#allocation9 + $0x330] sm:$0xff]  ;;  %v8136_v5 = vld [vmem:[#allocation9 + $0x318] sm:$0xff] }
 0x761   :  { %15211 = vmatprep.subr.bf16.mxu1 %v17423_v2  ;;  %v8103_v2 = vld [vmem:[#allocation9 + $0x210] sm:$0xff] }
 0x762   :  { %v17468_v20 = vcombine.low %v8103_v2, %v8107_v4 }
 0x763   :  { %14884 = vmatpush1.bf16.msra.mxu0 %v17420_v60  ;;  %v17462_v60 = vcombine.low %v8096_v61, %v8100_v12  ;;  %v8140_v61 = vld [vmem:[#allocation9 + $0x338] sm:$0xff] }
 0x764   :  { %15212 = vmatpush1.bf16.msra.mxu1 %v17422_v24  ;;  %14885 = vmatprep.subr.bf16.mxu0 %v17429_v53  ;;  %v17469_v24 = vcombine.high %v8103_v2, %v8107_v4  ;;  %v17471_v53 = vcombine.high %v8104_v8, %v8108_v63  ;;  %v8147_v2 = vld [vmem:[#allocation9 + $0x370] sm:$0xff]  ;;  %v8144_v4 = vld [vmem:[#allocation9 + $0x358] sm:$0xff] }
 0x765   :  { %15213 = vmatprep.subr.bf16.mxu1 %v17431_v49  ;;  %v8111_v49 = vld [vmem:[#allocation9 + $0x250] sm:$0xff] }
 0x766   :  { %v17476_v6 = vcombine.low %v8111_v49, %v8115_v51 }
 0x767   :  { %14886 = vmatpush1.bf16.msra.mxu0 %v17428_v22  ;;  %v17470_v22 = vcombine.low %v8104_v8, %v8108_v63  ;;  %v8148_v8 = vld [vmem:[#allocation9 + $0x378] sm:$0xff] }
 0x768   :  { %15214 = vmatpush1.bf16.msra.mxu1 %v17430_v9  ;;  %14887 = vmatprep.subr.bf16.mxu0 %v17437_v21  ;;  %v17477_v9 = vcombine.high %v8111_v49, %v8115_v51  ;;  %v17479_v21 = vcombine.high %v8112_v1, %v8116_v19  ;;  %v8155_v49 = vld [vmem:[#allocation9 + $0x3b0] sm:$0xff]  ;;  %v8152_v51 = vld [vmem:[#allocation9 + $0x398] sm:$0xff] }
 0x769   :  { %15215 = vmatprep.subr.bf16.mxu1 %v17439_v46  ;;  %v8119_v46 = vld [vmem:[#allocation9 + $0x290] sm:$0xff] }
 0x76a   :  { %v17484_v48 = vcombine.low %v8119_v46, %v8123_v44 }
 0x76b   :  { %14888 = vmatpush1.bf16.msra.mxu0 %v17436_v32  ;;  %v17478_v32 = vcombine.low %v8112_v1, %v8116_v19  ;;  %v8156_v1 = vld [vmem:[#allocation9 + $0x3b8] sm:$0xff] }
 0x76c   :  { %15216 = vmatpush1.bf16.msra.mxu1 %v17438_v40  ;;  %14889 = vmatprep.subr.bf16.mxu0 %v17445_v30  ;;  %v17485_v40 = vcombine.high %v8119_v46, %v8123_v44  ;;  %v17487_v30 = vcombine.high %v8120_v16, %v8124_v23  ;;  %v8163_v46 = vld [vmem:[#allocation9 + $0x3f0] sm:$0xff]  ;;  %v8160_v44 = vld [vmem:[#allocation9 + $0x3d8] sm:$0xff] }
 0x76d   :  { %15217 = vmatprep.subr.bf16.mxu1 %v17447_v38  ;;  %v8127_v38 = vld [vmem:[#allocation9 + $0x2d0] sm:$0xff] }
 0x76e   :  { %v17492_v12 = vcombine.low %v8127_v38, %v8131_v43 }
 0x76f   :  { %14890 = vmatpush1.bf16.msra.mxu0 %v17444_v11  ;;  %v17486_v11 = vcombine.low %v8120_v16, %v8124_v23  ;;  %v8164_v16 = vld [vmem:[#allocation9 + $0x3f8] sm:$0xff] }
 0x770   :  { %15218 = vmatpush1.bf16.msra.mxu1 %v17446_v55  ;;  %14891 = vmatprep.subr.bf16.mxu0 %v17453_v57  ;;  %v17493_v55 = vcombine.high %v8127_v38, %v8131_v43  ;;  %v17495_v57 = vcombine.high %v8128_v52, %v8132_v54  ;;  %v8171_v38 = vld [vmem:[#allocation9 + $0x430] sm:$0xff]  ;;  %v8168_v43 = vld [vmem:[#allocation9 + $0x418] sm:$0xff] }
 0x771   :  { %15219 = vmatprep.subr.bf16.mxu1 %v17455_v58  ;;  %v8135_v58 = vld [vmem:[#allocation9 + $0x310] sm:$0xff] }
 0x772   :  { %v17500_v63 = vcombine.low %v8135_v58, %v8139_v59 }
 0x773   :  { %14892 = vmatpush1.bf16.msra.mxu0 %v17452_v62  ;;  %v17494_v62 = vcombine.low %v8128_v52, %v8132_v54  ;;  %v8172_v52 = vld [vmem:[#allocation9 + $0x438] sm:$0xff] }
 0x774   :  { %15220 = vmatpush1.bf16.msra.mxu1 %v17454_v10  ;;  %14893 = vmatprep.subr.bf16.mxu0 %v17461_v36  ;;  %v17501_v10 = vcombine.high %v8135_v58, %v8139_v59  ;;  %v17503_v36 = vcombine.high %v8136_v5, %v8140_v61  ;;  %v8179_v58 = vld [vmem:[#allocation9 + $0x470] sm:$0xff] }
 0x775   :  { %15221 = vmatprep.subr.bf16.mxu1 %v17463_v45  ;;  %v8143_v45 = vld [vmem:[#allocation9 + $0x350] sm:$0xff] }
 0x776   :  { %v17508_v19 = vcombine.low %v8143_v45, %v8147_v2 }
 0x777   :  { %14894 = vmatpush1.bf16.msra.mxu0 %v17460_v15  ;;  %v17502_v15 = vcombine.low %v8136_v5, %v8140_v61  ;;  %v8176_v5 = vld [vmem:[#allocation9 + $0x458] sm:$0xff] }
 0x778   :  { %15222 = vmatpush1.bf16.msra.mxu1 %v17462_v60  ;;  %14895 = vmatprep.subr.bf16.mxu0 %v17469_v24  ;;  %v17509_v60 = vcombine.high %v8143_v45, %v8147_v2  ;;  %v17511_v24 = vcombine.high %v8144_v4, %v8148_v8  ;;  %v8180_v61 = vld [vmem:[#allocation9 + $0x478] sm:$0xff] }
 0x779   :  { %15223 = vmatprep.subr.bf16.mxu1 %v17471_v53  ;;  %v8151_v53 = vld [vmem:[#allocation9 + $0x390] sm:$0xff]  ;;  %v17543_v45 = vcombine.high %v8176_v5, %v8180_v61  ;;  %v8184_v2 = vld [vmem:[#allocation9 + $0x498] sm:$0xff] }
 0x77a   :  { %v17516_v23 = vcombine.low %v8151_v53, %v8155_v49 }
 0x77b   :  { %14896 = vmatpush1.bf16.msra.mxu0 %v17468_v20  ;;  %v17510_v20 = vcombine.low %v8144_v4, %v8148_v8  ;;  %v8188_v4 = vld [vmem:[#allocation9 + $0x4b8] sm:$0xff] }
 0x77c   :  { %15224 = vmatpush1.bf16.msra.mxu1 %v17470_v22  ;;  %14897 = vmatprep.subr.bf16.mxu0 %v17477_v9  ;;  %v17517_v22 = vcombine.high %v8151_v53, %v8155_v49  ;;  %v17519_v9 = vcombine.high %v8152_v51, %v8156_v1  ;;  %v8195_v53 = vld [vmem:[#allocation9 + $0x4f0] sm:$0xff]  ;;  %v8192_v49 = vld [vmem:[#allocation9 + $0x4d8] sm:$0xff] }
 0x77d   :  { %15225 = vmatprep.subr.bf16.mxu1 %v17479_v21  ;;  %v8159_v21 = vld [vmem:[#allocation9 + $0x3d0] sm:$0xff] }
 0x77e   :  { %v17524_v54 = vcombine.low %v8159_v21, %v8163_v46 }
 0x77f   :  { %14898 = vmatpush1.bf16.msra.mxu0 %v17476_v6  ;;  %v17518_v6 = vcombine.low %v8152_v51, %v8156_v1  ;;  %v8196_v51 = vld [vmem:[#allocation9 + $0x4f8] sm:$0xff] }
 0x780   :  { %15226 = vmatpush1.bf16.msra.mxu1 %v17478_v32  ;;  %14899 = vmatprep.subr.bf16.mxu0 %v17485_v40  ;;  %v17525_v32 = vcombine.high %v8159_v21, %v8163_v46  ;;  %v17527_v40 = vcombine.high %v8160_v44, %v8164_v16  ;;  %v8200_v21 = vld [vmem:[#allocation9 + $0x518] sm:$0xff] }
 0x781   :  { %15227 = vmatprep.subr.bf16.mxu1 %v17487_v30  ;;  %v8167_v30 = vld [vmem:[#allocation9 + $0x410] sm:$0xff]  ;;  %v8204_v46 = vld [vmem:[#allocation9 + $0x538] sm:$0xff] }
 0x782   :  { %v17532_v59 = vcombine.low %v8167_v30, %v8171_v38 }
 0x783   :  { %14900 = vmatpush1.bf16.msra.mxu0 %v17484_v48  ;;  %v17526_v48 = vcombine.low %v8160_v44, %v8164_v16  ;;  %v17558_v44 = vcombine.low %v8192_v49, %v8196_v51 }
 0x784   :  { %15228 = vmatpush1.bf16.msra.mxu1 %v17486_v11  ;;  %14901 = vmatprep.subr.bf16.mxu0 %v17493_v55  ;;  %v17533_v11 = vcombine.high %v8167_v30, %v8171_v38  ;;  %v17535_v55 = vcombine.high %v8168_v43, %v8172_v52  ;;  %v8212_v30 = vld [vmem:[#allocation9 + $0x578] sm:$0xff] }
 0x785   :  { %15229 = vmatprep.subr.bf16.mxu1 %v17495_v57  ;;  %v8175_v57 = vld [vmem:[#allocation9 + $0x450] sm:$0xff] }
 0x786   :  { %v17540_v8 = vcombine.low %v8175_v57, %v8179_v58 }
 0x787   :  { %14902 = vmatpush1.bf16.msra.mxu0 %v17492_v12  ;;  %v17534_v12 = vcombine.low %v8168_v43, %v8172_v52  ;;  %v17566_v43 = vcombine.low %v8200_v21, %v8204_v46 }
 0x788   :  { %15230 = vmatpush1.bf16.msra.mxu1 %v17494_v62  ;;  %14903 = vmatprep.subr.bf16.mxu0 %v17501_v10  ;;  %v17541_v62 = vcombine.high %v8175_v57, %v8179_v58  ;;  %v8183_v10 = vld [vmem:[#allocation9 + $0x490] sm:$0xff]  ;;  %v8220_v57 = vld [vmem:[#allocation9 + $0x5b8] sm:$0xff] }
 0x789   :  { %15231 = vmatprep.subr.bf16.mxu1 %v17503_v36  ;;  %v8187_v36 = vld [vmem:[#allocation9 + $0x4b0] sm:$0xff] }
 0x78a   :  { %v17548_v1 = vcombine.low %v8183_v10, %v8187_v36 }
 0x78b   :  { %14904 = vmatpush1.bf16.msra.mxu0 %v17500_v63  ;;  %v17542_v63 = vcombine.low %v8176_v5, %v8180_v61 }
 0x78c   :  { %15232 = vmatpush1.bf16.msra.mxu1 %v17502_v15  ;;  %14905 = vmatprep.subr.bf16.mxu0 %v17509_v60  ;;  %v17549_v15 = vcombine.high %v8183_v10, %v8187_v36  ;;  %v17551_v60 = vcombine.high %v8184_v2, %v8188_v4  ;;  %v8224_v10 = vld [vmem:[#allocation9 + $0x5d8] sm:$0xff] }
 0x78d   :  { %15233 = vmatprep.subr.bf16.mxu1 %v17511_v24  ;;  %v8191_v24 = vld [vmem:[#allocation9 + $0x4d0] sm:$0xff]  ;;  %v8228_v36 = vld [vmem:[#allocation9 + $0x5f8] sm:$0xff] }
 0x78f   :  { %14906 = vmatpush1.bf16.msra.mxu0 %v17508_v19  ;;  %v17557_v19 = vcombine.high %v8191_v24, %v8195_v53 }
 0x790   :  { %15234 = vmatpush1.bf16.msra.mxu1 %v17510_v20  ;;  %14907 = vmatprep.subr.bf16.mxu0 %v17517_v22  ;;  %v17559_v20 = vcombine.high %v8192_v49, %v8196_v51  ;;  %v8199_v22 = vld [vmem:[#allocation9 + $0x510] sm:$0xff]  ;;  %v17590_v49 = vcombine.low %v8224_v10, %v8228_v36 }
 0x791   :  { %15235 = vmatprep.subr.bf16.mxu1 %v17519_v9  ;;  %v8203_v9 = vld [vmem:[#allocation9 + $0x530] sm:$0xff] }
 0x792   :  { %v17565_v16 = vcombine.high %v8199_v22, %v8203_v9  ;;  %v17564_v38 = vcombine.low %v8199_v22, %v8203_v9  ;;  %v8244_v22 = vld [vmem:[#allocation9 + $0x678] sm:$0xff] }
 0x793   :  { %14908 = vmatpush1.bf16.msra.mxu0 %v17516_v23  ;;  %v17567_v23 = vcombine.high %v8200_v21, %v8204_v46 }
 0x794   :  { %15236 = vmatpush1.bf16.msra.mxu1 %v17518_v6  ;;  %14909 = vmatprep.subr.bf16.mxu0 %v17525_v32  ;;  %v8207_v6 = vld [vmem:[#allocation9 + $0x550] sm:$0xff] }
 0x795   :  { %15237 = vmatprep.subr.bf16.mxu1 %v17527_v40  ;;  %v8211_v32 = vld [vmem:[#allocation9 + $0x570] sm:$0xff]  ;;  %v8208_v40 = vld [vmem:[#allocation9 + $0x558] sm:$0xff] }
 0x796   :  { %v17573_v52 = vcombine.high %v8207_v6, %v8211_v32  ;;  %v17572_v58 = vcombine.low %v8207_v6, %v8211_v32  ;;  %v8252_v6 = vld [vmem:[#allocation9 + $0x6b8] sm:$0xff] }
 0x797   :  { %14910 = vmatpush1.bf16.msra.mxu0 %v17524_v54  ;;  %v17575_v54 = vcombine.high %v8208_v40, %v8212_v30 }
 0x798   :  { %15238 = vmatpush1.bf16.msra.mxu1 %v17526_v48  ;;  %14920 = vmatprep.subr.bf16.mxu0 %v17533_v11  ;;  %v8215_v48 = vld [vmem:[#allocation9 + $0x590] sm:$0xff] }
 0x799   :  { %15248 = vmatprep.subr.bf16.mxu1 %v17535_v55  ;;  %v8219_v11 = vld [vmem:[#allocation9 + $0x5b0] sm:$0xff]  ;;  %v8216_v55 = vld [vmem:[#allocation9 + $0x598] sm:$0xff] }
 0x79a   :  { %14912 = vmatmul.mubr.bf16.vlgmr.msra.gmra.mrb[20].mxu0 %v19582_v27  ;;  %v17581_v5 = vcombine.high %v8215_v48, %v8219_v11  ;;  %v17583_v61 = vcombine.high %v8216_v55, %v8220_v57 }
 0x79b   :  { %15240 = vmatmul.mubr.bf16.vlgmr.msra.gmra.mrb[36].mxu1 %v19582_v27  ;;  %14921 = vmatpush1.bf16.msra.mxu0 %v17532_v59  ;;  %v17550_v27 = vcombine.low %v8184_v2, %v8188_v4  ;;  %v17574_v59 = vcombine.low %v8208_v40, %v8212_v30  ;;  %v17582_v2 = vcombine.low %v8216_v55, %v8220_v57 }
 0x79c   :  { %14952 = vmatprep.mubr.bf16.mxu0 %v19584_v28  ;;  %15249 = vmatpush1.bf16.msra.mxu1 %v17534_v12  ;;  %v8223_v12 = vld [vmem:[#allocation9 + $0x5d0] sm:$0xff] }
 0x79d   :  { %15280 = vmatprep.mubr.bf16.mxu1 %v19584_v28  ;;  %14922 = vmatprep.subr.bf16.mxu0 %v17541_v62  ;;  %v17556_v28 = vcombine.low %v8191_v24, %v8195_v53  ;;  %v8227_v62 = vld [vmem:[#allocation9 + $0x5f0] sm:$0xff]  ;;  %v8236_v24 = vld [vmem:[#allocation9 + $0x638] sm:$0xff] }
 0x79e   :  { %15250 = vmatprep.subr.bf16.mxu1 %v17543_v45  ;;  %v17580_v45 = vcombine.low %v8215_v48, %v8219_v11  ;;  %v17589_v4 = vcombine.high %v8223_v12, %v8227_v62  ;;  %v17588_v53 = vcombine.low %v8223_v12, %v8227_v62  ;;  %v8260_v48 = vld [vmem:[#allocation9 + $0x6f8] sm:$0xff] }
 0x79f   :  { %14923 = vmatpush1.bf16.msra.mxu0 %v17540_v8  ;;  %v17591_v8 = vcombine.high %v8224_v10, %v8228_v36  ;;  %v8268_v12 = vld [vmem:[#allocation9 + $0x738] sm:$0xff] }
 0x7a0   :  { %15251 = vmatpush1.bf16.msra.mxu1 %v17542_v63  ;;  %14924 = vmatprep.subr.bf16.mxu0 %v17549_v15  ;;  %v8231_v63 = vld [vmem:[#allocation9 + $0x610] sm:$0xff] }
 0x7a1   :  { %15252 = vmatprep.subr.bf16.mxu1 %v17551_v60  ;;  %v8235_v15 = vld [vmem:[#allocation9 + $0x630] sm:$0xff]  ;;  %v8232_v60 = vld [vmem:[#allocation9 + $0x618] sm:$0xff] }
 0x7a2   :  { %v17597_v51 = vcombine.high %v8231_v63, %v8235_v15  ;;  %v17596_v9 = vcombine.low %v8231_v63, %v8235_v15  ;;  %v17598_v21 = vcombine.low %v8232_v60, %v8236_v24  ;;  %v8276_v63 = vld [vmem:[#allocation9 + $0x778] sm:$0xff] }
 0x7a3   :  { %14925 = vmatpush1.bf16.msra.mxu0 %v17548_v1  ;;  %v17599_v1 = vcombine.high %v8232_v60, %v8236_v24 }
 0x7a4   :  { %15253 = vmatpush1.bf16.msra.mxu1 %v17550_v27  ;;  %14926 = vmatprep.subr.bf16.mxu0 %v17557_v19  ;;  %v8239_v27 = vld [vmem:[#allocation9 + $0x650] sm:$0xff] }
 0x7a5   :  { %15254 = vmatprep.subr.bf16.mxu1 %v17559_v20  ;;  %v8243_v19 = vld [vmem:[#allocation9 + $0x670] sm:$0xff]  ;;  %v8240_v20 = vld [vmem:[#allocation9 + $0x658] sm:$0xff] }
 0x7a6   :  { %v17605_v46 = vcombine.high %v8239_v27, %v8243_v19  ;;  %v17604_v32 = vcombine.low %v8239_v27, %v8243_v19  ;;  %v17606_v40 = vcombine.low %v8240_v20, %v8244_v22  ;;  %v8284_v27 = vld [vmem:[#allocation9 + $0x7b8] sm:$0xff] }
 0x7a7   :  { %14927 = vmatpush1.bf16.msra.mxu0 %v17556_v28  ;;  %v17607_v28 = vcombine.high %v8240_v20, %v8244_v22 }
 0x7a8   :  { %15255 = vmatpush1.bf16.msra.mxu1 %v17558_v44  ;;  %14928 = vmatprep.subr.bf16.mxu0 %v17565_v16  ;;  %v8247_v44 = vld [vmem:[#allocation9 + $0x690] sm:$0xff] }
 0x7a9   :  { %15256 = vmatprep.subr.bf16.mxu1 %v17567_v23  ;;  %v8251_v16 = vld [vmem:[#allocation9 + $0x6b0] sm:$0xff]  ;;  %v8248_v23 = vld [vmem:[#allocation9 + $0x698] sm:$0xff] }
 0x7aa   :  { %v17613_v30 = vcombine.high %v8247_v44, %v8251_v16  ;;  %v17612_v11 = vcombine.low %v8247_v44, %v8251_v16  ;;  %v17614_v55 = vcombine.low %v8248_v23, %v8252_v6  ;;  %v8292_v44 = vld [vmem:[#allocation9 + $0x7f8] sm:$0xff] }
 0x7ab   :  { %14929 = vmatpush1.bf16.msra.mxu0 %v17564_v38  ;;  %v17615_v38 = vcombine.high %v8248_v23, %v8252_v6 }
 0x7ac   :  { %15257 = vmatpush1.bf16.msra.mxu1 %v17566_v43  ;;  %14930 = vmatprep.subr.bf16.mxu0 %v17573_v52  ;;  %v8255_v43 = vld [vmem:[#allocation9 + $0x6d0] sm:$0xff] }
 0x7ad   :  { %15258 = vmatprep.subr.bf16.mxu1 %v17575_v54  ;;  %v8259_v52 = vld [vmem:[#allocation9 + $0x6f0] sm:$0xff]  ;;  %v8256_v54 = vld [vmem:[#allocation9 + $0x6d8] sm:$0xff] }
 0x7ae   :  { %v17621_v57 = vcombine.high %v8255_v43, %v8259_v52  ;;  %v17620_v62 = vcombine.low %v8255_v43, %v8259_v52  ;;  %v17622_v10 = vcombine.low %v8256_v54, %v8260_v48  ;;  %v8300_v43 = vld [vmem:[#allocation9 + $0x838] sm:$0xff] }
 0x7af   :  { %14931 = vmatpush1.bf16.msra.mxu0 %v17572_v58  ;;  %v17623_v58 = vcombine.high %v8256_v54, %v8260_v48 }
 0x7b0   :  { %15259 = vmatpush1.bf16.msra.mxu1 %v17574_v59  ;;  %14932 = vmatprep.subr.bf16.mxu0 %v17581_v5  ;;  %v8263_v59 = vld [vmem:[#allocation9 + $0x710] sm:$0xff] }
 0x7b1   :  { %15260 = vmatprep.subr.bf16.mxu1 %v17583_v61  ;;  %v8267_v5 = vld [vmem:[#allocation9 + $0x730] sm:$0xff]  ;;  %v8264_v61 = vld [vmem:[#allocation9 + $0x718] sm:$0xff] }
 0x7b2   :  { %v17629_v36 = vcombine.high %v8263_v59, %v8267_v5  ;;  %v17628_v15 = vcombine.low %v8263_v59, %v8267_v5  ;;  %v17630_v60 = vcombine.low %v8264_v61, %v8268_v12  ;;  %v8304_v59 = vld [vmem:[#allocation9 + $0x858] sm:$0xff] }
 0x7b3   :  { %14933 = vmatpush1.bf16.msra.mxu0 %v17580_v45  ;;  %v17631_v45 = vcombine.high %v8264_v61, %v8268_v12  ;;  %v8308_v5 = vld [vmem:[#allocation9 + $0x878] sm:$0xff] }
 0x7b4   :  { %15261 = vmatpush1.bf16.msra.mxu1 %v17582_v2  ;;  %14934 = vmatprep.subr.bf16.mxu0 %v17589_v4  ;;  %v8271_v2 = vld [vmem:[#allocation9 + $0x750] sm:$0xff] }
 0x7b5   :  { %15262 = vmatprep.subr.bf16.mxu1 %v17591_v8  ;;  %v8275_v4 = vld [vmem:[#allocation9 + $0x770] sm:$0xff]  ;;  %v8272_v8 = vld [vmem:[#allocation9 + $0x758] sm:$0xff] }
 0x7b6   :  { %v17637_v24 = vcombine.high %v8271_v2, %v8275_v4  ;;  %v17636_v19 = vcombine.low %v8271_v2, %v8275_v4  ;;  %v17638_v20 = vcombine.low %v8272_v8, %v8276_v63  ;;  %v8316_v2 = vld [vmem:[#allocation9 + $0x8b8] sm:$0xff] }
 0x7b7   :  { %14935 = vmatpush1.bf16.msra.mxu0 %v17588_v53  ;;  %v17639_v53 = vcombine.high %v8272_v8, %v8276_v63  ;;  %v17670_v8 = vcombine.low %v8304_v59, %v8308_v5 }
 0x7b8   :  { %15263 = vmatpush1.bf16.msra.mxu1 %v17590_v49  ;;  %14936 = vmatprep.subr.bf16.mxu0 %v17597_v51  ;;  %v8279_v49 = vld [vmem:[#allocation9 + $0x790] sm:$0xff] }
 0x7b9   :  { %15264 = vmatprep.subr.bf16.mxu1 %v17599_v1  ;;  %v8283_v51 = vld [vmem:[#allocation9 + $0x7b0] sm:$0xff]  ;;  %v8280_v1 = vld [vmem:[#allocation9 + $0x798] sm:$0xff] }
 0x7ba   :  { %v17645_v22 = vcombine.high %v8279_v49, %v8283_v51  ;;  %v17644_v16 = vcombine.low %v8279_v49, %v8283_v51  ;;  %v17646_v23 = vcombine.low %v8280_v1, %v8284_v27  ;;  %v8324_v49 = vld [vmem:[#allocation9 + $0x8f8] sm:$0xff] }
 0x7bb   :  { %14937 = vmatpush1.bf16.msra.mxu0 %v17596_v9  ;;  %v17647_v9 = vcombine.high %v8280_v1, %v8284_v27 }
 0x7bc   :  { %15265 = vmatpush1.bf16.msra.mxu1 %v17598_v21  ;;  %14938 = vmatprep.subr.bf16.mxu0 %v17605_v46  ;;  %v8287_v21 = vld [vmem:[#allocation9 + $0x7d0] sm:$0xff] }
 0x7bd   :  { %15266 = vmatprep.subr.bf16.mxu1 %v17607_v28  ;;  %v8291_v46 = vld [vmem:[#allocation9 + $0x7f0] sm:$0xff]  ;;  %v8288_v28 = vld [vmem:[#allocation9 + $0x7d8] sm:$0xff] }
 0x7be   :  { %v17653_v6 = vcombine.high %v8287_v21, %v8291_v46  ;;  %v17652_v52 = vcombine.low %v8287_v21, %v8291_v46  ;;  %v17654_v54 = vcombine.low %v8288_v28, %v8292_v44 }
 0x7bf   :  { %14939 = vmatpush1.bf16.msra.mxu0 %v17604_v32  ;;  %v17655_v32 = vcombine.high %v8288_v28, %v8292_v44  ;;  %v8335_v44 = vld [vmem:[#allocation9 + $0x950] sm:$0xff] }
 0x7c0   :  { %15267 = vmatpush1.bf16.msra.mxu1 %v17606_v40  ;;  %14940 = vmatprep.subr.bf16.mxu0 %v17613_v30  ;;  %v8295_v40 = vld [vmem:[#allocation9 + $0x810] sm:$0xff] }
 0x7c1   :  { %15268 = vmatprep.subr.bf16.mxu1 %v17615_v38  ;;  %v8299_v30 = vld [vmem:[#allocation9 + $0x830] sm:$0xff]  ;;  %v8296_v38 = vld [vmem:[#allocation9 + $0x818] sm:$0xff] }
 0x7c2   :  { %v17661_v48 = vcombine.high %v8295_v40, %v8299_v30  ;;  %v17662_v61 = vcombine.low %v8296_v38, %v8300_v43 }
 0x7c3   :  { %14941 = vmatpush1.bf16.msra.mxu0 %v17612_v11  ;;  %v17663_v11 = vcombine.high %v8296_v38, %v8300_v43  ;;  %v8343_v43 = vld [vmem:[#allocation9 + $0x990] sm:$0xff] }
 0x7c4   :  { %15269 = vmatpush1.bf16.msra.mxu1 %v17614_v55  ;;  %14942 = vmatprep.subr.bf16.mxu0 %v17621_v57  ;;  %v8303_v55 = vld [vmem:[#allocation9 + $0x850] sm:$0xff] }
 0x7c5   :  { %15270 = vmatprep.subr.bf16.mxu1 %v17623_v58  ;;  %v8307_v57 = vld [vmem:[#allocation9 + $0x870] sm:$0xff]  ;;  %v17660_v58 = vcombine.low %v8295_v40, %v8299_v30 }
 0x7c6   :  { %v17669_v12 = vcombine.high %v8303_v55, %v8307_v57  ;;  %v17668_v4 = vcombine.low %v8303_v55, %v8307_v57 }
 0x7c7   :  { %14943 = vmatpush1.bf16.msra.mxu0 %v17620_v62  ;;  %v8311_v62 = vld [vmem:[#allocation9 + $0x890] sm:$0xff] }
 0x7c8   :  { %15271 = vmatpush1.bf16.msra.mxu1 %v17622_v10  ;;  %14944 = vmatprep.subr.bf16.mxu0 %v17629_v36  ;;  %v8315_v10 = vld [vmem:[#allocation9 + $0x8b0] sm:$0xff]  ;;  %v17671_v36 = vcombine.high %v8304_v59, %v8308_v5 }
 0x7c9   :  { %15272 = vmatprep.subr.bf16.mxu1 %v17631_v45  ;;  %v8312_v45 = vld [vmem:[#allocation9 + $0x898] sm:$0xff]  ;;  %v17677_v63 = vcombine.high %v8311_v62, %v8315_v10  ;;  %v17676_v51 = vcombine.low %v8311_v62, %v8315_v10  ;;  %v8351_v59 = vld [vmem:[#allocation9 + $0x9d0] sm:$0xff] }
 0x7ca   :  { %v8355_v5 = vld [vmem:[#allocation9 + $0x9f0] sm:$0xff] }
 0x7cb   :  { %14945 = vmatpush1.bf16.msra.mxu0 %v17628_v15  ;;  %v17679_v15 = vcombine.high %v8312_v45, %v8316_v2 }
 0x7cc   :  { %15273 = vmatpush1.bf16.msra.mxu1 %v17630_v60  ;;  %14946 = vmatprep.subr.bf16.mxu0 %v17637_v24  ;;  %v8319_v60 = vld [vmem:[#allocation9 + $0x8d0] sm:$0xff] }
 0x7cd   :  { %15274 = vmatprep.subr.bf16.mxu1 %v17639_v53  ;;  %v8323_v24 = vld [vmem:[#allocation9 + $0x8f0] sm:$0xff]  ;;  %v8320_v53 = vld [vmem:[#allocation9 + $0x8d8] sm:$0xff] }
 0x7ce   :  { %v17685_v1 = vcombine.high %v8319_v60, %v8323_v24  ;;  %v17687_v27 = vcombine.high %v8320_v53, %v8324_v49  ;;  %v17686_v21 = vcombine.low %v8320_v53, %v8324_v49  ;;  %v8367_v49 = vld [vmem:[#allocation9 + $0xa50] sm:$0xff] }
 0x7cf   :  { %14947 = vmatpush1.bf16.msra.mxu0 %v17636_v19  ;;  %v8327_v19 = vld [vmem:[#allocation9 + $0x910] sm:$0xff] }
 0x7d0   :  { %15275 = vmatpush1.bf16.msra.mxu1 %v17638_v20  ;;  %14948 = vmatprep.subr.bf16.mxu0 %v17645_v22  ;;  %v8331_v20 = vld [vmem:[#allocation9 + $0x930] sm:$0xff]  ;;  %v8328_v22 = vld [vmem:[#allocation9 + $0x918] sm:$0xff] }
 0x7d1   :  { %15276 = vmatprep.subr.bf16.mxu1 %v17647_v9  ;;  %v8332_v9 = vld [vmem:[#allocation9 + $0x938] sm:$0xff]  ;;  %v17693_v46 = vcombine.high %v8327_v19, %v8331_v20 }
 0x7d2   :  { %v17695_v28 = vcombine.high %v8328_v22, %v8332_v9  ;;  %v17694_v40 = vcombine.low %v8328_v22, %v8332_v9  ;;  %v8375_v9 = vld [vmem:[#allocation9 + $0xa90] sm:$0xff] }
 0x7d3   :  { %14949 = vmatpush1.bf16.msra.mxu0 %v17644_v16  ;;  %v8339_v16 = vld [vmem:[#allocation9 + $0x970] sm:$0xff] }
 0x7d4   :  { %15277 = vmatpush1.bf16.msra.mxu1 %v17646_v23  ;;  %14950 = vmatprep.subr.bf16.mxu0 %v17653_v6  ;;  %v8336_v23 = vld [vmem:[#allocation9 + $0x958] sm:$0xff]  ;;  %v17701_v30 = vcombine.high %v8335_v44, %v8339_v16 }
 0x7d5   :  { %15278 = vmatprep.subr.bf16.mxu1 %v17655_v32  ;;  %v8340_v6 = vld [vmem:[#allocation9 + $0x978] sm:$0xff]  ;;  %v17692_v32 = vcombine.low %v8327_v19, %v8331_v20 }
 0x7d6   :  { %v17703_v38 = vcombine.high %v8336_v23, %v8340_v6  ;;  %v17702_v55 = vcombine.low %v8336_v23, %v8340_v6  ;;  %v8383_v6 = vld [vmem:[#allocation9 + $0xad0] sm:$0xff] }
 0x7d7   :  { %14951 = vmatpush1.bf16.msra.mxu0 %v17652_v52  ;;  %v8347_v52 = vld [vmem:[#allocation9 + $0x9b0] sm:$0xff] }
 0x7d8   :  { %15279 = vmatpush1.bf16.msra.mxu1 %v17654_v54  ;;  %14961 = vmatprep.subr.bf16.mxu0 %v17661_v48  ;;  %v8344_v54 = vld [vmem:[#allocation9 + $0x998] sm:$0xff]  ;;  %v17709_v57 = vcombine.high %v8343_v43, %v8347_v52  ;;  %v17708_v62 = vcombine.low %v8343_v43, %v8347_v52 }
 0x7d9   :  { %15289 = vmatprep.subr.bf16.mxu1 %v17663_v11  ;;  %v8348_v48 = vld [vmem:[#allocation9 + $0x9b8] sm:$0xff]  ;;  %v17700_v11 = vcombine.low %v8335_v44, %v8339_v16 }
 0x7da   :  { %14953 = vmatmul.mubr.bf16.vlgmr.msra.gmra.mrb[20].mxu0 %v19596_v34  ;;  %v17710_v10 = vcombine.low %v8344_v54, %v8348_v48 }
 0x7db   :  { %15281 = vmatmul.mubr.bf16.vlgmr.msra.gmra.mrb[36].mxu1 %v19596_v34  ;;  %14962 = vmatpush1.bf16.msra.mxu0 %v17660_v58  ;;  %v17678_v34 = vcombine.low %v8312_v45, %v8316_v2  ;;  %v17711_v58 = vcombine.high %v8344_v54, %v8348_v48  ;;  %v8359_v2 = vld [vmem:[#allocation9 + $0xa10] sm:$0xff] }
 0x7dc   :  { %14993 = vmatprep.mubr.bf16.mxu0 %v19598_v13  ;;  %15290 = vmatpush1.bf16.msra.mxu1 %v17662_v61  ;;  %v8352_v61 = vld [vmem:[#allocation9 + $0x9d8] sm:$0xff]  ;;  %v8391_v48 = vld [vmem:[#allocation9 + $0xb10] sm:$0xff] }
 0x7dd   :  { %15321 = vmatprep.mubr.bf16.mxu1 %v19598_v13  ;;  %14963 = vmatprep.subr.bf16.mxu0 %v17669_v12  ;;  %v17684_v13 = vcombine.low %v8319_v60, %v8323_v24  ;;  %v8356_v12 = vld [vmem:[#allocation9 + $0x9f8] sm:$0xff] }
 0x7de   :  { %15291 = vmatprep.subr.bf16.mxu1 %v17671_v36  ;;  %v17717_v36 = vcombine.high %v8351_v59, %v8355_v5  ;;  %v17719_v45 = vcombine.high %v8352_v61, %v8356_v12  ;;  %v17718_v60 = vcombine.low %v8352_v61, %v8356_v12  ;;  %v8399_v12 = vld [vmem:[#allocation9 + $0xb50] sm:$0xff] }
 0x7df   :  { %14964 = vmatpush1.bf16.msra.mxu0 %v17668_v4  ;;  %v8363_v4 = vld [vmem:[#allocation9 + $0xa30] sm:$0xff] }
 0x7e0   :  { %15292 = vmatpush1.bf16.msra.mxu1 %v17670_v8  ;;  %14965 = vmatprep.subr.bf16.mxu0 %v17677_v63  ;;  %v8360_v8 = vld [vmem:[#allocation9 + $0xa18] sm:$0xff]  ;;  %v17725_v24 = vcombine.high %v8359_v2, %v8363_v4 }
 0x7e1   :  { %15293 = vmatprep.subr.bf16.mxu1 %v17679_v15  ;;  %v8364_v63 = vld [vmem:[#allocation9 + $0xa38] sm:$0xff]  ;;  %v17716_v15 = vcombine.low %v8351_v59, %v8355_v5 }
 0x7e2   :  { %v17727_v53 = vcombine.high %v8360_v8, %v8364_v63  ;;  %v17726_v19 = vcombine.low %v8360_v8, %v8364_v63  ;;  %v8407_v63 = vld [vmem:[#allocation9 + $0xb90] sm:$0xff] }
 0x7e3   :  { %14966 = vmatpush1.bf16.msra.mxu0 %v17676_v51  ;;  %v8371_v51 = vld [vmem:[#allocation9 + $0xa70] sm:$0xff] }
 0x7e4   :  { %15294 = vmatpush1.bf16.msra.mxu1 %v17678_v34  ;;  %14967 = vmatprep.subr.bf16.mxu0 %v17685_v1  ;;  %v8368_v34 = vld [vmem:[#allocation9 + $0xa58] sm:$0xff]  ;;  %v17733_v20 = vcombine.high %v8367_v49, %v8371_v51 }
 0x7e5   :  { %15295 = vmatprep.subr.bf16.mxu1 %v17687_v27  ;;  %v8372_v1 = vld [vmem:[#allocation9 + $0xa78] sm:$0xff]  ;;  %v17724_v27 = vcombine.low %v8359_v2, %v8363_v4 }
 0x7e6   :  { %v17735_v22 = vcombine.high %v8368_v34, %v8372_v1  ;;  %v17734_v44 = vcombine.low %v8368_v34, %v8372_v1  ;;  %v8415_v1 = vld [vmem:[#allocation9 + $0xbd0] sm:$0xff] }
 0x7e7   :  { %14968 = vmatpush1.bf16.msra.mxu0 %v17684_v13  ;;  %v8379_v13 = vld [vmem:[#allocation9 + $0xab0] sm:$0xff] }
 0x7e8   :  { %15296 = vmatpush1.bf16.msra.mxu1 %v17686_v21  ;;  %14969 = vmatprep.subr.bf16.mxu0 %v17693_v46  ;;  %v8376_v21 = vld [vmem:[#allocation9 + $0xa98] sm:$0xff]  ;;  %v17741_v16 = vcombine.high %v8375_v9, %v8379_v13 }
 0x7e9   :  { %15297 = vmatprep.subr.bf16.mxu1 %v17695_v28  ;;  %v8380_v46 = vld [vmem:[#allocation9 + $0xab8] sm:$0xff]  ;;  %v17732_v28 = vcombine.low %v8367_v49, %v8371_v51 }
 0x7ea   :  { %v17743_v23 = vcombine.high %v8376_v21, %v8380_v46  ;;  %v17742_v43 = vcombine.low %v8376_v21, %v8380_v46  ;;  %v8423_v46 = vld [vmem:[#allocation9 + $0xc10] sm:$0xff] }
 0x7eb   :  { %14970 = vmatpush1.bf16.msra.mxu0 %v17692_v32  ;;  %v8387_v32 = vld [vmem:[#allocation9 + $0xaf0] sm:$0xff] }
 0x7ec   :  { %15298 = vmatpush1.bf16.msra.mxu1 %v17694_v40  ;;  %14971 = vmatprep.subr.bf16.mxu0 %v17701_v30  ;;  %v8384_v40 = vld [vmem:[#allocation9 + $0xad8] sm:$0xff]  ;;  %v17749_v52 = vcombine.high %v8383_v6, %v8387_v32 }
 0x7ed   :  { %15299 = vmatprep.subr.bf16.mxu1 %v17703_v38  ;;  %v8388_v30 = vld [vmem:[#allocation9 + $0xaf8] sm:$0xff]  ;;  %v17740_v38 = vcombine.low %v8375_v9, %v8379_v13 }
 0x7ee   :  { %v17751_v54 = vcombine.high %v8384_v40, %v8388_v30  ;;  %v17750_v59 = vcombine.low %v8384_v40, %v8388_v30  ;;  %v8431_v30 = vld [vmem:[#allocation9 + $0xc50] sm:$0xff] }
 0x7ef   :  { %14972 = vmatpush1.bf16.msra.mxu0 %v17700_v11  ;;  %v8395_v11 = vld [vmem:[#allocation9 + $0xb30] sm:$0xff] }
 0x7f0   :  { %15300 = vmatpush1.bf16.msra.mxu1 %v17702_v55  ;;  %14973 = vmatprep.subr.bf16.mxu0 %v17709_v57  ;;  %v8392_v55 = vld [vmem:[#allocation9 + $0xb18] sm:$0xff]  ;;  %v17757_v5 = vcombine.high %v8391_v48, %v8395_v11 }
 0x7f1   :  { %15301 = vmatprep.subr.bf16.mxu1 %v17711_v58  ;;  %v8396_v57 = vld [vmem:[#allocation9 + $0xb38] sm:$0xff]  ;;  %v17748_v58 = vcombine.low %v8383_v6, %v8387_v32 }
 0x7f2   :  { %v17759_v61 = vcombine.high %v8392_v55, %v8396_v57  ;;  %v17758_v2 = vcombine.low %v8392_v55, %v8396_v57  ;;  %v8439_v55 = vld [vmem:[#allocation9 + $0xc90] sm:$0xff] }
 0x7f3   :  { %14974 = vmatpush1.bf16.msra.mxu0 %v17708_v62  ;;  %v8403_v62 = vld [vmem:[#allocation9 + $0xb70] sm:$0xff] }
 0x7f4   :  { %15302 = vmatpush1.bf16.msra.mxu1 %v17710_v10  ;;  %14975 = vmatprep.subr.bf16.mxu0 %v17717_v36  ;;  %v8400_v10 = vld [vmem:[#allocation9 + $0xb58] sm:$0xff]  ;;  %v17765_v4 = vcombine.high %v8399_v12, %v8403_v62  ;;  %v8443_v57 = vld [vmem:[#allocation9 + $0xcb0] sm:$0xff] }
 0x7f5   :  { %15303 = vmatprep.subr.bf16.mxu1 %v17719_v45  ;;  %v8404_v36 = vld [vmem:[#allocation9 + $0xb78] sm:$0xff]  ;;  %v17756_v45 = vcombine.low %v8391_v48, %v8395_v11 }
 0x7f6   :  { %v17767_v8 = vcombine.high %v8400_v10, %v8404_v36  ;;  %v17766_v49 = vcombine.low %v8400_v10, %v8404_v36  ;;  %v8447_v36 = vld [vmem:[#allocation9 + $0xcd0] sm:$0xff] }
 0x7f7   :  { %14976 = vmatpush1.bf16.msra.mxu0 %v17716_v15  ;;  %v8411_v15 = vld [vmem:[#allocation9 + $0xbb0] sm:$0xff] }
 0x7f8   :  { %15304 = vmatpush1.bf16.msra.mxu1 %v17718_v60  ;;  %14977 = vmatprep.subr.bf16.mxu0 %v17725_v24  ;;  %v8408_v60 = vld [vmem:[#allocation9 + $0xb98] sm:$0xff]  ;;  %v17773_v51 = vcombine.high %v8407_v63, %v8411_v15 }
 0x7f9   :  { %15305 = vmatprep.subr.bf16.mxu1 %v17727_v53  ;;  %v8412_v24 = vld [vmem:[#allocation9 + $0xbb8] sm:$0xff]  ;;  %v17764_v53 = vcombine.low %v8399_v12, %v8403_v62  ;;  %v17805_v62 = vcombine.high %v8439_v55, %v8443_v57 }
 0x7fa   :  { %v17775_v34 = vcombine.high %v8408_v60, %v8412_v24  ;;  %v17774_v9 = vcombine.low %v8408_v60, %v8412_v24  ;;  %v8455_v60 = vld [vmem:[#allocation9 + $0xd10] sm:$0xff] }
 0x7fb   :  { %14978 = vmatpush1.bf16.msra.mxu0 %v17724_v27  ;;  %v8419_v27 = vld [vmem:[#allocation9 + $0xbf0] sm:$0xff] }
 0x7fc   :  { %15306 = vmatpush1.bf16.msra.mxu1 %v17726_v19  ;;  %14979 = vmatprep.subr.bf16.mxu0 %v17733_v20  ;;  %v8416_v19 = vld [vmem:[#allocation9 + $0xbd8] sm:$0xff]  ;;  %v17781_v13 = vcombine.high %v8415_v1, %v8419_v27  ;;  %v8459_v24 = vld [vmem:[#allocation9 + $0xd30] sm:$0xff] }
 0x7fd   :  { %15307 = vmatprep.subr.bf16.mxu1 %v17735_v22  ;;  %v8420_v20 = vld [vmem:[#allocation9 + $0xbf8] sm:$0xff]  ;;  %v17772_v22 = vcombine.low %v8407_v63, %v8411_v15 }
 0x7fe   :  { %v17783_v21 = vcombine.high %v8416_v19, %v8420_v20  ;;  %v17782_v6 = vcombine.low %v8416_v19, %v8420_v20  ;;  %v8467_v19 = vld [vmem:[#allocation9 + $0xd70] sm:$0xff]  ;;  %v8464_v20 = vld [vmem:[#allocation9 + $0xd58] sm:$0xff] }
 0x7ff   :  { %14980 = vmatpush1.bf16.msra.mxu0 %v17732_v28  ;;  %v8427_v28 = vld [vmem:[#allocation9 + $0xc30] sm:$0xff] }
 0x800   :  { %15308 = vmatpush1.bf16.msra.mxu1 %v17734_v44  ;;  %14981 = vmatprep.subr.bf16.mxu0 %v17741_v16  ;;  %v8424_v44 = vld [vmem:[#allocation9 + $0xc18] sm:$0xff]  ;;  %v17789_v32 = vcombine.high %v8423_v46, %v8427_v28 }
 0x801   :  { %15309 = vmatprep.subr.bf16.mxu1 %v17743_v23  ;;  %v8428_v16 = vld [vmem:[#allocation9 + $0xc38] sm:$0xff]  ;;  %v17780_v23 = vcombine.low %v8415_v1, %v8419_v27  ;;  %v8463_v27 = vld [vmem:[#allocation9 + $0xd50] sm:$0xff] }
 0x802   :  { %v17791_v40 = vcombine.high %v8424_v44, %v8428_v16  ;;  %v17790_v48 = vcombine.low %v8424_v44, %v8428_v16  ;;  %v8475_v44 = vld [vmem:[#allocation9 + $0xdb0] sm:$0xff]  ;;  %v8472_v16 = vld [vmem:[#allocation9 + $0xd98] sm:$0xff] }
 0x803   :  { %14982 = vmatpush1.bf16.msra.mxu0 %v17740_v38  ;;  %v8435_v38 = vld [vmem:[#allocation9 + $0xc70] sm:$0xff] }
 0x804   :  { %15310 = vmatpush1.bf16.msra.mxu1 %v17742_v43  ;;  %14983 = vmatprep.subr.bf16.mxu0 %v17749_v52  ;;  %v17788_v43 = vcombine.low %v8423_v46, %v8427_v28  ;;  %v8432_v52 = vld [vmem:[#allocation9 + $0xc58] sm:$0xff]  ;;  %v17797_v11 = vcombine.high %v8431_v30, %v8435_v38  ;;  %v8471_v28 = vld [vmem:[#allocation9 + $0xd90] sm:$0xff] }
 0x805   :  { %15311 = vmatprep.subr.bf16.mxu1 %v17751_v54  ;;  %v8436_v54 = vld [vmem:[#allocation9 + $0xc78] sm:$0xff] }
 0x806   :  { %v17798_v12 = vcombine.low %v8432_v52, %v8436_v54 }
 0x807   :  { %14984 = vmatpush1.bf16.msra.mxu0 %v17748_v58  ;;  %v17799_v58 = vcombine.high %v8432_v52, %v8436_v54  ;;  %v8483_v52 = vld [vmem:[#allocation9 + $0xdf0] sm:$0xff] }
 0x808   :  { %15312 = vmatpush1.bf16.msra.mxu1 %v17750_v59  ;;  %14985 = vmatprep.subr.bf16.mxu0 %v17757_v5  ;;  %v8440_v59 = vld [vmem:[#allocation9 + $0xc98] sm:$0xff] }
 0x809   :  { %15313 = vmatprep.subr.bf16.mxu1 %v17759_v61  ;;  %v8444_v5 = vld [vmem:[#allocation9 + $0xcb8] sm:$0xff]  ;;  %v17796_v61 = vcombine.low %v8431_v30, %v8435_v38 }
 0x80a   :  { %v17807_v10 = vcombine.high %v8440_v59, %v8444_v5 }
 0x80b   :  { %14986 = vmatpush1.bf16.msra.mxu0 %v17756_v45  ;;  %v8451_v45 = vld [vmem:[#allocation9 + $0xcf0] sm:$0xff] }
 0x80c   :  { %15314 = vmatpush1.bf16.msra.mxu1 %v17758_v2  ;;  %14987 = vmatprep.subr.bf16.mxu0 %v17765_v4  ;;  %v8448_v2 = vld [vmem:[#allocation9 + $0xcd8] sm:$0xff]  ;;  %v17813_v63 = vcombine.high %v8447_v36, %v8451_v45 }
 0x80d   :  { %15315 = vmatprep.subr.bf16.mxu1 %v17767_v8  ;;  %v8452_v4 = vld [vmem:[#allocation9 + $0xcf8] sm:$0xff]  ;;  %v17804_v8 = vcombine.low %v8439_v55, %v8443_v57 }
 0x80e   :  { %v17815_v15 = vcombine.high %v8448_v2, %v8452_v4  ;;  %v8484_v55 = vld [vmem:[#allocation9 + $0xdf8] sm:$0xff] }
 0x80f   :  { %14988 = vmatpush1.bf16.msra.mxu0 %v17764_v53  ;;  %v8456_v53 = vld [vmem:[#allocation9 + $0xd18] sm:$0xff] }
 0x810   :  { %15316 = vmatpush1.bf16.msra.mxu1 %v17766_v49  ;;  %14989 = vmatprep.subr.bf16.mxu0 %v17773_v51  ;;  %v8460_v49 = vld [vmem:[#allocation9 + $0xd38] sm:$0xff]  ;;  %v17814_v51 = vcombine.low %v8448_v2, %v8452_v4  ;;  %v8491_v2 = vld [vmem:[#allocation9 + $0xe30] sm:$0xff] }
 0x811   :  { %15317 = vmatprep.subr.bf16.mxu1 %v17775_v34  ;;  %v17821_v34 = vcombine.high %v8455_v60, %v8459_v24  ;;  %v17823_v1 = vcombine.high %v8456_v53, %v8460_v49  ;;  %v8488_v4 = vld [vmem:[#allocation9 + $0xe18] sm:$0xff] }
 0x813   :  { %14990 = vmatpush1.bf16.msra.mxu0 %v17772_v22  ;;  %v8468_v22 = vld [vmem:[#allocation9 + $0xd78] sm:$0xff] }
 0x814   :  { %15318 = vmatpush1.bf16.msra.mxu1 %v17774_v9  ;;  %14991 = vmatprep.subr.bf16.mxu0 %v17781_v13  ;;  %v17820_v9 = vcombine.low %v8455_v60, %v8459_v24  ;;  %v17822_v13 = vcombine.low %v8456_v53, %v8460_v49  ;;  %v17831_v46 = vcombine.high %v8464_v20, %v8468_v22  ;;  %v8495_v24 = vld [vmem:[#allocation9 + $0xe50] sm:$0xff]  ;;  %v8496_v49 = vld [vmem:[#allocation9 + $0xe58] sm:$0xff] }
 0x815   :  { %15319 = vmatprep.subr.bf16.mxu1 %v17783_v21  ;;  %v17829_v21 = vcombine.high %v8463_v27, %v8467_v19  ;;  %v8499_v53 = vld [vmem:[#allocation9 + $0xe70] sm:$0xff] }
 0x817   :  { %14992 = vmatpush1.bf16.msra.mxu0 %v17780_v23  ;;  %v8476_v23 = vld [vmem:[#allocation9 + $0xdb8] sm:$0xff] }
 0x818   :  { %15320 = vmatpush1.bf16.msra.mxu1 %v17782_v6  ;;  %15002 = vmatprep.subr.bf16.mxu0 %v17789_v32  ;;  %v17828_v6 = vcombine.low %v8463_v27, %v8467_v19  ;;  %v17830_v32 = vcombine.low %v8464_v20, %v8468_v22  ;;  %v17839_v38 = vcombine.high %v8472_v16, %v8476_v23  ;;  %v8503_v19 = vld [vmem:[#allocation9 + $0xe90] sm:$0xff]  ;;  %v8504_v22 = vld [vmem:[#allocation9 + $0xe98] sm:$0xff] }
 0x819   :  { %15330 = vmatprep.subr.bf16.mxu1 %v17791_v40  ;;  %v17837_v40 = vcombine.high %v8471_v28, %v8475_v44  ;;  %v8507_v20 = vld [vmem:[#allocation9 + $0xeb0] sm:$0xff] }
 0x81a   :  { %14994 = vmatmul.mubr.bf16.vlgmr.msra.gmra.mrb[20].mxu0 %v19612_v41 }
 0x81b   :  { %15322 = vmatmul.mubr.bf16.vlgmr.msra.gmra.mrb[36].mxu1 %v19612_v41  ;;  %15003 = vmatpush1.bf16.msra.mxu0 %v17788_v43  ;;  %v17806_v41 = vcombine.low %v8440_v59, %v8444_v5  ;;  %v8479_v43 = vld [vmem:[#allocation9 + $0xdd0] sm:$0xff]  ;;  %v17836_v59 = vcombine.low %v8471_v28, %v8475_v44 }
 0x81c   :  { %15034 = vmatprep.mubr.bf16.mxu0 %v19614_v50  ;;  %15331 = vmatpush1.bf16.msra.mxu1 %v17790_v48  ;;  %v8511_v44 = vld [vmem:[#allocation9 + $0xed0] sm:$0xff] }
 0x81d   :  { %15362 = vmatprep.mubr.bf16.mxu1 %v19614_v50  ;;  %15004 = vmatprep.subr.bf16.mxu0 %v17797_v11  ;;  %v17812_v50 = vcombine.low %v8447_v36, %v8451_v45  ;;  %v8480_v11 = vld [vmem:[#allocation9 + $0xdd8] sm:$0xff]  ;;  %v8487_v45 = vld [vmem:[#allocation9 + $0xe10] sm:$0xff] }
 0x81e   :  { %15332 = vmatprep.subr.bf16.mxu1 %v17799_v58  ;;  %v17847_v36 = vcombine.high %v8480_v11, %v8484_v55 }
 0x81f   :  { %15005 = vmatpush1.bf16.msra.mxu0 %v17796_v61 }
 0x820   :  { %15333 = vmatpush1.bf16.msra.mxu1 %v17798_v12  ;;  %15006 = vmatprep.subr.bf16.mxu0 %v17805_v62  ;;  %v17838_v12 = vcombine.low %v8472_v16, %v8476_v23  ;;  %v17845_v62 = vcombine.high %v8479_v43, %v8483_v52  ;;  %v8515_v16 = vld [vmem:[#allocation9 + $0xef0] sm:$0xff]  ;;  %v8512_v23 = vld [vmem:[#allocation9 + $0xed8] sm:$0xff] }
 0x821   :  { %15334 = vmatprep.subr.bf16.mxu1 %v17807_v10 }
 0x823   :  { %15007 = vmatpush1.bf16.msra.mxu0 %v17804_v8  ;;  %v8492_v8 = vld [vmem:[#allocation9 + $0xe38] sm:$0xff] }
 0x824   :  { %15335 = vmatpush1.bf16.msra.mxu1 %v17806_v41  ;;  %15008 = vmatprep.subr.bf16.mxu0 %v17813_v63  ;;  %v17844_v41 = vcombine.low %v8479_v43, %v8483_v52  ;;  %v17846_v63 = vcombine.low %v8480_v11, %v8484_v55  ;;  %v17855_v60 = vcombine.high %v8488_v4, %v8492_v8  ;;  %v8519_v52 = vld [vmem:[#allocation9 + $0xf10] sm:$0xff]  ;;  %v8520_v55 = vld [vmem:[#allocation9 + $0xf18] sm:$0xff] }
 0x825   :  { %15336 = vmatprep.subr.bf16.mxu1 %v17815_v15  ;;  %v17853_v15 = vcombine.high %v8487_v45, %v8491_v2  ;;  %v8523_v11 = vld [vmem:[#allocation9 + $0xf30] sm:$0xff] }
 0x827   :  { %15009 = vmatpush1.bf16.msra.mxu0 %v17812_v50  ;;  %v8500_v50 = vld [vmem:[#allocation9 + $0xe78] sm:$0xff] }
 0x828   :  { %15337 = vmatpush1.bf16.msra.mxu1 %v17814_v51  ;;  %15010 = vmatprep.subr.bf16.mxu0 %v17821_v34  ;;  %v17852_v51 = vcombine.low %v8487_v45, %v8491_v2  ;;  %v17854_v34 = vcombine.low %v8488_v4, %v8492_v8  ;;  %v17863_v27 = vcombine.high %v8496_v49, %v8500_v50  ;;  %v8532_v45 = vld [vmem:[#allocation9 + $0xf78] sm:$0xff] }
 0x829   :  { %15338 = vmatprep.subr.bf16.mxu1 %v17823_v1  ;;  %v17861_v1 = vcombine.high %v8495_v24, %v8499_v53  ;;  %v17884_v2 = vcombine.low %v8519_v52, %v8523_v11 }
 0x82b   :  { %15011 = vmatpush1.bf16.msra.mxu0 %v17820_v9  ;;  %v8508_v9 = vld [vmem:[#allocation9 + $0xeb8] sm:$0xff] }
 0x82c   :  { %15339 = vmatpush1.bf16.msra.mxu1 %v17822_v13  ;;  %15012 = vmatprep.subr.bf16.mxu0 %v17829_v21  ;;  %v17860_v13 = vcombine.low %v8495_v24, %v8499_v53  ;;  %v17862_v21 = vcombine.low %v8496_v49, %v8500_v50  ;;  %v17871_v28 = vcombine.high %v8504_v22, %v8508_v9  ;;  %v8540_v24 = vld [vmem:[#allocation9 + $0xfb8] sm:$0xff] }
 0x82d   :  { %v19709_v30 = vpop.f32.mrb[16].mxu0  ;;  %15340 = vmatprep.subr.bf16.mxu1 %v17831_v46  ;;  %v17869_v46 = vcombine.high %v8503_v19, %v8507_v20 }
 0x82e   :  { %v19711_v54 = vpop.f32.mrb[32].mxu1  ;;  %v19713_v48 = vpop.f32.mrb[17].mxu0 }
 0x82f   :  { %v19715_v57 = vpop.f32.mrb[33].mxu1  ;;  %v14548_v58 = vpop.f32.mrb[18].mxu0  ;;  %15013 = vmatpush1.bf16.msra.mxu0 %v17828_v6  ;;  %v8516_v6 = vld [vmem:[#allocation9 + $0xef8] sm:$0xff] }
 0x830   :  { %v14876_v5 = vpop.f32.mrb[34].mxu1  ;;  %15341 = vmatpush1.bf16.msra.mxu1 %v17830_v32  ;;  %v14549_v61 = vpop.f32.mrb[19].mxu0  ;;  %15014 = vmatprep.subr.bf16.mxu0 %v17837_v40  ;;  %v17868_v32 = vcombine.low %v8503_v19, %v8507_v20  ;;  %v17870_v40 = vcombine.low %v8504_v22, %v8508_v9  ;;  %v17879_v43 = vcombine.high %v8512_v23, %v8516_v6  ;;  %v8524_v58 = vld [vmem:[#allocation9 + $0xf38] sm:$0xff] }
 0x831   :  { %v14877_v10 = vpop.f32.mrb[35].mxu1  ;;  %15342 = vmatprep.subr.bf16.mxu1 %v17839_v38  ;;  %v17877_v38 = vcombine.high %v8511_v44, %v8515_v16  ;;  %v17878_v5 = vcombine.low %v8512_v23, %v8516_v6  ;;  %v17885_v61 = vcombine.high %v8519_v52, %v8523_v11  ;;  %v17886_v4 = vcombine.low %v8520_v55, %v8524_v58  ;;  %v8548_v19 = vld [vmem:[#allocation9 + $0xff8] sm:$0xff] }
 0x832   :  { %v8531_v10 = vld [vmem:[#allocation9 + $0xf70] sm:$0xff]  ;;  %v8560_v52 = vld [vmem:[#allocation9 + $0x1058] sm:$0xff] }
 0x833   :  { %15015 = vmatpush1.bf16.msra.mxu0 %v17836_v59  ;;  %v17876_v59 = vcombine.low %v8511_v44, %v8515_v16  ;;  %v8556_v44 = vld [vmem:[#allocation9 + $0x1038] sm:$0xff] }
 0x834   :  { %15343 = vmatpush1.bf16.msra.mxu1 %v17838_v12  ;;  %15016 = vmatprep.subr.bf16.mxu0 %v17845_v62  ;;  %v17887_v12 = vcombine.high %v8520_v55, %v8524_v58  ;;  %v8527_v62 = vld [vmem:[#allocation9 + $0xf50] sm:$0xff]  ;;  %v8564_v11 = vld [vmem:[#allocation9 + $0x1078] sm:$0xff] }
 0x835   :  { %15344 = vmatprep.subr.bf16.mxu1 %v17847_v36  ;;  %v8528_v36 = vld [vmem:[#allocation9 + $0xf58] sm:$0xff]  ;;  %v17893_v8 = vcombine.high %v8527_v62, %v8531_v10  ;;  %v17892_v53 = vcombine.low %v8527_v62, %v8531_v10 }
 0x836   :  { %v17894_v49 = vcombine.low %v8528_v36, %v8532_v45  ;;  %v8572_v62 = vld [vmem:[#allocation9 + $0x10b8] sm:$0xff] }
 0x837   :  { %15017 = vmatpush1.bf16.msra.mxu0 %v17844_v41  ;;  %v17895_v41 = vcombine.high %v8528_v36, %v8532_v45  ;;  %v17926_v36 = vcombine.low %v8560_v52, %v8564_v11 }
 0x838   :  { %15345 = vmatpush1.bf16.msra.mxu1 %v17846_v63  ;;  %15018 = vmatprep.subr.bf16.mxu0 %v17853_v15  ;;  %v8535_v63 = vld [vmem:[#allocation9 + $0xf90] sm:$0xff] }
 0x839   :  { %15346 = vmatprep.subr.bf16.mxu1 %v17855_v60  ;;  %v8539_v15 = vld [vmem:[#allocation9 + $0xfb0] sm:$0xff]  ;;  %v8536_v60 = vld [vmem:[#allocation9 + $0xf98] sm:$0xff] }
 0x83a   :  { %v17901_v50 = vcombine.high %v8535_v63, %v8539_v15  ;;  %v17900_v20 = vcombine.low %v8535_v63, %v8539_v15  ;;  %v17902_v22 = vcombine.low %v8536_v60, %v8540_v24  ;;  %v8580_v63 = vld [vmem:[#allocation9 + $0x10f8] sm:$0xff] }
 0x83b   :  { %15019 = vmatpush1.bf16.msra.mxu0 %v17852_v51  ;;  %v17903_v51 = vcombine.high %v8536_v60, %v8540_v24 }
 0x83c   :  { %15347 = vmatpush1.bf16.msra.mxu1 %v17854_v34  ;;  %15020 = vmatprep.subr.bf16.mxu0 %v17861_v1  ;;  %v8543_v34 = vld [vmem:[#allocation9 + $0xfd0] sm:$0xff] }
 0x83d   :  { %15348 = vmatprep.subr.bf16.mxu1 %v17863_v27  ;;  %v8547_v1 = vld [vmem:[#allocation9 + $0xff0] sm:$0xff]  ;;  %v8544_v27 = vld [vmem:[#allocation9 + $0xfd8] sm:$0xff] }
 0x83e   :  { %v17909_v9 = vcombine.high %v8543_v34, %v8547_v1  ;;  %v17908_v16 = vcombine.low %v8543_v34, %v8547_v1  ;;  %v17910_v23 = vcombine.low %v8544_v27, %v8548_v19 }
 0x83f   :  { %15021 = vmatpush1.bf16.msra.mxu0 %v17860_v13  ;;  %v17911_v13 = vcombine.high %v8544_v27, %v8548_v19  ;;  %v8591_v19 = vld [vmem:[#allocation9 + $0x1150] sm:$0xff] }
 0x840   :  { %15349 = vmatpush1.bf16.msra.mxu1 %v17862_v21  ;;  %15022 = vmatprep.subr.bf16.mxu0 %v17869_v46  ;;  %v8551_v21 = vld [vmem:[#allocation9 + $0x1010] sm:$0xff] }
 0x841   :  { %15350 = vmatprep.subr.bf16.mxu1 %v17871_v28  ;;  %v8555_v46 = vld [vmem:[#allocation9 + $0x1030] sm:$0xff]  ;;  %v8552_v28 = vld [vmem:[#allocation9 + $0x1018] sm:$0xff] }
 0x842   :  { %v17917_v6 = vcombine.high %v8551_v21, %v8555_v46  ;;  %v17918_v55 = vcombine.low %v8552_v28, %v8556_v44 }
 0x843   :  { %15023 = vmatpush1.bf16.msra.mxu0 %v17868_v32  ;;  %v17919_v32 = vcombine.high %v8552_v28, %v8556_v44  ;;  %v8599_v44 = vld [vmem:[#allocation9 + $0x1190] sm:$0xff] }
 0x844   :  { %15351 = vmatpush1.bf16.msra.mxu1 %v17870_v40  ;;  %15024 = vmatprep.subr.bf16.mxu0 %v17877_v38  ;;  %v8559_v40 = vld [vmem:[#allocation9 + $0x1050] sm:$0xff] }
 0x845   :  { %15352 = vmatprep.subr.bf16.mxu1 %v17879_v43  ;;  %v8563_v38 = vld [vmem:[#allocation9 + $0x1070] sm:$0xff]  ;;  %v17916_v43 = vcombine.low %v8551_v21, %v8555_v46 }
 0x846   :  { %v17925_v58 = vcombine.high %v8559_v40, %v8563_v38  ;;  %v17924_v10 = vcombine.low %v8559_v40, %v8563_v38 }
 0x847   :  { %15025 = vmatpush1.bf16.msra.mxu0 %v17876_v59  ;;  %v8567_v59 = vld [vmem:[#allocation9 + $0x1090] sm:$0xff] }
 0x848   :  { %15353 = vmatpush1.bf16.msra.mxu1 %v17878_v5  ;;  %15026 = vmatprep.subr.bf16.mxu0 %v17885_v61  ;;  %v8571_v5 = vld [vmem:[#allocation9 + $0x10b0] sm:$0xff]  ;;  %v17927_v61 = vcombine.high %v8560_v52, %v8564_v11 }
 0x849   :  { %15354 = vmatprep.subr.bf16.mxu1 %v17887_v12  ;;  %v8568_v12 = vld [vmem:[#allocation9 + $0x1098] sm:$0xff]  ;;  %v17933_v45 = vcombine.high %v8567_v59, %v8571_v5  ;;  %v17932_v15 = vcombine.low %v8567_v59, %v8571_v5  ;;  %v8607_v52 = vld [vmem:[#allocation9 + $0x11d0] sm:$0xff] }
 0x84a   :  { %v8611_v11 = vld [vmem:[#allocation9 + $0x11f0] sm:$0xff] }
 0x84b   :  { %15027 = vmatpush1.bf16.msra.mxu0 %v17884_v2  ;;  %v17935_v2 = vcombine.high %v8568_v12, %v8572_v62 }
 0x84c   :  { %15355 = vmatpush1.bf16.msra.mxu1 %v17886_v4  ;;  %15028 = vmatprep.subr.bf16.mxu0 %v17893_v8  ;;  %v8575_v4 = vld [vmem:[#allocation9 + $0x10d0] sm:$0xff] }
 0x84d   :  { %15356 = vmatprep.subr.bf16.mxu1 %v17895_v41  ;;  %v8579_v8 = vld [vmem:[#allocation9 + $0x10f0] sm:$0xff]  ;;  %v8576_v41 = vld [vmem:[#allocation9 + $0x10d8] sm:$0xff] }
 0x84e   :  { %v17941_v60 = vcombine.high %v8575_v4, %v8579_v8  ;;  %v17943_v24 = vcombine.high %v8576_v41, %v8580_v63  ;;  %v17942_v34 = vcombine.low %v8576_v41, %v8580_v63  ;;  %v8623_v63 = vld [vmem:[#allocation9 + $0x1250] sm:$0xff] }
 0x84f   :  { %15029 = vmatpush1.bf16.msra.mxu0 %v17892_v53  ;;  %v8583_v53 = vld [vmem:[#allocation9 + $0x1110] sm:$0xff] }
 0x850   :  { %15357 = vmatpush1.bf16.msra.mxu1 %v17894_v49  ;;  %15030 = vmatprep.subr.bf16.mxu0 %v17901_v50  ;;  %v8587_v49 = vld [vmem:[#allocation9 + $0x1130] sm:$0xff]  ;;  %v8584_v50 = vld [vmem:[#allocation9 + $0x1118] sm:$0xff] }
 0x851   :  { %15358 = vmatprep.subr.bf16.mxu1 %v17903_v51  ;;  %v8588_v51 = vld [vmem:[#allocation9 + $0x1138] sm:$0xff]  ;;  %v17949_v1 = vcombine.high %v8583_v53, %v8587_v49 }
 0x852   :  { %v17951_v27 = vcombine.high %v8584_v50, %v8588_v51  ;;  %v17950_v21 = vcombine.low %v8584_v50, %v8588_v51  ;;  %v8631_v51 = vld [vmem:[#allocation9 + $0x1290] sm:$0xff] }
 0x853   :  { %15031 = vmatpush1.bf16.msra.mxu0 %v17900_v20  ;;  %v8595_v20 = vld [vmem:[#allocation9 + $0x1170] sm:$0xff] }
 0x854   :  { %15359 = vmatpush1.bf16.msra.mxu1 %v17902_v22  ;;  %15032 = vmatprep.subr.bf16.mxu0 %v17909_v9  ;;  %v8592_v22 = vld [vmem:[#allocation9 + $0x1158] sm:$0xff]  ;;  %v17957_v46 = vcombine.high %v8591_v19, %v8595_v20 }
 0x855   :  { %15360 = vmatprep.subr.bf16.mxu1 %v17911_v13  ;;  %v8596_v9 = vld [vmem:[#allocation9 + $0x1178] sm:$0xff]  ;;  %v17948_v13 = vcombine.low %v8583_v53, %v8587_v49 }
 0x856   :  { %v17959_v28 = vcombine.high %v8592_v22, %v8596_v9  ;;  %v17958_v40 = vcombine.low %v8592_v22, %v8596_v9  ;;  %v8639_v9 = vld [vmem:[#allocation9 + $0x12d0] sm:$0xff] }
 0x857   :  { %15033 = vmatpush1.bf16.msra.mxu0 %v17908_v16  ;;  %v8603_v16 = vld [vmem:[#allocation9 + $0x11b0] sm:$0xff] }
 0x858   :  { %15361 = vmatpush1.bf16.msra.mxu1 %v17910_v23  ;;  %15043 = vmatprep.subr.bf16.mxu0 %v17917_v6  ;;  %v8600_v23 = vld [vmem:[#allocation9 + $0x1198] sm:$0xff]  ;;  %v17965_v38 = vcombine.high %v8599_v44, %v8603_v16  ;;  %v17964_v59 = vcombine.low %v8599_v44, %v8603_v16 }
 0x859   :  { %15371 = vmatprep.subr.bf16.mxu1 %v17919_v32  ;;  %v8604_v6 = vld [vmem:[#allocation9 + $0x11b8] sm:$0xff]  ;;  %v17956_v32 = vcombine.low %v8591_v19, %v8595_v20 }
 0x85a   :  { %15035 = vmatmul.mubr.bf16.vlgmr.msra.gmra.mrb[20].mxu0 %v19636_v7  ;;  %v17966_v5 = vcombine.low %v8600_v23, %v8604_v6 }
 0x85b   :  { %15363 = vmatmul.mubr.bf16.vlgmr.msra.gmra.mrb[36].mxu1 %v19636_v7  ;;  %15044 = vmatpush1.bf16.msra.mxu0 %v17916_v43  ;;  %v17934_v7 = vcombine.low %v8568_v12, %v8572_v62  ;;  %v17967_v43 = vcombine.high %v8600_v23, %v8604_v6  ;;  %v8615_v62 = vld [vmem:[#allocation9 + $0x1210] sm:$0xff] }
 0x85c   :  { %15075 = vmatprep.mubr.bf16.mxu0 %v19638_v17  ;;  %15372 = vmatpush1.bf16.msra.mxu1 %v17918_v55  ;;  %v8608_v55 = vld [vmem:[#allocation9 + $0x11d8] sm:$0xff]  ;;  %v8647_v6 = vld [vmem:[#allocation9 + $0x1310] sm:$0xff] }
 0x85d   :  { %15403 = vmatprep.mubr.bf16.mxu1 %v19638_v17  ;;  %15045 = vmatprep.subr.bf16.mxu0 %v17925_v58  ;;  %v17940_v17 = vcombine.low %v8575_v4, %v8579_v8  ;;  %v8612_v58 = vld [vmem:[#allocation9 + $0x11f8] sm:$0xff] }
 0x85e   :  { %15373 = vmatprep.subr.bf16.mxu1 %v17927_v61  ;;  %v17973_v61 = vcombine.high %v8607_v52, %v8611_v11  ;;  %v17975_v12 = vcombine.high %v8608_v55, %v8612_v58  ;;  %v17974_v4 = vcombine.low %v8608_v55, %v8612_v58  ;;  %v8655_v58 = vld [vmem:[#allocation9 + $0x1350] sm:$0xff] }
 0x85f   :  { %15046 = vmatpush1.bf16.msra.mxu0 %v17924_v10  ;;  %v8619_v10 = vld [vmem:[#allocation9 + $0x1230] sm:$0xff] }
 0x860   :  { %15374 = vmatpush1.bf16.msra.mxu1 %v17926_v36  ;;  %15047 = vmatprep.subr.bf16.mxu0 %v17933_v45  ;;  %v8616_v36 = vld [vmem:[#allocation9 + $0x1218] sm:$0xff]  ;;  %v17981_v8 = vcombine.high %v8615_v62, %v8619_v10 }
 0x861   :  { %15375 = vmatprep.subr.bf16.mxu1 %v17935_v2  ;;  %v8620_v45 = vld [vmem:[#allocation9 + $0x1238] sm:$0xff]  ;;  %v17972_v2 = vcombine.low %v8607_v52, %v8611_v11 }
 0x862   :  { %v17983_v41 = vcombine.high %v8616_v36, %v8620_v45  ;;  %v17982_v53 = vcombine.low %v8616_v36, %v8620_v45  ;;  %v8663_v45 = vld [vmem:[#allocation9 + $0x1390] sm:$0xff] }
 0x863   :  { %15048 = vmatpush1.bf16.msra.mxu0 %v17932_v15  ;;  %v8627_v15 = vld [vmem:[#allocation9 + $0x1270] sm:$0xff] }
 0x864   :  { %15376 = vmatpush1.bf16.msra.mxu1 %v17934_v7  ;;  %15049 = vmatprep.subr.bf16.mxu0 %v17941_v60  ;;  %v8624_v7 = vld [vmem:[#allocation9 + $0x1258] sm:$0xff]  ;;  %v17989_v49 = vcombine.high %v8623_v63, %v8627_v15 }
 0x865   :  { %15377 = vmatprep.subr.bf16.mxu1 %v17943_v24  ;;  %v8628_v60 = vld [vmem:[#allocation9 + $0x1278] sm:$0xff]  ;;  %v17980_v24 = vcombine.low %v8615_v62, %v8619_v10 }
 0x866   :  { %v17991_v50 = vcombine.high %v8624_v7, %v8628_v60  ;;  %v17990_v19 = vcombine.low %v8624_v7, %v8628_v60  ;;  %v8671_v60 = vld [vmem:[#allocation9 + $0x13d0] sm:$0xff] }
 0x867   :  { %15050 = vmatpush1.bf16.msra.mxu0 %v17940_v17  ;;  %v8635_v17 = vld [vmem:[#allocation9 + $0x12b0] sm:$0xff] }
 0x868   :  { %15378 = vmatpush1.bf16.msra.mxu1 %v17942_v34  ;;  %15051 = vmatprep.subr.bf16.mxu0 %v17949_v1  ;;  %v8632_v34 = vld [vmem:[#allocation9 + $0x1298] sm:$0xff]  ;;  %v17997_v20 = vcombine.high %v8631_v51, %v8635_v17 }
 0x869   :  { %15379 = vmatprep.subr.bf16.mxu1 %v17951_v27  ;;  %v8636_v1 = vld [vmem:[#allocation9 + $0x12b8] sm:$0xff]  ;;  %v17988_v27 = vcombine.low %v8623_v63, %v8627_v15 }
 0x86a   :  { %v17999_v22 = vcombine.high %v8632_v34, %v8636_v1  ;;  %v17998_v44 = vcombine.low %v8632_v34, %v8636_v1  ;;  %v8679_v1 = vld [vmem:[#allocation9 + $0x1410] sm:$0xff] }
 0x86b   :  { %15052 = vmatpush1.bf16.msra.mxu0 %v17948_v13  ;;  %v8643_v13 = vld [vmem:[#allocation9 + $0x12f0] sm:$0xff] }
 0x86c   :  { %15380 = vmatpush1.bf16.msra.mxu1 %v17950_v21  ;;  %15053 = vmatprep.subr.bf16.mxu0 %v17957_v46  ;;  %v8640_v21 = vld [vmem:[#allocation9 + $0x12d8] sm:$0xff]  ;;  %v18005_v16 = vcombine.high %v8639_v9, %v8643_v13 }
 0x86d   :  { %15381 = vmatprep.subr.bf16.mxu1 %v17959_v28  ;;  %v8644_v46 = vld [vmem:[#allocation9 + $0x12f8] sm:$0xff]  ;;  %v17996_v28 = vcombine.low %v8631_v51, %v8635_v17 }
 0x86e   :  { %v18007_v23 = vcombine.high %v8640_v21, %v8644_v46  ;;  %v18006_v52 = vcombine.low %v8640_v21, %v8644_v46  ;;  %v8687_v46 = vld [vmem:[#allocation9 + $0x1450] sm:$0xff] }
 0x86f   :  { %15054 = vmatpush1.bf16.msra.mxu0 %v17956_v32  ;;  %v8651_v32 = vld [vmem:[#allocation9 + $0x1330] sm:$0xff] }
 0x870   :  { %15382 = vmatpush1.bf16.msra.mxu1 %v17958_v40  ;;  %15055 = vmatprep.subr.bf16.mxu0 %v17965_v38  ;;  %v8648_v40 = vld [vmem:[#allocation9 + $0x1318] sm:$0xff]  ;;  %v18013_v11 = vcombine.high %v8647_v6, %v8651_v32 }
 0x871   :  { %15383 = vmatprep.subr.bf16.mxu1 %v17967_v43  ;;  %v8652_v38 = vld [vmem:[#allocation9 + $0x1338] sm:$0xff]  ;;  %v18004_v43 = vcombine.low %v8639_v9, %v8643_v13 }
 0x872   :  { %v18015_v55 = vcombine.high %v8648_v40, %v8652_v38  ;;  %v18014_v62 = vcombine.low %v8648_v40, %v8652_v38  ;;  %v8695_v40 = vld [vmem:[#allocation9 + $0x1490] sm:$0xff] }
 0x873   :  { %15056 = vmatpush1.bf16.msra.mxu0 %v17964_v59  ;;  %v8659_v59 = vld [vmem:[#allocation9 + $0x1370] sm:$0xff] }
 0x874   :  { %15384 = vmatpush1.bf16.msra.mxu1 %v17966_v5  ;;  %15057 = vmatprep.subr.bf16.mxu0 %v17973_v61  ;;  %v8656_v5 = vld [vmem:[#allocation9 + $0x1358] sm:$0xff]  ;;  %v18021_v10 = vcombine.high %v8655_v58, %v8659_v59  ;;  %v8699_v38 = vld [vmem:[#allocation9 + $0x14b0] sm:$0xff] }
 0x875   :  { %15385 = vmatprep.subr.bf16.mxu1 %v17975_v12  ;;  %v8660_v61 = vld [vmem:[#allocation9 + $0x1378] sm:$0xff]  ;;  %v18012_v12 = vcombine.low %v8647_v6, %v8651_v32 }
 0x876   :  { %v18023_v36 = vcombine.high %v8656_v5, %v8660_v61  ;;  %v18022_v63 = vcombine.low %v8656_v5, %v8660_v61  ;;  %v8703_v61 = vld [vmem:[#allocation9 + $0x14d0] sm:$0xff] }
 0x877   :  { %15058 = vmatpush1.bf16.msra.mxu0 %v17972_v2  ;;  %v8667_v2 = vld [vmem:[#allocation9 + $0x13b0] sm:$0xff] }
 0x878   :  { %15386 = vmatpush1.bf16.msra.mxu1 %v17974_v4  ;;  %15059 = vmatprep.subr.bf16.mxu0 %v17981_v8  ;;  %v8664_v4 = vld [vmem:[#allocation9 + $0x1398] sm:$0xff]  ;;  %v18029_v15 = vcombine.high %v8663_v45, %v8667_v2 }
 0x879   :  { %15387 = vmatprep.subr.bf16.mxu1 %v17983_v41  ;;  %v8668_v8 = vld [vmem:[#allocation9 + $0x13b8] sm:$0xff]  ;;  %v18020_v41 = vcombine.low %v8655_v58, %v8659_v59  ;;  %v18061_v59 = vcombine.high %v8695_v40, %v8699_v38 }
 0x87a   :  { %v18031_v7 = vcombine.high %v8664_v4, %v8668_v8  ;;  %v18030_v51 = vcombine.low %v8664_v4, %v8668_v8  ;;  %v8711_v4 = vld [vmem:[#allocation9 + $0x1510] sm:$0xff] }
 0x87b   :  { %15060 = vmatpush1.bf16.msra.mxu0 %v17980_v24  ;;  %v8675_v24 = vld [vmem:[#allocation9 + $0x13f0] sm:$0xff] }
 0x87c   :  { %15388 = vmatpush1.bf16.msra.mxu1 %v17982_v53  ;;  %15061 = vmatprep.subr.bf16.mxu0 %v17989_v49  ;;  %v8672_v53 = vld [vmem:[#allocation9 + $0x13d8] sm:$0xff]  ;;  %v18037_v17 = vcombine.high %v8671_v60, %v8675_v24  ;;  %v8715_v8 = vld [vmem:[#allocation9 + $0x1530] sm:$0xff] }
 0x87d   :  { %15389 = vmatprep.subr.bf16.mxu1 %v17991_v50  ;;  %v8676_v49 = vld [vmem:[#allocation9 + $0x13f8] sm:$0xff]  ;;  %v18028_v50 = vcombine.low %v8663_v45, %v8667_v2 }
 0x87e   :  { %v18039_v34 = vcombine.high %v8672_v53, %v8676_v49  ;;  %v18038_v9 = vcombine.low %v8672_v53, %v8676_v49  ;;  %v8723_v53 = vld [vmem:[#allocation9 + $0x1570] sm:$0xff]  ;;  %v8720_v49 = vld [vmem:[#allocation9 + $0x1558] sm:$0xff] }
 0x87f   :  { %15062 = vmatpush1.bf16.msra.mxu0 %v17988_v27  ;;  %v8683_v27 = vld [vmem:[#allocation9 + $0x1430] sm:$0xff] }
 0x880   :  { %15390 = vmatpush1.bf16.msra.mxu1 %v17990_v19  ;;  %15063 = vmatprep.subr.bf16.mxu0 %v17997_v20  ;;  %v8680_v19 = vld [vmem:[#allocation9 + $0x1418] sm:$0xff]  ;;  %v18045_v13 = vcombine.high %v8679_v1, %v8683_v27 }
 0x881   :  { %15391 = vmatprep.subr.bf16.mxu1 %v17999_v22  ;;  %v8684_v20 = vld [vmem:[#allocation9 + $0x1438] sm:$0xff]  ;;  %v18036_v22 = vcombine.low %v8671_v60, %v8675_v24  ;;  %v8719_v24 = vld [vmem:[#allocation9 + $0x1550] sm:$0xff] }
 0x882   :  { %v18047_v21 = vcombine.high %v8680_v19, %v8684_v20  ;;  %v18046_v6 = vcombine.low %v8680_v19, %v8684_v20  ;;  %v8731_v19 = vld [vmem:[#allocation9 + $0x15b0] sm:$0xff]  ;;  %v8728_v20 = vld [vmem:[#allocation9 + $0x1598] sm:$0xff] }
 0x883   :  { %15064 = vmatpush1.bf16.msra.mxu0 %v17996_v28  ;;  %v8691_v28 = vld [vmem:[#allocation9 + $0x1470] sm:$0xff] }
 0x884   :  { %15392 = vmatpush1.bf16.msra.mxu1 %v17998_v44  ;;  %15065 = vmatprep.subr.bf16.mxu0 %v18005_v16  ;;  %v18044_v44 = vcombine.low %v8679_v1, %v8683_v27  ;;  %v8688_v16 = vld [vmem:[#allocation9 + $0x1458] sm:$0xff]  ;;  %v18053_v32 = vcombine.high %v8687_v46, %v8691_v28  ;;  %v8727_v27 = vld [vmem:[#allocation9 + $0x1590] sm:$0xff] }
 0x885   :  { %15393 = vmatprep.subr.bf16.mxu1 %v18007_v23  ;;  %v8692_v23 = vld [vmem:[#allocation9 + $0x1478] sm:$0xff] }
 0x886   :  { %v18054_v58 = vcombine.low %v8688_v16, %v8692_v23 }
 0x887   :  { %15066 = vmatpush1.bf16.msra.mxu0 %v18004_v43  ;;  %v18055_v43 = vcombine.high %v8688_v16, %v8692_v23  ;;  %v8736_v16 = vld [vmem:[#allocation9 + $0x15d8] sm:$0xff] }
 0x888   :  { %15394 = vmatpush1.bf16.msra.mxu1 %v18006_v52  ;;  %15067 = vmatprep.subr.bf16.mxu0 %v18013_v11  ;;  %v8696_v52 = vld [vmem:[#allocation9 + $0x1498] sm:$0xff] }
 0x889   :  { %15395 = vmatprep.subr.bf16.mxu1 %v18015_v55  ;;  %v8700_v11 = vld [vmem:[#allocation9 + $0x14b8] sm:$0xff]  ;;  %v18052_v55 = vcombine.low %v8687_v46, %v8691_v28  ;;  %v8735_v28 = vld [vmem:[#allocation9 + $0x15d0] sm:$0xff] }
 0x88a   :  { %v18063_v5 = vcombine.high %v8696_v52, %v8700_v11  ;;  %v8740_v23 = vld [vmem:[#allocation9 + $0x15f8] sm:$0xff] }
 0x88b   :  { %15068 = vmatpush1.bf16.msra.mxu0 %v18012_v12  ;;  %v8707_v12 = vld [vmem:[#allocation9 + $0x14f0] sm:$0xff] }
 0x88c   :  { %15396 = vmatpush1.bf16.msra.mxu1 %v18014_v62  ;;  %15069 = vmatprep.subr.bf16.mxu0 %v18021_v10  ;;  %v8704_v62 = vld [vmem:[#allocation9 + $0x14d8] sm:$0xff]  ;;  %v18069_v45 = vcombine.high %v8703_v61, %v8707_v12 }
 0x88d   :  { %15397 = vmatprep.subr.bf16.mxu1 %v18023_v36  ;;  %v8708_v10 = vld [vmem:[#allocation9 + $0x14f8] sm:$0xff]  ;;  %v18060_v36 = vcombine.low %v8695_v40, %v8699_v38  ;;  %v18103_v38 = vcombine.high %v8736_v16, %v8740_v23 }
 0x88e   :  { %v18071_v2 = vcombine.high %v8704_v62, %v8708_v10 }
 0x88f   :  { %15070 = vmatpush1.bf16.msra.mxu0 %v18020_v41  ;;  %v8712_v41 = vld [vmem:[#allocation9 + $0x1518] sm:$0xff] }
 0x890   :  { %15398 = vmatpush1.bf16.msra.mxu1 %v18022_v63  ;;  %15071 = vmatprep.subr.bf16.mxu0 %v18029_v15  ;;  %v8716_v63 = vld [vmem:[#allocation9 + $0x1538] sm:$0xff]  ;;  %v18070_v15 = vcombine.low %v8704_v62, %v8708_v10  ;;  %v8755_v62 = vld [vmem:[#allocation9 + $0x1670] sm:$0xff] }
 0x891   :  { %15399 = vmatprep.subr.bf16.mxu1 %v18031_v7  ;;  %v18077_v7 = vcombine.high %v8711_v4, %v8715_v8  ;;  %v18079_v60 = vcombine.high %v8712_v41, %v8716_v63  ;;  %v8752_v10 = vld [vmem:[#allocation9 + $0x1658] sm:$0xff] }
 0x893   :  { %15072 = vmatpush1.bf16.msra.mxu0 %v18028_v50  ;;  %v8724_v50 = vld [vmem:[#allocation9 + $0x1578] sm:$0xff] }
 0x894   :  { %15400 = vmatpush1.bf16.msra.mxu1 %v18030_v51  ;;  %15073 = vmatprep.subr.bf16.mxu0 %v18037_v17  ;;  %v18076_v51 = vcombine.low %v8711_v4, %v8715_v8  ;;  %v18078_v17 = vcombine.low %v8712_v41, %v8716_v63  ;;  %v18087_v1 = vcombine.high %v8720_v49, %v8724_v50  ;;  %v8759_v8 = vld [vmem:[#allocation9 + $0x1690] sm:$0xff]  ;;  %v8760_v63 = vld [vmem:[#allocation9 + $0x1698] sm:$0xff] }
 0x895   :  { %15401 = vmatprep.subr.bf16.mxu1 %v18039_v34  ;;  %v18085_v34 = vcombine.high %v8719_v24, %v8723_v53  ;;  %v8763_v41 = vld [vmem:[#allocation9 + $0x16b0] sm:$0xff] }
 0x897   :  { %15074 = vmatpush1.bf16.msra.mxu0 %v18036_v22  ;;  %v8732_v22 = vld [vmem:[#allocation9 + $0x15b8] sm:$0xff] }
 0x898   :  { %15402 = vmatpush1.bf16.msra.mxu1 %v18038_v9  ;;  %15084 = vmatprep.subr.bf16.mxu0 %v18045_v13  ;;  %v18084_v9 = vcombine.low %v8719_v24, %v8723_v53  ;;  %v18086_v13 = vcombine.low %v8720_v49, %v8724_v50  ;;  %v18095_v46 = vcombine.high %v8728_v20, %v8732_v22  ;;  %v8767_v53 = vld [vmem:[#allocation9 + $0x16d0] sm:$0xff]  ;;  %v8768_v50 = vld [vmem:[#allocation9 + $0x16d8] sm:$0xff] }
 0x899   :  { %15412 = vmatprep.subr.bf16.mxu1 %v18047_v21  ;;  %v18093_v21 = vcombine.high %v8727_v27, %v8731_v19  ;;  %v8771_v49 = vld [vmem:[#allocation9 + $0x16f0] sm:$0xff] }
 0x89a   :  { %15076 = vmatmul.mubr.bf16.vlgmr.msra.gmra.mrb[20].mxu0 %v19650_v35 }
 0x89b   :  { %15404 = vmatmul.mubr.bf16.vlgmr.msra.gmra.mrb[36].mxu1 %v19650_v35  ;;  %15085 = vmatpush1.bf16.msra.mxu0 %v18044_v44  ;;  %v18062_v35 = vcombine.low %v8696_v52, %v8700_v11  ;;  %v8739_v44 = vld [vmem:[#allocation9 + $0x15f0] sm:$0xff]  ;;  %v8744_v11 = vld [vmem:[#allocation9 + $0x1618] sm:$0xff] }
 0x89c   :  { %15116 = vmatprep.mubr.bf16.mxu0 %v19652_v0  ;;  %15413 = vmatpush1.bf16.msra.mxu1 %v18046_v6  ;;  %v18092_v6 = vcombine.low %v8727_v27, %v8731_v19  ;;  %v18101_v40 = vcombine.high %v8735_v28, %v8739_v44  ;;  %v8747_v52 = vld [vmem:[#allocation9 + $0x1630] sm:$0xff] }
 0x89d   :  { %15444 = vmatprep.mubr.bf16.mxu1 %v19652_v0  ;;  %15086 = vmatprep.subr.bf16.mxu0 %v18053_v32  ;;  %v18068_v0 = vcombine.low %v8703_v61, %v8707_v12  ;;  %v18094_v32 = vcombine.low %v8728_v20, %v8732_v22  ;;  %v8751_v12 = vld [vmem:[#allocation9 + $0x1650] sm:$0xff]  ;;  %v8776_v22 = vld [vmem:[#allocation9 + $0x1718] sm:$0xff] }
 0x89e   :  { %15414 = vmatprep.subr.bf16.mxu1 %v18055_v43  ;;  %v8743_v43 = vld [vmem:[#allocation9 + $0x1610] sm:$0xff] }
 0x89f   :  { %15087 = vmatpush1.bf16.msra.mxu0 %v18052_v55  ;;  %v8748_v55 = vld [vmem:[#allocation9 + $0x1638] sm:$0xff]  ;;  %v8775_v19 = vld [vmem:[#allocation9 + $0x1710] sm:$0xff] }
 0x8a0   :  { %15415 = vmatpush1.bf16.msra.mxu1 %v18054_v58  ;;  %15088 = vmatprep.subr.bf16.mxu0 %v18061_v59  ;;  %v18100_v58 = vcombine.low %v8735_v28, %v8739_v44  ;;  %v18102_v59 = vcombine.low %v8736_v16, %v8740_v23  ;;  %v18111_v61 = vcombine.high %v8744_v11, %v8748_v55  ;;  %v8779_v20 = vld [vmem:[#allocation9 + $0x1730] sm:$0xff]  ;;  %v8784_v23 = vld [vmem:[#allocation9 + $0x1758] sm:$0xff] }
 0x8a1   :  { %15416 = vmatprep.subr.bf16.mxu1 %v18063_v5  ;;  %v18109_v5 = vcombine.high %v8743_v43, %v8747_v52  ;;  %v8783_v44 = vld [vmem:[#allocation9 + $0x1750] sm:$0xff] }
 0x8a2   :  { %v8787_v16 = vld [vmem:[#allocation9 + $0x1770] sm:$0xff] }
 0x8a3   :  { %15089 = vmatpush1.bf16.msra.mxu0 %v18060_v36  ;;  %v8756_v36 = vld [vmem:[#allocation9 + $0x1678] sm:$0xff] }
 0x8a4   :  { %15417 = vmatpush1.bf16.msra.mxu1 %v18062_v35  ;;  %15090 = vmatprep.subr.bf16.mxu0 %v18069_v45  ;;  %v18108_v35 = vcombine.low %v8743_v43, %v8747_v52  ;;  %v18110_v45 = vcombine.low %v8744_v11, %v8748_v55  ;;  %v18119_v4 = vcombine.high %v8752_v10, %v8756_v36  ;;  %v8791_v52 = vld [vmem:[#allocation9 + $0x1790] sm:$0xff]  ;;  %v8792_v55 = vld [vmem:[#allocation9 + $0x1798] sm:$0xff] }
 0x8a5   :  { %15418 = vmatprep.subr.bf16.mxu1 %v18071_v2  ;;  %v18117_v2 = vcombine.high %v8751_v12, %v8755_v62  ;;  %v8795_v11 = vld [vmem:[#allocation9 + $0x17b0] sm:$0xff] }
 0x8a7   :  { %15091 = vmatpush1.bf16.msra.mxu0 %v18068_v0  ;;  %v8764_v0 = vld [vmem:[#allocation9 + $0x16b8] sm:$0xff] }
 0x8a8   :  { %15419 = vmatpush1.bf16.msra.mxu1 %v18070_v15  ;;  %15092 = vmatprep.subr.bf16.mxu0 %v18077_v7  ;;  %v18116_v15 = vcombine.low %v8751_v12, %v8755_v62  ;;  %v18118_v7 = vcombine.low %v8752_v10, %v8756_v36  ;;  %v18127_v24 = vcombine.high %v8760_v63, %v8764_v0  ;;  %v8799_v62 = vld [vmem:[#allocation9 + $0x17d0] sm:$0xff]  ;;  %v8800_v36 = vld [vmem:[#allocation9 + $0x17d8] sm:$0xff] }
 0x8a9   :  { %15420 = vmatprep.subr.bf16.mxu1 %v18079_v60  ;;  %v18125_v60 = vcombine.high %v8759_v8, %v8763_v41  ;;  %v8803_v10 = vld [vmem:[#allocation9 + $0x17f0] sm:$0xff] }
 0x8ab   :  { %15093 = vmatpush1.bf16.msra.mxu0 %v18076_v51  ;;  %v8772_v51 = vld [vmem:[#allocation9 + $0x16f8] sm:$0xff] }
 0x8ac   :  { %15421 = vmatpush1.bf16.msra.mxu1 %v18078_v17  ;;  %15094 = vmatprep.subr.bf16.mxu0 %v18085_v34  ;;  %v18124_v17 = vcombine.low %v8759_v8, %v8763_v41  ;;  %v18126_v34 = vcombine.low %v8760_v63, %v8764_v0  ;;  %v18135_v27 = vcombine.high %v8768_v50, %v8772_v51  ;;  %v8807_v41 = vld [vmem:[#allocation9 + $0x1810] sm:$0xff]  ;;  %v8808_v0 = vld [vmem:[#allocation9 + $0x1818] sm:$0xff] }
 0x8ad   :  { %15422 = vmatprep.subr.bf16.mxu1 %v18087_v1  ;;  %v18133_v1 = vcombine.high %v8767_v53, %v8771_v49  ;;  %v8811_v63 = vld [vmem:[#allocation9 + $0x1830] sm:$0xff] }
 0x8af   :  { %15095 = vmatpush1.bf16.msra.mxu0 %v18084_v9  ;;  %v8780_v9 = vld [vmem:[#allocation9 + $0x1738] sm:$0xff] }
 0x8b0   :  { %15423 = vmatpush1.bf16.msra.mxu1 %v18086_v13  ;;  %15096 = vmatprep.subr.bf16.mxu0 %v18093_v21  ;;  %v18132_v13 = vcombine.low %v8767_v53, %v8771_v49  ;;  %v18134_v21 = vcombine.low %v8768_v50, %v8772_v51  ;;  %v18143_v28 = vcombine.high %v8776_v22, %v8780_v9  ;;  %v8815_v49 = vld [vmem:[#allocation9 + $0x1850] sm:$0xff] }
 0x8b1   :  { %15424 = vmatprep.subr.bf16.mxu1 %v18095_v46  ;;  %v18141_v46 = vcombine.high %v8775_v19, %v8779_v20  ;;  %v8819_v50 = vld [vmem:[#allocation9 + $0x1870] sm:$0xff]  ;;  %v18172_v51 = vcombine.low %v8807_v41, %v8811_v63 }
 0x8b3   :  { %15097 = vmatpush1.bf16.msra.mxu0 %v18092_v6  ;;  %v8788_v6 = vld [vmem:[#allocation9 + $0x1778] sm:$0xff] }
 0x8b4   :  { %15425 = vmatpush1.bf16.msra.mxu1 %v18094_v32  ;;  %15098 = vmatprep.subr.bf16.mxu0 %v18101_v40  ;;  %v18140_v32 = vcombine.low %v8775_v19, %v8779_v20  ;;  %v18142_v40 = vcombine.low %v8776_v22, %v8780_v9  ;;  %v18151_v43 = vcombine.high %v8784_v23, %v8788_v6  ;;  %v8823_v19 = vld [vmem:[#allocation9 + $0x1890] sm:$0xff]  ;;  %v8824_v9 = vld [vmem:[#allocation9 + $0x1898] sm:$0xff] }
 0x8b5   :  { %15426 = vmatprep.subr.bf16.mxu1 %v18103_v38  ;;  %v18149_v38 = vcombine.high %v8783_v44, %v8787_v16  ;;  %v8827_v20 = vld [vmem:[#allocation9 + $0x18b0] sm:$0xff] }
 0x8b7   :  { %15099 = vmatpush1.bf16.msra.mxu0 %v18100_v58  ;;  %v8796_v58 = vld [vmem:[#allocation9 + $0x17b8] sm:$0xff] }
 0x8b8   :  { %15427 = vmatpush1.bf16.msra.mxu1 %v18102_v59  ;;  %15100 = vmatprep.subr.bf16.mxu0 %v18109_v5  ;;  %v18148_v59 = vcombine.low %v8783_v44, %v8787_v16  ;;  %v18150_v5 = vcombine.low %v8784_v23, %v8788_v6  ;;  %v18159_v12 = vcombine.high %v8792_v55, %v8796_v58  ;;  %v8831_v16 = vld [vmem:[#allocation9 + $0x18d0] sm:$0xff]  ;;  %v8832_v6 = vld [vmem:[#allocation9 + $0x18d8] sm:$0xff] }
 0x8b9   :  { %15428 = vmatprep.subr.bf16.mxu1 %v18111_v61  ;;  %v18157_v61 = vcombine.high %v8791_v52, %v8795_v11  ;;  %v8835_v23 = vld [vmem:[#allocation9 + $0x18f0] sm:$0xff] }
 0x8bb   :  { %15101 = vmatpush1.bf16.msra.mxu0 %v18108_v35  ;;  %v8804_v35 = vld [vmem:[#allocation9 + $0x17f8] sm:$0xff] }
 0x8bc   :  { %15429 = vmatpush1.bf16.msra.mxu1 %v18110_v45  ;;  %15102 = vmatprep.subr.bf16.mxu0 %v18117_v2  ;;  %v18156_v45 = vcombine.low %v8791_v52, %v8795_v11  ;;  %v18158_v2 = vcombine.low %v8792_v55, %v8796_v58  ;;  %v18167_v8 = vcombine.high %v8800_v36, %v8804_v35  ;;  %v8839_v52 = vld [vmem:[#allocation9 + $0x1910] sm:$0xff]  ;;  %v8840_v55 = vld [vmem:[#allocation9 + $0x1918] sm:$0xff] }
 0x8bd   :  { %15430 = vmatprep.subr.bf16.mxu1 %v18119_v4  ;;  %v18165_v4 = vcombine.high %v8799_v62, %v8803_v10  ;;  %v8843_v11 = vld [vmem:[#allocation9 + $0x1930] sm:$0xff]  ;;  %v8844_v58 = vld [vmem:[#allocation9 + $0x1938] sm:$0xff] }
 0x8bf   :  { %15103 = vmatpush1.bf16.msra.mxu0 %v18116_v15  ;;  %v8812_v15 = vld [vmem:[#allocation9 + $0x1838] sm:$0xff] }
 0x8c0   :  { %15431 = vmatpush1.bf16.msra.mxu1 %v18118_v7  ;;  %15104 = vmatprep.subr.bf16.mxu0 %v18125_v60  ;;  %v18164_v7 = vcombine.low %v8799_v62, %v8803_v10  ;;  %v18166_v60 = vcombine.low %v8800_v36, %v8804_v35  ;;  %v18175_v53 = vcombine.high %v8808_v0, %v8812_v15  ;;  %v8851_v62 = vld [vmem:[#allocation9 + $0x1970] sm:$0xff]  ;;  %v8848_v10 = vld [vmem:[#allocation9 + $0x1958] sm:$0xff] }
 0x8c1   :  { %15432 = vmatprep.subr.bf16.mxu1 %v18127_v24  ;;  %v18173_v24 = vcombine.high %v8807_v41, %v8811_v63  ;;  %v8852_v36 = vld [vmem:[#allocation9 + $0x1978] sm:$0xff]  ;;  %v18204_v35 = vcombine.low %v8839_v52, %v8843_v11  ;;  %v8859_v41 = vld [vmem:[#allocation9 + $0x19b0] sm:$0xff] }
 0x8c2   :  { %v8856_v63 = vld [vmem:[#allocation9 + $0x1998] sm:$0xff] }
 0x8c3   :  { %15105 = vmatpush1.bf16.msra.mxu0 %v18124_v17  ;;  %v8816_v17 = vld [vmem:[#allocation9 + $0x1858] sm:$0xff] }
 0x8c4   :  { %15433 = vmatpush1.bf16.msra.mxu1 %v18126_v34  ;;  %15106 = vmatprep.subr.bf16.mxu0 %v18133_v1  ;;  %v8820_v34 = vld [vmem:[#allocation9 + $0x1878] sm:$0xff]  ;;  %v18174_v1 = vcombine.low %v8808_v0, %v8812_v15 }
 0x8c5   :  { %15434 = vmatprep.subr.bf16.mxu1 %v18135_v27  ;;  %v18181_v27 = vcombine.high %v8815_v49, %v8819_v50  ;;  %v18183_v22 = vcombine.high %v8816_v17, %v8820_v34  ;;  %v8860_v0 = vld [vmem:[#allocation9 + $0x19b8] sm:$0xff] }
 0x8c7   :  { %15107 = vmatpush1.bf16.msra.mxu0 %v18132_v13  ;;  %v8828_v13 = vld [vmem:[#allocation9 + $0x18b8] sm:$0xff] }
 0x8c8   :  { %15435 = vmatpush1.bf16.msra.mxu1 %v18134_v21  ;;  %15108 = vmatprep.subr.bf16.mxu0 %v18141_v46  ;;  %v18180_v21 = vcombine.low %v8815_v49, %v8819_v50  ;;  %v18182_v46 = vcombine.low %v8816_v17, %v8820_v34  ;;  %v18191_v44 = vcombine.high %v8824_v9, %v8828_v13  ;;  %v8867_v49 = vld [vmem:[#allocation9 + $0x19f0] sm:$0xff]  ;;  %v8864_v50 = vld [vmem:[#allocation9 + $0x19d8] sm:$0xff] }
 0x8c9   :  { %15436 = vmatprep.subr.bf16.mxu1 %v18143_v28  ;;  %v18189_v28 = vcombine.high %v8823_v19, %v8827_v20  ;;  %v18222_v34 = vcombine.low %v8856_v63, %v8860_v0 }
 0x8cb   :  { %15109 = vmatpush1.bf16.msra.mxu0 %v18140_v32  ;;  %v8836_v32 = vld [vmem:[#allocation9 + $0x18f8] sm:$0xff] }
 0x8cc   :  { %15437 = vmatpush1.bf16.msra.mxu1 %v18142_v40  ;;  %15110 = vmatprep.subr.bf16.mxu0 %v18149_v38  ;;  %v18188_v40 = vcombine.low %v8823_v19, %v8827_v20  ;;  %v18197_v38 = vcombine.high %v8831_v16, %v8835_v23  ;;  %v8871_v19 = vld [vmem:[#allocation9 + $0x1a10] sm:$0xff] }
 0x8cd   :  { %15438 = vmatprep.subr.bf16.mxu1 %v18151_v43  ;;  %v18199_v43 = vcombine.high %v8832_v6, %v8836_v32  ;;  %v8875_v20 = vld [vmem:[#allocation9 + $0x1a30] sm:$0xff] }
 0x8cf   :  { %15111 = vmatpush1.bf16.msra.mxu0 %v18148_v59  ;;  %v18198_v59 = vcombine.low %v8832_v6, %v8836_v32  ;;  %v8884_v6 = vld [vmem:[#allocation9 + $0x1a78] sm:$0xff]  ;;  %v18236_v32 = vcombine.low %v8871_v19, %v8875_v20 }
 0x8d0   :  { %15439 = vmatpush1.bf16.msra.mxu1 %v18150_v5  ;;  %15112 = vmatprep.subr.bf16.mxu0 %v18157_v61  ;;  %v18205_v5 = vcombine.high %v8839_v52, %v8843_v11  ;;  %v18207_v61 = vcombine.high %v8840_v55, %v8844_v58  ;;  %v8891_v52 = vld [vmem:[#allocation9 + $0x1ab0] sm:$0xff]  ;;  %v8888_v11 = vld [vmem:[#allocation9 + $0x1a98] sm:$0xff] }
 0x8d1   :  { %15440 = vmatprep.subr.bf16.mxu1 %v18159_v12  ;;  %v8847_v12 = vld [vmem:[#allocation9 + $0x1950] sm:$0xff] }
 0x8d2   :  { %v18212_v15 = vcombine.low %v8847_v12, %v8851_v62 }
 0x8d3   :  { %15113 = vmatpush1.bf16.msra.mxu0 %v18156_v45  ;;  %v18206_v45 = vcombine.low %v8840_v55, %v8844_v58  ;;  %v8892_v55 = vld [vmem:[#allocation9 + $0x1ab8] sm:$0xff] }
 0x8d4   :  { %15441 = vmatpush1.bf16.msra.mxu1 %v18158_v2  ;;  %15114 = vmatprep.subr.bf16.mxu0 %v18165_v4  ;;  %v18213_v2 = vcombine.high %v8847_v12, %v8851_v62  ;;  %v18215_v4 = vcombine.high %v8848_v10, %v8852_v36  ;;  %v8899_v12 = vld [vmem:[#allocation9 + $0x1af0] sm:$0xff]  ;;  %v8896_v62 = vld [vmem:[#allocation9 + $0x1ad8] sm:$0xff] }
 0x8d5   :  { %15442 = vmatprep.subr.bf16.mxu1 %v18167_v8  ;;  %v8855_v8 = vld [vmem:[#allocation9 + $0x1990] sm:$0xff] }
 0x8d6   :  { %v18220_v17 = vcombine.low %v8855_v8, %v8859_v41 }
 0x8d7   :  { %15115 = vmatpush1.bf16.msra.mxu0 %v18164_v7  ;;  %v18214_v7 = vcombine.low %v8848_v10, %v8852_v36  ;;  %v8900_v10 = vld [vmem:[#allocation9 + $0x1af8] sm:$0xff] }
 0x8d8   :  { %15443 = vmatpush1.bf16.msra.mxu1 %v18166_v60  ;;  %15125 = vmatprep.subr.bf16.mxu0 %v18173_v24  ;;  %v18221_v60 = vcombine.high %v8855_v8, %v8859_v41  ;;  %v18223_v24 = vcombine.high %v8856_v63, %v8860_v0  ;;  %v8907_v8 = vld [vmem:[#allocation9 + $0x1b30] sm:$0xff]  ;;  %v8904_v41 = vld [vmem:[#allocation9 + $0x1b18] sm:$0xff] }
 0x8d9   :  { %15453 = vmatprep.subr.bf16.mxu1 %v18175_v53  ;;  %v8863_v53 = vld [vmem:[#allocation9 + $0x19d0] sm:$0xff]  ;;  %v8908_v63 = vld [vmem:[#allocation9 + $0x1b38] sm:$0xff] }
 0x8da   :  { %15117 = vmatmul.mubr.bf16.vlgmr.msra.gmra.mrb[20].mxu0 %v19664_v26 }
 0x8db   :  { %15445 = vmatmul.mubr.bf16.vlgmr.msra.gmra.mrb[36].mxu1 %v19664_v26  ;;  %15126 = vmatpush1.bf16.msra.mxu0 %v18172_v51  ;;  %v18190_v26 = vcombine.low %v8824_v9, %v8828_v13  ;;  %v8868_v51 = vld [vmem:[#allocation9 + $0x19f8] sm:$0xff]  ;;  %v18228_v13 = vcombine.low %v8863_v53, %v8867_v49 }
 0x8dc   :  { %15157 = vmatprep.mubr.bf16.mxu0 %v19666_v14  ;;  %15454 = vmatpush1.bf16.msra.mxu1 %v18174_v1  ;;  %v18229_v1 = vcombine.high %v8863_v53, %v8867_v49  ;;  %v8876_v9 = vld [vmem:[#allocation9 + $0x1a38] sm:$0xff]  ;;  %v8915_v53 = vld [vmem:[#allocation9 + $0x1b70] sm:$0xff] }
 0x8dd   :  { %15485 = vmatprep.mubr.bf16.mxu1 %v19666_v14  ;;  %15127 = vmatprep.subr.bf16.mxu0 %v18181_v27  ;;  %v18196_v14 = vcombine.low %v8831_v16, %v8835_v23  ;;  %v18231_v27 = vcombine.high %v8864_v50, %v8868_v51  ;;  %v8883_v16 = vld [vmem:[#allocation9 + $0x1a70] sm:$0xff]  ;;  %v8880_v23 = vld [vmem:[#allocation9 + $0x1a58] sm:$0xff] }
 0x8de   :  { %15455 = vmatprep.subr.bf16.mxu1 %v18183_v22  ;;  %v8872_v22 = vld [vmem:[#allocation9 + $0x1a18] sm:$0xff] }
 0x8df   :  { %15128 = vmatpush1.bf16.msra.mxu0 %v18180_v21  ;;  %v18230_v21 = vcombine.low %v8864_v50, %v8868_v51  ;;  %v8912_v49 = vld [vmem:[#allocation9 + $0x1b58] sm:$0xff] }
 0x8e0   :  { %15456 = vmatpush1.bf16.msra.mxu1 %v18182_v46  ;;  %15129 = vmatprep.subr.bf16.mxu0 %v18189_v28  ;;  %v18237_v46 = vcombine.high %v8871_v19, %v8875_v20  ;;  %v18239_v28 = vcombine.high %v8872_v22, %v8876_v9  ;;  %v8916_v50 = vld [vmem:[#allocation9 + $0x1b78] sm:$0xff]  ;;  %v8923_v19 = vld [vmem:[#allocation9 + $0x1bb0] sm:$0xff] }
 0x8e1   :  { %15457 = vmatprep.subr.bf16.mxu1 %v18191_v44  ;;  %v8879_v44 = vld [vmem:[#allocation9 + $0x1a50] sm:$0xff]  ;;  %v8920_v20 = vld [vmem:[#allocation9 + $0x1b98] sm:$0xff] }
 0x8e2   :  { %v18244_v58 = vcombine.low %v8879_v44, %v8883_v16 }
 0x8e3   :  { %15130 = vmatpush1.bf16.msra.mxu0 %v18188_v40  ;;  %v18238_v40 = vcombine.low %v8872_v22, %v8876_v9  ;;  %v8924_v22 = vld [vmem:[#allocation9 + $0x1bb8] sm:$0xff] }
 0x8e4   :  { %15458 = vmatpush1.bf16.msra.mxu1 %v18190_v26  ;;  %15131 = vmatprep.subr.bf16.mxu0 %v18197_v38  ;;  %v18245_v26 = vcombine.high %v8879_v44, %v8883_v16  ;;  %v18247_v38 = vcombine.high %v8880_v23, %v8884_v6  ;;  %v8931_v44 = vld [vmem:[#allocation9 + $0x1bf0] sm:$0xff]  ;;  %v8928_v16 = vld [vmem:[#allocation9 + $0x1bd8] sm:$0xff] }
 0x8e5   :  { %15459 = vmatprep.subr.bf16.mxu1 %v18199_v43  ;;  %v8887_v43 = vld [vmem:[#allocation9 + $0x1a90] sm:$0xff] }
 0x8e6   :  { %v18252_v36 = vcombine.low %v8887_v43, %v8891_v52 }
 0x8e7   :  { %15132 = vmatpush1.bf16.msra.mxu0 %v18196_v14  ;;  %v18246_v14 = vcombine.low %v8880_v23, %v8884_v6  ;;  %v8932_v23 = vld [vmem:[#allocation9 + $0x1bf8] sm:$0xff] }
 0x8e8   :  { %15460 = vmatpush1.bf16.msra.mxu1 %v18198_v59  ;;  %15133 = vmatprep.subr.bf16.mxu0 %v18205_v5  ;;  %v18253_v59 = vcombine.high %v8887_v43, %v8891_v52  ;;  %v18255_v5 = vcombine.high %v8888_v11, %v8892_v55  ;;  %v8939_v43 = vld [vmem:[#allocation9 + $0x1c30] sm:$0xff]  ;;  %v8936_v52 = vld [vmem:[#allocation9 + $0x1c18] sm:$0xff] }
 0x8e9   :  { %15461 = vmatprep.subr.bf16.mxu1 %v18207_v61  ;;  %v8895_v61 = vld [vmem:[#allocation9 + $0x1ad0] sm:$0xff] }
 0x8ea   :  { %v18260_v0 = vcombine.low %v8895_v61, %v8899_v12 }
 0x8eb   :  { %15134 = vmatpush1.bf16.msra.mxu0 %v18204_v35  ;;  %v18254_v35 = vcombine.low %v8888_v11, %v8892_v55  ;;  %v8940_v11 = vld [vmem:[#allocation9 + $0x1c38] sm:$0xff] }
 0x8ec   :  { %15462 = vmatpush1.bf16.msra.mxu1 %v18206_v45  ;;  %15135 = vmatprep.subr.bf16.mxu0 %v18213_v2  ;;  %v18261_v45 = vcombine.high %v8895_v61, %v8899_v12  ;;  %v18263_v2 = vcombine.high %v8896_v62, %v8900_v10  ;;  %v8947_v61 = vld [vmem:[#allocation9 + $0x1c70] sm:$0xff] }
 0x8ed   :  { %15463 = vmatprep.subr.bf16.mxu1 %v18215_v4  ;;  %v8903_v4 = vld [vmem:[#allocation9 + $0x1b10] sm:$0xff] }
 0x8ee   :  { %v18268_v51 = vcombine.low %v8903_v4, %v8907_v8 }
 0x8ef   :  { %15136 = vmatpush1.bf16.msra.mxu0 %v18212_v15  ;;  %v18262_v15 = vcombine.low %v8896_v62, %v8900_v10  ;;  %v8944_v62 = vld [vmem:[#allocation9 + $0x1c58] sm:$0xff] }
 0x8f0   :  { %15464 = vmatpush1.bf16.msra.mxu1 %v18214_v7  ;;  %15137 = vmatprep.subr.bf16.mxu0 %v18221_v60  ;;  %v18269_v7 = vcombine.high %v8903_v4, %v8907_v8  ;;  %v18271_v60 = vcombine.high %v8904_v41, %v8908_v63  ;;  %v8948_v10 = vld [vmem:[#allocation9 + $0x1c78] sm:$0xff] }
 0x8f1   :  { %15465 = vmatprep.subr.bf16.mxu1 %v18223_v24  ;;  %v8911_v24 = vld [vmem:[#allocation9 + $0x1b50] sm:$0xff]  ;;  %v18311_v4 = vcombine.high %v8944_v62, %v8948_v10  ;;  %v8952_v8 = vld [vmem:[#allocation9 + $0x1c98] sm:$0xff] }
 0x8f2   :  { %v18276_v9 = vcombine.low %v8911_v24, %v8915_v53 }
 0x8f3   :  { %15138 = vmatpush1.bf16.msra.mxu0 %v18220_v17  ;;  %v18270_v17 = vcombine.low %v8904_v41, %v8908_v63  ;;  %v8956_v41 = vld [vmem:[#allocation9 + $0x1cb8] sm:$0xff] }
 0x8f4   :  { %15466 = vmatpush1.bf16.msra.mxu1 %v18222_v34  ;;  %15139 = vmatprep.subr.bf16.mxu0 %v18229_v1  ;;  %v18277_v34 = vcombine.high %v8911_v24, %v8915_v53  ;;  %v18279_v1 = vcombine.high %v8912_v49, %v8916_v50  ;;  %v8963_v24 = vld [vmem:[#allocation9 + $0x1cf0] sm:$0xff]  ;;  %v8960_v53 = vld [vmem:[#allocation9 + $0x1cd8] sm:$0xff] }
 0x8f5   :  { %15467 = vmatprep.subr.bf16.mxu1 %v18231_v27  ;;  %v8919_v27 = vld [vmem:[#allocation9 + $0x1b90] sm:$0xff] }
 0x8f6   :  { %v18284_v6 = vcombine.low %v8919_v27, %v8923_v19 }
 0x8f7   :  { %15140 = vmatpush1.bf16.msra.mxu0 %v18228_v13  ;;  %v18278_v13 = vcombine.low %v8912_v49, %v8916_v50  ;;  %v8964_v49 = vld [vmem:[#allocation9 + $0x1cf8] sm:$0xff] }
 0x8f8   :  { %15468 = vmatpush1.bf16.msra.mxu1 %v18230_v21  ;;  %15141 = vmatprep.subr.bf16.mxu0 %v18237_v46  ;;  %v18285_v21 = vcombine.high %v8919_v27, %v8923_v19  ;;  %v18287_v46 = vcombine.high %v8920_v20, %v8924_v22  ;;  %v8968_v27 = vld [vmem:[#allocation9 + $0x1d18] sm:$0xff] }
 0x8f9   :  { %15469 = vmatprep.subr.bf16.mxu1 %v18239_v28  ;;  %v8927_v28 = vld [vmem:[#allocation9 + $0x1bd0] sm:$0xff]  ;;  %v8972_v19 = vld [vmem:[#allocation9 + $0x1d38] sm:$0xff] }
 0x8fa   :  { %v18292_v55 = vcombine.low %v8927_v28, %v8931_v44 }
 0x8fb   :  { %15142 = vmatpush1.bf16.msra.mxu0 %v18236_v32  ;;  %v18286_v32 = vcombine.low %v8920_v20, %v8924_v22  ;;  %v18326_v20 = vcombine.low %v8960_v53, %v8964_v49 }
 0x8fc   :  { %15470 = vmatpush1.bf16.msra.mxu1 %v18238_v40  ;;  %15143 = vmatprep.subr.bf16.mxu0 %v18245_v26  ;;  %v18293_v40 = vcombine.high %v8927_v28, %v8931_v44  ;;  %v18295_v26 = vcombine.high %v8928_v16, %v8932_v23  ;;  %v8980_v28 = vld [vmem:[#allocation9 + $0x1d78] sm:$0xff] }
 0x8fd   :  { %15471 = vmatprep.subr.bf16.mxu1 %v18247_v38  ;;  %v8935_v38 = vld [vmem:[#allocation9 + $0x1c10] sm:$0xff] }
 0x8fe   :  { %v18300_v12 = vcombine.low %v8935_v38, %v8939_v43 }
 0x8ff   :  { %15144 = vmatpush1.bf16.msra.mxu0 %v18244_v58  ;;  %v18294_v58 = vcombine.low %v8928_v16, %v8932_v23  ;;  %v18334_v16 = vcombine.low %v8968_v27, %v8972_v19 }
 0x900   :  { %15472 = vmatpush1.bf16.msra.mxu1 %v18246_v14  ;;  %15145 = vmatprep.subr.bf16.mxu0 %v18253_v59  ;;  %v18301_v14 = vcombine.high %v8935_v38, %v8939_v43  ;;  %v18303_v59 = vcombine.high %v8936_v52, %v8940_v11  ;;  %v8988_v38 = vld [vmem:[#allocation9 + $0x1db8] sm:$0xff] }
 0x901   :  { %15473 = vmatprep.subr.bf16.mxu1 %v18255_v5  ;;  %v8943_v5 = vld [vmem:[#allocation9 + $0x1c50] sm:$0xff] }
 0x902   :  { %v18308_v63 = vcombine.low %v8943_v5, %v8947_v61 }
 0x903   :  { %15146 = vmatpush1.bf16.msra.mxu0 %v18252_v36  ;;  %v18302_v36 = vcombine.low %v8936_v52, %v8940_v11 }
 0x904   :  { %15474 = vmatpush1.bf16.msra.mxu1 %v18254_v35  ;;  %15147 = vmatprep.subr.bf16.mxu0 %v18261_v45  ;;  %v18309_v35 = vcombine.high %v8943_v5, %v8947_v61  ;;  %v8951_v45 = vld [vmem:[#allocation9 + $0x1c90] sm:$0xff]  ;;  %v8996_v5 = vld [vmem:[#allocation9 + $0x1df8] sm:$0xff] }
 0x905   :  { %15475 = vmatprep.subr.bf16.mxu1 %v18263_v2  ;;  %v8955_v2 = vld [vmem:[#allocation9 + $0x1cb0] sm:$0xff] }
 0x906   :  { %v18316_v50 = vcombine.low %v8951_v45, %v8955_v2 }
 0x907   :  { %15148 = vmatpush1.bf16.msra.mxu0 %v18260_v0  ;;  %v18310_v0 = vcombine.low %v8944_v62, %v8948_v10 }
 0x908   :  { %15476 = vmatpush1.bf16.msra.mxu1 %v18262_v15  ;;  %15149 = vmatprep.subr.bf16.mxu0 %v18269_v7  ;;  %v18317_v15 = vcombine.high %v8951_v45, %v8955_v2  ;;  %v18319_v7 = vcombine.high %v8952_v8, %v8956_v41  ;;  %v9000_v45 = vld [vmem:[#allocation9 + $0x1e18] sm:$0xff] }
 0x909   :  { %15477 = vmatprep.subr.bf16.mxu1 %v18271_v60  ;;  %v8959_v60 = vld [vmem:[#allocation9 + $0x1cd0] sm:$0xff]  ;;  %v9004_v2 = vld [vmem:[#allocation9 + $0x1e38] sm:$0xff] }
 0x90b   :  { %15150 = vmatpush1.bf16.msra.mxu0 %v18268_v51  ;;  %v18325_v51 = vcombine.high %v8959_v60, %v8963_v24 }
 0x90c   :  { %15478 = vmatpush1.bf16.msra.mxu1 %v18270_v17  ;;  %15151 = vmatprep.subr.bf16.mxu0 %v18277_v34  ;;  %v18327_v17 = vcombine.high %v8960_v53, %v8964_v49  ;;  %v8967_v34 = vld [vmem:[#allocation9 + $0x1d10] sm:$0xff]  ;;  %v18366_v53 = vcombine.low %v9000_v45, %v9004_v2 }
 0x90d   :  { %15479 = vmatprep.subr.bf16.mxu1 %v18279_v1  ;;  %v8971_v1 = vld [vmem:[#allocation9 + $0x1d30] sm:$0xff] }
 0x90e   :  { %v18333_v22 = vcombine.high %v8967_v34, %v8971_v1  ;;  %v18332_v44 = vcombine.low %v8967_v34, %v8971_v1  ;;  %v9020_v34 = vld [vmem:[#allocation9 + $0x1eb8] sm:$0xff] }
 0x90f   :  { %15152 = vmatpush1.bf16.msra.mxu0 %v18276_v9  ;;  %v18335_v9 = vcombine.high %v8968_v27, %v8972_v19 }
 0x910   :  { %15480 = vmatpush1.bf16.msra.mxu1 %v18278_v13  ;;  %15153 = vmatprep.subr.bf16.mxu0 %v18285_v21  ;;  %v8975_v13 = vld [vmem:[#allocation9 + $0x1d50] sm:$0xff] }
 0x911   :  { %15481 = vmatprep.subr.bf16.mxu1 %v18287_v46  ;;  %v8979_v21 = vld [vmem:[#allocation9 + $0x1d70] sm:$0xff]  ;;  %v8976_v46 = vld [vmem:[#allocation9 + $0x1d58] sm:$0xff] }
 0x912   :  { %v18341_v23 = vcombine.high %v8975_v13, %v8979_v21  ;;  %v18340_v43 = vcombine.low %v8975_v13, %v8979_v21  ;;  %v18342_v52 = vcombine.low %v8976_v46, %v8980_v28  ;;  %v9028_v13 = vld [vmem:[#allocation9 + $0x1ef8] sm:$0xff] }
 0x913   :  { %15154 = vmatpush1.bf16.msra.mxu0 %v18284_v6  ;;  %v18343_v6 = vcombine.high %v8976_v46, %v8980_v28 }
 0x914   :  { %15482 = vmatpush1.bf16.msra.mxu1 %v18286_v32  ;;  %15155 = vmatprep.subr.bf16.mxu0 %v18293_v40  ;;  %v8983_v32 = vld [vmem:[#allocation9 + $0x1d90] sm:$0xff] }
 0x915   :  { %15483 = vmatprep.subr.bf16.mxu1 %v18295_v26  ;;  %v8987_v40 = vld [vmem:[#allocation9 + $0x1db0] sm:$0xff]  ;;  %v8984_v26 = vld [vmem:[#allocation9 + $0x1d98] sm:$0xff] }
 0x916   :  { %v18349_v11 = vcombine.high %v8983_v32, %v8987_v40  ;;  %v18348_v61 = vcombine.low %v8983_v32, %v8987_v40  ;;  %v9036_v32 = vld [vmem:[#allocation9 + $0x1f38] sm:$0xff] }
 0x917   :  { %15156 = vmatpush1.bf16.msra.mxu0 %v18292_v55  ;;  %v18351_v55 = vcombine.high %v8984_v26, %v8988_v38 }
 0x918   :  { %15484 = vmatpush1.bf16.msra.mxu1 %v18294_v58  ;;  %15166 = vmatprep.subr.bf16.mxu0 %v18301_v14  ;;  %v8991_v58 = vld [vmem:[#allocation9 + $0x1dd0] sm:$0xff] }
 0x919   :  { %15494 = vmatprep.subr.bf16.mxu1 %v18303_v59  ;;  %v8995_v14 = vld [vmem:[#allocation9 + $0x1df0] sm:$0xff]  ;;  %v8992_v59 = vld [vmem:[#allocation9 + $0x1dd8] sm:$0xff] }
 0x91a   :  { %15158 = vmatmul.mubr.bf16.vlgmr.msra.gmra.mrb[20].mxu0 %v19680_v3  ;;  %v18357_v62 = vcombine.high %v8991_v58, %v8995_v14  ;;  %v18359_v10 = vcombine.high %v8992_v59, %v8996_v5 }
 0x91b   :  { %15486 = vmatmul.mubr.bf16.vlgmr.msra.gmra.mrb[36].mxu1 %v19680_v3  ;;  %15167 = vmatpush1.bf16.msra.mxu0 %v18300_v12  ;;  %v18318_v3 = vcombine.low %v8952_v8, %v8956_v41  ;;  %v18350_v12 = vcombine.low %v8984_v26, %v8988_v38  ;;  %v18358_v8 = vcombine.low %v8992_v59, %v8996_v5 }
 0x91c   :  { %15198 = vmatprep.mubr.bf16.mxu0 %v19682_v33  ;;  %15495 = vmatpush1.bf16.msra.mxu1 %v18302_v36  ;;  %v8999_v36 = vld [vmem:[#allocation9 + $0x1e10] sm:$0xff] }
 0x91d   :  { %15526 = vmatprep.mubr.bf16.mxu1 %v19682_v33  ;;  %15168 = vmatprep.subr.bf16.mxu0 %v18309_v35  ;;  %v18324_v33 = vcombine.low %v8959_v60, %v8963_v24  ;;  %v9003_v35 = vld [vmem:[#allocation9 + $0x1e30] sm:$0xff]  ;;  %v9012_v60 = vld [vmem:[#allocation9 + $0x1e78] sm:$0xff] }
 0x91e   :  { %15496 = vmatprep.subr.bf16.mxu1 %v18311_v4  ;;  %v18356_v4 = vcombine.low %v8991_v58, %v8995_v14  ;;  %v18365_v41 = vcombine.high %v8999_v36, %v9003_v35  ;;  %v18364_v24 = vcombine.low %v8999_v36, %v9003_v35  ;;  %v9044_v58 = vld [vmem:[#allocation9 + $0x1f78] sm:$0xff]  ;;  %v19733_v14 = vld [vmem:[#allocation10] sm:$0xff] }
 0x91f   :  { %15169 = vmatpush1.bf16.msra.mxu0 %v18308_v63  ;;  %v18367_v63 = vcombine.high %v9000_v45, %v9004_v2  ;;  %v9070_v36 = vrot.slane %v19733_v14, %v19413_v31  ;;  %v9048_v35 = vld [vmem:[#allocation9 + $0x1f98] sm:$0xff]  ;;  %v9078_v2 = vrot.slane %v19733_v14, %v19420_v39 }
 0x920   :  { %15497 = vmatpush1.bf16.msra.mxu1 %v18310_v0  ;;  %15170 = vmatprep.subr.bf16.mxu0 %v18317_v15  ;;  %v9007_v0 = vld [vmem:[#allocation9 + $0x1e50] sm:$0xff]  ;;  %v9052_v45 = vld [vmem:[#allocation9 + $0x1fb8] sm:$0xff] }
 0x921   :  { %15498 = vmatprep.subr.bf16.mxu1 %v18319_v7  ;;  %v9011_v15 = vld [vmem:[#allocation9 + $0x1e70] sm:$0xff]  ;;  %v9008_v7 = vld [vmem:[#allocation9 + $0x1e58] sm:$0xff]  ;;  %v18634_v31 = vadd.f32 %v19715_v57, %v9078_v2  ;;  %v18414_v39 = vcombine.low %v9048_v35, %v9052_v45 }
 0x922   :  { %v18373_v49 = vcombine.high %v9007_v0, %v9011_v15  ;;  %v18372_v1 = vcombine.low %v9007_v0, %v9011_v15  ;;  %v18374_v27 = vcombine.low %v9008_v7, %v9012_v60  ;;  %v9055_v0 = vld [vmem:[#allocation9 + $0x1fd0] sm:$0xff] }
 0x923   :  { %15171 = vmatpush1.bf16.msra.mxu0 %v18316_v50  ;;  %v18375_v50 = vcombine.high %v9008_v7, %v9012_v60  ;;  %v9059_v15 = vld [vmem:[#allocation9 + $0x1ff0] sm:$0xff]  ;;  %v18632_v7 = vadd.f32 %v19713_v48, %v9070_v36  ;;  %v9056_v60 = vld [vmem:[#allocation9 + $0x1fd8] sm:$0xff]  ;;  %v18865_v48 = vld [vmem:[#allocation12 + $0x40] sm:$0xff]  }
 0x924   :  { %15499 = vmatpush1.bf16.msra.mxu1 %v18318_v3  ;;  %15172 = vmatprep.subr.bf16.mxu0 %v18325_v51  ;;  %v9015_v3 = vld [vmem:[#allocation9 + $0x1e90] sm:$0xff]  ;;  %v18891_v36 = vld [vmem:[#allocation12 + $0x30] sm:$0xff]  }
 0x925   :  { %15500 = vmatprep.subr.bf16.mxu1 %v18327_v17  ;;  %v9019_v51 = vld [vmem:[#allocation9 + $0x1eb0] sm:$0xff]  ;;  %v9016_v17 = vld [vmem:[#allocation9 + $0x1e98] sm:$0xff] }
 0x926   :  { %v18381_v19 = vcombine.high %v9015_v3, %v9019_v51  ;;  %v18380_v21 = vcombine.low %v9015_v3, %v9019_v51  ;;  %v18382_v46 = vcombine.low %v9016_v17, %v9020_v34  ;;  %v15536_v3 = vmax.f32 %v18632_v7, 0.0 }
 0x927   :  { %15173 = vmatpush1.bf16.msra.mxu0 %v18324_v33  ;;  %v18383_v33 = vcombine.high %v9016_v17, %v9020_v34  ;;  %v15538_v51 = vmax.f32 %v18634_v31, 0.0  ;;  %v18420_v17 = vcombine.low %v9055_v0, %v9059_v15 }
 0x928   :  { %15501 = vmatpush1.bf16.msra.mxu1 %v18326_v20  ;;  %15174 = vmatprep.subr.bf16.mxu0 %v18333_v22  ;;  %v9023_v20 = vld [vmem:[#allocation9 + $0x1ed0] sm:$0xff] }
 0x929   :  { %15502 = vmatprep.subr.bf16.mxu1 %v18335_v9  ;;  %v9027_v22 = vld [vmem:[#allocation9 + $0x1ef0] sm:$0xff]  ;;  %v9024_v9 = vld [vmem:[#allocation9 + $0x1ed8] sm:$0xff]  ;;  %v15546_v57 = vmin.f32 %v15538_v51, 6.0 }
 0x92a   :  { %v18389_v28 = vcombine.high %v9023_v20, %v9027_v22  ;;  %v18388_v40 = vcombine.low %v9023_v20, %v9027_v22  ;;  %v18390_v26 = vcombine.low %v9024_v9, %v9028_v13  ;;  %v18869_v20 = vld [vmem:[#allocation12 + $0x48] sm:$0xff]   ;;  %v18907_v51 = vld [vmem:[#allocation12 + $0x110] sm:$0xff]  }
 0x92b   :  { %15175 = vmatpush1.bf16.msra.mxu0 %v18332_v44  ;;  %v18391_v44 = vcombine.high %v9024_v9, %v9028_v13  ;;  %v18870_v9 = vld [vmem:[#allocation12 + $0xc8] sm:$0xff]   ;;  %v15554_v13 = vpack.c.bf16 %v15546_v57, %v15546_v57  ;;  %v18913_v57 = vld [vmem:[#allocation12 + $0x160] sm:$0xff]  }
 0x92c   :  { %15503 = vmatpush1.bf16.msra.mxu1 %v18334_v16  ;;  %15176 = vmatprep.subr.bf16.mxu0 %v18341_v23  ;;  %v9031_v16 = vld [vmem:[#allocation9 + $0x1f10] sm:$0xff] }
 0x92d   :  { %15504 = vmatprep.subr.bf16.mxu1 %v18343_v6  ;;  %v9035_v23 = vld [vmem:[#allocation9 + $0x1f30] sm:$0xff]  ;;  %v9032_v6 = vld [vmem:[#allocation9 + $0x1f18] sm:$0xff] }
 0x92e   :  { %v18397_v38 = vcombine.high %v9031_v16, %v9035_v23  ;;  %v18396_v59 = vcombine.low %v9031_v16, %v9035_v23  ;;  %v18398_v5 = vcombine.low %v9032_v6, %v9036_v32  ;;  %v18875_v16 = vld [vmem:[#allocation12 + $0x10] sm:$0xff]  }
 0x92f   :  { %15177 = vmatpush1.bf16.msra.mxu0 %v18340_v43  ;;  %v18399_v43 = vcombine.high %v9032_v6, %v9036_v32  ;;  %v18876_v23 = vld [vmem:[#allocation12 + $0x90] sm:$0xff]   ;;  %v18877_v6 = vld [vmem:[#allocation12 + $0x58] sm:$0xff]  }
 0x930   :  { %15505 = vmatpush1.bf16.msra.mxu1 %v18342_v52  ;;  %15178 = vmatprep.subr.bf16.mxu0 %v18349_v11  ;;  %v9039_v52 = vld [vmem:[#allocation9 + $0x1f50] sm:$0xff]  ;;  %v18878_v32 = vld [vmem:[#allocation12 + $0xd8] sm:$0xff]  }
 0x931   :  { %15506 = vmatprep.subr.bf16.mxu1 %v18351_v55  ;;  %v9043_v11 = vld [vmem:[#allocation9 + $0x1f70] sm:$0xff]  ;;  %v9040_v55 = vld [vmem:[#allocation9 + $0x1f58] sm:$0xff] }
 0x933   :  { %15179 = vmatpush1.bf16.msra.mxu0 %v18348_v61  ;;  %v18405_v61 = vcombine.high %v9039_v52, %v9043_v11 }
 0x934   :  { %15507 = vmatpush1.bf16.msra.mxu1 %v18350_v12  ;;  %15180 = vmatprep.subr.bf16.mxu0 %v18357_v62  ;;  %v18407_v12 = vcombine.high %v9040_v55, %v9044_v58  ;;  %v9047_v62 = vld [vmem:[#allocation9 + $0x1f90] sm:$0xff] }
 0x935   :  { %15508 = vmatprep.subr.bf16.mxu1 %v18359_v10  ;;  %v9051_v10 = vld [vmem:[#allocation9 + $0x1fb0] sm:$0xff] }
 0x937   :  { %15181 = vmatpush1.bf16.msra.mxu0 %v18356_v4  ;;  %v18404_v4 = vcombine.low %v9039_v52, %v9043_v11  ;;  %v9066_v52 = vrot.slane %v19733_v14, %v19408_v29  ;;  %v18884_v11 = vld [vmem:[#allocation12 + $0xa0] sm:$0xff]   ;;  %v18890_v29 = vld [vmem:[#allocation12 + $0xf0] sm:$0xff]  }
 0x938   :  { %15509 = vmatpush1.bf16.msra.mxu1 %v18358_v8  ;;  %15182 = vmatprep.subr.bf16.mxu0 %v18365_v41  ;;  %v18406_v8 = vcombine.low %v9040_v55, %v9044_v58  ;;  %v18413_v41 = vcombine.high %v9047_v62, %v9051_v10  ;;  %v18885_v55 = vld [vmem:[#allocation12 + $0x68] sm:$0xff]   ;;  %v9074_v58 = vrot.slane %v19733_v14, %v19447_v42  ;;  %v18892_v42 = vld [vmem:[#allocation12 + $0xb0] sm:$0xff]  }
 0x939   :  { %15510 = vmatprep.subr.bf16.mxu1 %v18367_v63  ;;  %v18415_v63 = vcombine.high %v9048_v35, %v9052_v45  ;;  %v18893_v45 = vld [vmem:[#allocation12 + $0x78] sm:$0xff]  }
 0x93b   :  { %15183 = vmatpush1.bf16.msra.mxu0 %v18364_v24  ;;  %v9060_v24 = vld [vmem:[#allocation9 + $0x1ff8] sm:$0xff] }
 0x93c   :  { %15511 = vmatpush1.bf16.msra.mxu1 %v18366_v53  ;;  %15184 = vmatprep.subr.bf16.mxu0 %v18373_v49  ;;  %v18412_v53 = vcombine.low %v9047_v62, %v9051_v10  ;;  %v18421_v49 = vcombine.high %v9055_v0, %v9059_v15  ;;  %v18422_v34 = vcombine.low %v9056_v60, %v9060_v24  ;;  %v18889_v62 = vld [vmem:[#allocation12 + $0x70] sm:$0xff]   ;;  %v18898_v0 = vld [vmem:[#allocation12 + $0x1c0] sm:$0xff]  }
 0x93d   :  { %15512 = vmatprep.subr.bf16.mxu1 %v18375_v50  ;;  %v18423_v50 = vcombine.high %v9056_v60, %v9060_v24  ;;  %v18633_v10 = vadd.f32 %v19711_v54, %v9074_v58  ;;  %v18899_v15 = vld [vmem:[#allocation12 + $0x100] sm:$0xff]   ;;  %v18901_v24 = vld [vmem:[#allocation12 + $0x148] sm:$0xff]  }
 0x93e   :  { %v18900_v60 = vld [vmem:[#allocation12 + $0x180] sm:$0xff]  }
 0x93f   :  { %15185 = vmatpush1.bf16.msra.mxu0 %v18372_v1  ;;  %v18866_v1 = vld [vmem:[#allocation12 + $0xc0] sm:$0xff]   ;;  %v15537_v2 = vmax.f32 %v18633_v10, 0.0 }
 0x940   :  { %15513 = vmatpush1.bf16.msra.mxu1 %v18374_v27  ;;  %15186 = vmatprep.subr.bf16.mxu0 %v18381_v19  ;;  %v15544_v27 = vmin.f32 %v15536_v3, 6.0  ;;  %v18867_v19 = vld [vmem:[#allocation12] sm:$0xff]   ;;  %v18906_v3 = vld [vmem:[#allocation12 + $0x1d0] sm:$0xff]  }
 0x941   :  { %15514 = vmatprep.subr.bf16.mxu1 %v18383_v33  ;;  %v18868_v33 = vld [vmem:[#allocation12 + $0x80] sm:$0xff]   ;;  %v15545_v54 = vmin.f32 %v15537_v2, 6.0 }
 0x942   :  { %v15552_v22 = vpack.c.bf16 %v15544_v27, %v15544_v27  ;;  %v18912_v27 = vld [vmem:[#allocation12 + $0x198] sm:$0xff]  }
 0x943   :  { %15187 = vmatpush1.bf16.msra.mxu0 %v18380_v21  ;;  %v18871_v21 = vld [vmem:[#allocation12 + $0x8] sm:$0xff]   ;;  %v15553_v31 = vpack.c.bf16 %v15545_v54, %v15545_v54 }
 0x944   :  { %15515 = vmatpush1.bf16.msra.mxu1 %v18382_v46  ;;  %15188 = vmatprep.subr.bf16.mxu0 %v18389_v28  ;;  %v18872_v46 = vld [vmem:[#allocation12 + $0x88] sm:$0xff]   ;;  %v18873_v28 = vld [vmem:[#allocation12 + $0x50] sm:$0xff]  }
 0x945   :  { %15516 = vmatprep.subr.bf16.mxu1 %v18391_v44  ;;  %v18874_v44 = vld [vmem:[#allocation12 + $0xd0] sm:$0xff]  }
 0x946   :  { %v18930_v54 = vld [vmem:[#allocation15 + $0x8] sm:$0xff]  }
 0x947   :  { %15189 = vmatpush1.bf16.msra.mxu0 %v18388_v40  ;;  %v18880_v40 = vld [vmem:[#allocation12 + $0x98] sm:$0xff]  }
 0x948   :  { %15517 = vmatpush1.bf16.msra.mxu1 %v18390_v26  ;;  %15190 = vmatprep.subr.bf16.mxu0 %v18397_v38  ;;  %v18881_v26 = vld [vmem:[#allocation12 + $0x60] sm:$0xff]  }
 0x949   :  { %15518 = vmatprep.subr.bf16.mxu1 %v18399_v43  ;;  %v18882_v38 = vld [vmem:[#allocation12 + $0xe0] sm:$0xff]  }
 0x94a   :  { %v18883_v43 = vld [vmem:[#allocation12 + $0x20] sm:$0xff]  }
 0x94b   :  { %15191 = vmatpush1.bf16.msra.mxu0 %v18396_v59  ;;  %v18886_v59 = vld [vmem:[#allocation12 + $0xe8] sm:$0xff]  }
 0x94c   :  { %15519 = vmatpush1.bf16.msra.mxu1 %v18398_v5  ;;  %15192 = vmatprep.subr.bf16.mxu0 %v18405_v61  ;;  %v18887_v5 = vld [vmem:[#allocation12 + $0x28] sm:$0xff]   ;;  %v18631_v61 = vadd.f32 %v19709_v30, %v9066_v52  ;;  %v18895_v30 = vld [vmem:[#allocation12 + $0x38] sm:$0xff]   ;;  %v9094_v52 = vrot.slane %v19733_v14, %v19470_v37 }
 0x94d   :  { %15520 = vmatprep.subr.bf16.mxu1 %v18407_v12  ;;  %v18888_v12 = vld [vmem:[#allocation12 + $0xa8] sm:$0xff]  }
 0x94e   :  { %v15535_v35 = vmax.f32 %v18631_v61, 0.0 }
 0x94f   :  { %15193 = vmatpush1.bf16.msra.mxu0 %v18404_v4  ;;  %v18894_v4 = vld [vmem:[#allocation12 + $0xf8] sm:$0xff]  }
 0x950   :  { %15521 = vmatpush1.bf16.msra.mxu1 %v18406_v8  ;;  %15194 = vmatprep.subr.bf16.mxu0 %v18413_v41  ;;  %v15543_v8 = vmin.f32 %v15535_v35, 6.0  ;;  %v18896_v41 = vld [vmem:[#allocation12 + $0xb8] sm:$0xff]  }
 0x951   :  { %15522 = vmatprep.subr.bf16.mxu1 %v18415_v63  ;;  %v18897_v63 = vld [vmem:[#allocation12 + $0x140] sm:$0xff]  }
 0x952   :  { %v15551_v7 = vpack.c.bf16 %v15543_v8, %v15543_v8 }
 0x953   :  { %15195 = vmatpush1.bf16.msra.mxu0 %v18412_v53  ;;  %v18902_v53 = vld [vmem:[#allocation12 + $0x1c8] sm:$0xff]  }
 0x954   :  { %15523 = vmatpush1.bf16.msra.mxu1 %v18414_v39  ;;  %15196 = vmatprep.subr.bf16.mxu0 %v18421_v49  ;;  %v18903_v39 = vld [vmem:[#allocation12 + $0x108] sm:$0xff]  }
 0x955   :  { %15524 = vmatprep.subr.bf16.mxu1 %v18423_v50  ;;  %v18904_v49 = vld [vmem:[#allocation12 + $0x188] sm:$0xff]   ;;  %v18905_v50 = vld [vmem:[#allocation12 + $0x150] sm:$0xff]  }
 0x957   :  { %15197 = vmatpush1.bf16.msra.mxu0 %v18420_v17  ;;  %v18908_v17 = vld [vmem:[#allocation12 + $0x190] sm:$0xff]  }
 0x958   :  { %15525 = vmatpush1.bf16.msra.mxu1 %v18422_v34  ;;  %18498 = vmatprep.subr.bf16.mxu0 %v18865_v48  ;;  %v18909_v34 = vld [vmem:[#allocation12 + $0x158] sm:$0xff]  }
 0x959   :  { %18520 = vmatprep.subr.bf16.mxu1 %v18866_v1  ;;  %v18910_v48 = vld [vmem:[#allocation12 + $0x1d8] sm:$0xff]  }
 0x95a   :  { %15199 = vmatmul.mubr.bf16.vlgmr.msra.gmra.mrb[20].mxu0 %v19691_v47  ;;  %v18911_v1 = vld [vmem:[#allocation12 + $0x118] sm:$0xff]  }
 0x95b   :  { %15527 = vmatmul.mubr.bf16.vlgmr.msra.gmra.mrb[36].mxu1 %v19691_v47  ;;  %18499 = vmatpush3.bf16.msra.mxu0 %v18867_v19  ;;  %v18879_v47 = vld [vmem:[#allocation12 + $0x18] sm:$0xff]   ;;  %v18914_v19 = vld [vmem:[#allocation12 + $0x1e0] sm:$0xff]  }
 0x95c   :  { %16110 = vmatprep.mubr.bf16.mxu0 %v15552_v22  ;;  %18521 = vmatpush3.bf16.msra.mxu1 %v18868_v33  ;;  %v18915_v33 = vld [vmem:[#allocation12 + $0x120] sm:$0xff]   ;;  %v18917_v22 = vld [vmem:[#allocation12 + $0x168] sm:$0xff]  }
 0x95d   :  { %16150 = vmatprep.mubr.bf16.mxu1 %v15554_v13  ;;  %18500 = vmatprep.subr.bf16.mxu0 %v18869_v20  ;;  %v18916_v20 = vld [vmem:[#allocation12 + $0x1a0] sm:$0xff]   ;;  %v18919_v13 = vld [vmem:[#allocation12 + $0x128] sm:$0xff]  }
 0x95e   :  { %18522 = vmatprep.subr.bf16.mxu1 %v18870_v9  ;;  %v18918_v9 = vld [vmem:[#allocation12 + $0x1e8] sm:$0xff]  }
 0x95f   :  { %18501 = vmatpush3.bf16.msra.mxu0 %v18871_v21  ;;  %v18920_v21 = vld [vmem:[#allocation12 + $0x1a8] sm:$0xff]  }
 0x960   :  { %18523 = vmatpush3.bf16.msra.mxu1 %v18872_v46  ;;  %18502 = vmatprep.subr.bf16.mxu0 %v18873_v28  ;;  %v18921_v46 = vld [vmem:[#allocation12 + $0x170] sm:$0xff]  }
 0x961   :  { %18524 = vmatprep.subr.bf16.mxu1 %v18874_v44  ;;  %v18922_v28 = vld [vmem:[#allocation12 + $0x1f0] sm:$0xff]  }
 0x962   :  { %v18923_v44 = vld [vmem:[#allocation12 + $0x130] sm:$0xff]  }
 0x963   :  { %18503 = vmatpush3.bf16.msra.mxu0 %v18875_v16  ;;  %v18924_v16 = vld [vmem:[#allocation12 + $0x1b0] sm:$0xff]  }
 0x964   :  { %18525 = vmatpush3.bf16.msra.mxu1 %v18876_v23  ;;  %18504 = vmatprep.subr.bf16.mxu0 %v18877_v6  ;;  %v18925_v23 = vld [vmem:[#allocation12 + $0x178] sm:$0xff]  }
 0x965   :  { %18526 = vmatprep.subr.bf16.mxu1 %v18878_v32  ;;  %v18926_v6 = vld [vmem:[#allocation12 + $0x1f8] sm:$0xff]  }
 0x966   :  { %v18927_v32 = vld [vmem:[#allocation12 + $0x138] sm:$0xff]  }
 0x967   :  { %18505 = vmatpush3.bf16.msra.mxu0 %v18879_v47  ;;  %v18928_v47 = vld [vmem:[#allocation12 + $0x1b8] sm:$0xff]  }
 0x968   :  { %18527 = vmatpush3.bf16.msra.mxu1 %v18880_v40  ;;  %18506 = vmatprep.subr.bf16.mxu0 %v18881_v26  ;;  %v19188_v40 = vmov 0.0   ;;  %v9082_v26 = vrot.slane %v19733_v14, %v19467_v25 }
 0x969   :  { %18528 = vmatprep.subr.bf16.mxu1 %v18882_v38  ;;  %v9090_v38 = vrot.slane %v19733_v14, %v19487_v18 }
 0x96b   :  { %18507 = vmatpush3.bf16.msra.mxu0 %v18883_v43  ;;  %v9086_v43 = vrot.slane %v19733_v14, %v19450_v56 }
 0x96c   :  { %18529 = vmatpush3.bf16.msra.mxu1 %v18884_v11  ;;  %18508 = vmatprep.subr.bf16.mxu0 %v18885_v55 }
 0x96d   :  { %18530 = vmatprep.subr.bf16.mxu1 %v18886_v59 }
 0x96f   :  { %18509 = vmatpush3.bf16.msra.mxu0 %v18887_v5 }
 0x970   :  { %18531 = vmatpush3.bf16.msra.mxu1 %v18888_v12  ;;  %18510 = vmatprep.subr.bf16.mxu0 %v18889_v62 }
 0x971   :  { %18532 = vmatprep.subr.bf16.mxu1 %v18890_v29 }
 0x973   :  { %18511 = vmatpush3.bf16.msra.mxu0 %v18891_v36 }
 0x974   :  { %18533 = vmatpush3.bf16.msra.mxu1 %v18892_v42  ;;  %18512 = vmatprep.subr.bf16.mxu0 %v18893_v45 }
 0x975   :  { %18534 = vmatprep.subr.bf16.mxu1 %v18894_v4 }
 0x977   :  { %18513 = vmatpush3.bf16.msra.mxu0 %v18895_v30  ;;  %v18929_v30 = vld [vmem:[#allocation15] sm:$0xff]  }
 0x978   :  { %18535 = vmatpush3.bf16.msra.mxu1 %v18896_v41  ;;  %18542 = vmatprep.subr.bf16.mxu0 %v18897_v63 }
 0x979   :  { %18564 = vmatprep.subr.bf16.mxu1 %v18898_v0  ;;  %v18931_v0 = vld [vmem:[#allocation15 + $0x10] sm:$0xff]  }
 0x97a   :  { %16111 = vmatmul.mubr.bf16.vlgmr.msra.gmra.mrb[24].mxu0 %v15551_v7  ;;  %v18933_v7 = vld [vmem:[#allocation15 + $0x20] sm:$0xff]  }
 0x97b   :  { %16151 = vmatmul.mubr.bf16.vlgmr.msra.gmra.mrb[40].mxu1 %v15553_v31  ;;  %18543 = vmatpush3.bf16.msra.mxu0 %v18899_v15  ;;  %v18932_v15 = vld [vmem:[#allocation15 + $0x18] sm:$0xff]  }
 0x97c   :  { %18565 = vmatpush3.bf16.msra.mxu1 %v18900_v60  ;;  %18544 = vmatprep.subr.bf16.mxu0 %v18901_v24  ;;  %v18424_v31 = vld [vmem:[#allocation13] ss:$0 sm:$0xff] }
 0x97d   :  { %18566 = vmatprep.subr.bf16.mxu1 %v18902_v53 }
 0x97f   :  { %18545 = vmatpush3.bf16.msra.mxu0 %v18903_v39 }
 0x980   :  { %18567 = vmatpush3.bf16.msra.mxu1 %v18904_v49  ;;  %18546 = vmatprep.subr.bf16.mxu0 %v18905_v50 }
 0x981   :  { %18568 = vmatprep.subr.bf16.mxu1 %v18906_v3 }
 0x983   :  { %18547 = vmatpush3.bf16.msra.mxu0 %v18907_v51 }
 0x984   :  { %18569 = vmatpush3.bf16.msra.mxu1 %v18908_v17  ;;  %18548 = vmatprep.subr.bf16.mxu0 %v18909_v34 }
 0x985   :  { %18570 = vmatprep.subr.bf16.mxu1 %v18910_v48 }
 0x987   :  { %18549 = vmatpush3.bf16.msra.mxu0 %v18911_v1 }
 0x988   :  { %18571 = vmatpush3.bf16.msra.mxu1 %v18912_v27  ;;  %18550 = vmatprep.subr.bf16.mxu0 %v18913_v57  ;;  %v18934_v27 = vld [vmem:[#allocation15 + $0x28] sm:$0xff]   ;;  %v18935_v57 = vld [vmem:[#allocation15 + $0x30] sm:$0xff]  }
 0x989   :  { %18572 = vmatprep.subr.bf16.mxu1 %v18914_v19  ;;  %v18936_v19 = vld [vmem:[#allocation15 + $0x38] sm:$0xff]  }
 0x98b   :  { %18551 = vmatpush3.bf16.msra.mxu0 %v18915_v33 }
 0x98c   :  { %18573 = vmatpush3.bf16.msra.mxu1 %v18916_v20  ;;  %18552 = vmatprep.subr.bf16.mxu0 %v18917_v22 }
 0x98d   :  { %18574 = vmatprep.subr.bf16.mxu1 %v18918_v9 }
 0x98f   :  { %18553 = vmatpush3.bf16.msra.mxu0 %v18919_v13 }
 0x990   :  { %18575 = vmatpush3.bf16.msra.mxu1 %v18920_v21  ;;  %18554 = vmatprep.subr.bf16.mxu0 %v18921_v46 }
 0x991   :  { %18576 = vmatprep.subr.bf16.mxu1 %v18922_v28 }
 0x993   :  { %18555 = vmatpush3.bf16.msra.mxu0 %v18923_v44 }
 0x994   :  { %18577 = vmatpush3.bf16.msra.mxu1 %v18924_v16  ;;  %18556 = vmatprep.subr.bf16.mxu0 %v18925_v23 }
 0x995   :  { %18578 = vmatprep.subr.bf16.mxu1 %v18926_v6 }
 0x997   :  { %18557 = vmatpush3.bf16.msra.mxu0 %v18927_v32 }
 0x998   :  { %18579 = vmatpush3.bf16.msra.mxu1 %v18928_v47  ;;  %18595 = vmatprep.subr.bf16.mxu0 %v19188_v40 }
 0xa2d   :  { %v15200_v11 = vpop.f32.mrb[20].mxu0 }
 0xa2e   :  { %v18635_v55 = vadd.f32 %v15200_v11, %v9082_v26  ;;  %v15528_v58 = vpop.f32.mrb[36].mxu1  ;;  %v15202_v59 = vpop.f32.mrb[21].mxu0 }
 0xa2f   :  { %v18637_v5 = vadd.f32 %v15528_v58, %v9090_v38  ;;  %v18636_v61 = vadd.f32 %v15202_v59, %v9086_v43  ;;  %v15530_v12 = vpop.f32.mrb[37].mxu1  ;;  %v15204_v62 = vpop.f32.mrb[22].mxu0  ;;  %v18489_v38 = vld [vmem:[#allocation16] ss:$0 sm:$0xff] }
 0xa30   :  { %v15539_v10 = vmax.f32 %v18635_v55, 0.0  ;;  %v18638_v29 = vadd.f32 %v15530_v12, %v9094_v52  ;;  %v15532_v25 = vpop.f32.mrb[38].mxu1  ;;  %v15205_v36 = vpop.f32.mrb[23].mxu0 }
 0xa31   :  { %v15541_v35 = vmax.f32 %v18637_v5, 0.0  ;;  %v15540_v18 = vmax.f32 %v18636_v61, 0.0  ;;  %v15533_v42 = vpop.f32.mrb[39].mxu1 }
 0xa32   :  { %v15547_v45 = vmin.f32 %v15539_v10, 6.0  ;;  %v15542_v56 = vmax.f32 %v18638_v29, 0.0 }
 0xa33   :  { %v15549_v2 = vmin.f32 %v15541_v35, 6.0  ;;  %v15548_v4 = vmin.f32 %v15540_v18, 6.0 }
 0xa34   :  { %v15550_v37 = vmin.f32 %v15542_v56, 6.0  ;;  %v15555_v8 = vpack.c.bf16 %v15547_v45, %v15547_v45 }
 0xa35   :  { %v15556_v14 = vpack.c.bf16 %v15548_v4, %v15548_v4  ;;  %v15557_v63 = vpack.c.bf16 %v15549_v2, %v15549_v2 }
 0xa36   :  { %v15558_v41 = vpack.c.bf16 %v15550_v37, %v15550_v37 }
 0xa37   :  { %16190 = vmatprep.mubr.bf16.mxu0 %v15556_v14 }
 0xa38   :  { %16230 = vmatprep.mubr.bf16.mxu1 %v15558_v41  ;;  %16191 = vmatmul.mubr.bf16.vlgmr.msra.gmra.mrb[28].mxu0 %v15555_v8 }
 0xa39   :  { %16231 = vmatmul.mubr.bf16.vlgmr.msra.gmra.mrb[44].mxu1 %v15557_v63  ;;  %18596 = vmatpush3.bf16.msra.mxu0 %v18929_v30 }
 0xa3a   :  { %18597 = vmatprep.subr.bf16.mxu0 %v19188_v40  ;;  %18611 = vmatprep.mubr.msk.bf16.mxu0 %vm19189_vm1, %v19188_v40 }
 0xa3d   :  { %18598 = vmatpush3.bf16.msra.mxu0 %v18930_v54 }
 0xa3e   :  { %18599 = vmatprep.subr.bf16.mxu0 %v19188_v40 }
 0xa41   :  { %18600 = vmatpush3.bf16.msra.mxu0 %v18931_v0 }
 0xa42   :  { %18601 = vmatprep.subr.bf16.mxu0 %v19188_v40 }
 0xa45   :  { %18602 = vmatpush3.bf16.msra.mxu0 %v18932_v15 }
 0xa46   :  { %18603 = vmatprep.subr.bf16.mxu0 %v19188_v40 }
 0xa49   :  { %18604 = vmatpush3.bf16.msra.mxu0 %v18933_v7 }
 0xa4a   :  { %18605 = vmatprep.subr.bf16.mxu0 %v19188_v40 }
 0xa4d   :  { %v18514_v60 = vpop.f32.mrb[24].mxu0  ;;  %18606 = vmatpush3.bf16.msra.mxu0 %v18934_v27 }
 0xa4e   :  { %v18536_v24 = vpop.f32.mrb[40].mxu1  ;;  %v18515_v53 = vpop.f32.mrb[25].mxu0  ;;  %18607 = vmatprep.subr.bf16.mxu0 %v19188_v40 }
 0xa4f   :  { %v18516_v39 = vadd.f32 %v18515_v53, %v18514_v60  ;;  %v18537_v49 = vpop.f32.mrb[41].mxu1  ;;  %v18517_v50 = vpop.f32.mrb[26].mxu0 }
 0xa50   :  { %v18538_v3 = vadd.f32 %v18537_v49, %v18536_v24  ;;  %v18539_v51 = vpop.f32.mrb[42].mxu1  ;;  %v18518_v17 = vpop.f32.mrb[27].mxu0 }
 0xa51   :  { %v16113_v34 = vadd.f32 %v18516_v39, %v18424_v31  ;;  %v18540_v48 = vpop.f32.mrb[43].mxu1  ;;  %18608 = vmatpush3.bf16.msra.mxu0 %v18935_v57 }
 0xa52   :  { %18609 = vmatprep.subr.bf16.mxu0 %v19188_v40 }
 0xa53   :  { %v16153_v1 = vadd.f32 %v18538_v3, %v16113_v34 }
 0xa55   :  { %18610 = vmatpush3.bf16.msra.mxu0 %v18936_v19 }
 0xb0b   :  { %v18558_v33 = vpop.f32.mrb[28].mxu0 }
 0xb0c   :  { %v18580_v20 = vpop.f32.mrb[44].mxu1  ;;  %v18559_v22 = vpop.f32.mrb[29].mxu0 }
 0xb0d   :  { %v18560_v9 = vadd.f32 %v18559_v22, %v18558_v33  ;;  %v18581_v13 = vpop.f32.mrb[45].mxu1  ;;  %v18561_v21 = vpop.f32.mrb[30].mxu0 }
 0xb0e   :  { %v18582_v46 = vadd.f32 %v18581_v13, %v18580_v20  ;;  %v18583_v28 = vpop.f32.mrb[46].mxu1  ;;  %v18562_v44 = vpop.f32.mrb[31].mxu0 }
 0xb0f   :  { %v16193_v16 = vadd.f32 %v18560_v9, %v16153_v1  ;;  %v18584_v23 = vpop.f32.mrb[47].mxu1 }
 0xb11   :  { %v16233_v6 = vadd.f32 %v18582_v46, %v16193_v16 }
 0xb13   :  { %v16238_v32 = vmax.f32 %v16233_v6, 0.0 }
 0xb15   :  { %v16239_v47 = vmin.f32 %v16238_v32, 6.0 }
 0xb17   :  { %v16240_v26 = vpack.c.bf16 %v16239_v47, %v16239_v47 }
 0xb19   :  { %18612 = vmatmul.mubr.bf16.vlgmr.msra.gmra.mrb[32].mxu0 %v16240_v26 }
 0xbec   :  { %v16346_v43 = vpop.f32.mrb[32].mxu0 }
 0xbed   :  { %v16347_v40 = vadd.f32 %v18489_v38, %v16346_v43  ;;  %v18613_v52 = vpop.f32.mrb[33].mxu0 }
 0xbee   :  { %v16349_v11 = vpop.f32.mrb[34].mxu0 }
 0xbef   :  { %16353 = vst.msk [vmem:[%s19780_s11] sm:$0xff] %vm16352_vm2, %v16347_v40  ;;  %v18614_v55 = vpop.f32.mrb[35].mxu0 }
 0xbf0   :  { %16358 = vsyncpa [#allocation3], 1 }
 0xbf1   :  { %16359 = vsyncpa [#allocation5], 1 }
 0xbf2   :  { %16360 = vsyncpa [#allocation8], 1 }
 0xbf3   :  { %16361 = vsyncpa [#allocation11], 1 }
 0xbf4   :  { %16362 = vsyncpa [#allocation14], 1 }
 0xbf5   :  { %16363 = vsyncpa [#allocation17], 1 }

</bundles_post_ra>
